<compile_context>
chip_gen: v5e
topology: v5e:2x2
jax: 0.10.0
libtpu: 0.0.40
codegen_flags: <defaults>
</compile_context>

<pallas_src>
import functools

import jax
import jax.numpy as jnp
from jax.experimental import pallas as pl
from jax.experimental.pallas import tpu as pltpu


def _stable_ce_kernel(tgt_ref, logits_ref, loss_ref, denom_acc, st_acc):
    """One (row_block, c_block) tile of logits; accumulates over the class axis."""
    ri = pl.program_id(0)          # row-block index ("parallel")
    ci = pl.program_id(1)          # class-block index ("arbitrary" reduction)

    @pl.when(ci == 0)
    def _():
        denom_acc[...] = jnp.zeros_like(denom_acc)
        st_acc[...] = jnp.zeros_like(st_acc)

    x = logits_ref[...].astype(jnp.float32)               # (rb, cb)
    rb, cb = x.shape

    # StableMax numerator: s(x) = x + 1 for x >= 0, 1 / (1 - x) for x < 0
    s_x = jnp.where(x >= 0.0, x + 1.0, 1.0 / (1.0 - x))
    denom_acc[...] += jnp.sum(s_x, axis=-1, keepdims=True)

    # Target class indices for this row block (targets are fully resident in VMEM).
    row0 = pl.multiple_of(ri * rb, 8)
    tgt = tgt_ref[pl.ds(row0, rb), :]                      # (rb, 1) int32

    # Select s_x at the target column of this class tile (one-hot masked sum;
    # no dynamic gather on TPU).  No full-tile divide needed.
    col = ci * cb + jax.lax.broadcasted_iota(jnp.int32, x.shape, 1)
    st_acc[...] += jnp.sum(jnp.where(col == tgt, s_x, 0.0),
                           axis=-1, keepdims=True)

    @pl.when(ci == pl.num_programs(1) - 1)
    def _():
        p_t = st_acc[...] / denom_acc[...]                 # (rb, 1)
        # +1e-10 kept to match the original PyTorch module exactly.
        loss_ref[...] = -jnp.log(p_t + 1e-10)


def _choose_blocks(n, c, itemsize, target_bytes):
    """Pick MiB-scale (row_block, c_block) tiles for the logits."""
    # Class tile: full C if >= 8 rows fit in the target, else a /128 divisor of C.
    if c * itemsize * 8 <= target_bytes:
        c_block = c
    else:
        c_block = c  # fallback: no nice divisor -> take full rows of C
        start = min((c // 128) * 128,
                    (target_bytes // (8 * itemsize)) // 128 * 128)
        for cand in range(start, 0, -128):
            if c % cand == 0:
                c_block = cand
                break
    # Row tile: fill the byte budget, multiple of 8, prefer a divisor of N.
    rb = max(8, min(n, target_bytes // max(1, c_block * itemsize)))
    rb = max(8, (rb // 8) * 8)
    while rb > 8 and n % rb != 0:
        rb -= 8
    return rb, c_block


def stable_cross_entropy_loss(logits, targets, *, reduction="mean",
                              block_rows=None, block_cols=None,
                              target_block_bytes=4 * 1024 * 1024):
    """logits: (N, C) float, targets: (N,) int class indices.

    Matches StableCrossEntropyLoss(reduction=...) for hard targets.
    """
    # TODO(synk): soft-target branch (targets with same rank as logits) is not
    # wired into the kernel; only hard class-index targets are supported.
    n, c = logits.shape
    itemsize = jnp.dtype(logits.dtype).itemsize

    auto_rb, auto_cb = _choose_blocks(n, c, itemsize, target_block_bytes)
    if block_rows is None:
        block_rows = auto_rb
    if block_cols is None:
        block_cols = auto_cb
    block_rows = max(8, (int(block_rows) // 8) * 8)
    if c % block_cols != 0:
        block_cols = c

    tgt2d = targets.astype(jnp.int32).reshape(n, 1)

    # Pad rows so the row grid is exact; padded rows are dropped before reduction.
    pad = (-n) % block_rows
    if pad:
        logits = jnp.pad(logits, ((0, pad), (0, 0)))
        tgt2d = jnp.pad(tgt2d, ((0, pad), (0, 0)))
    n_pad = n + pad

    num_r = n_pad // block_rows
    num_c = c // block_cols

    # Explicit VMEM budget: double-buffered logits tile + resident targets +
    # small outputs/scratch.  Capped at 64 MiB so it is valid on v7x as well.
    vmem_needed = (2 * block_rows * block_cols * itemsize
                   + 2 * n_pad * 4
                   + 6 * block_rows * 4
                   + (1 << 20))
    vmem_limit = int(min(64 << 20, max(32 << 20, 2 * vmem_needed)))

    out = pl.pallas_call(
        _stable_ce_kernel,
        out_shape=jax.ShapeDtypeStruct((n_pad, 1), jnp.float32),
        grid_spec=pltpu.PrefetchScalarGridSpec(
            num_scalar_prefetch=0,
            grid=(num_r, num_c),
            in_specs=[
                # targets: one up-front DMA, fully resident across the grid
                pl.BlockSpec((n_pad, 1), lambda ri, ci: (0, 0)),
                # logits: MiB-scale (row, class) tiles
                pl.BlockSpec((block_rows, block_cols), lambda ri, ci: (ri, ci)),
            ],
            out_specs=pl.BlockSpec((block_rows, 1), lambda ri, ci: (ri, 0)),
            scratch_shapes=[
                pltpu.VMEM((block_rows, 1), jnp.float32),   # denom accumulator
                pltpu.VMEM((block_rows, 1), jnp.float32),   # target-score accumulator
            ],
        ),
        compiler_params=pltpu.CompilerParams(
            dimension_semantics=("parallel", "arbitrary"),
            vmem_limit_bytes=vmem_limit,
        ),
    )(tgt2d, logits)

    losses = out[:n, 0]
    if reduction == "mean":
        return jnp.mean(losses)
    if reduction == "sum":
        return jnp.sum(losses)
    return losses


def _reference(logits, targets, reduction="mean"):
    x = logits.astype(jnp.float32)
    s_x = jnp.where(x >= 0.0, x + 1.0, 1.0 / (1.0 - x))
    probs = s_x / jnp.sum(s_x, axis=-1, keepdims=True)
    p_t = jnp.take_along_axis(probs, targets[:, None].astype(jnp.int32), axis=1)[:, 0]
    loss = -jnp.log(p_t + 1e-10)
    if reduction == "mean":
        return jnp.mean(loss)
    if reduction == "sum":
        return jnp.sum(loss)
    return loss


if __name__ == "__main__":
    key = jax.random.PRNGKey(0)
    k1, k2 = jax.random.split(key)

    N, C = 256, 512
    logits = jax.random.normal(k1, (N, C), dtype=jnp.float32) * 3.0
    targets = jax.random.randint(k2, (N,), 0, C, dtype=jnp.int32)

    # 1) auto-tiled (single class tile, large row block), reduction='mean'
    loss = jax.block_until_ready(stable_cross_entropy_loss(logits, targets))
    ref = jax.block_until_ready(_reference(logits, targets, "mean"))
    assert jnp.allclose(loss, ref, rtol=1e-5, atol=1e-5), (loss, ref)

    # 2) forced small tiles: exercises the class-reduction axis and row padding
    loss_t = jax.block_until_ready(
        stable_cross_entropy_loss(logits, targets, block_rows=48, block_cols=128))
    assert jnp.allclose(loss_t, ref, rtol=1e-5, atol=1e-5), (loss_t, ref)

    # 3) reduction='sum' and 'none'
    loss_sum = jax.block_until_ready(
        stable_cross_entropy_loss(logits, targets, reduction="sum"))
    ref_sum = jax.block_until_ready(_reference(logits, targets, "sum"))
    assert jnp.allclose(loss_sum, ref_sum, rtol=1e-5, atol=1e-4), (loss_sum, ref_sum)

    loss_none = jax.block_until_ready(
        stable_cross_entropy_loss(logits, targets, reduction="none"))
    ref_none = jax.block_until_ready(_reference(logits, targets, "none"))
    assert jnp.allclose(loss_none, ref_none, rtol=1e-5, atol=1e-5)

    # 4) bf16 logits end-to-end (DMA half the bytes; in-kernel f32 math)
    logits_bf16 = logits.astype(jnp.bfloat16)
    loss_bf = jax.block_until_ready(stable_cross_entropy_loss(logits_bf16, targets))
    ref_bf = jax.block_until_ready(_reference(logits_bf16, targets, "mean"))
    assert jnp.allclose(loss_bf, ref_bf, rtol=1e-5, atol=1e-5), (loss_bf, ref_bf)

    print("KERNEL_OK")
</pallas_src>

<mosaic_0001>
module attributes {stable_mosaic.version = 11 : i64} {
  func.func @_stable_ce_kernel(%arg0: i32, %arg1: i32, %arg2: memref<256x1xi32, #tpu.memory_space<vmem>>, %arg3: memref<256x512xf32, #tpu.memory_space<vmem>>, %arg4: memref<256x1xf32, #tpu.memory_space<vmem>>, %arg5: memref<256x1xf32, #tpu.memory_space<vmem>>, %arg6: memref<256x1xf32, #tpu.memory_space<vmem>>) attributes {dimension_semantics = [#tpu.dimension_semantics<parallel>, #tpu.dimension_semantics<arbitrary>], iteration_bounds = array<i64: 1, 1>, scalar_prefetch = 0 : i64, scratch_operands = 2 : i64, tpu.core_type = #tpu.core_type<tc>, window_params = [{pipeline_mode = #tpu.pipeline_mode<synchronous>, transform_indices = @transform_0, window_bounds = array<i64: 256, 1>}, {transform_indices = @transform_1, window_bounds = array<i64: 256, 512>}, {transform_indices = @transform_2, window_bounds = array<i64: 256, 1>}]} {
    %c0_i32 = arith.constant 0 : i32
    %0 = arith.cmpi eq, %arg1, %c0_i32 : i32
    %1 = arith.extui %0 : i1 to i32
    %c0_i32_0 = arith.constant 0 : i32
    %2 = arith.cmpi ne, %1, %c0_i32_0 : i32
    scf.if %2 {
      %cst_19 = arith.constant 0.000000e+00 : f32
      %38 = vector.broadcast %cst_19 : f32 to vector<256x1xf32>
      %c0_20 = arith.constant 0 : index
      %c0_21 = arith.constant 0 : index
      %39 = vector.load %arg5[%c0_20, %c0_21] : memref<256x1xf32, #tpu.memory_space<vmem>>, vector<256x1xf32>
      tpu.vector_store %arg5[%c0_20, %c0_21], %38 {strides = array<i32>} : memref<256x1xf32, #tpu.memory_space<vmem>>, vector<256x1xf32>,
      %cst_22 = arith.constant 0.000000e+00 : f32
      %40 = vector.broadcast %cst_22 : f32 to vector<256x1xf32>
      %c0_23 = arith.constant 0 : index
      %c0_24 = arith.constant 0 : index
      %41 = vector.load %arg6[%c0_23, %c0_24] : memref<256x1xf32, #tpu.memory_space<vmem>>, vector<256x1xf32>
      tpu.vector_store %arg6[%c0_23, %c0_24], %40 {strides = array<i32>} : memref<256x1xf32, #tpu.memory_space<vmem>>, vector<256x1xf32>,
    } else {
    }
    %c0 = arith.constant 0 : index
    %c0_1 = arith.constant 0 : index
    %3 = vector.load %arg3[%c0, %c0_1] : memref<256x512xf32, #tpu.memory_space<vmem>>, vector<256x512xf32>
    %cst = arith.constant 0.000000e+00 : f32
    %4 = vector.broadcast %cst : f32 to vector<256x512xf32>
    %5 = arith.cmpf oge, %3, %4 : vector<256x512xf32>
    %cst_2 = arith.constant 1.000000e+00 : f32
    %6 = vector.broadcast %cst_2 : f32 to vector<256x512xf32>
    %7 = arith.addf %3, %6 : vector<256x512xf32>
    %cst_3 = arith.constant 1.000000e+00 : f32
    %8 = vector.broadcast %cst_3 : f32 to vector<256x512xf32>
    %9 = arith.subf %8, %3 : vector<256x512xf32>
    %cst_4 = arith.constant 1.000000e+00 : f32
    %10 = vector.broadcast %cst_4 : f32 to vector<256x512xf32>
    %11 = arith.divf %10, %9 : vector<256x512xf32>
    %12 = arith.select %5, %7, %11 : vector<256x512xi1>, vector<256x512xf32>
    %c0_5 = arith.constant 0 : index
    %c0_6 = arith.constant 0 : index
    %13 = vector.load %arg5[%c0_5, %c0_6] : memref<256x1xf32, #tpu.memory_space<vmem>>, vector<256x1xf32>
    %cst_7 = arith.constant dense<0.000000e+00> : vector<256xf32>
    %14 = vector.multi_reduction <add>, %12, %cst_7 [1] : vector<256x512xf32> to vector<256xf32>
    %15 = vector.shape_cast %14 : vector<256xf32> to vector<256x1xf32>
    %16 = arith.addf %13, %15 : vector<256x1xf32>
    %c0_8 = arith.constant 0 : index
    %c0_9 = arith.constant 0 : index
    %17 = vector.load %arg5[%c0_8, %c0_9] : memref<256x1xf32, #tpu.memory_space<vmem>>, vector<256x1xf32>
    tpu.vector_store %arg5[%c0_8, %c0_9], %16 {strides = array<i32>} : memref<256x1xf32, #tpu.memory_space<vmem>>, vector<256x1xf32>,
    %c256_i32 = arith.constant 256 : i32
    %18 = arith.muli %arg0, %c256_i32 : i32
    %19 = tpu.assume_multiple %18, 8 : i32
    %20 = arith.index_cast %19 : i32 to index
    %c0_10 = arith.constant 0 : index
    %21 = vector.load %arg2[%20, %c0_10] : memref<256x1xi32, #tpu.memory_space<vmem>>, vector<256x1xi32>
    %c512_i32 = arith.constant 512 : i32
    %22 = arith.muli %arg1, %c512_i32 : i32
    %23 = tpu.iota {dimensions = array<i32: 1>} : vector<256x512xi32>
    %24 = vector.broadcast %22 : i32 to vector<256x512xi32>
    %25 = arith.addi %24, %23 : vector<256x512xi32>
    %c0_11 = arith.constant 0 : index
    %c0_12 = arith.constant 0 : index
    %26 = vector.load %arg6[%c0_11, %c0_12] : memref<256x1xf32, #tpu.memory_space<vmem>>, vector<256x1xf32>
    %27 = vector.broadcast %21 : vector<256x1xi32> to vector<256x512xi32>
    %28 = arith.cmpi eq, %25, %27 : vector<256x512xi32>
    %cst_13 = arith.constant 0.000000e+00 : f32
    %29 = vector.broadcast %cst_13 : f32 to vector<256x512xf32>
    %30 = arith.select %28, %12, %29 : vector<256x512xi1>, vector<256x512xf32>
    %cst_14 = arith.constant dense<0.000000e+00> : vector<256xf32>
    %31 = vector.multi_reduction <add>, %30, %cst_14 [1] : vector<256x512xf32> to vector<256xf32>
    %32 = vector.shape_cast %31 : vector<256xf32> to vector<256x1xf32>
    %33 = arith.addf %26, %32 : vector<256x1xf32>
    %c0_15 = arith.constant 0 : index
    %c0_16 = arith.constant 0 : index
    %34 = vector.load %arg6[%c0_15, %c0_16] : memref<256x1xf32, #tpu.memory_space<vmem>>, vector<256x1xf32>
    tpu.vector_store %arg6[%c0_15, %c0_16], %33 {strides = array<i32>} : memref<256x1xf32, #tpu.memory_space<vmem>>, vector<256x1xf32>,
    %c0_i32_17 = arith.constant 0 : i32
    %35 = arith.cmpi eq, %arg1, %c0_i32_17 : i32
    %36 = arith.extui %35 : i1 to i32
    %c0_i32_18 = arith.constant 0 : i32
    %37 = arith.cmpi ne, %36, %c0_i32_18 : i32
    scf.if %37 {
      %c0_19 = arith.constant 0 : index
      %c0_20 = arith.constant 0 : index
      %38 = vector.load %arg6[%c0_19, %c0_20] : memref<256x1xf32, #tpu.memory_space<vmem>>, vector<256x1xf32>
      %c0_21 = arith.constant 0 : index
      %c0_22 = arith.constant 0 : index
      %39 = vector.load %arg5[%c0_21, %c0_22] : memref<256x1xf32, #tpu.memory_space<vmem>>, vector<256x1xf32>
      %40 = arith.divf %38, %39 : vector<256x1xf32>
      %cst_23 = arith.constant 1.000000e-10 : f32
      %41 = vector.broadcast %cst_23 : f32 to vector<256x1xf32>
      %42 = arith.addf %40, %41 : vector<256x1xf32>
      %43 = math.log %42 : vector<256x1xf32>
      %cst_24 = arith.constant 0.000000e+00 : f32
      %44 = vector.broadcast %cst_24 : f32 to vector<256x1xf32>
      %45 = arith.subf %44, %43 : vector<256x1xf32>
      %c0_25 = arith.constant 0 : index
      %c0_26 = arith.constant 0 : index
      %46 = vector.load %arg4[%c0_25, %c0_26] : memref<256x1xf32, #tpu.memory_space<vmem>>, vector<256x1xf32>
      tpu.vector_store %arg4[%c0_25, %c0_26], %45 {strides = array<i32>} : memref<256x1xf32, #tpu.memory_space<vmem>>, vector<256x1xf32>,
    } else {
    }
    return
  }
  func.func @transform_0(%arg0: i32, %arg1: i32) -> (i32, i32) {
    %c0_i32 = arith.constant 0 : i32
    %c0_i32_0 = arith.constant 0 : i32
    %c0_i32_1 = arith.constant 0 : i32
    return %c0_i32, %c0_i32_0 : i32, i32
  }
  func.func @transform_1(%arg0: i32, %arg1: i32) -> (i32, i32) {
    %c0_i32 = arith.constant 0 : i32
    return %arg0, %arg1 : i32, i32
  }
  func.func @transform_2(%arg0: i32, %arg1: i32) -> (i32, i32) {
    %c0_i32 = arith.constant 0 : i32
    %c0_i32_0 = arith.constant 0 : i32
    return %arg0, %c0_i32 : i32, i32
  }
}

</mosaic_0001>

<bundles_post_ra>
// kernel: tpu_custom_call.1
= control target key start
LH: loop header
LB: loop body
LE: loop exit
PB: predicated region body
PF: predicated region fallthrough
CT: control target
= control target key end

     0   :  { %7 = vsyncpa [#allocation5], 0  ;;  %s4711_s12 = smov [#allocation4]   ;;  %s4712_s14 = smov 512   ;;  %s10484_s0 = inlined_call_operand.vmem [shape: s32[256,1], index: 0, kind: input, shape index: {}]   ;;  %s10485_s1 = inlined_call_operand.hbm [shape: f32[256,512], index: 1, kind: input, shape index: {}]   ;;  %s10486_s2 = inlined_call_operand.vmem [shape: f32[256,1], index: 2, kind: output, shape index: {}]  }
   0x1   :  { %s14_s11 = sshll.u32 %s10485_s1, 4  ;;  %s16_s13 = sshll.u32 %s4711_s12, 4  ;;  %s15_s11 = int_to_ptr.hbm [resolvable:$true] %s14_s11  ;;  %s17_s13 = int_to_ptr.vmem [resolvable:$true] %s16_s13 }
   0x2   :  { %s4713_s15 = smov 32  }
   0x3   :  { %22 = dma.hbm_to_vmem [thread:$0]  %s15_s11, 16384, %s17_s13, [#allocation5], %s4712_s14, %s4712_s14, %s4713_s15  }
   0x4   :  { %4709 = dma.done.wait [#allocation5], 16384  }
   0x5   :  { %4710 = vsyncadd [#allocation5], 4294950912  ;;  %v4734_v0 = vld [vmem:[#allocation4 + $0x80] sm:$0xff]  ;;  %v4736_v1 = vld [vmem:[#allocation4 + $0x88] sm:$0xff] }
   0x6   :  { %v4738_v2 = vld [vmem:[#allocation4 + $0x90] sm:$0xff]  ;;  %v4740_v3 = vld [vmem:[#allocation4 + $0x98] sm:$0xff]  ;;  %v496_v4 = vsub.f32 1.0, %v4734_v0  ;;  %v4744_v5 = vsub.f32 1.0, %v4736_v1  ;;  %v4757_v12 = vadd.f32 1.0, %v4734_v0  ;;  %v4760_v13 = vadd.f32 1.0, %v4736_v1 }
   0x7   :  { %v4747_v6 = vsub.f32 1.0, %v4738_v2  ;;  %v4750_v7 = vsub.f32 1.0, %v4740_v3  ;;  %v4763_v14 = vadd.f32 1.0, %v4738_v2  ;;  %v4767_v16 = vadd.f32 1.0, %v4740_v3  ;;  %v4772_v19 = vld [vmem:[#allocation4 + $0x40] sm:$0xff]  ;;  %v4780_v22 = vld [vmem:[#allocation4 + $0x48] sm:$0xff] }
   0x8   :  { %4286 = vrcp.f32 %v496_v4  ;;  %v857_v8 = vand.u32 2147483647, %v496_v4  ;;  %v859_v9 = vand.u32 2147483648, %v496_v4  ;;  %v872_v10 = vand.u32 2147483647, %v4744_v5  ;;  %v4794_v30 = vld [vmem:[#allocation4 + $0x50] sm:$0xff] }
   0x9   :  { %4288 = vrcp.f32 %v4744_v5  ;;  %v874_v11 = vand.u32 2147483648, %v4744_v5  ;;  %v887_v15 = vand.u32 2147483647, %v4747_v6  ;;  %v889_v17 = vand.u32 2147483648, %v4747_v6  ;;  %v4809_v40 = vld [vmem:[#allocation4 + $0x58] sm:$0xff] }
   0xa   :  { %4290 = vrcp.f32 %v4747_v6  ;;  %v904_v18 = vand.u32 2147483648, %v4750_v7  ;;  %vm853_vm0 = vweird.f32 %v496_v4  ;;  %vm4774_vm1 = vcmp.eq.f32.partialorder %v857_v8, 8.507059e+37 }
   0xb   :  { %4292 = vrcp.f32 %v4750_v7  ;;  %vm868_vm2 = vweird.f32 %v4744_v5  ;;  %v902_v21 = vand.u32 2147483647, %v4750_v7  ;;  %vm240_vm3 = vcmp.ge.f32.partialorder %v4734_v0, 0.0 }
   0xc   :  { %v860_v24 = vor.u32 1.1754944e-38, %v859_v9  ;;  %vm4783_vm4 = vcmp.eq.f32.partialorder %v872_v10, 8.507059e+37  ;;  %v875_v26 = vor.u32 1.1754944e-38, %v874_v11  ;;  %vm883_vm5 = vweird.f32 %v4747_v6 }
   0xd   :  { %vm241_vm6 = vcmp.ge.f32.partialorder %v4736_v1, 0.0  ;;  %vm4789_vm7 = vcmp.eq.f32.partialorder %v887_v15, 8.507059e+37  ;;  %vm898_vm8 = vweird.f32 %v4750_v7  ;;  %v4797_v31 = vsub.f32 1.0, %v4772_v19 }
   0xe   :  { %v4287_v23 = vpop.eup %4286  ;;  %v890_v34 = vor.u32 1.1754944e-38, %v889_v17  ;;  %v905_v35 = vor.u32 1.1754944e-38, %v904_v18  ;;  %v4802_v36 = vsub.f32 1.0, %v4780_v22  ;;  %vm4805_vm11 = vcmp.eq.f32.partialorder %v902_v21, 8.507059e+37 }
   0xf   :  { %v4289_v27 = vpop.eup %4288  ;;  %v849_v28 = vmul.f32 %v4287_v23, %v496_v4  ;;  %vm854_vm10 = vweird.f32 %v4287_v23  ;;  %4294 = vrcp.f32 %v4797_v31  ;;  %v4814_v43 = vsub.f32 1.0, %v4794_v30 }
  0x10   :  { %v4291_v32 = vpop.eup %4290  ;;  %v864_v33 = vmul.f32 %v4289_v27, %v4744_v5  ;;  %vm869_vm13 = vweird.f32 %v4289_v27  ;;  %v739_v44 = vand.u32 2147483648, %v4797_v31  ;;  %vm4820_vm15 = vmor %vm853_vm0, %vm854_vm10  ;;  %v4825_v50 = vsub.f32 1.0, %v4809_v40 }
  0x11   :  { %v850_v37 = vsub.f32 1.0, %v849_v28  ;;  %v879_v38 = vmul.f32 %v4291_v32, %v4747_v6  ;;  %v4293_v41 = vpop.eup %4292  ;;  %vm884_vm14 = vweird.f32 %v4291_v32  ;;  %vm733_vm12 = vweird.f32 %v4797_v31  ;;  %vm4831_vm9 = vmor %vm868_vm2, %vm869_vm13 }
  0x12   :  { %v865_v42 = vsub.f32 1.0, %v864_v33  ;;  %v894_v47 = vmul.f32 %v4293_v41, %v4750_v7  ;;  %4296 = vrcp.f32 %v4802_v36  ;;  %vm899_vm0 = vweird.f32 %v4293_v41  ;;  %vm4837_vm10 = vmor %vm883_vm5, %vm884_vm14 }
  0x13   :  { %v851_v45 = vmul.f32 %v4287_v23, %v850_v37  ;;  %v880_v46 = vsub.f32 1.0, %v879_v38  ;;  %v737_v57 = vand.u32 2147483647, %v4797_v31  ;;  %v740_v58 = vor.u32 1.1754944e-38, %v739_v44  ;;  %vm4852_vm5 = vmor %vm898_vm8, %vm899_vm0 }
  0x14   :  { %v866_v49 = vmul.f32 %v4289_v27, %v865_v42  ;;  %v895_v54 = vsub.f32 1.0, %v894_v47  ;;  %4298 = vrcp.f32 %v4814_v43  ;;  %vm748_vm2 = vweird.f32 %v4802_v36 }
  0x15   :  { %v852_v51 = vadd.f32 %v4287_v23, %v851_v45  ;;  %v881_v53 = vmul.f32 %v4291_v32, %v880_v46  ;;  %v4295_v59 = vpop.eup %4294  ;;  %v752_v8 = vand.u32 2147483647, %v4802_v36  ;;  %v754_v25 = vand.u32 2147483648, %v4802_v36 }
  0x16   :  { %v867_v55 = vadd.f32 %v4289_v27, %v866_v49  ;;  %v896_v62 = vmul.f32 %v4293_v41, %v895_v54  ;;  %v729_v6 = vmul.f32 %v4295_v59, %v4797_v31  ;;  %vm763_vm8 = vweird.f32 %v4814_v43  ;;  %v4927_v49 = vld [vmem:[#allocation4] sm:$0xff]  ;;  %v4935_v54 = vld [vmem:[#allocation4 + $0x10] sm:$0xff] }
  0x17   :  { %v856_v60 = vsel %vm4820_vm15, %v4287_v23, %v852_v51  ;;  %v882_v61 = vadd.f32 %v4291_v32, %v881_v53  ;;  %4300 = vrcp.f32 %v4825_v50  ;;  %v767_v37 = vand.u32 2147483647, %v4814_v43  ;;  %v4929_v51 = vld [vmem:[#allocation4 + $0x8] sm:$0xff] }
  0x18   :  { %v861_v63 = vsel %vm4774_vm1, %v860_v24, %v856_v60  ;;  %v871_v4 = vsel %vm4831_vm9, %v4289_v27, %v867_v55  ;;  %v897_v11 = vadd.f32 %v4293_v41, %v896_v62  ;;  %v4297_v7 = vpop.eup %4296  ;;  %v730_v20 = vsub.f32 1.0, %v729_v6 }
  0x19   :  { %v876_v9 = vsel %vm4783_vm4, %v875_v26, %v871_v4  ;;  %v886_v10 = vsel %vm4837_vm10, %v4291_v32, %v882_v61  ;;  %v4865_v15 = vsel %vm240_vm3, %v4757_v12, %v861_v63  ;;  %vm734_vm1 = vweird.f32 %v4295_v59 }
  0x1a   :  { %v891_v17 = vsel %vm4789_vm7, %v890_v34, %v886_v10  ;;  %v4872_v18 = vsel %vm241_vm6, %v4760_v13, %v876_v9  ;;  %v901_v21 = vsel %vm4852_vm5, %v4293_v41, %v897_v11  ;;  %vm10652_vm4 = vcmp.ge.f32.partialorder %v4738_v2, 0.0  ;;  %v4299_v24 = vpop.eup %4298  ;;  %vm4895_vm7 = vmor %vm733_vm12, %vm734_vm1 }
  0x1b   :  { %v4879_v0 = vsel %vm10652_vm4, %v4763_v14, %v891_v17  ;;  %v2708_v12 = vadd.f32 %v4872_v18, %v4865_v15  ;;  %v744_v23 = vmul.f32 %v4297_v7, %v4802_v36  ;;  %v906_v1 = vsel %vm4805_vm11, %v905_v35, %v901_v21 }
  0x1c   :  { %v731_v13 = vmul.f32 %v4295_v59, %v730_v20  ;;  %vm749_vm3 = vweird.f32 %v4297_v7  ;;  %vm10653_vm6 = vcmp.ge.f32.partialorder %v4740_v3, 0.0  ;;  %v759_v28 = vmul.f32 %v4299_v24, %v4814_v43 }
  0x1d   :  { %v4890_v26 = vsel %vm10653_vm6, %v4767_v16, %v906_v1  ;;  %v2709_v2 = vadd.f32 %v2708_v12, %v4879_v0  ;;  %v745_v27 = vsub.f32 1.0, %v744_v23  ;;  %vm764_vm9 = vweird.f32 %v4299_v24  ;;  %vm4909_vm12 = vmor %vm748_vm2, %vm749_vm3  ;;  %v4301_v52 = vpop.eup %4300 }
  0x1e   :  { %v732_v29 = vadd.f32 %v4295_v59, %v731_v13  ;;  %v769_v32 = vand.u32 2147483648, %v4814_v43  ;;  %v760_v33 = vsub.f32 1.0, %v759_v28  ;;  %vm738_vm11 = vcmp.eq.f32.partialorder %v737_v57, 8.507059e+37  ;;  %vm4921_vm0 = vmor %vm763_vm8, %vm764_vm9 }
  0x1f   :  { %v2710_v3 = vadd.f32 %v2709_v2, %v4890_v26  ;;  %v746_v16 = vmul.f32 %v4297_v7, %v745_v27  ;;  %v755_v35 = vor.u32 1.1754944e-38, %v754_v25  ;;  %vm753_vm13 = vcmp.eq.f32.partialorder %v752_v8, 8.507059e+37 }
  0x20   :  { %v736_v31 = vsel %vm4895_vm7, %v4295_v59, %v732_v29  ;;  %v761_v39 = vmul.f32 %v4299_v24, %v760_v33  ;;  %vm232_vm14 = vcmp.ge.f32.partialorder %v4772_v19, 0.0  ;;  %vm233_vm15 = vcmp.ge.f32.partialorder %v4780_v22, 0.0 }
  0x21   :  { %2711 = vadd.xlane.f32.xlu2 %v2710_v3  ;;  %v747_v38 = vadd.f32 %v4297_v7, %v746_v16  ;;  %v360_v41 = vadd.f32 1.0, %v4772_v19  ;;  %v361_v42 = vadd.f32 1.0, %v4780_v22  ;;  %v741_v44 = vsel %vm738_vm11, %v740_v58, %v736_v31  ;;  %v4947_v58 = vld [vmem:[#allocation4 + $0x18] sm:$0xff] }
  0x22   :  { %v762_v46 = vadd.f32 %v4299_v24, %v761_v39  ;;  %v770_v47 = vor.u32 1.1754944e-38, %v769_v32  ;;  %vm768_vm10 = vcmp.eq.f32.partialorder %v767_v37, 8.507059e+37  ;;  %vm234_vm2 = vcmp.ge.f32.partialorder %v4794_v30, 0.0 }
  0x23   :  { %v751_v45 = vsel %vm4909_vm12, %v4297_v7, %v747_v38  ;;  %v362_v43 = vadd.f32 1.0, %v4794_v30  ;;  %v774_v55 = vmul.f32 %v4301_v52, %v4825_v50  ;;  %vm778_vm5 = vweird.f32 %v4825_v50  ;;  %v5023_v38 = vld [vmem:[#allocation4 + $0xa0] sm:$0xff] }
  0x24   :  { %v756_v48 = vsel %vm753_vm13, %v755_v35, %v751_v45  ;;  %v766_v53 = vsel %vm4921_vm0, %v4299_v24, %v762_v46  ;;  %v4941_v56 = vsel %vm232_vm14, %v360_v41, %v741_v44  ;;  %v784_v60 = vand.u32 2147483648, %v4825_v50 }
  0x25   :  { %v4945_v57 = vsel %vm233_vm15, %v361_v42, %v756_v48  ;;  %v771_v59 = vsel %vm768_vm10, %v770_v47, %v766_v53  ;;  %v4951_v61 = vsub.f32 1.0, %v4927_v49  ;;  %v4954_v62 = vsub.f32 1.0, %v4929_v51 }
  0x26   :  { %v775_v63 = vsub.f32 1.0, %v774_v55  ;;  %vm779_vm1 = vweird.f32 %v4301_v52  ;;  %v782_v19 = vand.u32 2147483647, %v4825_v50  ;;  %v4958_v4 = vsub.f32 1.0, %v4935_v54 }
  0x27   :  { %v2698_v22 = vadd.f32 %v4945_v57, %v4941_v56  ;;  %v4963_v5 = vsub.f32 1.0, %v4947_v58  ;;  %4302 = vrcp.f32 %v4951_v61  ;;  %vm235_vm4 = vcmp.ge.f32.partialorder %v4809_v40, 0.0  ;;  %vm4975_vm3 = vmor %vm778_vm5, %vm779_vm1 }
  0x28   :  { %v776_v6 = vmul.f32 %v4301_v52, %v775_v63  ;;  %v4969_v8 = vsel %vm234_vm2, %v362_v43, %v771_v59  ;;  %4304 = vrcp.f32 %v4954_v62  ;;  %v363_v9 = vadd.f32 1.0, %v4809_v40  ;;  %v5036_v43 = vld [vmem:[#allocation4 + $0xa8] sm:$0xff] }
  0x29   :  { %v785_v11 = vor.u32 1.1754944e-38, %v784_v60  ;;  %v617_v7 = vand.u32 2147483647, %v4951_v61  ;;  %4306 = vrcp.f32 %v4958_v4  ;;  %vm783_vm6 = vcmp.eq.f32.partialorder %v782_v19, 8.507059e+37 }
  0x2a   :  { %v777_v17 = vadd.f32 %v4301_v52, %v776_v6  ;;  %v619_v30 = vand.u32 2147483648, %v4951_v61  ;;  %v632_v20 = vand.u32 2147483647, %v4954_v62  ;;  %v2699_v21 = vadd.f32 %v2698_v22, %v4969_v8 }
  0x2b   :  { %v4985_v12 = vadd.f32 1.0, %v4927_v49  ;;  %v4988_v50 = vadd.f32 1.0, %v4929_v51  ;;  %4308 = vrcp.f32 %v4963_v5  ;;  %v4994_v24 = vadd.f32 1.0, %v4935_v54 }
  0x2c   :  { %v781_v23 = vsel %vm4975_vm3, %v4301_v52, %v777_v17  ;;  %v4997_v1 = vadd.f32 1.0, %v4947_v58  ;;  %v634_v13 = vand.u32 2147483648, %v4954_v62  ;;  %vm224_vm7 = vcmp.ge.f32.partialorder %v4927_v49, 0.0 }
  0x2d   :  { %v4303_v25 = vpop.eup %4302  ;;  %v786_v2 = vsel %vm783_vm6, %v785_v11, %v781_v23  ;;  %vm613_vm8 = vweird.f32 %v4951_v61  ;;  %vm5002_vm9 = vcmp.eq.f32.partialorder %v617_v7, 8.507059e+37  ;;  %vm628_vm11 = vweird.f32 %v4954_v62  ;;  %v5057_v11 = vld [vmem:[#allocation4 + $0xb0] sm:$0xff] }
  0x2e   :  { %v4305_v27 = vpop.eup %4304  ;;  %v5009_v28 = vsel %vm235_vm4, %v363_v9, %v786_v2  ;;  %vm225_vm12 = vcmp.ge.f32.partialorder %v4929_v51, 0.0  ;;  %v609_v29 = vmul.f32 %v4303_v25, %v4951_v61  ;;  %v620_v32 = vor.u32 1.1754944e-38, %v619_v30  ;;  %v5085_v2 = vld [vmem:[#allocation4 + $0xb8] sm:$0xff] }
  0x2f   :  { %vm5013_vm13 = vcmp.eq.f32.partialorder %v632_v20, 8.507059e+37  ;;  %v4307_v16 = vpop.eup %4306  ;;  %v2700_v33 = vadd.f32 %v2699_v21, %v5009_v28  ;;  %vm226_vm14 = vcmp.ge.f32.partialorder %v4935_v54, 0.0  ;;  %v624_v31 = vmul.f32 %v4305_v27, %v4954_v62 }
  0x30   :  { %vm643_vm15 = vweird.f32 %v4958_v4  ;;  %v647_v40 = vand.u32 2147483647, %v4958_v4  ;;  %v610_v34 = vsub.f32 1.0, %v609_v29  ;;  %vm614_vm0 = vweird.f32 %v4303_v25 }
  0x31   :  { %v635_v35 = vor.u32 1.1754944e-38, %v634_v13  ;;  %v639_v37 = vmul.f32 %v4307_v16, %v4958_v4  ;;  %v4309_v39 = vpop.eup %4308  ;;  %2701 = vadd.xlane.f32.xlu1 %v2700_v33  ;;  %v625_v41 = vsub.f32 1.0, %v624_v31  ;;  %vm629_vm10 = vweird.f32 %v4305_v27  ;;  %vm5030_vm1 = vmor %vm613_vm8, %vm614_vm0 }
  0x32   :  { %v649_v42 = vand.u32 2147483648, %v4958_v4  ;;  %vm658_vm2 = vweird.f32 %v4963_v5  ;;  %v611_v36 = vmul.f32 %v4303_v25, %v610_v34  ;;  %vm644_vm5 = vweird.f32 %v4307_v16  ;;  %vm5041_vm4 = vmor %vm628_vm11, %vm629_vm10 }
  0x33   :  { %v640_v44 = vsub.f32 1.0, %v639_v37  ;;  %v654_v45 = vmul.f32 %v4309_v39, %v4963_v5  ;;  %v626_v47 = vmul.f32 %v4305_v27, %v625_v41  ;;  %v662_v48 = vand.u32 2147483647, %v4963_v5  ;;  %vm5047_vm6 = vmor %vm643_vm15, %vm644_vm5 }
  0x34   :  { %v664_v52 = vand.u32 2147483648, %v4963_v5  ;;  %v500_v53 = vsub.f32 1.0, %v5023_v38  ;;  %v612_v55 = vadd.f32 %v4303_v25, %v611_v36  ;;  %vm659_vm3 = vweird.f32 %v4309_v39 }
  0x35   :  { %v641_v60 = vmul.f32 %v4307_v16, %v640_v44  ;;  %v655_v61 = vsub.f32 1.0, %v654_v45  ;;  %v627_v63 = vadd.f32 %v4305_v27, %v626_v47  ;;  %vm5051_vm8 = vcmp.eq.f32.partialorder %v647_v40, 8.507059e+37  ;;  %vm5068_vm11 = vmor %vm658_vm2, %vm659_vm3 }
  0x36   :  { %v650_v6 = vor.u32 1.1754944e-38, %v649_v42  ;;  %4310 = vrcp.f32 %v500_v53  ;;  %v616_v62 = vsel %vm5030_vm1, %v4303_v25, %v612_v55  ;;  %v5060_v7 = vsub.f32 1.0, %v5036_v43 }
  0x37   :  { %v642_v9 = vadd.f32 %v4307_v16, %v641_v60  ;;  %v656_v10 = vmul.f32 %v4309_v39, %v655_v61  ;;  %v621_v4 = vsel %vm5002_vm9, %v620_v32, %v616_v62  ;;  %v631_v17 = vsel %vm5041_vm4, %v4305_v27, %v627_v63 }
  0x38   :  { %vm5072_vm15 = vcmp.eq.f32.partialorder %v662_v48, 8.507059e+37  ;;  %v665_v21 = vor.u32 1.1754944e-38, %v664_v52  ;;  %v636_v23 = vsel %vm5013_vm13, %v635_v35, %v631_v17  ;;  %v5083_v5 = vsel %vm224_vm7, %v4985_v12, %v621_v4  ;;  %v5144_v52 = vld [vmem:[#allocation4 + $0x60] sm:$0xff] }
  0x39   :  { %v646_v13 = vsel %vm5047_vm6, %v4307_v16, %v642_v9  ;;  %v657_v25 = vadd.f32 %v4309_v39, %v656_v10  ;;  %vm227_vm9 = vcmp.ge.f32.partialorder %v4947_v58, 0.0  ;;  %v5093_v27 = vsel %vm225_vm12, %v4988_v50, %v636_v23  ;;  %v5157_v9 = vld [vmem:[#allocation4 + $0x70] sm:$0xff] }
  0x3a   :  { %v651_v14 = vsel %vm5051_vm8, %v650_v6, %v646_v13  ;;  %v5096_v29 = vsub.f32 1.0, %v5057_v11  ;;  %v2688_v58 = vadd.f32 %v5093_v27, %v5083_v5  ;;  %4312 = vrcp.f32 %v5060_v7 }
  0x3b   :  { %v661_v49 = vsel %vm5068_vm11, %v4309_v39, %v657_v25  ;;  %v5103_v12 = vsel %vm226_vm14, %v4994_v24, %v651_v14  ;;  %v5111_v50 = vsub.f32 1.0, %v5085_v2  ;;  %vm913_vm7 = vweird.f32 %v500_v53 }
  0x3c   :  { %v4311_v32 = vpop.eup %4310  ;;  %v666_v51 = vsel %vm5072_vm15, %v665_v21, %v661_v49  ;;  %v2689_v16 = vadd.f32 %v2688_v58, %v5103_v12  ;;  %v917_v24 = vand.u32 2147483647, %v500_v53  ;;  %v919_v33 = vand.u32 2147483648, %v500_v53 }
  0x3d   :  { %v5114_v3 = vsel %vm227_vm9, %v4997_v1, %v666_v51  ;;  %v909_v54 = vmul.f32 %v4311_v32, %v500_v53  ;;  %4314 = vrcp.f32 %v5096_v29  ;;  %vm914_vm12 = vweird.f32 %v4311_v32  ;;  %v5146_v53 = vld [vmem:[#allocation4 + $0x68] sm:$0xff] }
  0x3e   :  { %v2690_v31 = vadd.f32 %v2689_v16, %v5114_v3  ;;  %v932_v34 = vand.u32 2147483647, %v5060_v7  ;;  %v934_v35 = vand.u32 2147483648, %v5060_v7  ;;  %4316 = vrcp.f32 %v5111_v50  ;;  %vm5130_vm0 = vmor %vm913_vm7, %vm914_vm12 }
  0x3f   :  { %v910_v40 = vsub.f32 1.0, %v909_v54  ;;  %vm244_vm13 = vcmp.ge.f32.partialorder %v5023_v38, 0.0  ;;  %vm245_vm14 = vcmp.ge.f32.partialorder %v5036_v43, 0.0  ;;  %v372_v37 = vadd.f32 1.0, %v5023_v38 }
  0x40   :  { %v4313_v1 = vpop.eup %4312  ;;  %2691 = vadd.xlane.f32.xlu0 %v2690_v31  ;;  %v373_v41 = vadd.f32 1.0, %v5036_v43  ;;  %v5127_v42 = vadd.f32 1.0, %v5057_v11  ;;  %vm5134_vm10 = vcmp.eq.f32.partialorder %v917_v24, 8.507059e+37  ;;  %v920_v47 = vor.u32 1.1754944e-38, %v919_v33  ;;  %v5196_v31 = vld [vmem:[#allocation4 + $0x78] sm:$0xff] }
  0x41   :  { %v911_v39 = vmul.f32 %v4311_v32, %v910_v40  ;;  %v924_v45 = vmul.f32 %v4313_v1, %v5060_v7  ;;  %vm928_vm2 = vweird.f32 %v5060_v7  ;;  %vm5140_vm5 = vcmp.eq.f32.partialorder %v932_v34, 8.507059e+37 }
  0x42   :  { %vm246_vm1 = vcmp.ge.f32.partialorder %v5057_v11, 0.0  ;;  %vm929_vm4 = vweird.f32 %v4313_v1  ;;  %v935_v60 = vor.u32 1.1754944e-38, %v934_v35  ;;  %vm943_vm3 = vweird.f32 %v5096_v29 }
  0x43   :  { %v912_v46 = vadd.f32 %v4311_v32, %v911_v39  ;;  %v4315_v55 = vpop.eup %4314  ;;  %v925_v59 = vsub.f32 1.0, %v924_v45  ;;  %v947_v19 = vand.u32 2147483647, %v5096_v29  ;;  %v949_v22 = vand.u32 2147483648, %v5096_v29  ;;  %vm5170_vm11 = vmor %vm928_vm2, %vm929_vm4 }
  0x44   :  { %v939_v63 = vmul.f32 %v4315_v55, %v5096_v29  ;;  %v4317_v6 = vpop.eup %4316  ;;  %vm247_vm6 = vcmp.ge.f32.partialorder %v5085_v2, 0.0  ;;  %vm958_vm8 = vweird.f32 %v5111_v50  ;;  %v5160_v10 = vsub.f32 1.0, %v5144_v52 }
  0x45   :  { %v916_v61 = vsel %vm5130_vm0, %v4311_v32, %v912_v46  ;;  %v926_v62 = vmul.f32 %v4313_v1, %v925_v59  ;;  %v5163_v4 = vsub.f32 1.0, %v5146_v53  ;;  %vm944_vm15 = vweird.f32 %v4315_v55 }
  0x46   :  { %v921_v17 = vsel %vm5134_vm10, %v920_v47, %v916_v61  ;;  %v940_v20 = vsub.f32 1.0, %v939_v63  ;;  %v954_v21 = vmul.f32 %v4317_v6, %v5111_v50  ;;  %v962_v13 = vand.u32 2147483647, %v5111_v50  ;;  %vm5185_vm7 = vmor %vm943_vm3, %vm944_vm15 }
  0x47   :  { %v927_v23 = vadd.f32 %v4313_v1, %v926_v62  ;;  %v964_v25 = vand.u32 2147483648, %v5111_v50  ;;  %4318 = vrcp.f32 %v5160_v10  ;;  %vm959_vm9 = vweird.f32 %v4317_v6 }
  0x48   :  { %v941_v14 = vmul.f32 %v4315_v55, %v940_v20  ;;  %v955_v49 = vsub.f32 1.0, %v954_v21  ;;  %v5179_v7 = vsub.f32 1.0, %v5157_v9  ;;  %v950_v51 = vor.u32 1.1754944e-38, %v949_v22  ;;  %vm5201_vm0 = vmor %vm958_vm8, %vm959_vm9 }
  0x49   :  { %v931_v58 = vsel %vm5170_vm11, %v4313_v1, %v927_v23  ;;  %v5191_v16 = vsel %vm244_vm13, %v372_v37, %v921_v17  ;;  %4320 = vrcp.f32 %v5163_v4  ;;  %vm948_vm12 = vcmp.eq.f32.partialorder %v947_v19, 8.507059e+37 }
  0x4a   :  { %v936_v54 = vsel %vm5140_vm5, %v935_v60, %v931_v58  ;;  %v942_v24 = vadd.f32 %v4315_v55, %v941_v14  ;;  %v956_v33 = vmul.f32 %v4317_v6, %v955_v49  ;;  %v375_v29 = vadd.f32 1.0, %v5085_v2 }
  0x4b   :  { %vm5205_vm13 = vcmp.eq.f32.partialorder %v962_v13, 8.507059e+37  ;;  %v965_v34 = vor.u32 1.1754944e-38, %v964_v25  ;;  %v5211_v35 = vsel %vm245_vm14, %v373_v41, %v936_v54  ;;  %4322 = vrcp.f32 %v5179_v7 }
  0x4c   :  { %v946_v1 = vsel %vm5185_vm7, %v4315_v55, %v942_v24  ;;  %v957_v37 = vadd.f32 %v4317_v6, %v956_v33  ;;  %v2713_v50 = vadd.f32 %v5211_v35, %v5191_v16  ;;  %vm236_vm10 = vcmp.ge.f32.partialorder %v5144_v52, 0.0  ;;  %v5273_v33 = vld [vmem:[#allocation4 + $0x20] sm:$0xff] }
  0x4d   :  { %v4319_v39 = vpop.eup %4318  ;;  %v951_v36 = vsel %vm948_vm12, %v950_v51, %v946_v1  ;;  %v364_v44 = vadd.f32 1.0, %v5144_v52  ;;  %v5221_v45 = vsub.f32 1.0, %v5196_v31  ;;  %vm793_vm14 = vweird.f32 %v5160_v10 }
  0x4e   :  { %v961_v43 = vsel %vm5201_vm0, %v4317_v6, %v957_v37  ;;  %v5229_v41 = vsel %vm246_vm1, %v5127_v42, %v951_v36  ;;  %v789_v46 = vmul.f32 %v4319_v39, %v5160_v10  ;;  %v797_v47 = vand.u32 2147483647, %v5160_v10  ;;  %v5290_v36 = vld [vmem:[#allocation4 + $0x30] sm:$0xff] }
  0x4f   :  { %v4321_v48 = vpop.eup %4320  ;;  %v966_v55 = vsel %vm5205_vm13, %v965_v34, %v961_v43  ;;  %v2714_v59 = vadd.f32 %v2713_v50, %v5229_v41  ;;  %vm237_vm2 = vcmp.ge.f32.partialorder %v5146_v53, 0.0  ;;  %v799_v60 = vand.u32 2147483648, %v5160_v10 }
  0x50   :  { %vm808_vm5 = vweird.f32 %v5163_v4  ;;  %v5241_v11 = vsel %vm247_vm6, %v375_v29, %v966_v55  ;;  %v790_v42 = vsub.f32 1.0, %v789_v46  ;;  %vm794_vm1 = vweird.f32 %v4319_v39 }
  0x51   :  { %v804_v61 = vmul.f32 %v4321_v48, %v5163_v4  ;;  %v2715_v63 = vadd.f32 %v2714_v59, %v5241_v11  ;;  %v812_v19 = vand.u32 2147483647, %v5163_v4  ;;  %v814_v22 = vand.u32 2147483648, %v5163_v4  ;;  %v4323_v6 = vpop.eup %4322  ;;  %vm5253_vm6 = vmor %vm793_vm14, %vm794_vm1  ;;  %v5275_v4 = vld [vmem:[#allocation4 + $0x28] sm:$0xff] }
  0x52   :  { %4324 = vrcp.f32 %v5221_v45  ;;  %vm238_vm4 = vcmp.ge.f32.partialorder %v5157_v9, 0.0  ;;  %v791_v62 = vmul.f32 %v4319_v39, %v790_v42  ;;  %vm809_vm3 = vweird.f32 %v4321_v48 }
  0x53   :  { %v805_v17 = vsub.f32 1.0, %v804_v61  ;;  %v827_v2 = vand.u32 2147483647, %v5179_v7  ;;  %2716 = vadd.xlane.f32.xlu2 %v2715_v63  ;;  %v365_v30 = vadd.f32 1.0, %v5146_v53  ;;  %v800_v21 = vor.u32 1.1754944e-38, %v799_v60  ;;  %vm5262_vm11 = vmor %vm808_vm5, %vm809_vm3 }
  0x54   :  { %v819_v23 = vmul.f32 %v4323_v6, %v5179_v7  ;;  %v829_v13 = vand.u32 2147483648, %v5179_v7  ;;  %v366_v25 = vadd.f32 1.0, %v5157_v9  ;;  %v792_v14 = vadd.f32 %v4319_v39, %v791_v62 }
  0x55   :  { %vm798_vm8 = vcmp.eq.f32.partialorder %v797_v47, 8.507059e+37  ;;  %v806_v49 = vmul.f32 %v4321_v48, %v805_v17  ;;  %v815_v10 = vor.u32 1.1754944e-38, %v814_v22  ;;  %vm823_vm15 = vweird.f32 %v5179_v7  ;;  %v5292_v47 = vld [vmem:[#allocation4 + $0x38] sm:$0xff] }
  0x56   :  { %v820_v32 = vsub.f32 1.0, %v819_v23  ;;  %vm824_vm9 = vweird.f32 %v4323_v6  ;;  %v796_v51 = vsel %vm5253_vm6, %v4319_v39, %v792_v14  ;;  %vm813_vm7 = vcmp.eq.f32.partialorder %v812_v19, 8.507059e+37 }
  0x57   :  { %v807_v54 = vadd.f32 %v4321_v48, %v806_v49  ;;  %vm5269_vm12 = vcmp.eq.f32.partialorder %v827_v2, 8.507059e+37  ;;  %v801_v40 = vsel %vm798_vm8, %v800_v21, %v796_v51  ;;  %v830_v34 = vor.u32 1.1754944e-38, %v829_v13  ;;  %vm5280_vm13 = vmor %vm823_vm15, %vm824_vm9 }
  0x58   :  { %v4325_v29 = vpop.eup %4324  ;;  %v821_v38 = vmul.f32 %v4323_v6, %v820_v32  ;;  %vm838_vm0 = vweird.f32 %v5221_v45  ;;  %v844_v50 = vand.u32 2147483648, %v5221_v45  ;;  %v5288_v39 = vsel %vm236_vm10, %v364_v44, %v801_v40 }
  0x59   :  { %v811_v7 = vsel %vm5262_vm11, %v4321_v48, %v807_v54  ;;  %v834_v37 = vmul.f32 %v4325_v29, %v5221_v45  ;;  %v484_v48 = vsub.f32 1.0, %v5273_v33  ;;  %v5296_v55 = vsub.f32 1.0, %v5275_v4 }
  0x5a   :  { %v816_v43 = vsel %vm813_vm7, %v815_v10, %v811_v7  ;;  %v822_v46 = vadd.f32 %v4323_v6, %v821_v38  ;;  %vm839_vm14 = vweird.f32 %v4325_v29  ;;  %v842_v60 = vand.u32 2147483647, %v5221_v45 }
  0x5b   :  { %v835_v59 = vsub.f32 1.0, %v834_v37  ;;  %v5301_v52 = vsel %vm237_vm2, %v365_v30, %v816_v43  ;;  %v5308_v61 = vsub.f32 1.0, %v5290_v36  ;;  %4326 = vrcp.f32 %v484_v48  ;;  %vm5317_vm10 = vmor %vm838_vm0, %vm839_vm14 }
  0x5c   :  { %v826_v44 = vsel %vm5280_vm13, %v4323_v6, %v822_v46  ;;  %v2703_v42 = vadd.f32 %v5301_v52, %v5288_v39  ;;  %v5313_v22 = vsub.f32 1.0, %v5292_v47  ;;  %v845_v6 = vor.u32 1.1754944e-38, %v844_v50 }
  0x5d   :  { %v831_v63 = vsel %vm5269_vm12, %v830_v34, %v826_v44  ;;  %v836_v19 = vmul.f32 %v4325_v29, %v835_v59  ;;  %4328 = vrcp.f32 %v5296_v55  ;;  %vm239_vm2 = vcmp.ge.f32.partialorder %v5196_v31, 0.0  ;;  %v5369_v44 = vld [vmem:[#allocation4 + $0x100] sm:$0xff] }
  0x5e   :  { %v5323_v62 = vsel %vm238_vm4, %v366_v25, %v831_v63  ;;  %v367_v17 = vadd.f32 1.0, %v5196_v31  ;;  %vm843_vm5 = vcmp.eq.f32.partialorder %v842_v60, 8.507059e+37  ;;  %v677_v45 = vand.u32 2147483647, %v484_v48 }
  0x5f   :  { %v837_v2 = vadd.f32 %v4325_v29, %v836_v19  ;;  %v2704_v30 = vadd.f32 %v2703_v42, %v5323_v62  ;;  %v679_v20 = vand.u32 2147483648, %v484_v48  ;;  %4330 = vrcp.f32 %v5308_v61 }
  0x60   :  { %v5333_v9 = vadd.f32 1.0, %v5273_v33  ;;  %v692_v23 = vand.u32 2147483647, %v5296_v55  ;;  %4332 = vrcp.f32 %v5313_v22  ;;  %vm228_vm1 = vcmp.ge.f32.partialorder %v5273_v33, 0.0 }
  0x61   :  { %v841_v21 = vsel %vm5317_vm10, %v4325_v29, %v837_v2  ;;  %v4327_v13 = vpop.eup %4326  ;;  %v5339_v14 = vadd.f32 1.0, %v5275_v4  ;;  %v5342_v49 = vadd.f32 1.0, %v5290_v36  ;;  %v694_v58 = vand.u32 2147483648, %v5296_v55 }
  0x62   :  { %v846_v25 = vsel %vm843_vm5, %v845_v6, %v841_v21  ;;  %v5350_v32 = vadd.f32 1.0, %v5292_v47  ;;  %v669_v51 = vmul.f32 %v4327_v13, %v484_v48  ;;  %vm673_vm4 = vweird.f32 %v484_v48  ;;  %v5381_v6 = vld [vmem:[#allocation4 + $0x108] sm:$0xff] }
  0x63   :  { %v5347_v10 = vsel %vm239_vm2, %v367_v17, %v846_v25  ;;  %v4329_v54 = vpop.eup %4328  ;;  %vm229_vm3 = vcmp.ge.f32.partialorder %v5275_v4, 0.0  ;;  %vm5354_vm6 = vcmp.eq.f32.partialorder %v677_v45, 8.507059e+37  ;;  %v680_v40 = vor.u32 1.1754944e-38, %v679_v20 }
  0x64   :  { %10702 = vst [vmem:[#allocation7_spill] sm:$0xff] %v5347_v10  ;;  %v2705_v24 = vadd.f32 %v2704_v30, %v5347_v10  ;;  %vm688_vm8 = vweird.f32 %v5296_v55  ;;  %v670_v31 = vsub.f32 1.0, %v669_v51  ;;  %vm674_vm11 = vweird.f32 %v4327_v13  ;;  %v5396_v51 = vld [vmem:[#allocation4 + $0x110] sm:$0xff] }
  0x65   :  { %v684_v38 = vmul.f32 %v4329_v54, %v5296_v55  ;;  %vm5360_vm15 = vcmp.eq.f32.partialorder %v692_v23, 8.507059e+37  ;;  %v4331_v7 = vpop.eup %4330  ;;  %vm230_vm9 = vcmp.ge.f32.partialorder %v5290_v36, 0.0  ;;  %v695_v1 = vor.u32 1.1754944e-38, %v694_v58  ;;  %vm5373_vm0 = vmor %vm673_vm4, %vm674_vm11 }
  0x66   :  { %2706 = vadd.xlane.f32.xlu1 %v2705_v24  ;;  %vm703_vm7 = vweird.f32 %v5308_v61  ;;  %v707_v37 = vand.u32 2147483647, %v5308_v61  ;;  %v709_v50 = vand.u32 2147483648, %v5308_v61  ;;  %v4333_v43 = vpop.eup %4332  ;;  %v671_v46 = vmul.f32 %v4327_v13, %v670_v31 }
  0x67   :  { %v685_v59 = vsub.f32 1.0, %v684_v38  ;;  %vm689_vm12 = vweird.f32 %v4329_v54  ;;  %v699_v60 = vmul.f32 %v4331_v7, %v5308_v61  ;;  %v714_v63 = vmul.f32 %v4333_v43, %v5313_v22 }
  0x68   :  { %vm718_vm13 = vweird.f32 %v5313_v22  ;;  %v722_v19 = vand.u32 2147483647, %v5313_v22  ;;  %v724_v53 = vand.u32 2147483648, %v5313_v22  ;;  %v672_v17 = vadd.f32 %v4327_v13, %v671_v46  ;;  %vm5385_vm10 = vmor %vm688_vm8, %vm689_vm12 }
  0x69   :  { %v686_v2 = vmul.f32 %v4329_v54, %v685_v59  ;;  %v700_v30 = vsub.f32 1.0, %v699_v60  ;;  %vm704_vm14 = vweird.f32 %v4331_v7  ;;  %vm5389_vm2 = vcmp.eq.f32.partialorder %v707_v37, 8.507059e+37  ;;  %v5424_v60 = vld [vmem:[#allocation4 + $0x118] sm:$0xff] }
  0x6a   :  { %v715_v20 = vsub.f32 1.0, %v714_v63  ;;  %vm719_vm5 = vweird.f32 %v4333_v43  ;;  %v512_v21 = vsub.f32 1.0, %v5369_v44  ;;  %v676_v23 = vsel %vm5373_vm0, %v4327_v13, %v672_v17  ;;  %vm5405_vm4 = vmor %vm703_vm7, %vm704_vm14 }
  0x6b   :  { %v687_v25 = vadd.f32 %v4329_v54, %v686_v2  ;;  %v701_v58 = vmul.f32 %v4331_v7, %v700_v30  ;;  %v5399_v55 = vsub.f32 1.0, %v5381_v6  ;;  %v681_v24 = vsel %vm5354_vm6, %v680_v40, %v676_v23  ;;  %vm5413_vm8 = vmor %vm718_vm13, %vm719_vm5 }
  0x6c   :  { %v710_v38 = vor.u32 1.1754944e-38, %v709_v50  ;;  %v716_v37 = vmul.f32 %v4333_v43, %v715_v20  ;;  %4334 = vrcp.f32 %v512_v21  ;;  %v725_v29 = vor.u32 1.1754944e-38, %v724_v53 }
  0x6d   :  { %v691_v13 = vsel %vm5385_vm10, %v4329_v54, %v687_v25  ;;  %v702_v46 = vadd.f32 %v4331_v7, %v701_v58  ;;  %v5420_v61 = vsel %vm228_vm1, %v5333_v9, %v681_v24  ;;  %vm723_vm6 = vcmp.eq.f32.partialorder %v722_v19, 8.507059e+37 }
  0x6e   :  { %v696_v40 = vsel %vm5360_vm15, %v695_v1, %v691_v13  ;;  %v717_v50 = vadd.f32 %v4333_v43, %v716_v37  ;;  %v5427_v54 = vsub.f32 1.0, %v5396_v51  ;;  %vm231_vm11 = vcmp.ge.f32.partialorder %v5292_v47, 0.0 }
  0x6f   :  { %v706_v22 = vsel %vm5405_vm4, %v4331_v7, %v702_v46  ;;  %v5435_v33 = vsel %vm229_vm3, %v5339_v14, %v696_v40  ;;  %4336 = vrcp.f32 %v5399_v55  ;;  %v5450_v4 = vsub.f32 1.0, %v5424_v60  ;;  %v5482_v46 = vld [vmem:[#allocation4 + $0xe0] sm:$0xff] }
  0x70   :  { %v711_v9 = vsel %vm5389_vm2, %v710_v38, %v706_v22  ;;  %v721_v34 = vsel %vm5413_vm8, %v4333_v43, %v717_v50  ;;  %v2693_v1 = vadd.f32 %v5435_v33, %v5420_v61  ;;  %4338 = vrcp.f32 %v5427_v54 }
  0x71   :  { %v726_v47 = vsel %vm723_vm6, %v725_v29, %v721_v34  ;;  %v5447_v7 = vsel %vm230_vm9, %v5342_v49, %v711_v9  ;;  %v1097_v19 = vand.u32 2147483647, %v512_v21  ;;  %v1099_v53 = vand.u32 2147483648, %v512_v21  ;;  %v5489_v9 = vld [vmem:[#allocation4 + $0xe8] sm:$0xff] }
  0x72   :  { %v4335_v14 = vpop.eup %4334  ;;  %v5453_v42 = vsel %vm231_vm11, %v5350_v32, %v726_v47  ;;  %v2694_v63 = vadd.f32 %v2693_v1, %v5447_v7  ;;  %vm256_vm1 = vcmp.ge.f32.partialorder %v5369_v44, 0.0  ;;  %vm1093_vm3 = vweird.f32 %v512_v21 }
  0x73   :  { %v1089_v43 = vmul.f32 %v4335_v14, %v512_v21  ;;  %v1112_v36 = vand.u32 2147483647, %v5399_v55  ;;  %vm257_vm15 = vcmp.ge.f32.partialorder %v5381_v6, 0.0  ;;  %vm1094_vm9 = vweird.f32 %v4335_v14 }
  0x74   :  { %v2695_v17 = vadd.f32 %v2694_v63, %v5453_v42  ;;  %v1114_v32 = vand.u32 2147483648, %v5399_v55  ;;  %4340 = vrcp.f32 %v5450_v4  ;;  %v384_v30 = vadd.f32 1.0, %v5369_v44  ;;  %vm5473_vm0 = vmor %vm1093_vm3, %vm1094_vm9 }
  0x75   :  { %v4337_v49 = vpop.eup %4336  ;;  %v1090_v2 = vsub.f32 1.0, %v1089_v43  ;;  %v385_v48 = vadd.f32 1.0, %v5381_v6  ;;  %v386_v45 = vadd.f32 1.0, %v5396_v51  ;;  %vm5467_vm7 = vcmp.eq.f32.partialorder %v1097_v19, 8.507059e+37 }
  0x76   :  { %2696 = vadd.xlane.f32.xlu0 %v2695_v17  ;;  %v1104_v20 = vmul.f32 %v4337_v49, %v5399_v55  ;;  %v1100_v58 = vor.u32 1.1754944e-38, %v1099_v53  ;;  %vm1108_vm12 = vweird.f32 %v5399_v55  ;;  %v4339_v24 = vpop.eup %4338  ;;  %vm1109_vm13 = vweird.f32 %v4337_v49 }
  0x77   :  { %v1091_v23 = vmul.f32 %v4335_v14, %v1090_v2  ;;  %vm5477_vm14 = vcmp.eq.f32.partialorder %v1112_v36, 8.507059e+37  ;;  %v1129_v13 = vand.u32 2147483648, %v5427_v54  ;;  %v1115_v29 = vor.u32 1.1754944e-38, %v1114_v32  ;;  %vm5496_vm5 = vmor %vm1108_vm12, %vm1109_vm13 }
  0x78   :  { %v1105_v38 = vsub.f32 1.0, %v1104_v20  ;;  %v1119_v40 = vmul.f32 %v4339_v24, %v5427_v54  ;;  %vm1123_vm10 = vweird.f32 %v5427_v54  ;;  %v1127_v50 = vand.u32 2147483647, %v5427_v54 }
  0x79   :  { %v1092_v59 = vadd.f32 %v4335_v14, %v1091_v23  ;;  %vm1138_vm2 = vweird.f32 %v5450_v4  ;;  %v1142_v22 = vand.u32 2147483647, %v5450_v4  ;;  %vm1124_vm4 = vweird.f32 %v4339_v24 }
  0x7a   :  { %v1106_v21 = vmul.f32 %v4337_v49, %v1105_v38  ;;  %v4341_v34 = vpop.eup %4340  ;;  %v1120_v63 = vsub.f32 1.0, %v1119_v40  ;;  %v5501_v43 = vsub.f32 1.0, %v5482_v46  ;;  %v1130_v17 = vor.u32 1.1754944e-38, %v1129_v13  ;;  %vm5516_vm6 = vmor %vm1123_vm10, %vm1124_vm4  ;;  %v5527_v13 = vld [vmem:[#allocation4 + $0xf8] sm:$0xff] }
  0x7b   :  { %v1096_v1 = vsel %vm5473_vm0, %v4335_v14, %v1092_v59  ;;  %v1134_v36 = vmul.f32 %v4341_v34, %v5450_v4  ;;  %v5506_v14 = vld [vmem:[#allocation4 + $0xf0] sm:$0xff]  ;;  %vm1139_vm8 = vweird.f32 %v4341_v34  ;;  %v1144_v55 = vand.u32 2147483648, %v5450_v4 }
  0x7c   :  { %v1101_v19 = vsel %vm5467_vm7, %v1100_v58, %v1096_v1  ;;  %v1107_v53 = vadd.f32 %v4337_v49, %v1106_v21  ;;  %v1121_v2 = vmul.f32 %v4339_v24, %v1120_v63  ;;  %v5510_v32 = vsub.f32 1.0, %v5489_v9 }
  0x7d   :  { %v1135_v25 = vsub.f32 1.0, %v1134_v36  ;;  %v5522_v58 = vsel %vm256_vm1, %v384_v30, %v1101_v19  ;;  %4342 = vrcp.f32 %v5501_v43  ;;  %vm1128_vm11 = vcmp.eq.f32.partialorder %v1127_v50, 8.507059e+37  ;;  %vm5544_vm1 = vmor %vm1138_vm2, %vm1139_vm8 }
  0x7e   :  { %v1111_v20 = vsel %vm5496_vm5, %v4337_v49, %v1107_v53  ;;  %10727 = vst [vmem:[#allocation8_spill] sm:$0xff] %v5522_v58  ;;  %v1122_v38 = vadd.f32 %v4339_v24, %v1121_v2  ;;  %v5530_v54 = vsub.f32 1.0, %v5506_v14  ;;  %vm258_vm3 = vcmp.ge.f32.partialorder %v5396_v51, 0.0 }
  0x7f   :  { %v1116_v31 = vsel %vm5477_vm14, %v1115_v29, %v1111_v20  ;;  %v1136_v49 = vmul.f32 %v4341_v34, %v1135_v25  ;;  %4344 = vrcp.f32 %v5510_v32  ;;  %v387_v30 = vadd.f32 1.0, %v5424_v60 }
  0x80   :  { %v5535_v44 = vsel %vm257_vm15, %v385_v48, %v1116_v31  ;;  %v1126_v37 = vsel %vm5516_vm6, %v4339_v24, %v1122_v38  ;;  %v1145_v51 = vor.u32 1.1754944e-38, %v1144_v55  ;;  %vm1143_vm15 = vcmp.eq.f32.partialorder %v1142_v22, 8.507059e+37 }
  0x81   :  { %10728 = vst [vmem:[#allocation9_spill] sm:$0xff] %v5535_v44  ;;  %v2728_v6 = vadd.f32 %v5535_v44, %v5522_v58  ;;  %v1131_v48 = vsel %vm1128_vm11, %v1130_v17, %v1126_v37  ;;  %v1137_v29 = vadd.f32 %v4341_v34, %v1136_v49  ;;  %v5551_v40 = vsub.f32 1.0, %v5527_v13 }
  0x82   :  { %vm259_vm9 = vcmp.ge.f32.partialorder %v5424_v60, 0.0  ;;  %v5554_v24 = vsel %vm258_vm3, %v386_v45, %v1131_v48  ;;  %v5557_v4 = vadd.f32 1.0, %v5482_v46  ;;  %4346 = vrcp.f32 %v5530_v54 }
  0x83   :  { %10731 = vst [vmem:[#allocation10_spill] sm:$0xff] %v5554_v24  ;;  %v4343_v21 = vpop.eup %4342  ;;  %v1141_v50 = vsel %vm5544_vm1, %v4341_v34, %v1137_v29  ;;  %v2729_v1 = vadd.f32 %v2728_v6, %v5554_v24  ;;  %vm252_vm7 = vcmp.ge.f32.partialorder %v5482_v46, 0.0  ;;  %vm1033_vm12 = vweird.f32 %v5501_v43  ;;  %v5735_v24 = vld [vmem:[#allocation4 + $0x170] sm:$0xff] }
  0x84   :  { %v1037_v22 = vand.u32 2147483647, %v5501_v43  ;;  %v1146_v60 = vsel %vm1143_vm15, %v1145_v51, %v1141_v50  ;;  %v1029_v45 = vmul.f32 %v4343_v21, %v5501_v43  ;;  %v1039_v47 = vand.u32 2147483648, %v5501_v43 }
  0x85   :  { %v1052_v63 = vand.u32 2147483647, %v5510_v32  ;;  %v4345_v19 = vpop.eup %4344  ;;  %v5569_v53 = vsel %vm259_vm9, %v387_v30, %v1146_v60  ;;  %vm253_vm0 = vcmp.ge.f32.partialorder %v5489_v9, 0.0  ;;  %vm1034_vm13 = vweird.f32 %v4343_v21 }
  0x86   :  { %10732 = vst [vmem:[#allocation11_spill] sm:$0xff] %v5569_v53  ;;  %v1054_v34 = vand.u32 2147483648, %v5510_v32  ;;  %4348 = vrcp.f32 %v5551_v40  ;;  %v2730_v17 = vadd.f32 %v2729_v1, %v5569_v53  ;;  %v1030_v36 = vsub.f32 1.0, %v1029_v45  ;;  %vm5588_vm4 = vmor %vm1033_vm12, %vm1034_vm13 }
  0x87   :  { %v1044_v2 = vmul.f32 %v4345_v19, %v5510_v32  ;;  %v1069_v55 = vand.u32 2147483648, %v5530_v54  ;;  %v381_v20 = vadd.f32 1.0, %v5489_v9  ;;  %v382_v23 = vadd.f32 1.0, %v5506_v14 }
  0x88   :  { %vm5579_vm14 = vcmp.eq.f32.partialorder %v1037_v22, 8.507059e+37  ;;  %vm1048_vm10 = vweird.f32 %v5510_v32  ;;  %v4347_v31 = vpop.eup %4346  ;;  %2731 = vadd.xlane.f32.xlu2 %v2730_v17  ;;  %vm254_vm2 = vcmp.ge.f32.partialorder %v5506_v14, 0.0  ;;  %v1031_v38 = vmul.f32 %v4343_v21, %v1030_v36  ;;  %v5599_v22 = vld [vmem:[#allocation4 + $0xc0] sm:$0xff] }
  0x89   :  { %v1040_v49 = vor.u32 1.1754944e-38, %v1039_v47  ;;  %v1045_v30 = vsub.f32 1.0, %v1044_v2  ;;  %vm1049_vm5 = vweird.f32 %v4345_v19  ;;  %vm5592_vm8 = vcmp.eq.f32.partialorder %v1052_v63, 8.507059e+37  ;;  %v5609_v63 = vld [vmem:[#allocation4 + $0xc8] sm:$0xff] }
  0x8a   :  { %v1059_v51 = vmul.f32 %v4347_v31, %v5530_v54  ;;  %vm1063_vm6 = vweird.f32 %v5530_v54  ;;  %v1067_v6 = vand.u32 2147483647, %v5530_v54  ;;  %v1032_v48 = vadd.f32 %v4343_v21, %v1031_v38  ;;  %vm5603_vm11 = vmor %vm1048_vm10, %vm1049_vm5  ;;  %v5617_v38 = vld [vmem:[#allocation4 + $0xd0] sm:$0xff]  ;;  %v5641_v54 = vld [vmem:[#allocation4 + $0xd8] sm:$0xff] }
  0x8b   :  { %v1046_v29 = vmul.f32 %v4345_v19, %v1045_v30  ;;  %v1055_v50 = vor.u32 1.1754944e-38, %v1054_v34  ;;  %v1070_v1 = vor.u32 1.1754944e-38, %v1069_v55  ;;  %vm1064_vm3 = vweird.f32 %v4347_v31 }
  0x8c   :  { %v4349_v43 = vpop.eup %4348  ;;  %v1060_v45 = vsub.f32 1.0, %v1059_v51  ;;  %vm1078_vm1 = vweird.f32 %v5551_v40  ;;  %v1082_v47 = vand.u32 2147483647, %v5551_v40  ;;  %v1036_v34 = vsel %vm5588_vm4, %v4343_v21, %v1032_v48  ;;  %vm5626_vm9 = vmor %vm1063_vm6, %vm1064_vm3 }
  0x8d   :  { %v1047_v17 = vadd.f32 %v4345_v19, %v1046_v29  ;;  %v1074_v36 = vmul.f32 %v4349_v43, %v5551_v40  ;;  %v1084_v32 = vand.u32 2147483648, %v5551_v40  ;;  %v1041_v2 = vsel %vm5579_vm14, %v1040_v49, %v1036_v34 }
  0x8e   :  { %v1061_v55 = vmul.f32 %v4347_v31, %v1060_v45  ;;  %vm1079_vm15 = vweird.f32 %v4349_v43  ;;  %v5620_v30 = vsub.f32 1.0, %v5599_v22  ;;  %v5633_v25 = vsel %vm252_vm7, %v5557_v4, %v1041_v2 }
  0x8f   :  { %v1051_v51 = vsel %vm5603_vm11, %v4345_v19, %v1047_v17  ;;  %v1075_v37 = vsub.f32 1.0, %v1074_v36  ;;  %10743 = vst [vmem:[#allocation12_spill] sm:$0xff] %v5633_v25  ;;  %v5636_v49 = vsub.f32 1.0, %v5609_v63  ;;  %v383_v48 = vadd.f32 1.0, %v5527_v13  ;;  %vm1080_vm7 = vmor %vm1078_vm1, %vm1079_vm15 }
  0x90   :  { %v1056_v19 = vsel %vm5592_vm8, %v1055_v50, %v1051_v51  ;;  %v1062_v29 = vadd.f32 %v4347_v31, %v1061_v55  ;;  %vm1068_vm12 = vcmp.eq.f32.partialorder %v1067_v6, 8.507059e+37  ;;  %v5648_v46 = vsub.f32 1.0, %v5617_v38 }
  0x91   :  { %v1076_v60 = vmul.f32 %v4349_v43, %v1075_v37  ;;  %v5645_v45 = vsel %vm253_vm0, %v381_v20, %v1056_v19  ;;  %4350 = vrcp.f32 %v5620_v30  ;;  %vm1083_vm13 = vcmp.eq.f32.partialorder %v1082_v47, 8.507059e+37 }
  0x92   :  { %10744 = vst [vmem:[#allocation13_spill] sm:$0xff] %v5645_v45  ;;  %v1066_v4 = vsel %vm5626_vm9, %v4347_v31, %v1062_v29  ;;  %v1085_v59 = vor.u32 1.1754944e-38, %v1084_v32  ;;  %v2723_v6 = vadd.f32 %v5645_v45, %v5633_v25  ;;  %v5659_v50 = vsub.f32 1.0, %v5641_v54 }
  0x93   :  { %v1071_v9 = vsel %vm1068_vm12, %v1070_v1, %v1066_v4  ;;  %v1077_v20 = vadd.f32 %v4349_v43, %v1076_v60  ;;  %4352 = vrcp.f32 %v5636_v49  ;;  %vm255_vm0 = vcmp.ge.f32.partialorder %v5527_v13, 0.0 }
  0x94   :  { %v5665_v31 = vsel %vm254_vm2, %v382_v23, %v1071_v9  ;;  %v977_v34 = vand.u32 2147483647, %v5620_v30  ;;  %4354 = vrcp.f32 %v5648_v46  ;;  %v5671_v17 = vadd.f32 1.0, %v5599_v22 }
  0x95   :  { %10745 = vst [vmem:[#allocation14_spill] sm:$0xff] %v5665_v31  ;;  %v1081_v40 = vsel %vm1080_vm7, %v4349_v43, %v1077_v20  ;;  %v2724_v47 = vadd.f32 %v2723_v6, %v5665_v31  ;;  %v979_v36 = vand.u32 2147483648, %v5620_v30  ;;  %vm248_vm14 = vcmp.ge.f32.partialorder %v5599_v22, 0.0 }
  0x96   :  { %v1086_v1 = vsel %vm1083_vm13, %v1085_v59, %v1081_v40  ;;  %v992_v14 = vand.u32 2147483647, %v5636_v49  ;;  %v994_v13 = vand.u32 2147483648, %v5636_v49  ;;  %4356 = vrcp.f32 %v5659_v50 }
  0x97   :  { %v4351_v32 = vpop.eup %4350  ;;  %v5674_v2 = vsel %vm255_vm0, %v383_v48, %v1086_v1  ;;  %v5682_v43 = vadd.f32 1.0, %v5609_v63  ;;  %v5685_v55 = vadd.f32 1.0, %v5617_v38  ;;  %vm249_vm10 = vcmp.ge.f32.partialorder %v5609_v63, 0.0  ;;  %v5709_v1 = vld [vmem:[#allocation4 + $0x168] sm:$0xff] }
  0x98   :  { %10746 = vst [vmem:[#allocation15_spill] sm:$0xff] %v5674_v2  ;;  %v2725_v23 = vadd.f32 %v2724_v47, %v5674_v2  ;;  %v969_v51 = vmul.f32 %v4351_v32, %v5620_v30  ;;  %v5690_v37 = vadd.f32 1.0, %v5641_v54  ;;  %vm973_vm2 = vweird.f32 %v5620_v30 }
  0x99   :  { %v4353_v21 = vpop.eup %4352  ;;  %vm5693_vm5 = vcmp.eq.f32.partialorder %v977_v34, 8.507059e+37  ;;  %vm988_vm4 = vweird.f32 %v5636_v49  ;;  %vm974_vm8 = vweird.f32 %v4351_v32  ;;  %v980_v29 = vor.u32 1.1754944e-38, %v979_v36  ;;  %v5707_v34 = vld [vmem:[#allocation4 + $0x160] sm:$0xff] }
  0x9a   :  { %2726 = vadd.xlane.f32.xlu1 %v2725_v23  ;;  %v970_v19 = vsub.f32 1.0, %v969_v51  ;;  %v984_v60 = vmul.f32 %v4353_v21, %v5636_v49  ;;  %v4355_v4 = vpop.eup %4354  ;;  %vm250_vm6 = vcmp.ge.f32.partialorder %v5617_v38, 0.0  ;;  %vm5700_vm11 = vcmp.eq.f32.partialorder %v992_v14, 8.507059e+37  ;;  %vm5714_vm15 = vmor %vm973_vm2, %vm974_vm8 }
  0x9b   :  { %v995_v6 = vor.u32 1.1754944e-38, %v994_v13  ;;  %vm1003_vm3 = vweird.f32 %v5648_v46  ;;  %v1007_v9 = vand.u32 2147483647, %v5648_v46  ;;  %vm989_vm1 = vweird.f32 %v4353_v21 }
  0x9c   :  { %v971_v20 = vmul.f32 %v4351_v32, %v970_v19  ;;  %v985_v40 = vsub.f32 1.0, %v984_v60  ;;  %v999_v47 = vmul.f32 %v4355_v4, %v5648_v46  ;;  %v4357_v36 = vpop.eup %4356  ;;  %vm1004_vm9 = vweird.f32 %v4355_v4  ;;  %vm5724_vm7 = vmor %vm988_vm4, %vm989_vm1 }
  0x9d   :  { %v1009_v13 = vand.u32 2147483648, %v5648_v46  ;;  %vm1018_vm12 = vweird.f32 %v5659_v50  ;;  %v1022_v23 = vand.u32 2147483647, %v5659_v50  ;;  %v1014_v2 = vmul.f32 %v4357_v36, %v5659_v50  ;;  %vm5742_vm0 = vmor %vm1003_vm3, %vm1004_vm9 }
  0x9e   :  { %v972_v51 = vadd.f32 %v4351_v32, %v971_v20  ;;  %v986_v19 = vmul.f32 %v4353_v21, %v985_v40  ;;  %v1000_v60 = vsub.f32 1.0, %v999_v47  ;;  %vm1019_vm13 = vweird.f32 %v4357_v36 }
  0x9f   :  { %v1024_v31 = vand.u32 2147483648, %v5659_v50  ;;  %v524_v45 = vsub.f32 1.0, %v5707_v34  ;;  %v5731_v53 = vsub.f32 1.0, %v5709_v1  ;;  %v1015_v25 = vsub.f32 1.0, %v1014_v2 }
  0xa0   :  { %v976_v20 = vsel %vm5714_vm15, %v4351_v32, %v972_v51  ;;  %v987_v40 = vadd.f32 %v4353_v21, %v986_v19  ;;  %v1001_v47 = vmul.f32 %v4355_v4, %v1000_v60  ;;  %vm5746_vm2 = vcmp.eq.f32.partialorder %v1007_v9, 8.507059e+37 }
  0xa1   :  { %v981_v49 = vsel %vm5693_vm5, %v980_v29, %v976_v20  ;;  %v1010_v32 = vor.u32 1.1754944e-38, %v1009_v13  ;;  %4358 = vrcp.f32 %v524_v45  ;;  %v1016_v51 = vmul.f32 %v4357_v36, %v1015_v25  ;;  %vm5762_vm5 = vmor %vm1018_vm12, %vm1019_vm13 }
  0xa2   :  { %v991_v2 = vsel %vm5724_vm7, %v4353_v21, %v987_v40  ;;  %v1002_v14 = vadd.f32 %v4355_v4, %v1001_v47  ;;  %v5755_v48 = vsel %vm248_vm14, %v5671_v17, %v981_v49  ;;  %vm1023_vm4 = vcmp.eq.f32.partialorder %v1022_v23, 8.507059e+37  ;;  %v5766_v21 = vld [vmem:[#allocation4 + $0x178] sm:$0xff] }
  0xa3   :  { %v996_v46 = vsel %vm5700_vm11, %v995_v6, %v991_v2  ;;  %v1025_v9 = vor.u32 1.1754944e-38, %v1024_v31  ;;  %v5769_v25 = vsub.f32 1.0, %v5735_v24  ;;  %v1017_v17 = vadd.f32 %v4357_v36, %v1016_v51 }
  0xa4   :  { %v1006_v22 = vsel %vm5742_vm0, %v4355_v4, %v1002_v14  ;;  %v5776_v59 = vsel %vm249_vm10, %v5682_v43, %v996_v46  ;;  %4360 = vrcp.f32 %v5731_v53  ;;  %vm251_vm14 = vcmp.ge.f32.partialorder %v5641_v54, 0.0 }
  0xa5   :  { %10761 = vst [vmem:[#allocation16_spill] sm:$0xff] %v5776_v59  ;;  %v1011_v50 = vsel %vm5746_vm2, %v1010_v32, %v1006_v22  ;;  %v2718_v31 = vadd.f32 %v5776_v59, %v5755_v48  ;;  %v1021_v10 = vsel %vm5762_vm5, %v4357_v36, %v1017_v17  ;;  %v5792_v63 = vsub.f32 1.0, %v5766_v21 }
  0xa6   :  { %v5789_v4 = vsel %vm250_vm6, %v5685_v55, %v1011_v50  ;;  %v1026_v6 = vsel %vm1023_vm4, %v1025_v9, %v1021_v10  ;;  %4362 = vrcp.f32 %v5769_v25  ;;  %v1277_v23 = vand.u32 2147483647, %v524_v45 }
  0xa7   :  { %10762 = vst [vmem:[#allocation17_spill] sm:$0xff] %v5789_v4  ;;  %v4359_v43 = vpop.eup %4358  ;;  %v2719_v54 = vadd.f32 %v2718_v31, %v5789_v4  ;;  %v5797_v44 = vsel %vm251_vm14, %v5690_v37, %v1026_v6  ;;  %v1279_v36 = vand.u32 2147483648, %v524_v45  ;;  %vm268_vm10 = vcmp.ge.f32.partialorder %v5707_v34, 0.0  ;;  %v5832_v6 = vld [vmem:[#allocation4 + $0x140] sm:$0xff] }
  0xa8   :  { %10763 = vst [vmem:[#allocation18_spill] sm:$0xff] %v5797_v44  ;;  %v1269_v13 = vmul.f32 %v4359_v43, %v524_v45  ;;  %vm1273_vm8 = vweird.f32 %v524_v45  ;;  %v1292_v38 = vand.u32 2147483647, %v5731_v53  ;;  %vm269_vm6 = vcmp.ge.f32.partialorder %v5709_v1, 0.0 }
  0xa9   :  { %v2720_v19 = vadd.f32 %v2719_v54, %v5797_v44  ;;  %vm1274_vm11 = vweird.f32 %v4359_v43  ;;  %v1294_v30 = vand.u32 2147483648, %v5731_v53  ;;  %4364 = vrcp.f32 %v5792_v63  ;;  %v5834_v54 = vld [vmem:[#allocation4 + $0x148] sm:$0xff] }
  0xaa   :  { %v4361_v55 = vpop.eup %4360  ;;  %v1270_v60 = vsub.f32 1.0, %v1269_v13  ;;  %v396_v37 = vadd.f32 1.0, %v5707_v34  ;;  %v397_v20 = vadd.f32 1.0, %v5709_v1  ;;  %v1307_v47 = vand.u32 2147483647, %v5769_v25  ;;  %vm5815_vm1 = vmor %vm1273_vm8, %vm1274_vm11 }
  0xab   :  { %2721 = vadd.xlane.f32.xlu0 %v2720_v19  ;;  %v1284_v40 = vmul.f32 %v4361_v55, %v5731_v53  ;;  %v398_v49 = vadd.f32 1.0, %v5735_v24  ;;  %vm5810_vm3 = vcmp.eq.f32.partialorder %v1277_v23, 8.507059e+37  ;;  %v1280_v14 = vor.u32 1.1754944e-38, %v1279_v36  ;;  %v5877_v36 = vld [vmem:[#allocation4 + $0x158] sm:$0xff] }
  0xac   :  { %v1271_v32 = vmul.f32 %v4359_v43, %v1270_v60  ;;  %v4363_v51 = vpop.eup %4362  ;;  %vm1288_vm15 = vweird.f32 %v5731_v53  ;;  %vm1289_vm9 = vweird.f32 %v4361_v55  ;;  %v1309_v9 = vand.u32 2147483648, %v5769_v25 }
  0xad   :  { %v1285_v29 = vsub.f32 1.0, %v1284_v40  ;;  %vm5821_vm12 = vcmp.eq.f32.partialorder %v1292_v38, 8.507059e+37  ;;  %v1295_v50 = vor.u32 1.1754944e-38, %v1294_v30  ;;  %v1299_v31 = vmul.f32 %v4363_v51, %v5769_v25  ;;  %vm5840_vm2 = vmor %vm1288_vm15, %vm1289_vm9 }
  0xae   :  { %v1272_v22 = vadd.f32 %v4359_v43, %v1271_v32  ;;  %vm1303_vm7 = vweird.f32 %v5769_v25  ;;  %vm5827_vm13 = vcmp.eq.f32.partialorder %v1307_v47, 8.507059e+37  ;;  %vm1318_vm0 = vweird.f32 %v5792_v63  ;;  %v5848_v32 = vld [vmem:[#allocation4 + $0x150] sm:$0xff] }
  0xaf   :  { %v1286_v10 = vmul.f32 %v4361_v55, %v1285_v29  ;;  %v4365_v13 = vpop.eup %4364  ;;  %v1300_v19 = vsub.f32 1.0, %v1299_v31  ;;  %vm1304_vm5 = vweird.f32 %v4363_v51  ;;  %v1322_v38 = vand.u32 2147483647, %v5792_v63 }
  0xb0   :  { %v1276_v23 = vsel %vm5815_vm1, %v4359_v43, %v1272_v22  ;;  %v1310_v40 = vor.u32 1.1754944e-38, %v1309_v9  ;;  %v1314_v47 = vmul.f32 %v4365_v13, %v5792_v63  ;;  %v1324_v53 = vand.u32 2147483648, %v5792_v63  ;;  %vm5859_vm4 = vmor %vm1303_vm7, %vm1304_vm5 }
  0xb1   :  { %v1281_v60 = vsel %vm5810_vm3, %v1280_v14, %v1276_v23  ;;  %v1287_v30 = vadd.f32 %v4361_v55, %v1286_v10  ;;  %v1301_v43 = vmul.f32 %v4363_v51, %v1300_v19  ;;  %v520_v46 = vsub.f32 1.0, %v5832_v6 }
  0xb2   :  { %v5853_v29 = vsub.f32 1.0, %v5834_v54  ;;  %v1315_v14 = vsub.f32 1.0, %v1314_v47  ;;  %vm1319_vm14 = vweird.f32 %v4365_v13  ;;  %v5865_v9 = vsel %vm268_vm10, %v396_v37, %v1281_v60 }
  0xb3   :  { %v1291_v22 = vsel %vm5840_vm2, %v4361_v55, %v1287_v30  ;;  %10776 = vst [vmem:[#allocation19_spill] sm:$0xff] %v5865_v9  ;;  %v1302_v10 = vadd.f32 %v4363_v51, %v1301_v43  ;;  %v5870_v23 = vsub.f32 1.0, %v5848_v32  ;;  %4366 = vrcp.f32 %v520_v46  ;;  %vm5883_vm10 = vmor %vm1318_vm0, %vm1319_vm14 }
  0xb4   :  { %v1296_v31 = vsel %vm5821_vm12, %v1295_v50, %v1291_v22  ;;  %vm270_vm8 = vcmp.ge.f32.partialorder %v5735_v24, 0.0  ;;  %v1316_v25 = vmul.f32 %v4365_v13, %v1315_v14  ;;  %v1325_v17 = vor.u32 1.1754944e-38, %v1324_v53 }
  0xb5   :  { %v5875_v55 = vsel %vm269_vm6, %v397_v20, %v1296_v31  ;;  %v1306_v34 = vsel %vm5859_vm4, %v4363_v51, %v1302_v10  ;;  %4368 = vrcp.f32 %v5853_v29  ;;  %v399_v1 = vadd.f32 1.0, %v5766_v21 }
  0xb6   :  { %10777 = vst [vmem:[#allocation20_spill] sm:$0xff] %v5875_v55  ;;  %v2743_v24 = vadd.f32 %v5875_v55, %v5865_v9  ;;  %v1311_v20 = vsel %vm5827_vm13, %v1310_v40, %v1306_v34  ;;  %v1317_v50 = vadd.f32 %v4365_v13, %v1316_v25  ;;  %vm1323_vm6 = vcmp.eq.f32.partialorder %v1322_v38, 8.507059e+37 }
  0xb7   :  { %vm271_vm11 = vcmp.ge.f32.partialorder %v5766_v21, 0.0  ;;  %v5894_v63 = vsel %vm270_vm8, %v398_v49, %v1311_v20  ;;  %v5897_v51 = vsub.f32 1.0, %v5877_v36  ;;  %4370 = vrcp.f32 %v5870_v23 }
  0xb8   :  { %10780 = vst [vmem:[#allocation21_spill] sm:$0xff] %v5894_v63  ;;  %v1321_v19 = vsel %vm5883_vm10, %v4365_v13, %v1317_v50  ;;  %v2744_v60 = vadd.f32 %v2743_v24, %v5894_v63  ;;  %v392_v30 = vadd.f32 1.0, %v5832_v6  ;;  %vm264_vm3 = vcmp.ge.f32.partialorder %v5832_v6, 0.0 }
  0xb9   :  { %v4367_v45 = vpop.eup %4366  ;;  %v1326_v40 = vsel %vm1323_vm6, %v1325_v17, %v1321_v19  ;;  %v5906_v21 = vadd.f32 1.0, %v5834_v54  ;;  %v1217_v49 = vand.u32 2147483647, %v520_v46  ;;  %v1219_v38 = vand.u32 2147483648, %v520_v46 }
  0xba   :  { %v5908_v47 = vsel %vm271_vm11, %v399_v1, %v1326_v40  ;;  %v5911_v43 = vadd.f32 1.0, %v5848_v32  ;;  %v1209_v53 = vmul.f32 %v4367_v45, %v520_v46  ;;  %v1232_v13 = vand.u32 2147483647, %v5853_v29 }
  0xbb   :  { %10781 = vst [vmem:[#allocation22_spill] sm:$0xff] %v5908_v47  ;;  %v4369_v22 = vpop.eup %4368  ;;  %v2745_v2 = vadd.f32 %v2744_v60, %v5908_v47  ;;  %vm265_vm1 = vcmp.ge.f32.partialorder %v5834_v54, 0.0  ;;  %v1234_v14 = vand.u32 2147483648, %v5853_v29  ;;  %v1247_v31 = vand.u32 2147483647, %v5870_v23 }
  0xbc   :  { %4372 = vrcp.f32 %v5897_v51  ;;  %v1210_v10 = vsub.f32 1.0, %v1209_v53  ;;  %vm1213_vm15 = vweird.f32 %v520_v46  ;;  %vm1214_vm9 = vweird.f32 %v4367_v45  ;;  %v5927_v46 = vld [vmem:[#allocation4 + $0x120] sm:$0xff] }
  0xbd   :  { %v1224_v25 = vmul.f32 %v4369_v22, %v5853_v29  ;;  %v4371_v34 = vpop.eup %4370  ;;  %2746 = vadd.xlane.f32.xlu2 %v2745_v2  ;;  %vm5920_vm12 = vcmp.eq.f32.partialorder %v1217_v49, 8.507059e+37  ;;  %v1220_v17 = vor.u32 1.1754944e-38, %v1219_v38  ;;  %vm1228_vm7 = vweird.f32 %v5853_v29  ;;  %vm5929_vm0 = vmor %vm1213_vm15, %vm1214_vm9  ;;  %v5958_v29 = vld [vmem:[#allocation4 + $0x130] sm:$0xff] }
  0xbe   :  { %v1249_v24 = vand.u32 2147483648, %v5870_v23  ;;  %v1211_v1 = vmul.f32 %v4367_v45, %v1210_v10  ;;  %vm1229_vm13 = vweird.f32 %v4369_v22  ;;  %v1239_v50 = vmul.f32 %v4371_v34, %v5870_v23  ;;  %v5942_v10 = vld [vmem:[#allocation4 + $0x128] sm:$0xff] }
  0xbf   :  { %v1225_v20 = vsub.f32 1.0, %v1224_v25  ;;  %vm5933_vm2 = vcmp.eq.f32.partialorder %v1232_v13, 8.507059e+37  ;;  %v1235_v40 = vor.u32 1.1754944e-38, %v1234_v14  ;;  %vm1243_vm5 = vweird.f32 %v5870_v23  ;;  %vm5946_vm8 = vmor %vm1228_vm7, %vm1229_vm13  ;;  %v5978_v23 = vld [vmem:[#allocation4 + $0x138] sm:$0xff] }
  0xc0   :  { %vm5938_vm4 = vcmp.eq.f32.partialorder %v1247_v31, 8.507059e+37  ;;  %v1212_v38 = vadd.f32 %v4367_v45, %v1211_v1  ;;  %v1240_v2 = vsub.f32 1.0, %v1239_v50  ;;  %vm1244_vm14 = vweird.f32 %v4371_v34 }
  0xc1   :  { %v1226_v53 = vmul.f32 %v4369_v22, %v1225_v20  ;;  %v1250_v14 = vor.u32 1.1754944e-38, %v1249_v24  ;;  %vm1258_vm10 = vweird.f32 %v5897_v51  ;;  %v1264_v31 = vand.u32 2147483648, %v5897_v51  ;;  %vm5964_vm6 = vmor %vm1243_vm5, %vm1244_vm14 }
  0xc2   :  { %v4373_v25 = vpop.eup %4372  ;;  %v5953_v47 = vsub.f32 1.0, %v5927_v46  ;;  %v1216_v1 = vsel %vm5929_vm0, %v4367_v45, %v1212_v38  ;;  %v1241_v50 = vmul.f32 %v4371_v34, %v1240_v2  ;;  %v1262_v9 = vand.u32 2147483647, %v5897_v51 }
  0xc3   :  { %v1227_v20 = vadd.f32 %v4369_v22, %v1226_v53  ;;  %v1254_v63 = vmul.f32 %v4373_v25, %v5897_v51  ;;  %v1221_v55 = vsel %vm5920_vm12, %v1220_v17, %v1216_v1  ;;  %vm1259_vm11 = vweird.f32 %v4373_v25 }
  0xc4   :  { %v5970_v45 = vsub.f32 1.0, %v5942_v10  ;;  %v1242_v38 = vadd.f32 %v4371_v34, %v1241_v50  ;;  %v5976_v37 = vsel %vm264_vm3, %v392_v30, %v1221_v55  ;;  %vm266_vm15 = vcmp.ge.f32.partialorder %v5848_v32, 0.0  ;;  %vm5999_vm3 = vmor %vm1258_vm10, %vm1259_vm11 }
  0xc5   :  { %v1231_v19 = vsel %vm5946_vm8, %v4369_v22, %v1227_v20  ;;  %v1255_v53 = vsub.f32 1.0, %v1254_v63  ;;  %10794 = vst [vmem:[#allocation23_spill] sm:$0xff] %v5976_v37  ;;  %v5984_v2 = vsub.f32 1.0, %v5958_v29  ;;  %4374 = vrcp.f32 %v5953_v47 }
  0xc6   :  { %v1236_v17 = vsel %vm5933_vm2, %v1235_v40, %v1231_v19  ;;  %v1246_v22 = vsel %vm5964_vm6, %v4371_v34, %v1242_v38  ;;  %v1265_v13 = vor.u32 1.1754944e-38, %v1264_v31  ;;  %v6006_v60 = vsub.f32 1.0, %v5978_v23 }
  0xc7   :  { %v1256_v63 = vmul.f32 %v4373_v25, %v1255_v53  ;;  %v5992_v6 = vsel %vm265_vm1, %v5906_v21, %v1236_v17  ;;  %v1251_v55 = vsel %vm5938_vm4, %v1250_v14, %v1246_v22  ;;  %4376 = vrcp.f32 %v5970_v45 }
  0xc8   :  { %10795 = vst [vmem:[#allocation24_spill] sm:$0xff] %v5992_v6  ;;  %v2738_v34 = vadd.f32 %v5992_v6, %v5976_v37  ;;  %v395_v54 = vadd.f32 1.0, %v5877_v36  ;;  %vm1263_vm1 = vcmp.eq.f32.partialorder %v1262_v9, 8.507059e+37  ;;  %v6013_v51 = vsel %vm266_vm15, %v5911_v43, %v1251_v55 }
  0xc9   :  { %v1257_v21 = vadd.f32 %v4373_v25, %v1256_v63  ;;  %10798 = vst [vmem:[#allocation25_spill] sm:$0xff] %v6013_v51  ;;  %vm267_vm9 = vcmp.ge.f32.partialorder %v5877_v36, 0.0  ;;  %v1157_v49 = vand.u32 2147483647, %v5953_v47  ;;  %4378 = vrcp.f32 %v5984_v2 }
  0xca   :  { %v2739_v40 = vadd.f32 %v2738_v34, %v6013_v51  ;;  %v6022_v31 = vadd.f32 1.0, %v5927_v46  ;;  %v1159_v9 = vand.u32 2147483648, %v5953_v47  ;;  %vm260_vm12 = vcmp.ge.f32.partialorder %v5927_v46, 0.0  ;;  %v6070_v51 = vld [vmem:[#allocation4 + $0x1c8] sm:$0xff] }
  0xcb   :  { %v1261_v14 = vsel %vm5999_vm3, %v4373_v25, %v1257_v21  ;;  %v4375_v1 = vpop.eup %4374  ;;  %v6027_v36 = vadd.f32 1.0, %v5942_v10  ;;  %v6030_v43 = vadd.f32 1.0, %v5958_v29  ;;  %4380 = vrcp.f32 %v6006_v60 }
  0xcc   :  { %v1266_v32 = vsel %vm1263_vm1, %v1265_v13, %v1261_v14  ;;  %v6036_v25 = vadd.f32 1.0, %v5978_v23  ;;  %v1149_v50 = vmul.f32 %v4375_v1, %v5953_v47  ;;  %vm1153_vm7 = vweird.f32 %v5953_v47 }
  0xcd   :  { %v6033_v20 = vsel %vm267_vm9, %v395_v54, %v1266_v32  ;;  %v4377_v24 = vpop.eup %4376  ;;  %vm261_vm13 = vcmp.ge.f32.partialorder %v5942_v10, 0.0  ;;  %vm6042_vm0 = vcmp.eq.f32.partialorder %v1157_v49, 8.507059e+37  ;;  %v1172_v53 = vand.u32 2147483647, %v5970_v45  ;;  %v6055_v49 = vld [vmem:[#allocation4 + $0x1c0] sm:$0xff] }
  0xce   :  { %10799 = vst [vmem:[#allocation26_spill] sm:$0xff] %v6033_v20  ;;  %v2740_v19 = vadd.f32 %v2739_v40, %v6033_v20  ;;  %v1174_v17 = vand.u32 2147483648, %v5970_v45  ;;  %v1150_v22 = vsub.f32 1.0, %v1149_v50  ;;  %vm1154_vm2 = vweird.f32 %v4375_v1 }
  0xcf   :  { %v1160_v63 = vor.u32 1.1754944e-38, %v1159_v9  ;;  %v1164_v13 = vmul.f32 %v4377_v24, %v5970_v45  ;;  %v4379_v55 = vpop.eup %4378  ;;  %vm262_vm5 = vcmp.ge.f32.partialorder %v5958_v29, 0.0  ;;  %vm1168_vm4 = vweird.f32 %v5970_v45  ;;  %vm6060_vm10 = vmor %vm1153_vm7, %vm1154_vm2  ;;  %v6098_v9 = vld [vmem:[#allocation4 + $0x1d0] sm:$0xff] }
  0xd0   :  { %2741 = vadd.xlane.f32.xlu1 %v2740_v19  ;;  %vm1183_vm14 = vweird.f32 %v5984_v2  ;;  %v1187_v30 = vand.u32 2147483647, %v5984_v2  ;;  %v1189_v34 = vand.u32 2147483648, %v5984_v2  ;;  %v1151_v54 = vmul.f32 %v4375_v1, %v1150_v22 }
  0xd1   :  { %v1165_v21 = vsub.f32 1.0, %v1164_v13  ;;  %vm1169_vm8 = vweird.f32 %v4377_v24  ;;  %v1179_v40 = vmul.f32 %v4379_v55, %v5984_v2  ;;  %v4381_v14 = vpop.eup %4380  ;;  %vm6064_vm6 = vcmp.eq.f32.partialorder %v1172_v53, 8.507059e+37 }
  0xd2   :  { %v1175_v50 = vor.u32 1.1754944e-38, %v1174_v17  ;;  %vm1184_vm11 = vweird.f32 %v4379_v55  ;;  %vm1198_vm15 = vweird.f32 %v6006_v60  ;;  %v1152_v19 = vadd.f32 %v4375_v1, %v1151_v54  ;;  %vm6074_vm3 = vmor %vm1168_vm4, %vm1169_vm8 }
  0xd3   :  { %v1166_v22 = vmul.f32 %v4377_v24, %v1165_v21  ;;  %v1180_v13 = vsub.f32 1.0, %v1179_v40  ;;  %v1194_v20 = vmul.f32 %v4381_v14, %v6006_v60  ;;  %vm1199_vm1 = vweird.f32 %v4381_v14  ;;  %vm6090_vm9 = vmor %vm1183_vm14, %vm1184_vm11 }
  0xd4   :  { %v1202_v53 = vand.u32 2147483647, %v6006_v60  ;;  %v1204_v17 = vand.u32 2147483648, %v6006_v60  ;;  %v6081_v6 = vsub.f32 1.0, %v6055_v49  ;;  %v1156_v54 = vsel %vm6060_vm10, %v4375_v1, %v1152_v19 }
  0xd5   :  { %v1167_v21 = vadd.f32 %v4377_v24, %v1166_v22  ;;  %v1181_v40 = vmul.f32 %v4379_v55, %v1180_v13  ;;  %v1195_v37 = vsub.f32 1.0, %v1194_v20  ;;  %v1161_v45 = vsel %vm6042_vm0, %v1160_v63, %v1156_v54  ;;  %vm6115_vm0 = vmor %vm1198_vm15, %vm1199_vm1 }
  0xd6   :  { %vm6094_vm7 = vcmp.eq.f32.partialorder %v1187_v30, 8.507059e+37  ;;  %v1190_v58 = vor.u32 1.1754944e-38, %v1189_v34  ;;  %v6101_v1 = vsub.f32 1.0, %v6070_v51  ;;  %v6108_v2 = vsel %vm260_vm12, %v6022_v31, %v1161_v45 }
  0xd7   :  { %v1171_v20 = vsel %vm6074_vm3, %v4377_v24, %v1167_v21  ;;  %v1182_v38 = vadd.f32 %v4379_v55, %v1181_v40  ;;  %v1196_v63 = vmul.f32 %v4381_v14, %v1195_v37  ;;  %10812 = vst [vmem:[#allocation27_spill] sm:$0xff] %v6108_v2  ;;  %vm1203_vm2 = vcmp.eq.f32.partialorder %v1202_v53, 8.507059e+37  ;;  %v6119_v24 = vld [vmem:[#allocation4 + $0x1d8] sm:$0xff] }
  0xd8   :  { %v1176_v30 = vsel %vm6064_vm6, %v1175_v50, %v1171_v20  ;;  %v1205_v19 = vor.u32 1.1754944e-38, %v1204_v17  ;;  %4382 = vrcp.f32 %v6081_v6  ;;  %v6130_v60 = vsub.f32 1.0, %v6098_v9 }
  0xd9   :  { %v1186_v46 = vsel %vm6090_vm9, %v4379_v55, %v1182_v38  ;;  %v1197_v37 = vadd.f32 %v4381_v14, %v1196_v63  ;;  %v6127_v31 = vsel %vm261_vm13, %v6027_v36, %v1176_v30  ;;  %vm263_vm12 = vcmp.ge.f32.partialorder %v5978_v23, 0.0  ;;  %v6176_v63 = vld [vmem:[#allocation4 + $0x1a0] sm:$0xff] }
  0xda   :  { %10815 = vst [vmem:[#allocation28_spill] sm:$0xff] %v6127_v31  ;;  %v1191_v32 = vsel %vm6094_vm7, %v1190_v58, %v1186_v46  ;;  %v2733_v50 = vadd.f32 %v6127_v31, %v6108_v2  ;;  %4384 = vrcp.f32 %v6101_v1  ;;  %v6146_v36 = vsub.f32 1.0, %v6119_v24 }
  0xdb   :  { %v1201_v44 = vsel %vm6115_vm0, %v4381_v14, %v1197_v37  ;;  %v6143_v10 = vsel %vm262_vm5, %v6030_v43, %v1191_v32  ;;  %v1457_v55 = vand.u32 2147483647, %v6081_v6  ;;  %4386 = vrcp.f32 %v6130_v60 }
  0xdc   :  { %10816 = vst [vmem:[#allocation29_spill] sm:$0xff] %v6143_v10  ;;  %v1206_v23 = vsel %vm1203_vm2, %v1205_v19, %v1201_v44  ;;  %v2734_v4 = vadd.f32 %v2733_v50, %v6143_v10  ;;  %vm280_vm13 = vcmp.ge.f32.partialorder %v6055_v49, 0.0  ;;  %v1459_v29 = vand.u32 2147483648, %v6081_v6 }
  0xdd   :  { %v6150_v58 = vsel %vm263_vm12, %v6036_v25, %v1206_v23  ;;  %v408_v43 = vadd.f32 1.0, %v6055_v49  ;;  %v1472_v47 = vand.u32 2147483647, %v6101_v1  ;;  %4388 = vrcp.f32 %v6146_v36  ;;  %v6192_v23 = vld [vmem:[#allocation4 + $0x1a8] sm:$0xff] }
  0xde   :  { %10817 = vst [vmem:[#allocation30_spill] sm:$0xff] %v6150_v58  ;;  %v4383_v22 = vpop.eup %4382  ;;  %v2735_v14 = vadd.f32 %v2734_v4, %v6150_v58  ;;  %vm281_vm5 = vcmp.ge.f32.partialorder %v6070_v51, 0.0  ;;  %v409_v53 = vadd.f32 1.0, %v6070_v51  ;;  %v6164_v17 = vadd.f32 1.0, %v6098_v9 }
  0xdf   :  { %v1449_v13 = vmul.f32 %v4383_v22, %v6081_v6  ;;  %vm1453_vm4 = vweird.f32 %v6081_v6  ;;  %v1474_v54 = vand.u32 2147483648, %v6101_v1  ;;  %vm1454_vm14 = vweird.f32 %v4383_v22 }
  0xe0   :  { %v4385_v25 = vpop.eup %4384  ;;  %2736 = vadd.xlane.f32.xlu0 %v2735_v14  ;;  %vm6168_vm8 = vcmp.eq.f32.partialorder %v1457_v55, 8.507059e+37  ;;  %v1460_v20 = vor.u32 1.1754944e-38, %v1459_v29  ;;  %vm1468_vm10 = vweird.f32 %v6101_v1  ;;  %vm1483_vm6 = vweird.f32 %v6130_v60  ;;  %vm6185_vm1 = vmor %vm1453_vm4, %vm1454_vm14 }
  0xe1   :  { %v1450_v21 = vsub.f32 1.0, %v1449_v13  ;;  %v1464_v45 = vmul.f32 %v4385_v25, %v6101_v1  ;;  %v1487_v38 = vand.u32 2147483647, %v6130_v60  ;;  %v4387_v30 = vpop.eup %4386  ;;  %vm282_vm11 = vcmp.ge.f32.partialorder %v6098_v9, 0.0  ;;  %v6233_v13 = vld [vmem:[#allocation4 + $0x1b8] sm:$0xff] }
  0xe2   :  { %vm1469_vm15 = vweird.f32 %v4385_v25  ;;  %vm6179_vm3 = vcmp.eq.f32.partialorder %v1472_v47, 8.507059e+37  ;;  %v1475_v32 = vor.u32 1.1754944e-38, %v1474_v54  ;;  %v1479_v50 = vmul.f32 %v4387_v30, %v6130_v60 }
  0xe3   :  { %v1451_v34 = vmul.f32 %v4383_v22, %v1450_v21  ;;  %v1465_v19 = vsub.f32 1.0, %v1464_v45  ;;  %v1489_v44 = vand.u32 2147483648, %v6130_v60  ;;  %vm1498_vm9 = vweird.f32 %v6146_v36  ;;  %v4389_v4 = vpop.eup %4388  ;;  %vm6200_vm7 = vmor %vm1468_vm10, %vm1469_vm15  ;;  %v6206_v45 = vld [vmem:[#allocation4 + $0x1b0] sm:$0xff] }
  0xe4   :  { %v1502_v29 = vand.u32 2147483647, %v6146_v36  ;;  %v6196_v6 = vsub.f32 1.0, %v6176_v63  ;;  %v1480_v47 = vsub.f32 1.0, %v1479_v50  ;;  %vm1484_vm0 = vweird.f32 %v4387_v30 }
  0xe5   :  { %v1452_v55 = vadd.f32 %v4383_v22, %v1451_v34  ;;  %v1466_v14 = vmul.f32 %v4385_v25, %v1465_v19  ;;  %v1494_v54 = vmul.f32 %v4389_v4, %v6146_v36  ;;  %v1504_v21 = vand.u32 2147483648, %v6146_v36  ;;  %vm6220_vm12 = vmor %vm1483_vm6, %vm1484_vm0 }
  0xe6   :  { %vm1499_vm2 = vweird.f32 %v4389_v4  ;;  %v6211_v58 = vsub.f32 1.0, %v6192_v23  ;;  %v1481_v10 = vmul.f32 %v4387_v30, %v1480_v47  ;;  %4390 = vrcp.f32 %v6196_v6 }
  0xe7   :  { %v1456_v34 = vsel %vm6185_vm1, %v4383_v22, %v1452_v55  ;;  %v1467_v19 = vadd.f32 %v4385_v25, %v1466_v14  ;;  %v1495_v50 = vsub.f32 1.0, %v1494_v54  ;;  %v1490_v22 = vor.u32 1.1754944e-38, %v1489_v44  ;;  %vm6239_vm14 = vmor %vm1498_vm9, %vm1499_vm2 }
  0xe8   :  { %v1461_v1 = vsel %vm6168_vm8, %v1460_v20, %v1456_v34  ;;  %v6229_v40 = vsub.f32 1.0, %v6206_v45  ;;  %v1482_v14 = vadd.f32 %v4387_v30, %v1481_v10  ;;  %vm1488_vm4 = vcmp.eq.f32.partialorder %v1487_v38, 8.507059e+37 }
  0xe9   :  { %v1471_v31 = vsel %vm6200_vm7, %v4385_v25, %v1467_v19  ;;  %v6226_v55 = vsel %vm280_vm13, %v408_v43, %v1461_v1  ;;  %v1496_v25 = vmul.f32 %v4389_v4, %v1495_v50  ;;  %v411_v60 = vadd.f32 1.0, %v6119_v24 }
  0xea   :  { %10828 = vst [vmem:[#allocation31_spill] sm:$0xff] %v6226_v55  ;;  %v1476_v20 = vsel %vm6179_vm3, %v1475_v32, %v1471_v31  ;;  %v1505_v43 = vor.u32 1.1754944e-38, %v1504_v21  ;;  %4392 = vrcp.f32 %v6211_v58  ;;  %v1486_v31 = vsel %vm6220_vm12, %v4387_v30, %v1482_v14 }
  0xeb   :  { %v6245_v44 = vsel %vm281_vm5, %v409_v53, %v1476_v20  ;;  %v1497_v10 = vadd.f32 %v4389_v4, %v1496_v25  ;;  %vm1503_vm13 = vcmp.eq.f32.partialorder %v1502_v29, 8.507059e+37  ;;  %vm283_vm8 = vcmp.ge.f32.partialorder %v6119_v24, 0.0 }
  0xec   :  { %10831 = vst [vmem:[#allocation32_spill] sm:$0xff] %v6245_v44  ;;  %v2758_v38 = vadd.f32 %v6245_v44, %v6226_v55  ;;  %v1491_v36 = vsel %vm1488_vm4, %v1490_v22, %v1486_v31  ;;  %v6254_v46 = vsub.f32 1.0, %v6233_v13  ;;  %4394 = vrcp.f32 %v6229_v40  ;;  %v4391_v51 = vpop.eup %4390 }
  0xed   :  { %v1501_v53 = vsel %vm6239_vm14, %v4389_v4, %v1497_v10  ;;  %v6262_v30 = vsel %vm282_vm11, %v6164_v17, %v1491_v36  ;;  %v404_v32 = vadd.f32 1.0, %v6176_v63  ;;  %vm1393_vm5 = vweird.f32 %v6196_v6 }
  0xee   :  { %10832 = vst [vmem:[#allocation33_spill] sm:$0xff] %v6262_v30  ;;  %v1506_v24 = vsel %vm1503_vm13, %v1505_v43, %v1501_v53  ;;  %v2759_v29 = vadd.f32 %v2758_v38, %v6262_v30  ;;  %vm276_vm10 = vcmp.ge.f32.partialorder %v6176_v63, 0.0  ;;  %v1389_v47 = vmul.f32 %v4391_v51, %v6196_v6 }
  0xef   :  { %v1397_v54 = vand.u32 2147483647, %v6196_v6  ;;  %v6270_v21 = vsel %vm283_vm8, %v411_v60, %v1506_v24  ;;  %v1399_v4 = vand.u32 2147483648, %v6196_v6  ;;  %v1412_v9 = vand.u32 2147483647, %v6211_v58 }
  0xf0   :  { %10833 = vst [vmem:[#allocation34_spill] sm:$0xff] %v6270_v21  ;;  %v1414_v17 = vand.u32 2147483648, %v6211_v58  ;;  %v4393_v34 = vpop.eup %4392  ;;  %v2760_v19 = vadd.f32 %v2759_v29, %v6270_v21  ;;  %vm277_vm6 = vcmp.ge.f32.partialorder %v6192_v23, 0.0  ;;  %v1390_v1 = vsub.f32 1.0, %v1389_v47 }
  0xf1   :  { %vm1394_vm11 = vweird.f32 %v4391_v51  ;;  %4396 = vrcp.f32 %v6254_v46  ;;  %v405_v50 = vadd.f32 1.0, %v6192_v23  ;;  %v406_v37 = vadd.f32 1.0, %v6206_v45 }
  0xf2   :  { %v1404_v22 = vmul.f32 %v4393_v34, %v6211_v58  ;;  %v1427_v20 = vand.u32 2147483647, %v6229_v40  ;;  %v4395_v14 = vpop.eup %4394  ;;  %2761 = vadd.xlane.f32.xlu2 %v2760_v19  ;;  %v1391_v25 = vmul.f32 %v4391_v51, %v1390_v1  ;;  %vm6282_vm15 = vcmp.eq.f32.partialorder %v1397_v54, 8.507059e+37  ;;  %vm6290_vm1 = vmor %vm1393_vm5, %vm1394_vm11  ;;  %v6304_v54 = vld [vmem:[#allocation4 + $0x180] sm:$0xff] }
  0xf3   :  { %vm1408_vm3 = vweird.f32 %v6211_v58  ;;  %v1429_v49 = vand.u32 2147483648, %v6229_v40  ;;  %v1400_v31 = vor.u32 1.1754944e-38, %v1399_v4  ;;  %vm1409_vm9 = vweird.f32 %v4393_v34  ;;  %v6306_v4 = vld [vmem:[#allocation4 + $0x188] sm:$0xff] }
  0xf4   :  { %v1405_v10 = vsub.f32 1.0, %v1404_v22  ;;  %v1419_v38 = vmul.f32 %v4395_v14, %v6229_v40  ;;  %v1392_v36 = vadd.f32 %v4391_v51, %v1391_v25  ;;  %vm6295_vm7 = vcmp.eq.f32.partialorder %v1412_v9, 8.507059e+37  ;;  %vm6312_vm4 = vmor %vm1408_vm3, %vm1409_vm9 }
  0xf5   :  { %v1415_v24 = vor.u32 1.1754944e-38, %v1414_v17  ;;  %vm1423_vm0 = vweird.f32 %v6229_v40  ;;  %vm1424_vm2 = vweird.f32 %v4395_v14  ;;  %vm6300_vm12 = vcmp.eq.f32.partialorder %v1427_v20, 8.507059e+37 }
  0xf6   :  { %v1406_v29 = vmul.f32 %v4393_v34, %v1405_v10  ;;  %v1420_v47 = vsub.f32 1.0, %v1419_v38  ;;  %v1396_v9 = vsel %vm6290_vm1, %v4391_v51, %v1392_v36  ;;  %v1430_v1 = vor.u32 1.1754944e-38, %v1429_v49  ;;  %vm6323_vm13 = vmor %vm1423_vm0, %vm1424_vm2  ;;  %v6328_v49 = vld [vmem:[#allocation4 + $0x190] sm:$0xff] }
  0xf7   :  { %v4397_v19 = vpop.eup %4396  ;;  %vm1438_vm14 = vweird.f32 %v6254_v46  ;;  %v1442_v22 = vand.u32 2147483647, %v6254_v46  ;;  %v1401_v20 = vsel %vm6282_vm15, %v1400_v31, %v1396_v9  ;;  %v1444_v51 = vand.u32 2147483648, %v6254_v46 }
  0xf8   :  { %v1407_v25 = vadd.f32 %v4393_v34, %v1406_v29  ;;  %v1421_v10 = vmul.f32 %v4395_v14, %v1420_v47  ;;  %v1434_v38 = vmul.f32 %v4397_v19, %v6254_v46  ;;  %vm1439_vm8 = vweird.f32 %v4397_v19 }
  0xf9   :  { %v528_v43 = vsub.f32 1.0, %v6304_v54  ;;  %v6332_v60 = vsub.f32 1.0, %v6306_v4  ;;  %v6338_v40 = vsel %vm276_vm10, %v404_v32, %v1401_v20  ;;  %vm278_vm5 = vcmp.ge.f32.partialorder %v6206_v45, 0.0  ;;  %vm1440_vm10 = vmor %vm1438_vm14, %vm1439_vm8 }
  0xfa   :  { %v1411_v31 = vsel %vm6312_vm4, %v4393_v34, %v1407_v25  ;;  %v1422_v36 = vadd.f32 %v4395_v14, %v1421_v10  ;;  %v1435_v29 = vsub.f32 1.0, %v1434_v38  ;;  %10846 = vst [vmem:[#allocation35_spill] sm:$0xff] %v6338_v40  ;;  %v6349_v34 = vld [vmem:[#allocation4 + $0x198] sm:$0xff]  ;;  %v6352_v63 = vsub.f32 1.0, %v6328_v49 }
  0xfb   :  { %v1416_v47 = vsel %vm6295_vm7, %v1415_v24, %v1411_v31  ;;  %4398 = vrcp.f32 %v528_v43  ;;  %v1445_v53 = vor.u32 1.1754944e-38, %v1444_v51  ;;  %v407_v23 = vadd.f32 1.0, %v6233_v13 }
  0xfc   :  { %v1426_v9 = vsel %vm6323_vm13, %v4395_v14, %v1422_v36  ;;  %v1436_v21 = vmul.f32 %v4397_v19, %v1435_v29  ;;  %v6347_v17 = vsel %vm277_vm6, %v405_v50, %v1416_v47  ;;  %4400 = vrcp.f32 %v6332_v60 }
  0xfd   :  { %10847 = vst [vmem:[#allocation36_spill] sm:$0xff] %v6347_v17  ;;  %v1431_v32 = vsel %vm6300_vm12, %v1430_v1, %v1426_v9  ;;  %v2753_v14 = vadd.f32 %v6347_v17, %v6338_v40  ;;  %vm1443_vm6 = vcmp.eq.f32.partialorder %v1442_v22, 8.507059e+37  ;;  %vm279_vm11 = vcmp.ge.f32.partialorder %v6233_v13, 0.0  ;;  %v6421_v17 = vld [vmem:[#allocation4 + $0x230] sm:$0xff] }
  0xfe   :  { %v1437_v50 = vadd.f32 %v4397_v19, %v1436_v21  ;;  %v6365_v24 = vsel %vm278_vm5, %v406_v37, %v1431_v32  ;;  %v6370_v46 = vsub.f32 1.0, %v6349_v34  ;;  %4402 = vrcp.f32 %v6352_v63 }
  0xff   :  { %10848 = vst [vmem:[#allocation37_spill] sm:$0xff] %v6365_v24  ;;  %v2754_v6 = vadd.f32 %v2753_v14, %v6365_v24  ;;  %vm272_vm15 = vcmp.ge.f32.partialorder %v6304_v54, 0.0  ;;  %v400_v21 = vadd.f32 1.0, %v6304_v54  ;;  %v1337_v22 = vand.u32 2147483647, %v528_v43 }
 0x100   :  { %v1441_v1 = vsel %vm1440_vm10, %v4397_v19, %v1437_v50  ;;  %v1339_v45 = vand.u32 2147483648, %v528_v43  ;;  %v401_v13 = vadd.f32 1.0, %v6306_v4  ;;  %vm1333_vm3 = vweird.f32 %v528_v43  ;;  %v6392_v50 = vld [vmem:[#allocation4 + $0x220] sm:$0xff] }
 0x101   :  { %v4399_v20 = vpop.eup %4398  ;;  %v1446_v25 = vsel %vm1443_vm6, %v1445_v53, %v1441_v1  ;;  %vm273_vm1 = vcmp.ge.f32.partialorder %v6306_v4, 0.0  ;;  %v1352_v19 = vand.u32 2147483647, %v6332_v60  ;;  %v1354_v51 = vand.u32 2147483648, %v6332_v60 }
 0x102   :  { %v6375_v37 = vsel %vm279_vm11, %v407_v23, %v1446_v25  ;;  %v1329_v10 = vmul.f32 %v4399_v20, %v528_v43  ;;  %v4401_v38 = vpop.eup %4400  ;;  %4404 = vrcp.f32 %v6370_v46  ;;  %vm1334_vm9 = vweird.f32 %v4399_v20 }
 0x103   :  { %10849 = vst [vmem:[#allocation38_spill] sm:$0xff] %v6375_v37  ;;  %v2755_v58 = vadd.f32 %v2754_v6, %v6375_v37  ;;  %v1344_v36 = vmul.f32 %v4401_v38, %v6332_v60  ;;  %v1369_v29 = vand.u32 2147483648, %v6352_v63  ;;  %v402_v47 = vadd.f32 1.0, %v6328_v49  ;;  %vm6395_vm4 = vmor %vm1333_vm3, %vm1334_vm9 }
 0x104   :  { %v1330_v31 = vsub.f32 1.0, %v1329_v10  ;;  %vm6386_vm7 = vcmp.eq.f32.partialorder %v1337_v22, 8.507059e+37  ;;  %v1340_v32 = vor.u32 1.1754944e-38, %v1339_v45  ;;  %vm1348_vm0 = vweird.f32 %v6332_v60  ;;  %v4403_v53 = vpop.eup %4402  ;;  %v6405_v10 = vld [vmem:[#allocation4 + $0x228] sm:$0xff] }
 0x105   :  { %2756 = vadd.xlane.f32.xlu1 %v2755_v58  ;;  %v1345_v23 = vsub.f32 1.0, %v1344_v36  ;;  %vm1349_vm2 = vweird.f32 %v4401_v38  ;;  %vm1363_vm12 = vweird.f32 %v6352_v63  ;;  %vm6399_vm14 = vcmp.eq.f32.partialorder %v1352_v19, 8.507059e+37 }
 0x106   :  { %v1331_v14 = vmul.f32 %v4399_v20, %v1330_v31  ;;  %v1355_v25 = vor.u32 1.1754944e-38, %v1354_v51  ;;  %v1359_v22 = vmul.f32 %v4403_v53, %v6352_v63  ;;  %v1367_v45 = vand.u32 2147483647, %v6352_v63  ;;  %vm6410_vm8 = vmor %vm1348_vm0, %vm1349_vm2 }
 0x107   :  { %v1346_v31 = vmul.f32 %v4401_v38, %v1345_v23  ;;  %v1370_v36 = vor.u32 1.1754944e-38, %v1369_v29  ;;  %vm1378_vm13 = vweird.f32 %v6370_v46  ;;  %vm1364_vm5 = vweird.f32 %v4403_v53 }
 0x108   :  { %v1332_v58 = vadd.f32 %v4399_v20, %v1331_v14  ;;  %v4405_v43 = vpop.eup %4404  ;;  %v1360_v37 = vsub.f32 1.0, %v1359_v22  ;;  %v1382_v51 = vand.u32 2147483647, %v6370_v46  ;;  %v6416_v24 = vsub.f32 1.0, %v6392_v50  ;;  %vm6433_vm6 = vmor %vm1363_vm12, %vm1364_vm5 }
 0x109   :  { %v1347_v29 = vadd.f32 %v4401_v38, %v1346_v31  ;;  %v1374_v23 = vmul.f32 %v4405_v43, %v6370_v46  ;;  %v6424_v60 = vsub.f32 1.0, %v6405_v10  ;;  %vm1379_vm10 = vweird.f32 %v4405_v43 }
 0x10a   :  { %v1336_v14 = vsel %vm6395_vm4, %v4399_v20, %v1332_v58  ;;  %v1361_v30 = vmul.f32 %v4403_v53, %v1360_v37  ;;  %v1384_v40 = vand.u32 2147483648, %v6370_v46  ;;  %4406 = vrcp.f32 %v6416_v24 }
 0x10b   :  { %v1341_v22 = vsel %vm6386_vm7, %v1340_v32, %v1336_v14  ;;  %v1351_v44 = vsel %vm6410_vm8, %v4401_v38, %v1347_v29  ;;  %v1375_v6 = vsub.f32 1.0, %v1374_v23  ;;  %vm1368_vm11 = vcmp.eq.f32.partialorder %v1367_v45, 8.507059e+37  ;;  %v6444_v32 = vld [vmem:[#allocation4 + $0x238] sm:$0xff] }
 0x10c   :  { %v6439_v58 = vsel %vm272_vm15, %v400_v21, %v1341_v22  ;;  %v1356_v37 = vsel %vm6399_vm14, %v1355_v25, %v1351_v44  ;;  %v1362_v9 = vadd.f32 %v4403_v53, %v1361_v30  ;;  %v6447_v63 = vsub.f32 1.0, %v6421_v17  ;;  %vm6461_vm15 = vmor %vm1378_vm13, %vm1379_vm10 }
 0x10d   :  { %10860 = vst [vmem:[#allocation39_spill] sm:$0xff] %v6439_v58  ;;  %vm274_vm3 = vcmp.ge.f32.partialorder %v6328_v49, 0.0  ;;  %v1376_v38 = vmul.f32 %v4405_v43, %v1375_v6  ;;  %v6452_v54 = vsel %vm273_vm1, %v401_v13, %v1356_v37  ;;  %4408 = vrcp.f32 %v6424_v60 }
 0x10e   :  { %10861 = vst [vmem:[#allocation40_spill] sm:$0xff] %v6452_v54  ;;  %v403_v21 = vadd.f32 1.0, %v6349_v34  ;;  %v1366_v44 = vsel %vm6433_vm6, %v4403_v53, %v1362_v9  ;;  %v1385_v49 = vor.u32 1.1754944e-38, %v1384_v40  ;;  %v2748_v4 = vadd.f32 %v6452_v54, %v6439_v58  ;;  %v6652_v58 = vld [vmem:[#allocation4 + $0x1f0] sm:$0xff] }
 0x10f   :  { %v1371_v13 = vsel %vm1368_vm11, %v1370_v36, %v1366_v44  ;;  %v1377_v1 = vadd.f32 %v4405_v43, %v1376_v38  ;;  %vm1383_vm1 = vcmp.eq.f32.partialorder %v1382_v51, 8.507059e+37  ;;  %v6468_v25 = vsub.f32 1.0, %v6444_v32 }
 0x110   :  { %vm275_vm9 = vcmp.ge.f32.partialorder %v6349_v34, 0.0  ;;  %v6471_v53 = vsel %vm274_vm3, %v402_v47, %v1371_v13  ;;  %v6474_v46 = vadd.f32 1.0, %v6392_v50  ;;  %4410 = vrcp.f32 %v6447_v63  ;;  %v4407_v45 = vpop.eup %4406 }
 0x111   :  { %10864 = vst [vmem:[#allocation41_spill] sm:$0xff] %v6471_v53  ;;  %v1381_v40 = vsel %vm6461_vm15, %v4405_v43, %v1377_v1  ;;  %v2749_v31 = vadd.f32 %v2748_v4, %v6471_v53  ;;  %vm292_vm7 = vcmp.ge.f32.partialorder %v6392_v50, 0.0  ;;  %vm1633_vm0 = vweird.f32 %v6416_v24 }
 0x112   :  { %v1637_v36 = vand.u32 2147483647, %v6416_v24  ;;  %v1386_v34 = vsel %vm1383_vm1, %v1385_v49, %v1381_v40  ;;  %v1629_v47 = vmul.f32 %v4407_v45, %v6416_v24  ;;  %v1639_v19 = vand.u32 2147483648, %v6416_v24 }
 0x113   :  { %v1652_v51 = vand.u32 2147483647, %v6424_v60  ;;  %v4409_v14 = vpop.eup %4408  ;;  %v6486_v29 = vsel %vm275_vm9, %v403_v21, %v1386_v34  ;;  %vm293_vm2 = vcmp.ge.f32.partialorder %v6405_v10, 0.0  ;;  %vm1634_vm12 = vweird.f32 %v4407_v45 }
 0x114   :  { %10865 = vst [vmem:[#allocation42_spill] sm:$0xff] %v6486_v29  ;;  %v1654_v43 = vand.u32 2147483648, %v6424_v60  ;;  %4412 = vrcp.f32 %v6468_v25  ;;  %v2750_v23 = vadd.f32 %v2749_v31, %v6486_v29  ;;  %v1630_v22 = vsub.f32 1.0, %v1629_v47  ;;  %vm6505_vm5 = vmor %vm1633_vm0, %vm1634_vm12 }
 0x115   :  { %v1644_v20 = vmul.f32 %v4409_v14, %v6424_v60  ;;  %v1669_v6 = vand.u32 2147483648, %v6447_v63  ;;  %v421_v37 = vadd.f32 1.0, %v6405_v10  ;;  %v422_v9 = vadd.f32 1.0, %v6421_v17 }
 0x116   :  { %vm6496_vm4 = vcmp.eq.f32.partialorder %v1637_v36, 8.507059e+37  ;;  %vm1648_vm14 = vweird.f32 %v6424_v60  ;;  %v4411_v21 = vpop.eup %4410  ;;  %2751 = vadd.xlane.f32.xlu0 %v2750_v23  ;;  %vm294_vm13 = vcmp.ge.f32.partialorder %v6421_v17, 0.0  ;;  %v1631_v44 = vmul.f32 %v4407_v45, %v1630_v22 }
 0x117   :  { %v1640_v30 = vor.u32 1.1754944e-38, %v1639_v19  ;;  %v1645_v49 = vsub.f32 1.0, %v1644_v20  ;;  %vm1649_vm8 = vweird.f32 %v4409_v14  ;;  %vm6509_vm10 = vcmp.eq.f32.partialorder %v1652_v51, 8.507059e+37  ;;  %v6516_v19 = vld [vmem:[#allocation4 + $0x200] sm:$0xff]  ;;  %v6526_v20 = vld [vmem:[#allocation4 + $0x208] sm:$0xff] }
 0x118   :  { %v1659_v1 = vmul.f32 %v4411_v21, %v6447_v63  ;;  %vm1663_vm6 = vweird.f32 %v6447_v63  ;;  %v1667_v40 = vand.u32 2147483647, %v6447_v63  ;;  %v1632_v31 = vadd.f32 %v4407_v45, %v1631_v44  ;;  %vm6520_vm11 = vmor %vm1648_vm14, %vm1649_vm8  ;;  %v6558_v63 = vld [vmem:[#allocation4 + $0x218] sm:$0xff] }
 0x119   :  { %v1646_v36 = vmul.f32 %v4409_v14, %v1645_v49  ;;  %v1655_v34 = vor.u32 1.1754944e-38, %v1654_v43  ;;  %v1670_v47 = vor.u32 1.1754944e-38, %v1669_v6  ;;  %vm1664_vm3 = vweird.f32 %v4411_v21 }
 0x11a   :  { %v4413_v24 = vpop.eup %4412  ;;  %v1660_v23 = vsub.f32 1.0, %v1659_v1  ;;  %vm1678_vm15 = vweird.f32 %v6468_v25  ;;  %v1682_v22 = vand.u32 2147483647, %v6468_v25  ;;  %v1636_v43 = vsel %vm6505_vm5, %v4407_v45, %v1632_v31  ;;  %v6534_v1 = vld [vmem:[#allocation4 + $0x210] sm:$0xff]  ;;  %vm6543_vm9 = vmor %vm1663_vm6, %vm1664_vm3 }
 0x11b   :  { %v1647_v6 = vadd.f32 %v4409_v14, %v1646_v36  ;;  %v1674_v44 = vmul.f32 %v4413_v24, %v6468_v25  ;;  %v1684_v60 = vand.u32 2147483648, %v6468_v25  ;;  %v1641_v49 = vsel %vm6496_vm4, %v1640_v30, %v1636_v43 }
 0x11c   :  { %v1661_v29 = vmul.f32 %v4411_v21, %v1660_v23  ;;  %vm1679_vm1 = vweird.f32 %v4413_v24  ;;  %v6537_v53 = vsub.f32 1.0, %v6516_v19  ;;  %v6550_v38 = vsel %vm292_vm7, %v6474_v46, %v1641_v49 }
 0x11d   :  { %v1651_v55 = vsel %vm6520_vm11, %v4409_v14, %v1647_v6  ;;  %v1675_v4 = vsub.f32 1.0, %v1674_v44  ;;  %10876 = vst [vmem:[#allocation43_spill] sm:$0xff] %v6550_v38  ;;  %v6553_v30 = vsub.f32 1.0, %v6526_v20  ;;  %v423_v31 = vadd.f32 1.0, %v6444_v32  ;;  %vm1680_vm7 = vmor %vm1678_vm15, %vm1679_vm1 }
 0x11e   :  { %v1656_v14 = vsel %vm6509_vm10, %v1655_v34, %v1651_v55  ;;  %v1662_v36 = vadd.f32 %v4411_v21, %v1661_v29  ;;  %vm1668_vm0 = vcmp.eq.f32.partialorder %v1667_v40, 8.507059e+37  ;;  %v6565_v50 = vsub.f32 1.0, %v6534_v1 }
 0x11f   :  { %v1676_v51 = vmul.f32 %v4413_v24, %v1675_v4  ;;  %v6562_v23 = vsel %vm293_vm2, %v421_v37, %v1656_v14  ;;  %4414 = vrcp.f32 %v6537_v53  ;;  %vm1683_vm12 = vcmp.eq.f32.partialorder %v1682_v22, 8.507059e+37 }
 0x120   :  { %10877 = vst [vmem:[#allocation44_spill] sm:$0xff] %v6562_v23  ;;  %v1666_v46 = vsel %vm6543_vm9, %v4411_v21, %v1662_v36  ;;  %v1685_v55 = vor.u32 1.1754944e-38, %v1684_v60  ;;  %v2773_v29 = vadd.f32 %v6562_v23, %v6550_v38  ;;  %v6576_v13 = vsub.f32 1.0, %v6558_v63 }
 0x121   :  { %v1671_v10 = vsel %vm1668_vm0, %v1670_v47, %v1666_v46  ;;  %v1677_v37 = vadd.f32 %v4413_v24, %v1676_v51  ;;  %4416 = vrcp.f32 %v6553_v30  ;;  %vm295_vm2 = vcmp.ge.f32.partialorder %v6444_v32, 0.0 }
 0x122   :  { %v6582_v21 = vsel %vm294_vm13, %v422_v9, %v1671_v10  ;;  %v1577_v34 = vand.u32 2147483647, %v6537_v53  ;;  %4418 = vrcp.f32 %v6565_v50  ;;  %v6588_v22 = vadd.f32 1.0, %v6516_v19 }
 0x123   :  { %10878 = vst [vmem:[#allocation45_spill] sm:$0xff] %v6582_v21  ;;  %v1681_v25 = vsel %vm1680_vm7, %v4413_v24, %v1677_v37  ;;  %v2774_v40 = vadd.f32 %v2773_v29, %v6582_v21  ;;  %v1579_v43 = vand.u32 2147483648, %v6537_v53  ;;  %vm288_vm4 = vcmp.ge.f32.partialorder %v6516_v19, 0.0 }
 0x124   :  { %v1686_v47 = vsel %vm1683_vm12, %v1685_v55, %v1681_v25  ;;  %v1592_v17 = vand.u32 2147483647, %v6553_v30  ;;  %v1594_v32 = vand.u32 2147483648, %v6553_v30  ;;  %4420 = vrcp.f32 %v6576_v13 }
 0x125   :  { %v4415_v6 = vpop.eup %4414  ;;  %v6591_v44 = vsel %vm295_vm2, %v423_v31, %v1686_v47  ;;  %v6599_v24 = vadd.f32 1.0, %v6526_v20  ;;  %v6602_v60 = vadd.f32 1.0, %v6534_v1  ;;  %vm289_vm14 = vcmp.ge.f32.partialorder %v6526_v20, 0.0  ;;  %v6626_v47 = vld [vmem:[#allocation4 + $0x1e8] sm:$0xff] }
 0x126   :  { %10879 = vst [vmem:[#allocation46_spill] sm:$0xff] %v6591_v44  ;;  %v2775_v9 = vadd.f32 %v2774_v40, %v6591_v44  ;;  %v1569_v49 = vmul.f32 %v4415_v6, %v6537_v53  ;;  %v6607_v4 = vadd.f32 1.0, %v6558_v63  ;;  %vm1573_vm13 = vweird.f32 %v6537_v53 }
 0x127   :  { %v4417_v45 = vpop.eup %4416  ;;  %vm6610_vm8 = vcmp.eq.f32.partialorder %v1577_v34, 8.507059e+37  ;;  %vm1588_vm5 = vweird.f32 %v6553_v30  ;;  %vm1574_vm10 = vweird.f32 %v4415_v6  ;;  %v1580_v36 = vor.u32 1.1754944e-38, %v1579_v43  ;;  %v6624_v34 = vld [vmem:[#allocation4 + $0x1e0] sm:$0xff] }
 0x128   :  { %2776 = vadd.xlane.f32.xlu2 %v2775_v9  ;;  %v1570_v14 = vsub.f32 1.0, %v1569_v49  ;;  %v1584_v51 = vmul.f32 %v4417_v45, %v6553_v30  ;;  %v4419_v46 = vpop.eup %4418  ;;  %vm290_vm6 = vcmp.ge.f32.partialorder %v6534_v1, 0.0  ;;  %vm6617_vm11 = vcmp.eq.f32.partialorder %v1592_v17, 8.507059e+37  ;;  %vm6631_vm1 = vmor %vm1573_vm13, %vm1574_vm10 }
 0x129   :  { %v1595_v29 = vor.u32 1.1754944e-38, %v1594_v32  ;;  %vm1603_vm3 = vweird.f32 %v6565_v50  ;;  %v1607_v10 = vand.u32 2147483647, %v6565_v50  ;;  %vm1589_vm15 = vweird.f32 %v4417_v45 }
 0x12a   :  { %v1571_v37 = vmul.f32 %v4415_v6, %v1570_v14  ;;  %v1585_v25 = vsub.f32 1.0, %v1584_v51  ;;  %v1599_v40 = vmul.f32 %v4419_v46, %v6565_v50  ;;  %v4421_v43 = vpop.eup %4420  ;;  %vm1604_vm9 = vweird.f32 %v4419_v46  ;;  %vm6641_vm7 = vmor %vm1588_vm5, %vm1589_vm15 }
 0x12b   :  { %v1609_v32 = vand.u32 2147483648, %v6565_v50  ;;  %vm1618_vm0 = vweird.f32 %v6576_v13  ;;  %v1622_v9 = vand.u32 2147483647, %v6576_v13  ;;  %v1614_v44 = vmul.f32 %v4421_v43, %v6576_v13  ;;  %vm6659_vm2 = vmor %vm1603_vm3, %vm1604_vm9 }
 0x12c   :  { %v1572_v49 = vadd.f32 %v4415_v6, %v1571_v37  ;;  %v1586_v14 = vmul.f32 %v4417_v45, %v1585_v25  ;;  %v1600_v51 = vsub.f32 1.0, %v1599_v40  ;;  %vm1619_vm12 = vweird.f32 %v4421_v43 }
 0x12d   :  { %v1624_v21 = vand.u32 2147483648, %v6576_v13  ;;  %v540_v23 = vsub.f32 1.0, %v6624_v34  ;;  %v6648_v38 = vsub.f32 1.0, %v6626_v47  ;;  %v1615_v54 = vsub.f32 1.0, %v1614_v44 }
 0x12e   :  { %v1576_v37 = vsel %vm6631_vm1, %v4415_v6, %v1572_v49  ;;  %v1587_v25 = vadd.f32 %v4417_v45, %v1586_v14  ;;  %v1601_v40 = vmul.f32 %v4419_v46, %v1600_v51  ;;  %vm6663_vm13 = vcmp.eq.f32.partialorder %v1607_v10, 8.507059e+37 }
 0x12f   :  { %v1581_v30 = vsel %vm6610_vm8, %v1580_v36, %v1576_v37  ;;  %v1610_v6 = vor.u32 1.1754944e-38, %v1609_v32  ;;  %4422 = vrcp.f32 %v540_v23  ;;  %v1616_v49 = vmul.f32 %v4421_v43, %v1615_v54  ;;  %vm6679_vm8 = vmor %vm1618_vm0, %vm1619_vm12 }
 0x130   :  { %v1591_v44 = vsel %vm6641_vm7, %v4417_v45, %v1587_v25  ;;  %v1602_v17 = vadd.f32 %v4419_v46, %v1601_v40  ;;  %v6672_v31 = vsel %vm288_vm4, %v6588_v22, %v1581_v30  ;;  %vm1623_vm5 = vcmp.eq.f32.partialorder %v1622_v9, 8.507059e+37  ;;  %v6683_v45 = vld [vmem:[#allocation4 + $0x1f8] sm:$0xff] }
 0x131   :  { %10892 = vst [vmem:[#allocation47_spill] sm:$0xff] %v6672_v31  ;;  %v1596_v50 = vsel %vm6617_vm11, %v1595_v29, %v1591_v44  ;;  %v1625_v10 = vor.u32 1.1754944e-38, %v1624_v21  ;;  %v6686_v54 = vsub.f32 1.0, %v6652_v58  ;;  %v1617_v22 = vadd.f32 %v4421_v43, %v1616_v49 }
 0x132   :  { %v1606_v19 = vsel %vm6659_vm2, %v4419_v46, %v1602_v17  ;;  %v6693_v55 = vsel %vm289_vm14, %v6599_v24, %v1596_v50  ;;  %4424 = vrcp.f32 %v6648_v38  ;;  %vm291_vm4 = vcmp.ge.f32.partialorder %v6558_v63, 0.0 }
 0x133   :  { %10895 = vst [vmem:[#allocation48_spill] sm:$0xff] %v6693_v55  ;;  %v1611_v13 = vsel %vm6663_vm13, %v1610_v6, %v1606_v19  ;;  %v2768_v21 = vadd.f32 %v6693_v55, %v6672_v31  ;;  %v1621_v2 = vsel %vm6679_vm8, %v4421_v43, %v1617_v22  ;;  %v6709_v20 = vsub.f32 1.0, %v6683_v45 }
 0x134   :  { %v6706_v46 = vsel %vm290_vm6, %v6602_v60, %v1611_v13  ;;  %v1626_v29 = vsel %vm1623_vm5, %v1625_v10, %v1621_v2  ;;  %4426 = vrcp.f32 %v6686_v54  ;;  %v1517_v9 = vand.u32 2147483647, %v540_v23 }
 0x135   :  { %10896 = vst [vmem:[#allocation49_spill] sm:$0xff] %v6706_v46  ;;  %v4423_v24 = vpop.eup %4422  ;;  %v2769_v63 = vadd.f32 %v2768_v21, %v6706_v46  ;;  %v6714_v59 = vsel %vm291_vm4, %v6607_v4, %v1626_v29  ;;  %v1519_v43 = vand.u32 2147483648, %v540_v23  ;;  %vm284_vm14 = vcmp.ge.f32.partialorder %v6624_v34, 0.0  ;;  %v6749_v29 = vld [vmem:[#allocation4 + $0x280] sm:$0xff] }
 0x136   :  { %10897 = vst [vmem:[#allocation50_spill] sm:$0xff] %v6714_v59  ;;  %v1509_v32 = vmul.f32 %v4423_v24, %v540_v23  ;;  %vm1513_vm10 = vweird.f32 %v540_v23  ;;  %v1532_v1 = vand.u32 2147483647, %v6648_v38  ;;  %vm285_vm6 = vcmp.ge.f32.partialorder %v6626_v47, 0.0 }
 0x137   :  { %v2770_v14 = vadd.f32 %v2769_v63, %v6714_v59  ;;  %vm1514_vm11 = vweird.f32 %v4423_v24  ;;  %v1534_v53 = vand.u32 2147483648, %v6648_v38  ;;  %4428 = vrcp.f32 %v6709_v20  ;;  %v6751_v63 = vld [vmem:[#allocation4 + $0x288] sm:$0xff] }
 0x138   :  { %v4425_v60 = vpop.eup %4424  ;;  %v1510_v51 = vsub.f32 1.0, %v1509_v32  ;;  %v412_v4 = vadd.f32 1.0, %v6624_v34  ;;  %v413_v37 = vadd.f32 1.0, %v6626_v47  ;;  %v1547_v40 = vand.u32 2147483647, %v6686_v54  ;;  %vm6732_vm15 = vmor %vm1513_vm10, %vm1514_vm11 }
 0x139   :  { %2771 = vadd.xlane.f32.xlu1 %v2770_v14  ;;  %v1524_v25 = vmul.f32 %v4425_v60, %v6648_v38  ;;  %v414_v30 = vadd.f32 1.0, %v6652_v58  ;;  %vm6727_vm3 = vcmp.eq.f32.partialorder %v1517_v9, 8.507059e+37  ;;  %v1520_v17 = vor.u32 1.1754944e-38, %v1519_v43  ;;  %v6794_v43 = vld [vmem:[#allocation4 + $0x298] sm:$0xff] }
 0x13a   :  { %v1511_v6 = vmul.f32 %v4423_v24, %v1510_v51  ;;  %v4427_v49 = vpop.eup %4426  ;;  %vm1528_vm1 = vweird.f32 %v6648_v38  ;;  %vm1529_vm9 = vweird.f32 %v4425_v60  ;;  %v1549_v10 = vand.u32 2147483648, %v6686_v54 }
 0x13b   :  { %v1525_v36 = vsub.f32 1.0, %v1524_v25  ;;  %vm6738_vm0 = vcmp.eq.f32.partialorder %v1532_v1, 8.507059e+37  ;;  %v1535_v13 = vor.u32 1.1754944e-38, %v1534_v53  ;;  %v1539_v21 = vmul.f32 %v4427_v49, %v6686_v54  ;;  %vm6757_vm13 = vmor %vm1528_vm1, %vm1529_vm9 }
 0x13c   :  { %v1512_v19 = vadd.f32 %v4423_v24, %v1511_v6  ;;  %vm1543_vm7 = vweird.f32 %v6686_v54  ;;  %vm6744_vm12 = vcmp.eq.f32.partialorder %v1547_v40, 8.507059e+37  ;;  %vm1558_vm2 = vweird.f32 %v6709_v20  ;;  %v6765_v6 = vld [vmem:[#allocation4 + $0x290] sm:$0xff] }
 0x13d   :  { %v1526_v2 = vmul.f32 %v4425_v60, %v1525_v36  ;;  %v4429_v32 = vpop.eup %4428  ;;  %v1540_v14 = vsub.f32 1.0, %v1539_v21  ;;  %vm1544_vm8 = vweird.f32 %v4427_v49  ;;  %v1562_v1 = vand.u32 2147483647, %v6709_v20 }
 0x13e   :  { %v1516_v9 = vsel %vm6732_vm15, %v4423_v24, %v1512_v19  ;;  %v1550_v25 = vor.u32 1.1754944e-38, %v1549_v10  ;;  %v1554_v40 = vmul.f32 %v4429_v32, %v6709_v20  ;;  %v1564_v38 = vand.u32 2147483648, %v6709_v20  ;;  %vm6776_vm5 = vmor %vm1543_vm7, %vm1544_vm8 }
 0x13f   :  { %v1521_v51 = vsel %vm6727_vm3, %v1520_v17, %v1516_v9  ;;  %v1527_v53 = vadd.f32 %v4425_v60, %v1526_v2  ;;  %v1541_v24 = vmul.f32 %v4427_v49, %v1540_v14  ;;  %v560_v50 = vsub.f32 1.0, %v6749_v29 }
 0x140   :  { %v6770_v36 = vsub.f32 1.0, %v6751_v63  ;;  %v1555_v17 = vsub.f32 1.0, %v1554_v40  ;;  %vm1559_vm4 = vweird.f32 %v4429_v32  ;;  %v6782_v10 = vsel %vm284_vm14, %v412_v4, %v1521_v51 }
 0x141   :  { %v1531_v19 = vsel %vm6757_vm13, %v4425_v60, %v1527_v53  ;;  %10910 = vst [vmem:[#allocation51_spill] sm:$0xff] %v6782_v10  ;;  %v1542_v2 = vadd.f32 %v4427_v49, %v1541_v24  ;;  %v6787_v9 = vsub.f32 1.0, %v6765_v6  ;;  %4430 = vrcp.f32 %v560_v50  ;;  %vm6800_vm14 = vmor %vm1558_vm2, %vm1559_vm4 }
 0x142   :  { %v1536_v21 = vsel %vm6738_vm0, %v1535_v13, %v1531_v19  ;;  %vm286_vm10 = vcmp.ge.f32.partialorder %v6652_v58, 0.0  ;;  %v1556_v54 = vmul.f32 %v4429_v32, %v1555_v17  ;;  %v1565_v22 = vor.u32 1.1754944e-38, %v1564_v38 }
 0x143   :  { %v6792_v60 = vsel %vm285_vm6, %v413_v37, %v1536_v21  ;;  %v1546_v34 = vsel %vm6776_vm5, %v4427_v49, %v1542_v2  ;;  %4432 = vrcp.f32 %v6770_v36  ;;  %v415_v47 = vadd.f32 1.0, %v6683_v45 }
 0x144   :  { %10911 = vst [vmem:[#allocation52_spill] sm:$0xff] %v6792_v60  ;;  %v2763_v58 = vadd.f32 %v6792_v60, %v6782_v10  ;;  %v1551_v37 = vsel %vm6744_vm12, %v1550_v25, %v1546_v34  ;;  %v1557_v13 = vadd.f32 %v4429_v32, %v1556_v54  ;;  %vm1563_vm6 = vcmp.eq.f32.partialorder %v1562_v1, 8.507059e+37 }
 0x145   :  { %vm287_vm11 = vcmp.ge.f32.partialorder %v6683_v45, 0.0  ;;  %v6811_v20 = vsel %vm286_vm10, %v414_v30, %v1551_v37  ;;  %v6814_v49 = vsub.f32 1.0, %v6794_v43  ;;  %4434 = vrcp.f32 %v6787_v9 }
 0x146   :  { %10914 = vst [vmem:[#allocation53_spill] sm:$0xff] %v6811_v20  ;;  %v1561_v14 = vsel %vm6800_vm14, %v4429_v32, %v1557_v13  ;;  %v2764_v51 = vadd.f32 %v2763_v58, %v6811_v20  ;;  %v432_v53 = vadd.f32 1.0, %v6749_v29  ;;  %vm304_vm3 = vcmp.ge.f32.partialorder %v6749_v29, 0.0 }
 0x147   :  { %v4431_v23 = vpop.eup %4430  ;;  %v1566_v25 = vsel %vm1563_vm6, %v1565_v22, %v1561_v14  ;;  %v6823_v45 = vadd.f32 1.0, %v6751_v63  ;;  %v1817_v30 = vand.u32 2147483647, %v560_v50  ;;  %v1819_v1 = vand.u32 2147483648, %v560_v50 }
 0x148   :  { %v6825_v40 = vsel %vm287_vm11, %v415_v47, %v1566_v25  ;;  %v6828_v24 = vadd.f32 1.0, %v6765_v6  ;;  %v1809_v38 = vmul.f32 %v4431_v23, %v560_v50  ;;  %v1832_v32 = vand.u32 2147483647, %v6770_v36 }
 0x149   :  { %10915 = vst [vmem:[#allocation54_spill] sm:$0xff] %v6825_v40  ;;  %v4433_v19 = vpop.eup %4432  ;;  %v2765_v44 = vadd.f32 %v2764_v51, %v6825_v40  ;;  %vm305_vm15 = vcmp.ge.f32.partialorder %v6751_v63, 0.0  ;;  %v1834_v17 = vand.u32 2147483648, %v6770_v36  ;;  %v1847_v21 = vand.u32 2147483647, %v6787_v9 }
 0x14a   :  { %4436 = vrcp.f32 %v6814_v49  ;;  %v1810_v2 = vsub.f32 1.0, %v1809_v38  ;;  %vm1813_vm1 = vweird.f32 %v560_v50  ;;  %vm1814_vm9 = vweird.f32 %v4431_v23  ;;  %v6844_v50 = vld [vmem:[#allocation4 + $0x260] sm:$0xff] }
 0x14b   :  { %v1824_v54 = vmul.f32 %v4433_v19, %v6770_v36  ;;  %v4435_v34 = vpop.eup %4434  ;;  %2766 = vadd.xlane.f32.xlu0 %v2765_v44  ;;  %vm6837_vm0 = vcmp.eq.f32.partialorder %v1817_v30, 8.507059e+37  ;;  %v1820_v22 = vor.u32 1.1754944e-38, %v1819_v1  ;;  %vm1828_vm7 = vweird.f32 %v6770_v36  ;;  %vm6846_vm2 = vmor %vm1813_vm1, %vm1814_vm9  ;;  %v6875_v36 = vld [vmem:[#allocation4 + $0x270] sm:$0xff] }
 0x14c   :  { %v1849_v58 = vand.u32 2147483648, %v6787_v9  ;;  %v1811_v47 = vmul.f32 %v4431_v23, %v1810_v2  ;;  %vm1829_vm12 = vweird.f32 %v4433_v19  ;;  %v1839_v13 = vmul.f32 %v4435_v34, %v6787_v9  ;;  %v6859_v2 = vld [vmem:[#allocation4 + $0x268] sm:$0xff] }
 0x14d   :  { %v1825_v37 = vsub.f32 1.0, %v1824_v54  ;;  %vm6850_vm13 = vcmp.eq.f32.partialorder %v1832_v32, 8.507059e+37  ;;  %v1835_v25 = vor.u32 1.1754944e-38, %v1834_v17  ;;  %vm1843_vm8 = vweird.f32 %v6787_v9  ;;  %vm6863_vm10 = vmor %vm1828_vm7, %vm1829_vm12  ;;  %v6895_v9 = vld [vmem:[#allocation4 + $0x278] sm:$0xff] }
 0x14e   :  { %vm6855_vm5 = vcmp.eq.f32.partialorder %v1847_v21, 8.507059e+37  ;;  %v1812_v1 = vadd.f32 %v4431_v23, %v1811_v47  ;;  %v1840_v44 = vsub.f32 1.0, %v1839_v13  ;;  %vm1844_vm4 = vweird.f32 %v4435_v34 }
 0x14f   :  { %v1826_v38 = vmul.f32 %v4433_v19, %v1825_v37  ;;  %v1850_v17 = vor.u32 1.1754944e-38, %v1849_v58  ;;  %vm1858_vm14 = vweird.f32 %v6814_v49  ;;  %v1864_v21 = vand.u32 2147483648, %v6814_v49  ;;  %vm6881_vm6 = vmor %vm1843_vm8, %vm1844_vm4 }
 0x150   :  { %v4437_v54 = vpop.eup %4436  ;;  %v6870_v59 = vsub.f32 1.0, %v6844_v50  ;;  %v1816_v47 = vsel %vm6846_vm2, %v4431_v23, %v1812_v1  ;;  %v1841_v13 = vmul.f32 %v4435_v34, %v1840_v44  ;;  %v1862_v40 = vand.u32 2147483647, %v6814_v49 }
 0x151   :  { %v1827_v37 = vadd.f32 %v4433_v19, %v1826_v38  ;;  %v1854_v46 = vmul.f32 %v4437_v54, %v6814_v49  ;;  %v1821_v55 = vsel %vm6837_vm0, %v1820_v22, %v1816_v47  ;;  %vm1859_vm11 = vweird.f32 %v4437_v54 }
 0x152   :  { %v6887_v23 = vsub.f32 1.0, %v6859_v2  ;;  %v1842_v1 = vadd.f32 %v4435_v34, %v1841_v13  ;;  %v6893_v4 = vsel %vm304_vm3, %v432_v53, %v1821_v55  ;;  %vm306_vm1 = vcmp.ge.f32.partialorder %v6765_v6, 0.0  ;;  %vm6916_vm3 = vmor %vm1858_vm14, %vm1859_vm11 }
 0x153   :  { %v1831_v14 = vsel %vm6863_vm10, %v4433_v19, %v1827_v37  ;;  %v1855_v38 = vsub.f32 1.0, %v1854_v46  ;;  %10928 = vst [vmem:[#allocation55_spill] sm:$0xff] %v6893_v4  ;;  %v6901_v44 = vsub.f32 1.0, %v6875_v36  ;;  %4438 = vrcp.f32 %v6870_v59 }
 0x154   :  { %v1836_v22 = vsel %vm6850_vm13, %v1835_v25, %v1831_v14  ;;  %v1846_v19 = vsel %vm6881_vm6, %v4435_v34, %v1842_v1  ;;  %v1865_v32 = vor.u32 1.1754944e-38, %v1864_v21  ;;  %v6923_v51 = vsub.f32 1.0, %v6895_v9 }
 0x155   :  { %v1856_v46 = vmul.f32 %v4437_v54, %v1855_v38  ;;  %v6909_v55 = vsel %vm305_vm15, %v6823_v45, %v1836_v22  ;;  %v1851_v29 = vsel %vm6855_vm5, %v1850_v17, %v1846_v19  ;;  %4440 = vrcp.f32 %v6887_v23 }
 0x156   :  { %10929 = vst [vmem:[#allocation56_spill] sm:$0xff] %v6909_v55  ;;  %v2788_v34 = vadd.f32 %v6909_v55, %v6893_v4  ;;  %v435_v63 = vadd.f32 1.0, %v6794_v43  ;;  %vm1863_vm15 = vcmp.eq.f32.partialorder %v1862_v40, 8.507059e+37  ;;  %v6930_v49 = vsel %vm306_vm1, %v6828_v24, %v1851_v29 }
 0x157   :  { %v1857_v45 = vadd.f32 %v4437_v54, %v1856_v46  ;;  %10932 = vst [vmem:[#allocation57_spill] sm:$0xff] %v6930_v49  ;;  %vm307_vm9 = vcmp.ge.f32.partialorder %v6794_v43, 0.0  ;;  %v1757_v30 = vand.u32 2147483647, %v6870_v59  ;;  %4442 = vrcp.f32 %v6901_v44 }
 0x158   :  { %v2789_v25 = vadd.f32 %v2788_v34, %v6930_v49  ;;  %v6939_v21 = vadd.f32 1.0, %v6844_v50  ;;  %v1759_v40 = vand.u32 2147483648, %v6870_v59  ;;  %vm300_vm0 = vcmp.ge.f32.partialorder %v6844_v50, 0.0  ;;  %v6987_v49 = vld [vmem:[#allocation4 + $0x248] sm:$0xff] }
 0x159   :  { %v1861_v17 = vsel %vm6916_vm3, %v4437_v54, %v1857_v45  ;;  %v4439_v47 = vpop.eup %4438  ;;  %v6944_v43 = vadd.f32 1.0, %v6859_v2  ;;  %v6947_v24 = vadd.f32 1.0, %v6875_v36  ;;  %4444 = vrcp.f32 %v6923_v51 }
 0x15a   :  { %v1866_v6 = vsel %vm1863_vm15, %v1865_v32, %v1861_v17  ;;  %v6953_v54 = vadd.f32 1.0, %v6895_v9  ;;  %v1749_v13 = vmul.f32 %v4439_v47, %v6870_v59  ;;  %vm1753_vm7 = vweird.f32 %v6870_v59 }
 0x15b   :  { %v6950_v37 = vsel %vm307_vm9, %v435_v63, %v1866_v6  ;;  %v4441_v58 = vpop.eup %4440  ;;  %vm301_vm12 = vcmp.ge.f32.partialorder %v6859_v2, 0.0  ;;  %vm6959_vm2 = vcmp.eq.f32.partialorder %v1757_v30, 8.507059e+37  ;;  %v1772_v38 = vand.u32 2147483647, %v6887_v23  ;;  %v6972_v30 = vld [vmem:[#allocation4 + $0x240] sm:$0xff] }
 0x15c   :  { %10933 = vst [vmem:[#allocation58_spill] sm:$0xff] %v6950_v37  ;;  %v2790_v14 = vadd.f32 %v2789_v25, %v6950_v37  ;;  %v1774_v22 = vand.u32 2147483648, %v6887_v23  ;;  %v1750_v19 = vsub.f32 1.0, %v1749_v13  ;;  %vm1754_vm13 = vweird.f32 %v4439_v47 }
 0x15d   :  { %v1760_v46 = vor.u32 1.1754944e-38, %v1759_v40  ;;  %v1764_v32 = vmul.f32 %v4441_v58, %v6887_v23  ;;  %v4443_v29 = vpop.eup %4442  ;;  %vm302_vm8 = vcmp.ge.f32.partialorder %v6875_v36, 0.0  ;;  %vm1768_vm5 = vweird.f32 %v6887_v23  ;;  %vm6977_vm14 = vmor %vm1753_vm7, %vm1754_vm13  ;;  %v7015_v40 = vld [vmem:[#allocation4 + $0x250] sm:$0xff] }
 0x15e   :  { %2791 = vadd.xlane.f32.xlu2 %v2790_v14  ;;  %vm1783_vm4 = vweird.f32 %v6901_v44  ;;  %v1787_v53 = vand.u32 2147483647, %v6901_v44  ;;  %v1789_v34 = vand.u32 2147483648, %v6901_v44  ;;  %v1751_v63 = vmul.f32 %v4439_v47, %v1750_v19 }
 0x15f   :  { %v1765_v45 = vsub.f32 1.0, %v1764_v32  ;;  %vm1769_vm10 = vweird.f32 %v4441_v58  ;;  %v1779_v25 = vmul.f32 %v4443_v29, %v6901_v44  ;;  %v4445_v17 = vpop.eup %4444  ;;  %vm6981_vm6 = vcmp.eq.f32.partialorder %v1772_v38, 8.507059e+37 }
 0x160   :  { %v1775_v13 = vor.u32 1.1754944e-38, %v1774_v22  ;;  %vm1784_vm11 = vweird.f32 %v4443_v29  ;;  %vm1798_vm1 = vweird.f32 %v6923_v51  ;;  %v1752_v14 = vadd.f32 %v4439_v47, %v1751_v63  ;;  %vm6991_vm3 = vmor %vm1768_vm5, %vm1769_vm10 }
 0x161   :  { %v1766_v19 = vmul.f32 %v4441_v58, %v1765_v45  ;;  %v1780_v32 = vsub.f32 1.0, %v1779_v25  ;;  %v1794_v37 = vmul.f32 %v4445_v17, %v6923_v51  ;;  %vm1799_vm15 = vweird.f32 %v4445_v17  ;;  %vm7007_vm9 = vmor %vm1783_vm4, %vm1784_vm11 }
 0x162   :  { %v1802_v38 = vand.u32 2147483647, %v6923_v51  ;;  %v1804_v22 = vand.u32 2147483648, %v6923_v51  ;;  %v6998_v55 = vsub.f32 1.0, %v6972_v30  ;;  %v1756_v63 = vsel %vm6977_vm14, %v4439_v47, %v1752_v14 }
 0x163   :  { %v1767_v45 = vadd.f32 %v4441_v58, %v1766_v19  ;;  %v1781_v25 = vmul.f32 %v4443_v29, %v1780_v32  ;;  %v1795_v4 = vsub.f32 1.0, %v1794_v37  ;;  %v1761_v23 = vsel %vm6959_vm2, %v1760_v46, %v1756_v63  ;;  %vm7032_vm2 = vmor %vm1798_vm1, %vm1799_vm15 }
 0x164   :  { %vm7011_vm7 = vcmp.eq.f32.partialorder %v1787_v53, 8.507059e+37  ;;  %v1790_v60 = vor.u32 1.1754944e-38, %v1789_v34  ;;  %v7018_v47 = vsub.f32 1.0, %v6987_v49  ;;  %v7025_v44 = vsel %vm300_vm0, %v6939_v21, %v1761_v23 }
 0x165   :  { %v1771_v37 = vsel %vm6991_vm3, %v4441_v58, %v1767_v45  ;;  %v1782_v1 = vadd.f32 %v4443_v29, %v1781_v25  ;;  %v1796_v46 = vmul.f32 %v4445_v17, %v1795_v4  ;;  %10946 = vst [vmem:[#allocation59_spill] sm:$0xff] %v7025_v44  ;;  %vm1803_vm13 = vcmp.eq.f32.partialorder %v1802_v38, 8.507059e+37  ;;  %v7036_v58 = vld [vmem:[#allocation4 + $0x258] sm:$0xff] }
 0x166   :  { %v1776_v53 = vsel %vm6981_vm6, %v1775_v13, %v1771_v37  ;;  %v1805_v14 = vor.u32 1.1754944e-38, %v1804_v22  ;;  %4446 = vrcp.f32 %v6998_v55  ;;  %v7047_v51 = vsub.f32 1.0, %v7015_v40 }
 0x167   :  { %v1786_v50 = vsel %vm7007_vm9, %v4443_v29, %v1782_v1  ;;  %v1797_v4 = vadd.f32 %v4445_v17, %v1796_v46  ;;  %v7044_v21 = vsel %vm301_vm12, %v6944_v43, %v1776_v53  ;;  %vm303_vm0 = vcmp.ge.f32.partialorder %v6895_v9, 0.0  ;;  %v7093_v46 = vld [vmem:[#allocation4 + $0x2e0] sm:$0xff] }
 0x168   :  { %10949 = vst [vmem:[#allocation60_spill] sm:$0xff] %v7044_v21  ;;  %v1791_v6 = vsel %vm7011_vm7, %v1790_v60, %v1786_v50  ;;  %v2783_v13 = vadd.f32 %v7044_v21, %v7025_v44  ;;  %4448 = vrcp.f32 %v7018_v47  ;;  %v7063_v43 = vsub.f32 1.0, %v7036_v58 }
 0x169   :  { %v1801_v31 = vsel %vm7032_vm2, %v4445_v17, %v1797_v4  ;;  %v7060_v2 = vsel %vm302_vm8, %v6947_v24, %v1791_v6  ;;  %v1697_v29 = vand.u32 2147483647, %v6998_v55  ;;  %4450 = vrcp.f32 %v7047_v51 }
 0x16a   :  { %10950 = vst [vmem:[#allocation61_spill] sm:$0xff] %v7060_v2  ;;  %v1806_v9 = vsel %vm1803_vm13, %v1805_v14, %v1801_v31  ;;  %v2784_v20 = vadd.f32 %v2783_v13, %v7060_v2  ;;  %vm296_vm12 = vcmp.ge.f32.partialorder %v6972_v30, 0.0  ;;  %v1699_v36 = vand.u32 2147483648, %v6998_v55 }
 0x16b   :  { %v7067_v60 = vsel %vm303_vm0, %v6953_v54, %v1806_v9  ;;  %v424_v24 = vadd.f32 1.0, %v6972_v30  ;;  %v1712_v59 = vand.u32 2147483647, %v7018_v47  ;;  %4452 = vrcp.f32 %v7063_v43  ;;  %v7109_v9 = vld [vmem:[#allocation4 + $0x2e8] sm:$0xff] }
 0x16c   :  { %10951 = vst [vmem:[#allocation62_spill] sm:$0xff] %v7067_v60  ;;  %v4447_v19 = vpop.eup %4446  ;;  %v2785_v17 = vadd.f32 %v2784_v20, %v7067_v60  ;;  %vm297_vm8 = vcmp.ge.f32.partialorder %v6987_v49, 0.0  ;;  %v425_v38 = vadd.f32 1.0, %v6987_v49  ;;  %v7081_v22 = vadd.f32 1.0, %v7015_v40 }
 0x16d   :  { %v1689_v32 = vmul.f32 %v4447_v19, %v6998_v55  ;;  %vm1693_vm5 = vweird.f32 %v6998_v55  ;;  %v1714_v63 = vand.u32 2147483648, %v7018_v47  ;;  %vm1694_vm4 = vweird.f32 %v4447_v19 }
 0x16e   :  { %v4449_v54 = vpop.eup %4448  ;;  %2786 = vadd.xlane.f32.xlu1 %v2785_v17  ;;  %vm7085_vm10 = vcmp.eq.f32.partialorder %v1697_v29, 8.507059e+37  ;;  %v1700_v37 = vor.u32 1.1754944e-38, %v1699_v36  ;;  %vm1708_vm14 = vweird.f32 %v7018_v47  ;;  %vm1723_vm6 = vweird.f32 %v7047_v51  ;;  %vm7102_vm15 = vmor %vm1693_vm5, %vm1694_vm4 }
 0x16f   :  { %v1690_v45 = vsub.f32 1.0, %v1689_v32  ;;  %v1704_v23 = vmul.f32 %v4449_v54, %v7018_v47  ;;  %v1727_v1 = vand.u32 2147483647, %v7047_v51  ;;  %v4451_v53 = vpop.eup %4450  ;;  %vm298_vm11 = vcmp.ge.f32.partialorder %v7015_v40, 0.0  ;;  %v7150_v32 = vld [vmem:[#allocation4 + $0x2f8] sm:$0xff] }
 0x170   :  { %vm1709_vm1 = vweird.f32 %v4449_v54  ;;  %vm7096_vm3 = vcmp.eq.f32.partialorder %v1712_v59, 8.507059e+37  ;;  %v1715_v6 = vor.u32 1.1754944e-38, %v1714_v63  ;;  %v1719_v13 = vmul.f32 %v4451_v53, %v7047_v51 }
 0x171   :  { %v1691_v34 = vmul.f32 %v4447_v19, %v1690_v45  ;;  %v1705_v14 = vsub.f32 1.0, %v1704_v23  ;;  %v1729_v31 = vand.u32 2147483648, %v7047_v51  ;;  %vm1738_vm9 = vweird.f32 %v7063_v43  ;;  %v4453_v20 = vpop.eup %4452  ;;  %vm7117_vm7 = vmor %vm1708_vm14, %vm1709_vm1  ;;  %v7123_v23 = vld [vmem:[#allocation4 + $0x2f0] sm:$0xff] }
 0x172   :  { %v1742_v36 = vand.u32 2147483647, %v7063_v43  ;;  %v7113_v55 = vsub.f32 1.0, %v7093_v46  ;;  %v1720_v59 = vsub.f32 1.0, %v1719_v13  ;;  %vm1724_vm2 = vweird.f32 %v4451_v53 }
 0x173   :  { %v1692_v29 = vadd.f32 %v4447_v19, %v1691_v34  ;;  %v1706_v17 = vmul.f32 %v4449_v54, %v1705_v14  ;;  %v1734_v63 = vmul.f32 %v4453_v20, %v7063_v43  ;;  %v1744_v45 = vand.u32 2147483648, %v7063_v43  ;;  %vm7137_vm0 = vmor %vm1723_vm6, %vm1724_vm2 }
 0x174   :  { %vm1739_vm13 = vweird.f32 %v4453_v20  ;;  %v7128_v60 = vsub.f32 1.0, %v7109_v9  ;;  %v1721_v2 = vmul.f32 %v4451_v53, %v1720_v59  ;;  %4454 = vrcp.f32 %v7113_v55 }
 0x175   :  { %v1696_v34 = vsel %vm7102_vm15, %v4447_v19, %v1692_v29  ;;  %v1707_v14 = vadd.f32 %v4449_v54, %v1706_v17  ;;  %v1735_v13 = vsub.f32 1.0, %v1734_v63  ;;  %v1730_v19 = vor.u32 1.1754944e-38, %v1729_v31  ;;  %vm7156_vm4 = vmor %vm1738_vm9, %vm1739_vm13 }
 0x176   :  { %v1701_v47 = vsel %vm7085_vm10, %v1700_v37, %v1696_v34  ;;  %v7146_v25 = vsub.f32 1.0, %v7123_v23  ;;  %v1722_v17 = vadd.f32 %v4451_v53, %v1721_v2  ;;  %vm1728_vm5 = vcmp.eq.f32.partialorder %v1727_v1, 8.507059e+37 }
 0x177   :  { %v1711_v21 = vsel %vm7117_vm7, %v4449_v54, %v1707_v14  ;;  %v7143_v29 = vsel %vm296_vm12, %v424_v24, %v1701_v47  ;;  %v1736_v54 = vmul.f32 %v4453_v20, %v1735_v13  ;;  %v427_v51 = vadd.f32 1.0, %v7036_v58 }
 0x178   :  { %10962 = vst [vmem:[#allocation63_spill] sm:$0xff] %v7143_v29  ;;  %v1716_v37 = vsel %vm7096_vm3, %v1715_v6, %v1711_v21  ;;  %v1745_v24 = vor.u32 1.1754944e-38, %v1744_v45  ;;  %4456 = vrcp.f32 %v7128_v60  ;;  %v1726_v21 = vsel %vm7137_vm0, %v4451_v53, %v1722_v17 }
 0x179   :  { %v7162_v31 = vsel %vm297_vm8, %v425_v38, %v1716_v37  ;;  %v1737_v2 = vadd.f32 %v4453_v20, %v1736_v54  ;;  %vm1743_vm12 = vcmp.eq.f32.partialorder %v1742_v36, 8.507059e+37  ;;  %vm299_vm10 = vcmp.ge.f32.partialorder %v7036_v58, 0.0 }
 0x17a   :  { %10965 = vst [vmem:[#allocation64_spill] sm:$0xff] %v7162_v31  ;;  %v2778_v1 = vadd.f32 %v7162_v31, %v7143_v29  ;;  %v1731_v43 = vsel %vm1728_vm5, %v1730_v19, %v1726_v21  ;;  %v7171_v50 = vsub.f32 1.0, %v7150_v32  ;;  %4458 = vrcp.f32 %v7146_v25  ;;  %v4455_v49 = vpop.eup %4454  ;;  %v7569_v31 = vld [vmem:[#allocation4 + $0x330] sm:$0xff] }
 0x17b   :  { %v1741_v38 = vsel %vm7156_vm4, %v4453_v20, %v1737_v2  ;;  %v7179_v53 = vsel %vm298_vm11, %v7081_v22, %v1731_v43  ;;  %v444_v6 = vadd.f32 1.0, %v7093_v46  ;;  %vm1993_vm8 = vweird.f32 %v7113_v55 }
 0x17c   :  { %10966 = vst [vmem:[#allocation65_spill] sm:$0xff] %v7179_v53  ;;  %v1746_v58 = vsel %vm1743_vm12, %v1745_v24, %v1741_v38  ;;  %v2779_v36 = vadd.f32 %v2778_v1, %v7179_v53  ;;  %vm316_vm14 = vcmp.ge.f32.partialorder %v7093_v46, 0.0  ;;  %v1989_v59 = vmul.f32 %v4455_v49, %v7113_v55 }
 0x17d   :  { %v1997_v63 = vand.u32 2147483647, %v7113_v55  ;;  %v7187_v45 = vsel %vm299_vm10, %v427_v51, %v1746_v58  ;;  %v1999_v20 = vand.u32 2147483648, %v7113_v55  ;;  %v2012_v40 = vand.u32 2147483647, %v7128_v60 }
 0x17e   :  { %10967 = vst [vmem:[#allocation66_spill] sm:$0xff] %v7187_v45  ;;  %v2014_v22 = vand.u32 2147483648, %v7128_v60  ;;  %v4457_v34 = vpop.eup %4456  ;;  %v2780_v14 = vadd.f32 %v2779_v36, %v7187_v45  ;;  %vm317_vm6 = vcmp.ge.f32.partialorder %v7109_v9, 0.0  ;;  %v1990_v47 = vsub.f32 1.0, %v1989_v59 }
 0x17f   :  { %vm1994_vm11 = vweird.f32 %v4455_v49  ;;  %4460 = vrcp.f32 %v7171_v50  ;;  %v445_v13 = vadd.f32 1.0, %v7109_v9  ;;  %v446_v4 = vadd.f32 1.0, %v7123_v23 }
 0x180   :  { %v2004_v19 = vmul.f32 %v4457_v34, %v7128_v60  ;;  %v2027_v37 = vand.u32 2147483647, %v7146_v25  ;;  %v4459_v17 = vpop.eup %4458  ;;  %2781 = vadd.xlane.f32.xlu0 %v2780_v14  ;;  %v1991_v54 = vmul.f32 %v4455_v49, %v1990_v47  ;;  %vm7199_vm1 = vcmp.eq.f32.partialorder %v1997_v63, 8.507059e+37  ;;  %vm7207_vm15 = vmor %vm1993_vm8, %vm1994_vm11  ;;  %v7221_v63 = vld [vmem:[#allocation4 + $0x2c0] sm:$0xff] }
 0x181   :  { %vm2008_vm3 = vweird.f32 %v7128_v60  ;;  %v2029_v30 = vand.u32 2147483648, %v7146_v25  ;;  %v2000_v21 = vor.u32 1.1754944e-38, %v1999_v20  ;;  %vm2009_vm9 = vweird.f32 %v4457_v34  ;;  %v7223_v20 = vld [vmem:[#allocation4 + $0x2c8] sm:$0xff] }
 0x182   :  { %v2005_v2 = vsub.f32 1.0, %v2004_v19  ;;  %v2019_v1 = vmul.f32 %v4459_v17, %v7146_v25  ;;  %v1992_v43 = vadd.f32 %v4455_v49, %v1991_v54  ;;  %vm7212_vm7 = vcmp.eq.f32.partialorder %v2012_v40, 8.507059e+37  ;;  %vm7229_vm5 = vmor %vm2008_vm3, %vm2009_vm9 }
 0x183   :  { %v2015_v58 = vor.u32 1.1754944e-38, %v2014_v22  ;;  %vm2023_vm2 = vweird.f32 %v7146_v25  ;;  %vm2024_vm13 = vweird.f32 %v4459_v17  ;;  %vm7217_vm0 = vcmp.eq.f32.partialorder %v2027_v37, 8.507059e+37 }
 0x184   :  { %v2006_v36 = vmul.f32 %v4457_v34, %v2005_v2  ;;  %v2020_v59 = vsub.f32 1.0, %v2019_v1  ;;  %v1996_v40 = vsel %vm7207_vm15, %v4455_v49, %v1992_v43  ;;  %v2030_v47 = vor.u32 1.1754944e-38, %v2029_v30  ;;  %vm7240_vm12 = vmor %vm2023_vm2, %vm2024_vm13  ;;  %v7245_v30 = vld [vmem:[#allocation4 + $0x2d0] sm:$0xff] }
 0x185   :  { %v4461_v14 = vpop.eup %4460  ;;  %vm2038_vm4 = vweird.f32 %v7171_v50  ;;  %v2042_v19 = vand.u32 2147483647, %v7171_v50  ;;  %v2001_v37 = vsel %vm7199_vm1, %v2000_v21, %v1996_v40  ;;  %v2044_v49 = vand.u32 2147483648, %v7171_v50 }
 0x186   :  { %v2007_v54 = vadd.f32 %v4457_v34, %v2006_v36  ;;  %v2021_v2 = vmul.f32 %v4459_v17, %v2020_v59  ;;  %v2034_v1 = vmul.f32 %v4461_v14, %v7171_v50  ;;  %vm2039_vm10 = vweird.f32 %v4461_v14 }
 0x187   :  { %v568_v24 = vsub.f32 1.0, %v7221_v63  ;;  %v7249_v51 = vsub.f32 1.0, %v7223_v20  ;;  %v7255_v25 = vsel %vm316_vm14, %v444_v6, %v2001_v37  ;;  %vm318_vm8 = vcmp.ge.f32.partialorder %v7123_v23, 0.0  ;;  %vm2040_vm14 = vmor %vm2038_vm4, %vm2039_vm10 }
 0x188   :  { %v2011_v21 = vsel %vm7229_vm5, %v4457_v34, %v2007_v54  ;;  %v2022_v43 = vadd.f32 %v4459_v17, %v2021_v2  ;;  %v2035_v36 = vsub.f32 1.0, %v2034_v1  ;;  %10980 = vst [vmem:[#allocation67_spill] sm:$0xff] %v7255_v25  ;;  %v7266_v34 = vld [vmem:[#allocation4 + $0x2d8] sm:$0xff]  ;;  %v7269_v46 = vsub.f32 1.0, %v7245_v30 }
 0x189   :  { %v2016_v59 = vsel %vm7212_vm7, %v2015_v58, %v2011_v21  ;;  %4462 = vrcp.f32 %v568_v24  ;;  %v2045_v38 = vor.u32 1.1754944e-38, %v2044_v49  ;;  %v447_v9 = vadd.f32 1.0, %v7150_v32 }
 0x18a   :  { %v2026_v40 = vsel %vm7240_vm12, %v4459_v17, %v2022_v43  ;;  %v2036_v45 = vmul.f32 %v4461_v14, %v2035_v36  ;;  %v7264_v22 = vsel %vm317_vm6, %v445_v13, %v2016_v59  ;;  %4464 = vrcp.f32 %v7249_v51 }
 0x18b   :  { %10981 = vst [vmem:[#allocation68_spill] sm:$0xff] %v7264_v22  ;;  %v2031_v6 = vsel %vm7217_vm0, %v2030_v47, %v2026_v40  ;;  %v2803_v17 = vadd.f32 %v7264_v22, %v7255_v25  ;;  %vm2043_vm6 = vcmp.eq.f32.partialorder %v2042_v19, 8.507059e+37  ;;  %vm319_vm11 = vcmp.ge.f32.partialorder %v7150_v32, 0.0  ;;  %v7338_v22 = vld [vmem:[#allocation4 + $0x2b0] sm:$0xff] }
 0x18c   :  { %v2037_v13 = vadd.f32 %v4461_v14, %v2036_v45  ;;  %v7282_v58 = vsel %vm318_vm8, %v446_v4, %v2031_v6  ;;  %v7287_v50 = vsub.f32 1.0, %v7266_v34  ;;  %4466 = vrcp.f32 %v7269_v46 }
 0x18d   :  { %10982 = vst [vmem:[#allocation69_spill] sm:$0xff] %v7282_v58  ;;  %v2804_v55 = vadd.f32 %v2803_v17, %v7282_v58  ;;  %vm312_vm1 = vcmp.ge.f32.partialorder %v7221_v63, 0.0  ;;  %v440_v45 = vadd.f32 1.0, %v7221_v63  ;;  %v1937_v19 = vand.u32 2147483647, %v568_v24 }
 0x18e   :  { %v2041_v47 = vsel %vm2040_vm14, %v4461_v14, %v2037_v13  ;;  %v1939_v23 = vand.u32 2147483648, %v568_v24  ;;  %v441_v32 = vadd.f32 1.0, %v7223_v20  ;;  %vm1933_vm3 = vweird.f32 %v568_v24  ;;  %v7309_v13 = vld [vmem:[#allocation4 + $0x2a0] sm:$0xff] }
 0x18f   :  { %v4463_v37 = vpop.eup %4462  ;;  %v2046_v54 = vsel %vm2043_vm6, %v2045_v38, %v2041_v47  ;;  %vm313_vm15 = vcmp.ge.f32.partialorder %v7223_v20, 0.0  ;;  %v1952_v14 = vand.u32 2147483647, %v7249_v51  ;;  %v1954_v49 = vand.u32 2147483648, %v7249_v51 }
 0x190   :  { %v7292_v4 = vsel %vm319_vm11, %v447_v9, %v2046_v54  ;;  %v1929_v2 = vmul.f32 %v4463_v37, %v568_v24  ;;  %v4465_v1 = vpop.eup %4464  ;;  %4468 = vrcp.f32 %v7287_v50  ;;  %vm1934_vm9 = vweird.f32 %v4463_v37 }
 0x191   :  { %10983 = vst [vmem:[#allocation70_spill] sm:$0xff] %v7292_v4  ;;  %v2805_v60 = vadd.f32 %v2804_v55, %v7292_v4  ;;  %v1944_v43 = vmul.f32 %v4465_v1, %v7249_v51  ;;  %v1969_v36 = vand.u32 2147483648, %v7269_v46  ;;  %v442_v59 = vadd.f32 1.0, %v7245_v30  ;;  %vm7312_vm5 = vmor %vm1933_vm3, %vm1934_vm9 }
 0x192   :  { %v1930_v21 = vsub.f32 1.0, %v1929_v2  ;;  %vm7303_vm7 = vcmp.eq.f32.partialorder %v1937_v19, 8.507059e+37  ;;  %v1940_v6 = vor.u32 1.1754944e-38, %v1939_v23  ;;  %vm1948_vm2 = vweird.f32 %v7249_v51  ;;  %v4467_v38 = vpop.eup %4466  ;;  %v7322_v2 = vld [vmem:[#allocation4 + $0x2a8] sm:$0xff] }
 0x193   :  { %2806 = vadd.xlane.f32.xlu2 %v2805_v60  ;;  %v1945_v9 = vsub.f32 1.0, %v1944_v43  ;;  %vm1949_vm13 = vweird.f32 %v4465_v1  ;;  %vm1963_vm0 = vweird.f32 %v7269_v46  ;;  %vm7316_vm4 = vcmp.eq.f32.partialorder %v1952_v14, 8.507059e+37 }
 0x194   :  { %v1931_v17 = vmul.f32 %v4463_v37, %v1930_v21  ;;  %v1955_v54 = vor.u32 1.1754944e-38, %v1954_v49  ;;  %v1959_v19 = vmul.f32 %v4467_v38, %v7269_v46  ;;  %v1967_v23 = vand.u32 2147483647, %v7269_v46  ;;  %vm7327_vm10 = vmor %vm1948_vm2, %vm1949_vm13 }
 0x195   :  { %v1946_v21 = vmul.f32 %v4465_v1, %v1945_v9  ;;  %v1970_v43 = vor.u32 1.1754944e-38, %v1969_v36  ;;  %vm1978_vm12 = vweird.f32 %v7287_v50  ;;  %vm1964_vm8 = vweird.f32 %v4467_v38 }
 0x196   :  { %v1932_v60 = vadd.f32 %v4463_v37, %v1931_v17  ;;  %v4469_v24 = vpop.eup %4468  ;;  %v1960_v4 = vsub.f32 1.0, %v1959_v19  ;;  %v1982_v49 = vand.u32 2147483647, %v7287_v50  ;;  %v7333_v58 = vsub.f32 1.0, %v7309_v13  ;;  %vm7350_vm6 = vmor %vm1963_vm0, %vm1964_vm8 }
 0x197   :  { %v1947_v36 = vadd.f32 %v4465_v1, %v1946_v21  ;;  %v1974_v9 = vmul.f32 %v4469_v24, %v7287_v50  ;;  %v7341_v51 = vsub.f32 1.0, %v7322_v2  ;;  %vm1979_vm14 = vweird.f32 %v4469_v24 }
 0x198   :  { %v1936_v17 = vsel %vm7312_vm5, %v4463_v37, %v1932_v60  ;;  %v1961_v25 = vmul.f32 %v4467_v38, %v1960_v4  ;;  %v1984_v53 = vand.u32 2147483648, %v7287_v50  ;;  %4470 = vrcp.f32 %v7333_v58 }
 0x199   :  { %v1941_v19 = vsel %vm7303_vm7, %v1940_v6, %v1936_v17  ;;  %v1951_v44 = vsel %vm7327_vm10, %v4465_v1, %v1947_v36  ;;  %v1975_v55 = vsub.f32 1.0, %v1974_v9  ;;  %vm1968_vm11 = vcmp.eq.f32.partialorder %v1967_v23, 8.507059e+37  ;;  %v7361_v6 = vld [vmem:[#allocation4 + $0x2b8] sm:$0xff] }
 0x19a   :  { %v7356_v60 = vsel %vm312_vm1, %v440_v45, %v1941_v19  ;;  %v1956_v4 = vsel %vm7316_vm4, %v1955_v54, %v1951_v44  ;;  %v1962_v40 = vadd.f32 %v4467_v38, %v1961_v25  ;;  %v7364_v46 = vsub.f32 1.0, %v7338_v22  ;;  %vm7378_vm1 = vmor %vm1978_vm12, %vm1979_vm14 }
 0x19b   :  { %10994 = vst [vmem:[#allocation71_spill] sm:$0xff] %v7356_v60  ;;  %vm314_vm3 = vcmp.ge.f32.partialorder %v7245_v30, 0.0  ;;  %v1976_v1 = vmul.f32 %v4469_v24, %v1975_v55  ;;  %v7369_v63 = vsel %vm313_vm15, %v441_v32, %v1956_v4  ;;  %4472 = vrcp.f32 %v7341_v51 }
 0x19c   :  { %10995 = vst [vmem:[#allocation72_spill] sm:$0xff] %v7369_v63  ;;  %v443_v45 = vadd.f32 1.0, %v7266_v34  ;;  %v1966_v44 = vsel %vm7350_vm6, %v4467_v38, %v1962_v40  ;;  %v1985_v30 = vor.u32 1.1754944e-38, %v1984_v53  ;;  %v2798_v20 = vadd.f32 %v7369_v63, %v7356_v60 }
 0x19d   :  { %v1971_v32 = vsel %vm1968_vm11, %v1970_v43, %v1966_v44  ;;  %v1977_v47 = vadd.f32 %v4469_v24, %v1976_v1  ;;  %vm1983_vm15 = vcmp.eq.f32.partialorder %v1982_v49, 8.507059e+37  ;;  %v7385_v54 = vsub.f32 1.0, %v7361_v6 }
 0x19e   :  { %vm315_vm9 = vcmp.ge.f32.partialorder %v7266_v34, 0.0  ;;  %v7388_v38 = vsel %vm314_vm3, %v442_v59, %v1971_v32  ;;  %v7391_v50 = vadd.f32 1.0, %v7309_v13  ;;  %4474 = vrcp.f32 %v7364_v46  ;;  %v4471_v23 = vpop.eup %4470 }
 0x19f   :  { %10998 = vst [vmem:[#allocation73_spill] sm:$0xff] %v7388_v38  ;;  %v1981_v53 = vsel %vm7378_vm1, %v4469_v24, %v1977_v47  ;;  %v2799_v21 = vadd.f32 %v2798_v20, %v7388_v38  ;;  %vm308_vm7 = vcmp.ge.f32.partialorder %v7309_v13, 0.0  ;;  %vm1873_vm2 = vweird.f32 %v7333_v58 }
 0x1a0   :  { %v1877_v43 = vand.u32 2147483647, %v7333_v58  ;;  %v1986_v34 = vsel %vm1983_vm15, %v1985_v30, %v1981_v53  ;;  %v1869_v59 = vmul.f32 %v4471_v23, %v7333_v58  ;;  %v1879_v14 = vand.u32 2147483648, %v7333_v58 }
 0x1a1   :  { %v1892_v49 = vand.u32 2147483647, %v7341_v51  ;;  %v4473_v17 = vpop.eup %4472  ;;  %v7403_v36 = vsel %vm315_vm9, %v443_v45, %v1986_v34  ;;  %vm309_vm13 = vcmp.ge.f32.partialorder %v7322_v2, 0.0  ;;  %vm1874_vm0 = vweird.f32 %v4471_v23 }
 0x1a2   :  { %10999 = vst [vmem:[#allocation74_spill] sm:$0xff] %v7403_v36  ;;  %v1894_v24 = vand.u32 2147483648, %v7341_v51  ;;  %4476 = vrcp.f32 %v7385_v54  ;;  %v2800_v9 = vadd.f32 %v2799_v21, %v7403_v36  ;;  %v1870_v19 = vsub.f32 1.0, %v1869_v59  ;;  %vm7422_vm8 = vmor %vm1873_vm2, %vm1874_vm0 }
 0x1a3   :  { %v1884_v37 = vmul.f32 %v4473_v17, %v7341_v51  ;;  %v1909_v55 = vand.u32 2147483648, %v7364_v46  ;;  %v437_v4 = vadd.f32 1.0, %v7322_v2  ;;  %v438_v40 = vadd.f32 1.0, %v7338_v22 }
 0x1a4   :  { %vm7413_vm5 = vcmp.eq.f32.partialorder %v1877_v43, 8.507059e+37  ;;  %vm1888_vm4 = vweird.f32 %v7341_v51  ;;  %v4475_v45 = vpop.eup %4474  ;;  %2801 = vadd.xlane.f32.xlu1 %v2800_v9  ;;  %vm310_vm12 = vcmp.ge.f32.partialorder %v7338_v22, 0.0  ;;  %v1871_v44 = vmul.f32 %v4471_v23, %v1870_v19 }
 0x1a5   :  { %v1880_v25 = vor.u32 1.1754944e-38, %v1879_v14  ;;  %v1885_v30 = vsub.f32 1.0, %v1884_v37  ;;  %vm1889_vm10 = vweird.f32 %v4473_v17  ;;  %vm7426_vm14 = vcmp.eq.f32.partialorder %v1892_v49, 8.507059e+37  ;;  %v7433_v14 = vld [vmem:[#allocation4 + $0x340] sm:$0xff]  ;;  %v7443_v37 = vld [vmem:[#allocation4 + $0x348] sm:$0xff] }
 0x1a6   :  { %v1899_v47 = vmul.f32 %v4475_v45, %v7364_v46  ;;  %vm1903_vm6 = vweird.f32 %v7364_v46  ;;  %v1907_v53 = vand.u32 2147483647, %v7364_v46  ;;  %v1872_v21 = vadd.f32 %v4471_v23, %v1871_v44  ;;  %vm7437_vm11 = vmor %vm1888_vm4, %vm1889_vm10  ;;  %v7475_v46 = vld [vmem:[#allocation4 + $0x358] sm:$0xff] }
 0x1a7   :  { %v1886_v43 = vmul.f32 %v4473_v17, %v1885_v30  ;;  %v1895_v34 = vor.u32 1.1754944e-38, %v1894_v24  ;;  %v1910_v59 = vor.u32 1.1754944e-38, %v1909_v55  ;;  %vm1904_vm3 = vweird.f32 %v4475_v45 }
 0x1a8   :  { %v4477_v58 = vpop.eup %4476  ;;  %v1900_v9 = vsub.f32 1.0, %v1899_v47  ;;  %vm1918_vm1 = vweird.f32 %v7385_v54  ;;  %v1922_v19 = vand.u32 2147483647, %v7385_v54  ;;  %v1876_v24 = vsel %vm7422_vm8, %v4471_v23, %v1872_v21  ;;  %v7451_v47 = vld [vmem:[#allocation4 + $0x350] sm:$0xff]  ;;  %vm7460_vm9 = vmor %vm1903_vm6, %vm1904_vm3 }
 0x1a9   :  { %v1887_v55 = vadd.f32 %v4473_v17, %v1886_v43  ;;  %v1914_v44 = vmul.f32 %v4477_v58, %v7385_v54  ;;  %v1924_v51 = vand.u32 2147483648, %v7385_v54  ;;  %v1881_v30 = vsel %vm7413_vm5, %v1880_v25, %v1876_v24 }
 0x1aa   :  { %v1901_v36 = vmul.f32 %v4475_v45, %v1900_v9  ;;  %vm1919_vm15 = vweird.f32 %v4477_v58  ;;  %v7454_v38 = vsub.f32 1.0, %v7433_v14  ;;  %v7467_v1 = vsel %vm308_vm7, %v7391_v50, %v1881_v30 }
 0x1ab   :  { %v1891_v63 = vsel %vm7437_vm11, %v4473_v17, %v1887_v55  ;;  %v1915_v20 = vsub.f32 1.0, %v1914_v44  ;;  %11010 = vst [vmem:[#allocation75_spill] sm:$0xff] %v7467_v1  ;;  %v7470_v25 = vsub.f32 1.0, %v7443_v37  ;;  %v439_v21 = vadd.f32 1.0, %v7361_v6  ;;  %vm1920_vm7 = vmor %vm1918_vm1, %vm1919_vm15 }
 0x1ac   :  { %v1896_v17 = vsel %vm7426_vm14, %v1895_v34, %v1891_v63  ;;  %v1902_v43 = vadd.f32 %v4475_v45, %v1901_v36  ;;  %vm1908_vm2 = vcmp.eq.f32.partialorder %v1907_v53, 8.507059e+37  ;;  %v7482_v13 = vsub.f32 1.0, %v7451_v47 }
 0x1ad   :  { %v1916_v49 = vmul.f32 %v4477_v58, %v1915_v20  ;;  %v7479_v9 = vsel %vm309_vm13, %v437_v4, %v1896_v17  ;;  %4478 = vrcp.f32 %v7454_v38  ;;  %vm1923_vm0 = vcmp.eq.f32.partialorder %v1922_v19, 8.507059e+37 }
 0x1ae   :  { %11011 = vst [vmem:[#allocation76_spill] sm:$0xff] %v7479_v9  ;;  %v1906_v50 = vsel %vm7460_vm9, %v4475_v45, %v1902_v43  ;;  %v1925_v63 = vor.u32 1.1754944e-38, %v1924_v51  ;;  %v2793_v36 = vadd.f32 %v7479_v9, %v7467_v1  ;;  %v7493_v32 = vsub.f32 1.0, %v7475_v46 }
 0x1af   :  { %v1911_v2 = vsel %vm1908_vm2, %v1910_v59, %v1906_v50  ;;  %v1917_v4 = vadd.f32 %v4477_v58, %v1916_v49  ;;  %4480 = vrcp.f32 %v7470_v25  ;;  %vm311_vm13 = vcmp.ge.f32.partialorder %v7361_v6, 0.0 }
 0x1b0   :  { %v7499_v45 = vsel %vm310_vm12, %v438_v40, %v1911_v2  ;;  %v2177_v34 = vand.u32 2147483647, %v7454_v38  ;;  %4482 = vrcp.f32 %v7482_v13  ;;  %v7505_v19 = vadd.f32 1.0, %v7433_v14 }
 0x1b1   :  { %11012 = vst [vmem:[#allocation77_spill] sm:$0xff] %v7499_v45  ;;  %v1921_v54 = vsel %vm1920_vm7, %v4477_v58, %v1917_v4  ;;  %v2794_v53 = vadd.f32 %v2793_v36, %v7499_v45  ;;  %v2179_v24 = vand.u32 2147483648, %v7454_v38  ;;  %vm328_vm5 = vcmp.ge.f32.partialorder %v7433_v14, 0.0 }
 0x1b2   :  { %v1926_v59 = vsel %vm1923_vm0, %v1925_v63, %v1921_v54  ;;  %v2192_v22 = vand.u32 2147483647, %v7470_v25  ;;  %v2194_v6 = vand.u32 2147483648, %v7470_v25  ;;  %4484 = vrcp.f32 %v7493_v32 }
 0x1b3   :  { %v4479_v55 = vpop.eup %4478  ;;  %v7508_v44 = vsel %vm311_vm13, %v439_v21, %v1926_v59  ;;  %v7516_v58 = vadd.f32 1.0, %v7443_v37  ;;  %v7519_v51 = vadd.f32 1.0, %v7451_v47  ;;  %vm329_vm4 = vcmp.ge.f32.partialorder %v7443_v37, 0.0  ;;  %v7543_v59 = vld [vmem:[#allocation4 + $0x328] sm:$0xff] }
 0x1b4   :  { %11013 = vst [vmem:[#allocation78_spill] sm:$0xff] %v7508_v44  ;;  %v2795_v40 = vadd.f32 %v2794_v53, %v7508_v44  ;;  %v2169_v30 = vmul.f32 %v4479_v55, %v7454_v38  ;;  %v7524_v20 = vadd.f32 1.0, %v7475_v46  ;;  %vm2173_vm12 = vweird.f32 %v7454_v38 }
 0x1b5   :  { %v4481_v23 = vpop.eup %4480  ;;  %vm7527_vm10 = vcmp.eq.f32.partialorder %v2177_v34, 8.507059e+37  ;;  %vm2188_vm8 = vweird.f32 %v7470_v25  ;;  %vm2174_vm14 = vweird.f32 %v4479_v55  ;;  %v2180_v43 = vor.u32 1.1754944e-38, %v2179_v24  ;;  %v7541_v34 = vld [vmem:[#allocation4 + $0x320] sm:$0xff] }
 0x1b6   :  { %2796 = vadd.xlane.f32.xlu0 %v2795_v40  ;;  %v2170_v17 = vsub.f32 1.0, %v2169_v30  ;;  %v2184_v49 = vmul.f32 %v4481_v23, %v7470_v25  ;;  %v4483_v50 = vpop.eup %4482  ;;  %vm330_vm6 = vcmp.ge.f32.partialorder %v7451_v47, 0.0  ;;  %vm7534_vm11 = vcmp.eq.f32.partialorder %v2192_v22, 8.507059e+37  ;;  %vm7548_vm15 = vmor %vm2173_vm12, %vm2174_vm14 }
 0x1b7   :  { %v2195_v36 = vor.u32 1.1754944e-38, %v2194_v6  ;;  %vm2203_vm3 = vweird.f32 %v7482_v13  ;;  %v2207_v2 = vand.u32 2147483647, %v7482_v13  ;;  %vm2189_vm1 = vweird.f32 %v4481_v23 }
 0x1b8   :  { %v2171_v4 = vmul.f32 %v4479_v55, %v2170_v17  ;;  %v2185_v54 = vsub.f32 1.0, %v2184_v49  ;;  %v2199_v53 = vmul.f32 %v4483_v50, %v7482_v13  ;;  %v4485_v24 = vpop.eup %4484  ;;  %vm2204_vm9 = vweird.f32 %v4483_v50  ;;  %vm7558_vm7 = vmor %vm2188_vm8, %vm2189_vm1 }
 0x1b9   :  { %v2209_v6 = vand.u32 2147483648, %v7482_v13  ;;  %vm2218_vm2 = vweird.f32 %v7493_v32  ;;  %v2222_v40 = vand.u32 2147483647, %v7493_v32  ;;  %v2214_v44 = vmul.f32 %v4485_v24, %v7493_v32  ;;  %vm7576_vm13 = vmor %vm2203_vm3, %vm2204_vm9 }
 0x1ba   :  { %v2172_v30 = vadd.f32 %v4479_v55, %v2171_v4  ;;  %v2186_v17 = vmul.f32 %v4481_v23, %v2185_v54  ;;  %v2200_v49 = vsub.f32 1.0, %v2199_v53  ;;  %vm2219_vm0 = vweird.f32 %v4485_v24 }
 0x1bb   :  { %v2224_v45 = vand.u32 2147483648, %v7493_v32  ;;  %v580_v60 = vsub.f32 1.0, %v7541_v34  ;;  %v7565_v9 = vsub.f32 1.0, %v7543_v59  ;;  %v2215_v1 = vsub.f32 1.0, %v2214_v44 }
 0x1bc   :  { %v2176_v4 = vsel %vm7548_vm15, %v4479_v55, %v2172_v30  ;;  %v2187_v54 = vadd.f32 %v4481_v23, %v2186_v17  ;;  %v2201_v53 = vmul.f32 %v4483_v50, %v2200_v49  ;;  %vm7580_vm12 = vcmp.eq.f32.partialorder %v2207_v2, 8.507059e+37 }
 0x1bd   :  { %v2181_v25 = vsel %vm7527_vm10, %v2180_v43, %v2176_v4  ;;  %v2210_v55 = vor.u32 1.1754944e-38, %v2209_v6  ;;  %4486 = vrcp.f32 %v580_v60  ;;  %v2216_v30 = vmul.f32 %v4485_v24, %v2215_v1  ;;  %vm7596_vm10 = vmor %vm2218_vm2, %vm2219_vm0 }
 0x1be   :  { %v2191_v44 = vsel %vm7558_vm7, %v4481_v23, %v2187_v54  ;;  %v2202_v22 = vadd.f32 %v4483_v50, %v2201_v53  ;;  %v7589_v21 = vsel %vm328_vm5, %v7505_v19, %v2181_v25  ;;  %vm2223_vm8 = vcmp.eq.f32.partialorder %v2222_v40, 8.507059e+37  ;;  %v7600_v23 = vld [vmem:[#allocation4 + $0x338] sm:$0xff] }
 0x1bf   :  { %11026 = vst [vmem:[#allocation79_spill] sm:$0xff] %v7589_v21  ;;  %v2196_v13 = vsel %vm7534_vm11, %v2195_v36, %v2191_v44  ;;  %v2225_v2 = vor.u32 1.1754944e-38, %v2224_v45  ;;  %v7603_v1 = vsub.f32 1.0, %v7569_v31  ;;  %v2217_v19 = vadd.f32 %v4485_v24, %v2216_v30 }
 0x1c0   :  { %v2206_v14 = vsel %vm7576_vm13, %v4483_v50, %v2202_v22  ;;  %v7610_v63 = vsel %vm329_vm4, %v7516_v58, %v2196_v13  ;;  %4488 = vrcp.f32 %v7565_v9  ;;  %vm331_vm5 = vcmp.ge.f32.partialorder %v7475_v46, 0.0 }
 0x1c1   :  { %11029 = vst [vmem:[#allocation80_spill] sm:$0xff] %v7610_v63  ;;  %v2211_v32 = vsel %vm7580_vm12, %v2210_v55, %v2206_v14  ;;  %v2818_v45 = vadd.f32 %v7610_v63, %v7589_v21  ;;  %v2221_v29 = vsel %vm7596_vm10, %v4485_v24, %v2217_v19  ;;  %v7626_v37 = vsub.f32 1.0, %v7600_v23 }
 0x1c2   :  { %v7623_v50 = vsel %vm330_vm6, %v7519_v51, %v2211_v32  ;;  %v2226_v36 = vsel %vm2223_vm8, %v2225_v2, %v2221_v29  ;;  %4490 = vrcp.f32 %v7603_v1  ;;  %v2117_v40 = vand.u32 2147483647, %v580_v60 }
 0x1c3   :  { %11030 = vst [vmem:[#allocation81_spill] sm:$0xff] %v7623_v50  ;;  %v4487_v58 = vpop.eup %4486  ;;  %v2819_v46 = vadd.f32 %v2818_v45, %v7623_v50  ;;  %v7631_v10 = vsel %vm331_vm5, %v7524_v20, %v2226_v36  ;;  %v2119_v24 = vand.u32 2147483648, %v580_v60  ;;  %vm324_vm4 = vcmp.ge.f32.partialorder %v7541_v34, 0.0  ;;  %v7666_v36 = vld [vmem:[#allocation4 + $0x300] sm:$0xff] }
 0x1c4   :  { %11031 = vst [vmem:[#allocation82_spill] sm:$0xff] %v7631_v10  ;;  %v2109_v6 = vmul.f32 %v4487_v58, %v580_v60  ;;  %vm2113_vm14 = vweird.f32 %v580_v60  ;;  %v2132_v47 = vand.u32 2147483647, %v7565_v9  ;;  %vm325_vm6 = vcmp.ge.f32.partialorder %v7543_v59, 0.0 }
 0x1c5   :  { %v2820_v17 = vadd.f32 %v2819_v46, %v7631_v10  ;;  %vm2114_vm11 = vweird.f32 %v4487_v58  ;;  %v2134_v38 = vand.u32 2147483648, %v7565_v9  ;;  %4492 = vrcp.f32 %v7626_v37  ;;  %v7668_v46 = vld [vmem:[#allocation4 + $0x308] sm:$0xff] }
 0x1c6   :  { %v4489_v51 = vpop.eup %4488  ;;  %v2110_v49 = vsub.f32 1.0, %v2109_v6  ;;  %v452_v20 = vadd.f32 1.0, %v7541_v34  ;;  %v453_v4 = vadd.f32 1.0, %v7543_v59  ;;  %v2147_v53 = vand.u32 2147483647, %v7603_v1  ;;  %vm7649_vm1 = vmor %vm2113_vm14, %vm2114_vm11 }
 0x1c7   :  { %2821 = vadd.xlane.f32.xlu2 %v2820_v17  ;;  %v2124_v54 = vmul.f32 %v4489_v51, %v7565_v9  ;;  %v454_v25 = vadd.f32 1.0, %v7569_v31  ;;  %vm7644_vm3 = vcmp.eq.f32.partialorder %v2117_v40, 8.507059e+37  ;;  %v2120_v22 = vor.u32 1.1754944e-38, %v2119_v24  ;;  %v7711_v24 = vld [vmem:[#allocation4 + $0x318] sm:$0xff] }
 0x1c8   :  { %v2111_v55 = vmul.f32 %v4487_v58, %v2110_v49  ;;  %v4491_v30 = vpop.eup %4490  ;;  %vm2128_vm15 = vweird.f32 %v7565_v9  ;;  %vm2129_vm9 = vweird.f32 %v4489_v51  ;;  %v2149_v2 = vand.u32 2147483648, %v7603_v1 }
 0x1c9   :  { %v2125_v43 = vsub.f32 1.0, %v2124_v54  ;;  %vm7655_vm2 = vcmp.eq.f32.partialorder %v2132_v47, 8.507059e+37  ;;  %v2135_v32 = vor.u32 1.1754944e-38, %v2134_v38  ;;  %v2139_v45 = vmul.f32 %v4491_v30, %v7603_v1  ;;  %vm7674_vm12 = vmor %vm2128_vm15, %vm2129_vm9 }
 0x1ca   :  { %v2112_v14 = vadd.f32 %v4487_v58, %v2111_v55  ;;  %vm2143_vm7 = vweird.f32 %v7603_v1  ;;  %vm7661_vm0 = vcmp.eq.f32.partialorder %v2147_v53, 8.507059e+37  ;;  %vm2158_vm13 = vweird.f32 %v7626_v37  ;;  %v7682_v55 = vld [vmem:[#allocation4 + $0x310] sm:$0xff] }
 0x1cb   :  { %v2126_v29 = vmul.f32 %v4489_v51, %v2125_v43  ;;  %v4493_v6 = vpop.eup %4492  ;;  %v2140_v17 = vsub.f32 1.0, %v2139_v45  ;;  %vm2144_vm10 = vweird.f32 %v4491_v30  ;;  %v2162_v47 = vand.u32 2147483647, %v7626_v37 }
 0x1cc   :  { %v2116_v40 = vsel %vm7649_vm1, %v4487_v58, %v2112_v14  ;;  %v2150_v54 = vor.u32 1.1754944e-38, %v2149_v2  ;;  %v2154_v53 = vmul.f32 %v4493_v6, %v7626_v37  ;;  %v2164_v9 = vand.u32 2147483648, %v7626_v37  ;;  %vm7693_vm8 = vmor %vm2143_vm7, %vm2144_vm10 }
 0x1cd   :  { %v2121_v49 = vsel %vm7644_vm3, %v2120_v22, %v2116_v40  ;;  %v2127_v38 = vadd.f32 %v4489_v51, %v2126_v29  ;;  %v2141_v58 = vmul.f32 %v4491_v30, %v2140_v17  ;;  %v576_v13 = vsub.f32 1.0, %v7666_v36 }
 0x1ce   :  { %v7687_v43 = vsub.f32 1.0, %v7668_v46  ;;  %v2155_v22 = vsub.f32 1.0, %v2154_v53  ;;  %vm2159_vm5 = vweird.f32 %v4493_v6  ;;  %v7699_v2 = vsel %vm324_vm4, %v452_v20, %v2121_v49 }
 0x1cf   :  { %v2131_v14 = vsel %vm7674_vm12, %v4489_v51, %v2127_v38  ;;  %11044 = vst [vmem:[#allocation83_spill] sm:$0xff] %v7699_v2  ;;  %v2142_v29 = vadd.f32 %v4491_v30, %v2141_v58  ;;  %v7704_v40 = vsub.f32 1.0, %v7682_v55  ;;  %4494 = vrcp.f32 %v576_v13  ;;  %vm7717_vm4 = vmor %vm2158_vm13, %vm2159_vm5 }
 0x1d0   :  { %v2136_v45 = vsel %vm7655_vm2, %v2135_v32, %v2131_v14  ;;  %vm326_vm14 = vcmp.ge.f32.partialorder %v7569_v31, 0.0  ;;  %v2156_v1 = vmul.f32 %v4493_v6, %v2155_v22  ;;  %v2165_v19 = vor.u32 1.1754944e-38, %v2164_v9 }
 0x1d1   :  { %v7709_v51 = vsel %vm325_vm6, %v453_v4, %v2136_v45  ;;  %v2146_v34 = vsel %vm7693_vm8, %v4491_v30, %v2142_v29  ;;  %4496 = vrcp.f32 %v7687_v43  ;;  %v455_v59 = vadd.f32 1.0, %v7600_v23 }
 0x1d2   :  { %11045 = vst [vmem:[#allocation84_spill] sm:$0xff] %v7709_v51  ;;  %v2813_v31 = vadd.f32 %v7709_v51, %v7699_v2  ;;  %v2151_v4 = vsel %vm7661_vm0, %v2150_v54, %v2146_v34  ;;  %v2157_v32 = vadd.f32 %v4493_v6, %v2156_v1  ;;  %vm2163_vm6 = vcmp.eq.f32.partialorder %v2162_v47, 8.507059e+37  ;;  %v7904_v51 = vld [vmem:[#allocation4 + $0x388] sm:$0xff] }
 0x1d3   :  { %vm327_vm11 = vcmp.ge.f32.partialorder %v7600_v23, 0.0  ;;  %v7728_v37 = vsel %vm326_vm14, %v454_v25, %v2151_v4  ;;  %v7731_v30 = vsub.f32 1.0, %v7711_v24  ;;  %4498 = vrcp.f32 %v7704_v40 }
 0x1d4   :  { %11048 = vst [vmem:[#allocation85_spill] sm:$0xff] %v7728_v37  ;;  %v2161_v17 = vsel %vm7717_vm4, %v4493_v6, %v2157_v32  ;;  %v2814_v49 = vadd.f32 %v2813_v31, %v7728_v37  ;;  %v448_v38 = vadd.f32 1.0, %v7666_v36  ;;  %vm320_vm3 = vcmp.ge.f32.partialorder %v7666_v36, 0.0 }
 0x1d5   :  { %v4495_v60 = vpop.eup %4494  ;;  %v2166_v54 = vsel %vm2163_vm6, %v2165_v19, %v2161_v17  ;;  %v7740_v23 = vadd.f32 1.0, %v7668_v46  ;;  %v2057_v25 = vand.u32 2147483647, %v576_v13  ;;  %v2059_v47 = vand.u32 2147483648, %v576_v13 }
 0x1d6   :  { %v7742_v53 = vsel %vm327_vm11, %v455_v59, %v2166_v54  ;;  %v7745_v58 = vadd.f32 1.0, %v7682_v55  ;;  %v2049_v9 = vmul.f32 %v4495_v60, %v576_v13  ;;  %v2072_v6 = vand.u32 2147483647, %v7687_v43 }
 0x1d7   :  { %11049 = vst [vmem:[#allocation86_spill] sm:$0xff] %v7742_v53  ;;  %v4497_v14 = vpop.eup %4496  ;;  %v2815_v44 = vadd.f32 %v2814_v49, %v7742_v53  ;;  %vm321_vm1 = vcmp.ge.f32.partialorder %v7668_v46, 0.0  ;;  %v2074_v22 = vand.u32 2147483648, %v7687_v43  ;;  %v2087_v45 = vand.u32 2147483647, %v7704_v40 }
 0x1d8   :  { %4500 = vrcp.f32 %v7731_v30  ;;  %v2050_v29 = vsub.f32 1.0, %v2049_v9  ;;  %vm2053_vm15 = vweird.f32 %v576_v13  ;;  %vm2054_vm9 = vweird.f32 %v4495_v60  ;;  %v7761_v13 = vld [vmem:[#allocation4 + $0x3a0] sm:$0xff] }
 0x1d9   :  { %v2064_v1 = vmul.f32 %v4497_v14, %v7687_v43  ;;  %v4499_v34 = vpop.eup %4498  ;;  %2816 = vadd.xlane.f32.xlu1 %v2815_v44  ;;  %vm7754_vm2 = vcmp.eq.f32.partialorder %v2057_v25, 8.507059e+37  ;;  %v2060_v19 = vor.u32 1.1754944e-38, %v2059_v47  ;;  %vm2068_vm7 = vweird.f32 %v7687_v43  ;;  %vm7763_vm13 = vmor %vm2053_vm15, %vm2054_vm9  ;;  %v7792_v43 = vld [vmem:[#allocation4 + $0x3b0] sm:$0xff] }
 0x1da   :  { %v2089_v31 = vand.u32 2147483648, %v7704_v40  ;;  %v2051_v59 = vmul.f32 %v4495_v60, %v2050_v29  ;;  %vm2069_vm0 = vweird.f32 %v4497_v14  ;;  %v2079_v32 = vmul.f32 %v4499_v34, %v7704_v40  ;;  %v7776_v29 = vld [vmem:[#allocation4 + $0x3a8] sm:$0xff] }
 0x1db   :  { %v2065_v4 = vsub.f32 1.0, %v2064_v1  ;;  %vm7767_vm12 = vcmp.eq.f32.partialorder %v2072_v6, 8.507059e+37  ;;  %v2075_v54 = vor.u32 1.1754944e-38, %v2074_v22  ;;  %vm2083_vm10 = vweird.f32 %v7704_v40  ;;  %vm7780_vm14 = vmor %vm2068_vm7, %vm2069_vm0  ;;  %v7812_v40 = vld [vmem:[#allocation4 + $0x3b8] sm:$0xff] }
 0x1dc   :  { %vm7772_vm8 = vcmp.eq.f32.partialorder %v2087_v45, 8.507059e+37  ;;  %v2052_v47 = vadd.f32 %v4495_v60, %v2051_v59  ;;  %v2080_v44 = vsub.f32 1.0, %v2079_v32  ;;  %vm2084_vm5 = vweird.f32 %v4499_v34 }
 0x1dd   :  { %v2066_v9 = vmul.f32 %v4497_v14, %v2065_v4  ;;  %v2090_v22 = vor.u32 1.1754944e-38, %v2089_v31  ;;  %vm2098_vm4 = vweird.f32 %v7731_v30  ;;  %v2104_v45 = vand.u32 2147483648, %v7731_v30  ;;  %vm7798_vm6 = vmor %vm2083_vm10, %vm2084_vm5 }
 0x1de   :  { %v4501_v1 = vpop.eup %4500  ;;  %v7787_v53 = vsub.f32 1.0, %v7761_v13  ;;  %v2056_v59 = vsel %vm7763_vm13, %v4495_v60, %v2052_v47  ;;  %v2081_v32 = vmul.f32 %v4499_v34, %v2080_v44  ;;  %v2102_v50 = vand.u32 2147483647, %v7731_v30 }
 0x1df   :  { %v2067_v4 = vadd.f32 %v4497_v14, %v2066_v9  ;;  %v2094_v10 = vmul.f32 %v4501_v1, %v7731_v30  ;;  %v2061_v37 = vsel %vm7754_vm2, %v2060_v19, %v2056_v59  ;;  %vm2099_vm11 = vweird.f32 %v4501_v1 }
 0x1e0   :  { %v7804_v60 = vsub.f32 1.0, %v7776_v29  ;;  %v2082_v47 = vadd.f32 %v4499_v34, %v2081_v32  ;;  %v7810_v20 = vsel %vm320_vm3, %v448_v38, %v2061_v37  ;;  %vm322_vm15 = vcmp.ge.f32.partialorder %v7682_v55, 0.0  ;;  %vm7833_vm3 = vmor %vm2098_vm4, %vm2099_vm11 }
 0x1e1   :  { %v2071_v17 = vsel %vm7780_vm14, %v4497_v14, %v2067_v4  ;;  %v2095_v9 = vsub.f32 1.0, %v2094_v10  ;;  %v7818_v44 = vsub.f32 1.0, %v7792_v43  ;;  %4502 = vrcp.f32 %v7787_v53 }
 0x1e2   :  { %v2076_v19 = vsel %vm7767_vm12, %v2075_v54, %v2071_v17  ;;  %v2086_v14 = vsel %vm7798_vm6, %v4499_v34, %v2082_v47  ;;  %v2105_v6 = vor.u32 1.1754944e-38, %v2104_v45  ;;  %v7840_v49 = vsub.f32 1.0, %v7812_v40 }
 0x1e3   :  { %v2096_v10 = vmul.f32 %v4501_v1, %v2095_v9  ;;  %v7826_v36 = vsel %vm321_vm1, %v7740_v23, %v2076_v19  ;;  %v2091_v37 = vsel %vm7772_vm8, %v2090_v22, %v2086_v14  ;;  %4504 = vrcp.f32 %v7804_v60 }
 0x1e4   :  { %11062 = vst [vmem:[#allocation87_spill] sm:$0xff] %v7826_v36  ;;  %v2808_v34 = vadd.f32 %v7826_v36, %v7810_v20  ;;  %v451_v46 = vadd.f32 1.0, %v7711_v24  ;;  %vm2103_vm1 = vcmp.eq.f32.partialorder %v2102_v50, 8.507059e+37  ;;  %v7847_v30 = vsel %vm322_vm15, %v7745_v58, %v2091_v37 }
 0x1e5   :  { %v2097_v23 = vadd.f32 %v4501_v1, %v2096_v10  ;;  %11065 = vst [vmem:[#allocation88_spill] sm:$0xff] %v7847_v30  ;;  %vm323_vm9 = vcmp.ge.f32.partialorder %v7711_v24, 0.0  ;;  %v2357_v25 = vand.u32 2147483647, %v7787_v53  ;;  %4506 = vrcp.f32 %v7818_v44 }
 0x1e6   :  { %v2809_v54 = vadd.f32 %v2808_v34, %v7847_v30  ;;  %v7856_v45 = vadd.f32 1.0, %v7761_v13  ;;  %v2359_v50 = vand.u32 2147483648, %v7787_v53  ;;  %vm340_vm2 = vcmp.ge.f32.partialorder %v7761_v13, 0.0 }
 0x1e7   :  { %v2101_v22 = vsel %vm7833_vm3, %v4501_v1, %v2097_v23  ;;  %v4503_v59 = vpop.eup %4502  ;;  %v7861_v24 = vadd.f32 1.0, %v7776_v29  ;;  %v7864_v58 = vadd.f32 1.0, %v7792_v43  ;;  %4508 = vrcp.f32 %v7840_v49 }
 0x1e8   :  { %v2106_v55 = vsel %vm2103_vm1, %v2105_v6, %v2101_v22  ;;  %v7870_v1 = vadd.f32 1.0, %v7812_v40  ;;  %v2349_v32 = vmul.f32 %v4503_v59, %v7787_v53  ;;  %vm2353_vm7 = vweird.f32 %v7787_v53 }
 0x1e9   :  { %v7867_v4 = vsel %vm323_vm9, %v451_v46, %v2106_v55  ;;  %v4505_v31 = vpop.eup %4504  ;;  %vm341_vm0 = vcmp.ge.f32.partialorder %v7776_v29, 0.0  ;;  %vm7876_vm13 = vcmp.eq.f32.partialorder %v2357_v25, 8.507059e+37  ;;  %v2372_v9 = vand.u32 2147483647, %v7804_v60  ;;  %v7889_v25 = vld [vmem:[#allocation4 + $0x380] sm:$0xff] }
 0x1ea   :  { %11066 = vst [vmem:[#allocation89_spill] sm:$0xff] %v7867_v4  ;;  %v2810_v17 = vadd.f32 %v2809_v54, %v7867_v4  ;;  %v2374_v19 = vand.u32 2147483648, %v7804_v60  ;;  %v2350_v14 = vsub.f32 1.0, %v2349_v32  ;;  %vm2354_vm12 = vweird.f32 %v4503_v59 }
 0x1eb   :  { %v2360_v10 = vor.u32 1.1754944e-38, %v2359_v50  ;;  %v2364_v6 = vmul.f32 %v4505_v31, %v7804_v60  ;;  %v4507_v37 = vpop.eup %4506  ;;  %vm342_vm10 = vcmp.ge.f32.partialorder %v7792_v43, 0.0  ;;  %vm2368_vm8 = vweird.f32 %v7804_v60  ;;  %vm7894_vm4 = vmor %vm2353_vm7, %vm2354_vm12  ;;  %v7932_v50 = vld [vmem:[#allocation4 + $0x390] sm:$0xff] }
 0x1ec   :  { %2811 = vadd.xlane.f32.xlu0 %v2810_v17  ;;  %vm2383_vm5 = vweird.f32 %v7818_v44  ;;  %v2387_v38 = vand.u32 2147483647, %v7818_v44  ;;  %v2389_v34 = vand.u32 2147483648, %v7818_v44  ;;  %v2351_v46 = vmul.f32 %v4503_v59, %v2350_v14 }
 0x1ed   :  { %v2365_v23 = vsub.f32 1.0, %v2364_v6  ;;  %vm2369_vm14 = vweird.f32 %v4505_v31  ;;  %v2379_v54 = vmul.f32 %v4507_v37, %v7818_v44  ;;  %v4509_v22 = vpop.eup %4508  ;;  %vm7898_vm6 = vcmp.eq.f32.partialorder %v2372_v9, 8.507059e+37 }
 0x1ee   :  { %v2375_v32 = vor.u32 1.1754944e-38, %v2374_v19  ;;  %vm2384_vm11 = vweird.f32 %v4507_v37  ;;  %vm2398_vm15 = vweird.f32 %v7840_v49  ;;  %v2352_v17 = vadd.f32 %v4503_v59, %v2351_v46  ;;  %vm7908_vm3 = vmor %vm2368_vm8, %vm2369_vm14 }
 0x1ef   :  { %v2366_v14 = vmul.f32 %v4505_v31, %v2365_v23  ;;  %v2380_v6 = vsub.f32 1.0, %v2379_v54  ;;  %v2394_v4 = vmul.f32 %v4509_v22, %v7840_v49  ;;  %vm2399_vm1 = vweird.f32 %v4509_v22  ;;  %vm7924_vm9 = vmor %vm2383_vm5, %vm2384_vm11 }
 0x1f0   :  { %v2402_v9 = vand.u32 2147483647, %v7840_v49  ;;  %v2404_v19 = vand.u32 2147483648, %v7840_v49  ;;  %v7915_v2 = vsub.f32 1.0, %v7889_v25  ;;  %v2356_v46 = vsel %vm7894_vm4, %v4503_v59, %v2352_v17 }
 0x1f1   :  { %v2367_v23 = vadd.f32 %v4505_v31, %v2366_v14  ;;  %v2381_v54 = vmul.f32 %v4507_v37, %v2380_v6  ;;  %v2395_v30 = vsub.f32 1.0, %v2394_v4  ;;  %v2361_v60 = vsel %vm7876_vm13, %v2360_v10, %v2356_v46  ;;  %vm7949_vm13 = vmor %vm2398_vm15, %vm2399_vm1 }
 0x1f2   :  { %vm7928_vm7 = vcmp.eq.f32.partialorder %v2387_v38, 8.507059e+37  ;;  %v2390_v36 = vor.u32 1.1754944e-38, %v2389_v34  ;;  %v7935_v59 = vsub.f32 1.0, %v7904_v51  ;;  %v7942_v44 = vsel %vm340_vm2, %v7856_v45, %v2361_v60 }
 0x1f3   :  { %v2371_v4 = vsel %vm7908_vm3, %v4505_v31, %v2367_v23  ;;  %v2382_v47 = vadd.f32 %v4507_v37, %v2381_v54  ;;  %v2396_v10 = vmul.f32 %v4509_v22, %v2395_v30  ;;  %11079 = vst [vmem:[#allocation90_spill] sm:$0xff] %v7942_v44  ;;  %vm2403_vm12 = vcmp.eq.f32.partialorder %v2402_v9, 8.507059e+37  ;;  %v7953_v31 = vld [vmem:[#allocation4 + $0x398] sm:$0xff] }
 0x1f4   :  { %v2376_v38 = vsel %vm7898_vm6, %v2375_v32, %v2371_v4  ;;  %v2405_v17 = vor.u32 1.1754944e-38, %v2404_v19  ;;  %4510 = vrcp.f32 %v7915_v2  ;;  %v7964_v49 = vsub.f32 1.0, %v7932_v50 }
 0x1f5   :  { %v2386_v13 = vsel %vm7924_vm9, %v4507_v37, %v2382_v47  ;;  %v2397_v30 = vadd.f32 %v4509_v22, %v2396_v10  ;;  %v7961_v45 = vsel %vm341_vm0, %v7861_v24, %v2376_v38  ;;  %vm343_vm2 = vcmp.ge.f32.partialorder %v7812_v40, 0.0  ;;  %v8010_v10 = vld [vmem:[#allocation4 + $0x360] sm:$0xff] }
 0x1f6   :  { %11082 = vst [vmem:[#allocation91_spill] sm:$0xff] %v7961_v45  ;;  %v2391_v55 = vsel %vm7928_vm7, %v2390_v36, %v2386_v13  ;;  %v2833_v32 = vadd.f32 %v7961_v45, %v7942_v44  ;;  %4512 = vrcp.f32 %v7935_v59  ;;  %v7980_v24 = vsub.f32 1.0, %v7953_v31 }
 0x1f7   :  { %v2401_v63 = vsel %vm7949_vm13, %v4509_v22, %v2397_v30  ;;  %v7977_v29 = vsel %vm342_vm10, %v7864_v58, %v2391_v55  ;;  %v2297_v37 = vand.u32 2147483647, %v7915_v2  ;;  %4514 = vrcp.f32 %v7964_v49 }
 0x1f8   :  { %11083 = vst [vmem:[#allocation92_spill] sm:$0xff] %v7977_v29  ;;  %v2406_v40 = vsel %vm2403_vm12, %v2405_v17, %v2401_v63  ;;  %v2834_v21 = vadd.f32 %v2833_v32, %v7977_v29  ;;  %vm336_vm0 = vcmp.ge.f32.partialorder %v7889_v25, 0.0  ;;  %v2299_v43 = vand.u32 2147483648, %v7915_v2 }
 0x1f9   :  { %v7984_v36 = vsel %vm343_vm2, %v7870_v1, %v2406_v40  ;;  %v464_v58 = vadd.f32 1.0, %v7889_v25  ;;  %v2312_v53 = vand.u32 2147483647, %v7935_v59  ;;  %4516 = vrcp.f32 %v7980_v24  ;;  %v8026_v40 = vld [vmem:[#allocation4 + $0x368] sm:$0xff] }
 0x1fa   :  { %11084 = vst [vmem:[#allocation93_spill] sm:$0xff] %v7984_v36  ;;  %v4511_v14 = vpop.eup %4510  ;;  %v2835_v22 = vadd.f32 %v2834_v21, %v7984_v36  ;;  %vm337_vm10 = vcmp.ge.f32.partialorder %v7904_v51, 0.0  ;;  %v465_v9 = vadd.f32 1.0, %v7904_v51  ;;  %v7998_v19 = vadd.f32 1.0, %v7932_v50 }
 0x1fb   :  { %v2289_v6 = vmul.f32 %v4511_v14, %v7915_v2  ;;  %vm2293_vm8 = vweird.f32 %v7915_v2  ;;  %v2314_v46 = vand.u32 2147483648, %v7935_v59  ;;  %vm2294_vm5 = vweird.f32 %v4511_v14 }
 0x1fc   :  { %v4513_v1 = vpop.eup %4512  ;;  %2836 = vadd.xlane.f32.xlu2 %v2835_v22  ;;  %vm8002_vm14 = vcmp.eq.f32.partialorder %v2297_v37, 8.507059e+37  ;;  %v2300_v4 = vor.u32 1.1754944e-38, %v2299_v43  ;;  %vm2308_vm4 = vweird.f32 %v7935_v59  ;;  %vm2323_vm6 = vweird.f32 %v7964_v49  ;;  %vm8019_vm1 = vmor %vm2293_vm8, %vm2294_vm5 }
 0x1fd   :  { %v2290_v23 = vsub.f32 1.0, %v2289_v6  ;;  %v2304_v60 = vmul.f32 %v4513_v1, %v7935_v59  ;;  %v2327_v47 = vand.u32 2147483647, %v7964_v49  ;;  %v4515_v38 = vpop.eup %4514  ;;  %vm338_vm11 = vcmp.ge.f32.partialorder %v7932_v50, 0.0  ;;  %v8067_v6 = vld [vmem:[#allocation4 + $0x378] sm:$0xff] }
 0x1fe   :  { %vm2309_vm15 = vweird.f32 %v4513_v1  ;;  %vm8013_vm3 = vcmp.eq.f32.partialorder %v2312_v53, 8.507059e+37  ;;  %v2315_v55 = vor.u32 1.1754944e-38, %v2314_v46  ;;  %v2319_v32 = vmul.f32 %v4515_v38, %v7964_v49 }
 0x1ff   :  { %v2291_v34 = vmul.f32 %v4511_v14, %v2290_v23  ;;  %v2305_v17 = vsub.f32 1.0, %v2304_v60  ;;  %v2329_v63 = vand.u32 2147483648, %v7964_v49  ;;  %vm2338_vm9 = vweird.f32 %v7980_v24  ;;  %v4517_v21 = vpop.eup %4516  ;;  %vm8034_vm7 = vmor %vm2308_vm4, %vm2309_vm15  ;;  %v8040_v60 = vld [vmem:[#allocation4 + $0x370] sm:$0xff] }
 0x200   :  { %v2342_v43 = vand.u32 2147483647, %v7980_v24  ;;  %v8030_v2 = vsub.f32 1.0, %v8010_v10  ;;  %v2320_v53 = vsub.f32 1.0, %v2319_v32  ;;  %vm2324_vm13 = vweird.f32 %v4515_v38 }
 0x201   :  { %v2292_v37 = vadd.f32 %v4511_v14, %v2291_v34  ;;  %v2306_v22 = vmul.f32 %v4513_v1, %v2305_v17  ;;  %v2334_v46 = vmul.f32 %v4517_v21, %v7980_v24  ;;  %v2344_v23 = vand.u32 2147483648, %v7980_v24  ;;  %vm8054_vm2 = vmor %vm2323_vm6, %vm2324_vm13 }
 0x202   :  { %vm2339_vm12 = vweird.f32 %v4517_v21  ;;  %v8045_v36 = vsub.f32 1.0, %v8026_v40  ;;  %v2321_v29 = vmul.f32 %v4515_v38, %v2320_v53  ;;  %4518 = vrcp.f32 %v8030_v2 }
 0x203   :  { %v2296_v34 = vsel %vm8019_vm1, %v4511_v14, %v2292_v37  ;;  %v2307_v17 = vadd.f32 %v4513_v1, %v2306_v22  ;;  %v2335_v32 = vsub.f32 1.0, %v2334_v46  ;;  %v2330_v14 = vor.u32 1.1754944e-38, %v2329_v63  ;;  %vm8073_vm5 = vmor %vm2338_vm9, %vm2339_vm12 }
 0x204   :  { %v2301_v59 = vsel %vm8002_vm14, %v2300_v4, %v2296_v34  ;;  %v8063_v54 = vsub.f32 1.0, %v8040_v60  ;;  %v2322_v22 = vadd.f32 %v4515_v38, %v2321_v29  ;;  %vm2328_vm8 = vcmp.eq.f32.partialorder %v2327_v47, 8.507059e+37 }
 0x205   :  { %v2311_v45 = vsel %vm8034_vm7, %v4513_v1, %v2307_v17  ;;  %v8060_v37 = vsel %vm336_vm0, %v464_v58, %v2301_v59  ;;  %v2336_v1 = vmul.f32 %v4517_v21, %v2335_v32  ;;  %v467_v49 = vadd.f32 1.0, %v7953_v31 }
 0x206   :  { %11095 = vst [vmem:[#allocation94_spill] sm:$0xff] %v8060_v37  ;;  %v2316_v4 = vsel %vm8013_vm3, %v2315_v55, %v2311_v45  ;;  %v2345_v58 = vor.u32 1.1754944e-38, %v2344_v23  ;;  %4520 = vrcp.f32 %v8045_v36  ;;  %v2326_v45 = vsel %vm8054_vm2, %v4515_v38, %v2322_v22 }
 0x207   :  { %v8079_v63 = vsel %vm337_vm10, %v465_v9, %v2316_v4  ;;  %v2337_v29 = vadd.f32 %v4517_v21, %v2336_v1  ;;  %vm2343_vm0 = vcmp.eq.f32.partialorder %v2342_v43, 8.507059e+37  ;;  %vm339_vm14 = vcmp.ge.f32.partialorder %v7953_v31, 0.0 }
 0x208   :  { %11098 = vst [vmem:[#allocation95_spill] sm:$0xff] %v8079_v63  ;;  %v2828_v47 = vadd.f32 %v8079_v63, %v8060_v37  ;;  %v2331_v24 = vsel %vm2328_vm8, %v2330_v14, %v2326_v45  ;;  %v8088_v13 = vsub.f32 1.0, %v8067_v6  ;;  %4522 = vrcp.f32 %v8063_v54  ;;  %v4519_v51 = vpop.eup %4518 }
 0x209   :  { %v2341_v9 = vsel %vm8073_vm5, %v4517_v21, %v2337_v29  ;;  %v8096_v38 = vsel %vm338_vm11, %v7998_v19, %v2331_v24  ;;  %v460_v55 = vadd.f32 1.0, %v8010_v10  ;;  %vm2233_vm10 = vweird.f32 %v8030_v2 }
 0x20a   :  { %11099 = vst [vmem:[#allocation96_spill] sm:$0xff] %v8096_v38  ;;  %v2346_v31 = vsel %vm2343_vm0, %v2345_v58, %v2341_v9  ;;  %v2829_v43 = vadd.f32 %v2828_v47, %v8096_v38  ;;  %vm332_vm4 = vcmp.ge.f32.partialorder %v8010_v10, 0.0  ;;  %v2229_v53 = vmul.f32 %v4519_v51, %v8030_v2 }
 0x20b   :  { %v2237_v46 = vand.u32 2147483647, %v8030_v2  ;;  %v8104_v23 = vsel %vm339_vm14, %v467_v49, %v2346_v31  ;;  %v2239_v21 = vand.u32 2147483648, %v8030_v2  ;;  %v2252_v50 = vand.u32 2147483647, %v8045_v36 }
 0x20c   :  { %11100 = vst [vmem:[#allocation97_spill] sm:$0xff] %v8104_v23  ;;  %v2254_v19 = vand.u32 2147483648, %v8045_v36  ;;  %v4521_v34 = vpop.eup %4520  ;;  %v2830_v17 = vadd.f32 %v2829_v43, %v8104_v23  ;;  %vm333_vm6 = vcmp.ge.f32.partialorder %v8026_v40, 0.0  ;;  %v2230_v59 = vsub.f32 1.0, %v2229_v53 }
 0x20d   :  { %vm2234_vm11 = vweird.f32 %v4519_v51  ;;  %4524 = vrcp.f32 %v8088_v13  ;;  %v461_v32 = vadd.f32 1.0, %v8026_v40  ;;  %v462_v30 = vadd.f32 1.0, %v8040_v60 }
 0x20e   :  { %v2244_v14 = vmul.f32 %v4521_v34, %v8045_v36  ;;  %v2267_v4 = vand.u32 2147483647, %v8063_v54  ;;  %v4523_v22 = vpop.eup %4522  ;;  %2831 = vadd.xlane.f32.xlu1 %v2830_v17  ;;  %v2231_v1 = vmul.f32 %v4519_v51, %v2230_v59  ;;  %vm8116_vm15 = vcmp.eq.f32.partialorder %v2237_v46, 8.507059e+37  ;;  %vm8124_vm1 = vmor %vm2233_vm10, %vm2234_vm11  ;;  %v8138_v46 = vld [vmem:[#allocation4 + $0x3e0] sm:$0xff] }
 0x20f   :  { %vm2248_vm3 = vweird.f32 %v8045_v36  ;;  %v2269_v25 = vand.u32 2147483648, %v8063_v54  ;;  %v2240_v45 = vor.u32 1.1754944e-38, %v2239_v21  ;;  %vm2249_vm9 = vweird.f32 %v4521_v34  ;;  %v8140_v21 = vld [vmem:[#allocation4 + $0x3e8] sm:$0xff] }
 0x210   :  { %v2245_v29 = vsub.f32 1.0, %v2244_v14  ;;  %v2259_v47 = vmul.f32 %v4523_v22, %v8063_v54  ;;  %v2232_v24 = vadd.f32 %v4519_v51, %v2231_v1  ;;  %vm8129_vm7 = vcmp.eq.f32.partialorder %v2252_v50, 8.507059e+37  ;;  %vm8146_vm8 = vmor %vm2248_vm3, %vm2249_vm9 }
 0x211   :  { %v2255_v31 = vor.u32 1.1754944e-38, %v2254_v19  ;;  %vm2263_vm13 = vweird.f32 %v8063_v54  ;;  %vm2264_vm12 = vweird.f32 %v4523_v22  ;;  %vm8134_vm2 = vcmp.eq.f32.partialorder %v2267_v4, 8.507059e+37 }
 0x212   :  { %v2246_v43 = vmul.f32 %v4521_v34, %v2245_v29  ;;  %v2260_v53 = vsub.f32 1.0, %v2259_v47  ;;  %v2236_v50 = vsel %vm8124_vm1, %v4519_v51, %v2232_v24  ;;  %v2270_v59 = vor.u32 1.1754944e-38, %v2269_v25  ;;  %vm8157_vm0 = vmor %vm2263_vm13, %vm2264_vm12  ;;  %v8162_v25 = vld [vmem:[#allocation4 + $0x3f0] sm:$0xff] }
 0x213   :  { %v4525_v17 = vpop.eup %4524  ;;  %vm2278_vm5 = vweird.f32 %v8088_v13  ;;  %v2282_v14 = vand.u32 2147483647, %v8088_v13  ;;  %v2241_v4 = vsel %vm8116_vm15, %v2240_v45, %v2236_v50  ;;  %v2284_v51 = vand.u32 2147483648, %v8088_v13 }
 0x214   :  { %v2247_v1 = vadd.f32 %v4521_v34, %v2246_v43  ;;  %v2261_v29 = vmul.f32 %v4523_v22, %v2260_v53  ;;  %v2274_v47 = vmul.f32 %v4525_v17, %v8088_v13  ;;  %vm2279_vm14 = vweird.f32 %v4525_v17 }
 0x215   :  { %v604_v58 = vsub.f32 1.0, %v8138_v46  ;;  %v8166_v49 = vsub.f32 1.0, %v8140_v21  ;;  %v8172_v54 = vsel %vm332_vm4, %v460_v55, %v2241_v4  ;;  %vm334_vm10 = vcmp.ge.f32.partialorder %v8040_v60, 0.0  ;;  %vm2280_vm4 = vmor %vm2278_vm5, %vm2279_vm14 }
 0x216   :  { %v2251_v45 = vsel %vm8146_vm8, %v4521_v34, %v2247_v1  ;;  %v2262_v24 = vadd.f32 %v4523_v22, %v2261_v29  ;;  %v2275_v43 = vsub.f32 1.0, %v2274_v47  ;;  %v8183_v34 = vld [vmem:[#allocation4 + $0x3f8] sm:$0xff]  ;;  %v8186_v10 = vsub.f32 1.0, %v8162_v25 }
 0x217   :  { %v2256_v53 = vsel %vm8129_vm7, %v2255_v31, %v2251_v45  ;;  %4526 = vrcp.f32 %v604_v58  ;;  %v2285_v9 = vor.u32 1.1754944e-38, %v2284_v51  ;;  %v463_v40 = vadd.f32 1.0, %v8067_v6 }
 0x218   :  { %v2266_v50 = vsel %vm8157_vm0, %v4523_v22, %v2262_v24  ;;  %v2276_v23 = vmul.f32 %v4525_v17, %v2275_v43  ;;  %v8181_v19 = vsel %vm333_vm6, %v461_v32, %v2256_v53  ;;  %4528 = vrcp.f32 %v8166_v49 }
 0x219   :  { %v2271_v55 = vsel %vm8134_vm2, %v2270_v59, %v2266_v50  ;;  %v2823_v22 = vadd.f32 %v8181_v19, %v8172_v54  ;;  %vm2283_vm6 = vcmp.eq.f32.partialorder %v2282_v14, 8.507059e+37  ;;  %vm335_vm11 = vcmp.ge.f32.partialorder %v8067_v6, 0.0 }
 0x21a   :  { %v2277_v32 = vadd.f32 %v4525_v17, %v2276_v23  ;;  %v8199_v31 = vsel %vm334_vm10, %v462_v30, %v2271_v55  ;;  %v8204_v13 = vsub.f32 1.0, %v8183_v34  ;;  %4530 = vrcp.f32 %v8186_v10 }
 0x21b   :  { %11113 = vst [vmem:[#allocation98_spill] sm:$0xff] %v8199_v31  ;;  %v2824_v2 = vadd.f32 %v2823_v22, %v8199_v31  ;;  %vm348_vm15 = vcmp.ge.f32.partialorder %v8138_v46, 0.0  ;;  %v476_v23 = vadd.f32 1.0, %v8138_v46  ;;  %v2477_v14 = vand.u32 2147483647, %v604_v58  ;;  %v8255_v31 = vld [vmem:[#allocation4 + $0x3d0] sm:$0xff] }
 0x21c   :  { %v2281_v59 = vsel %vm2280_vm4, %v4525_v17, %v2277_v32  ;;  %v2479_v60 = vand.u32 2147483648, %v604_v58  ;;  %v477_v6 = vadd.f32 1.0, %v8140_v21  ;;  %vm2473_vm3 = vweird.f32 %v604_v58  ;;  %v8226_v32 = vld [vmem:[#allocation4 + $0x3c0] sm:$0xff] }
 0x21d   :  { %v4527_v4 = vpop.eup %4526  ;;  %v2286_v1 = vsel %vm2283_vm6, %v2285_v9, %v2281_v59  ;;  %vm349_vm1 = vcmp.ge.f32.partialorder %v8140_v21, 0.0  ;;  %v2492_v17 = vand.u32 2147483647, %v8166_v49  ;;  %v2494_v51 = vand.u32 2147483648, %v8166_v49 }
 0x21e   :  { %v8209_v30 = vsel %vm335_vm11, %v463_v40, %v2286_v1  ;;  %v2469_v29 = vmul.f32 %v4527_v4, %v604_v58  ;;  %v4529_v47 = vpop.eup %4528  ;;  %4532 = vrcp.f32 %v8204_v13  ;;  %vm2474_vm9 = vweird.f32 %v4527_v4 }
 0x21f   :  { %11114 = vst [vmem:[#allocation99_spill] sm:$0xff] %v8209_v30  ;;  %v2825_v36 = vadd.f32 %v2824_v2, %v8209_v30  ;;  %v2484_v24 = vmul.f32 %v4529_v47, %v8166_v49  ;;  %v2509_v43 = vand.u32 2147483648, %v8186_v10  ;;  %v478_v53 = vadd.f32 1.0, %v8162_v25  ;;  %vm8229_vm8 = vmor %vm2473_vm3, %vm2474_vm9 }
 0x220   :  { %v2470_v45 = vsub.f32 1.0, %v2469_v29  ;;  %vm8220_vm7 = vcmp.eq.f32.partialorder %v2477_v14, 8.507059e+37  ;;  %v2480_v55 = vor.u32 1.1754944e-38, %v2479_v60  ;;  %vm2488_vm13 = vweird.f32 %v8166_v49  ;;  %v4531_v9 = vpop.eup %4530  ;;  %v8239_v29 = vld [vmem:[#allocation4 + $0x3c8] sm:$0xff] }
 0x221   :  { %2826 = vadd.xlane.f32.xlu0 %v2825_v36  ;;  %v2485_v40 = vsub.f32 1.0, %v2484_v24  ;;  %vm2489_vm12 = vweird.f32 %v4529_v47  ;;  %vm2503_vm2 = vweird.f32 %v8186_v10  ;;  %vm8233_vm5 = vcmp.eq.f32.partialorder %v2492_v17, 8.507059e+37 }
 0x222   :  { %v2471_v22 = vmul.f32 %v4527_v4, %v2470_v45  ;;  %v2495_v1 = vor.u32 1.1754944e-38, %v2494_v51  ;;  %v2499_v14 = vmul.f32 %v4531_v9, %v8186_v10  ;;  %v2507_v60 = vand.u32 2147483647, %v8186_v10  ;;  %vm8244_vm14 = vmor %vm2488_vm13, %vm2489_vm12 }
 0x223   :  { %v2486_v45 = vmul.f32 %v4529_v47, %v2485_v40  ;;  %v2510_v24 = vor.u32 1.1754944e-38, %v2509_v43  ;;  %vm2518_vm0 = vweird.f32 %v8204_v13  ;;  %vm2504_vm10 = vweird.f32 %v4531_v9 }
 0x224   :  { %v2472_v36 = vadd.f32 %v4527_v4, %v2471_v22  ;;  %v4533_v58 = vpop.eup %4532  ;;  %v2500_v30 = vsub.f32 1.0, %v2499_v14  ;;  %v2522_v51 = vand.u32 2147483647, %v8204_v13  ;;  %v8250_v38 = vsub.f32 1.0, %v8226_v32  ;;  %vm8267_vm6 = vmor %vm2503_vm2, %vm2504_vm10 }
 0x225   :  { %v2487_v43 = vadd.f32 %v4529_v47, %v2486_v45  ;;  %v2514_v40 = vmul.f32 %v4533_v58, %v8204_v13  ;;  %v8258_v49 = vsub.f32 1.0, %v8239_v29  ;;  %vm2519_vm4 = vweird.f32 %v4533_v58 }
 0x226   :  { %v2476_v22 = vsel %vm8229_vm8, %v4527_v4, %v2472_v36  ;;  %v2501_v63 = vmul.f32 %v4531_v9, %v2500_v30  ;;  %v2524_v37 = vand.u32 2147483648, %v8204_v13  ;;  %4534 = vrcp.f32 %v8250_v38 }
 0x227   :  { %v2481_v14 = vsel %vm8220_vm7, %v2480_v55, %v2476_v22  ;;  %v2491_v44 = vsel %vm8244_vm14, %v4529_v47, %v2487_v43  ;;  %v2515_v2 = vsub.f32 1.0, %v2514_v40  ;;  %vm2508_vm11 = vcmp.eq.f32.partialorder %v2507_v60, 8.507059e+37  ;;  %v8278_v55 = vld [vmem:[#allocation4 + $0x3d8] sm:$0xff] }
 0x228   :  { %v8273_v36 = vsel %vm348_vm15, %v476_v23, %v2481_v14  ;;  %v2496_v30 = vsel %vm8233_vm5, %v2495_v1, %v2491_v44  ;;  %v2502_v50 = vadd.f32 %v4531_v9, %v2501_v63  ;;  %v8281_v10 = vsub.f32 1.0, %v8255_v31  ;;  %vm8295_vm15 = vmor %vm2518_vm0, %vm2519_vm4 }
 0x229   :  { %vm350_vm3 = vcmp.ge.f32.partialorder %v8162_v25, 0.0  ;;  %v2516_v47 = vmul.f32 %v4533_v58, %v2515_v2  ;;  %v8286_v46 = vsel %vm349_vm1, %v477_v6, %v2496_v30  ;;  %4536 = vrcp.f32 %v8258_v49 }
 0x22a   :  { %v479_v23 = vadd.f32 1.0, %v8183_v34  ;;  %v2506_v44 = vsel %vm8267_vm6, %v4531_v9, %v2502_v50  ;;  %v2525_v25 = vor.u32 1.1754944e-38, %v2524_v37  ;;  %v2843_v21 = vadd.f32 %v8286_v46, %v8273_v36  ;;  %v2915_v50 = vld [vmem:[%s10484_s0] sm:$0xff] }
 0x22b   :  { %v2511_v6 = vsel %vm2508_vm11, %v2510_v24, %v2506_v44  ;;  %v2517_v59 = vadd.f32 %v4533_v58, %v2516_v47  ;;  %vm2523_vm1 = vcmp.eq.f32.partialorder %v2522_v51, 8.507059e+37  ;;  %v8302_v1 = vsub.f32 1.0, %v8278_v55 }
 0x22c   :  { %vm351_vm9 = vcmp.ge.f32.partialorder %v8183_v34, 0.0  ;;  %v8305_v9 = vsel %vm350_vm3, %v478_v53, %v2511_v6  ;;  %4538 = vrcp.f32 %v8281_v10  ;;  %v4535_v13 = vpop.eup %4534  ;;  %vm344_vm7 = vcmp.ge.f32.partialorder %v8226_v32, 0.0 }
 0x22d   :  { %v2521_v60 = vsel %vm8295_vm15, %v4533_v58, %v2517_v59  ;;  %v2844_v37 = vadd.f32 %v2843_v21, %v8305_v9  ;;  %v472_v45 = vadd.f32 1.0, %v8226_v32  ;;  %v2409_v17 = vmul.f32 %v4535_v13, %v8250_v38 }
 0x22e   :  { %v2526_v24 = vsel %vm2523_vm1, %v2525_v25, %v2521_v60  ;;  %vm2413_vm13 = vweird.f32 %v8250_v38  ;;  %v2417_v34 = vand.u32 2147483647, %v8250_v38  ;;  %vm345_vm12 = vcmp.ge.f32.partialorder %v8239_v29, 0.0 }
 0x22f   :  { %v4537_v53 = vpop.eup %4536  ;;  %v8316_v51 = vsel %vm351_vm9, %v479_v23, %v2526_v24  ;;  %v2419_v58 = vand.u32 2147483648, %v8250_v38  ;;  %v2432_v22 = vand.u32 2147483647, %v8258_v49  ;;  %4540 = vrcp.f32 %v8302_v1 }
 0x230   :  { %v2845_v43 = vadd.f32 %v2844_v37, %v8316_v51  ;;  %v2410_v40 = vsub.f32 1.0, %v2409_v17  ;;  %vm2414_vm2 = vweird.f32 %v4535_v13  ;;  %v2424_v14 = vmul.f32 %v4537_v53, %v8258_v49 }
 0x231   :  { %v473_v4 = vadd.f32 1.0, %v8239_v29  ;;  %vm2428_vm8 = vweird.f32 %v8258_v49  ;;  %v2434_v2 = vand.u32 2147483648, %v8258_v49  ;;  %v2449_v30 = vand.u32 2147483648, %v8281_v10  ;;  %vm8333_vm0 = vmor %vm2413_vm13, %vm2414_vm2 }
 0x232   :  { %v4539_v47 = vpop.eup %4538  ;;  %2846 = vadd.xlane.f32.xlu1 %v2845_v43  ;;  %v2411_v23 = vmul.f32 %v4535_v13, %v2410_v40  ;;  %v2425_v44 = vsub.f32 1.0, %v2424_v14  ;;  %vm2429_vm5 = vweird.f32 %v4537_v53  ;;  %vm8337_vm14 = vcmp.eq.f32.partialorder %v2417_v34, 8.507059e+37 }
 0x233   :  { %v2420_v21 = vor.u32 1.1754944e-38, %v2419_v58  ;;  %v2439_v6 = vmul.f32 %v4539_v47, %v8281_v10  ;;  %vm2443_vm10 = vweird.f32 %v8281_v10  ;;  %v4714_v59 = vmov 0   ;;  %vm8351_vm6 = vmor %vm2428_vm8, %vm2429_vm5 }
 0x234   :  { %4283 = vset.pattern.permute.xlu2 %v4714_v59  ;;  %4284 = vset.pattern.permute.xlu0 %v4714_v59  ;;  %v2412_v60 = vadd.f32 %v4535_v13, %v2411_v23  ;;  %v2426_v37 = vmul.f32 %v4537_v53, %v2425_v44  ;;  %vm8343_vm4 = vcmp.eq.f32.partialorder %v2432_v22, 8.507059e+37  ;;  %v2447_v24 = vand.u32 2147483647, %v8281_v10  ;;  %v2918_v10 = vld [vmem:[%s10484_s0 + $0x18] sm:$0xff] }
 0x235   :  { %2991 = vperm.xlu2 %4283, %v2915_v50   ;;  %4285 = vset.pattern.permute.xlu1 %v4714_v59  ;;  %v4541_v17 = vpop.eup %4540  ;;  %v2435_v58 = vor.u32 1.1754944e-38, %v2434_v2  ;;  %v2440_v43 = vsub.f32 1.0, %v2439_v6  ;;  %vm2444_vm11 = vweird.f32 %v4539_v47  ;;  %v2450_v40 = vor.u32 1.1754944e-38, %v2449_v30 }
 0x236   :  { %v2416_v22 = vsel %vm8333_vm0, %v4535_v13, %v2412_v60  ;;  %v2427_v14 = vadd.f32 %v4537_v53, %v2426_v37  ;;  %v2454_v23 = vmul.f32 %v4541_v17, %v8302_v1  ;;  %vm2458_vm3 = vweird.f32 %v8302_v1  ;;  %vm8367_vm15 = vmor %vm2443_vm10, %vm2444_vm11  ;;  %v2922_v13 = vld [vmem:[%s10484_s0 + $0x38] sm:$0xff] }
 0x237   :  { %v2421_v50 = vsel %vm8337_vm14, %v2420_v21, %v2416_v22  ;;  %v2441_v49 = vmul.f32 %v4539_v47, %v2440_v43  ;;  %v2462_v44 = vand.u32 2147483647, %v8302_v1  ;;  %v2464_v59 = vand.u32 2147483648, %v8302_v1 }
 0x238   :  { %v2431_v2 = vsel %vm8351_vm6, %v4537_v53, %v2427_v14  ;;  %v2455_v30 = vsub.f32 1.0, %v2454_v23  ;;  %vm2459_vm1 = vweird.f32 %v4541_v17  ;;  %v8373_v63 = vsel %vm344_vm7, %v472_v45, %v2421_v50  ;;  %v2917_v14 = vld [vmem:[%s10484_s0 + $0x10] sm:$0xff]  ;;  %v2920_v23 = vld [vmem:[%s10484_s0 + $0x28] sm:$0xff] }
 0x239   :  { %v474_v25 = vadd.f32 1.0, %v8255_v31  ;;  %v2436_v21 = vsel %vm8343_vm4, %v2435_v58, %v2431_v2  ;;  %v2442_v6 = vadd.f32 %v4539_v47, %v2441_v49  ;;  %vm2448_vm9 = vcmp.eq.f32.partialorder %v2447_v24, 8.507059e+37  ;;  %vm2460_vm7 = vmor %vm2458_vm3, %vm2459_vm1  ;;  %v2916_v50 = vld [vmem:[%s10484_s0 + $0x8] sm:$0xff]  ;;  %v2923_v49 = vld [vmem:[%s10484_s0 + $0x40] sm:$0xff] }
 0x23a   :  { %vm346_vm13 = vcmp.ge.f32.partialorder %v8255_v31, 0.0  ;;  %v2456_v53 = vmul.f32 %v4541_v17, %v2455_v30  ;;  %v8384_v60 = vsel %vm345_vm12, %v473_v4, %v2436_v21  ;;  %v2465_v45 = vor.u32 1.1754944e-38, %v2464_v59  ;;  %v8478_v59 = vpop.xlane.xlu0 %2691  ;;  %v2921_v2 = vld [vmem:[%s10484_s0 + $0x30] sm:$0xff]  ;;  %v2926_v30 = vld [vmem:[%s10484_s0 + $0x58] sm:$0xff] }
 0x23b   :  { %v2446_v32 = vsel %vm8367_vm15, %v4539_v47, %v2442_v6  ;;  %v2838_v37 = vadd.f32 %v8384_v60, %v8373_v63  ;;  %v475_v38 = vadd.f32 1.0, %v8278_v55  ;;  %vm2463_vm2 = vcmp.eq.f32.partialorder %v2462_v44, 8.507059e+37  ;;  %v8474_v44 = vpop.xlane.xlu1 %2701 }
 0x23c   :  { %v2451_v24 = vsel %vm2448_vm9, %v2450_v40, %v2446_v32  ;;  %v2457_v34 = vadd.f32 %v4541_v17, %v2456_v53  ;;  %vm347_vm8 = vcmp.ge.f32.partialorder %v8278_v55, 0.0  ;;  %vm31_vm12 = vcmask 7168   ;;  %v2919_v55 = vld [vmem:[%s10484_s0 + $0x20] sm:$0xff]  ;;  %v2925_v53 = vld [vmem:[%s10484_s0 + $0x50] sm:$0xff] }
 0x23d   :  { %3000 = vperm.xlu2 %4283, %v2918_v10   ;;  %v8394_v31 = vsel %vm346_vm13, %v474_v25, %v2451_v24  ;;  %v4715_v47 = vmov 0.0   ;;  %v2924_v10 = vld [vmem:[%s10484_s0 + $0x48] sm:$0xff]  ;;  %v2929_v32 = vld [vmem:[%s10484_s0 + $0x70] sm:$0xff]  ;;  %v2927_v24 = vld [vmem:[%s10484_s0 + $0x60] sm:$0xff] }
 0x23e   :  { %v2461_v29 = vsel %vm2460_vm7, %v4541_v17, %v2457_v34  ;;  %v2839_v4 = vadd.f32 %v2838_v37, %v8394_v31  ;;  %36 = vst.msk [vmem:[#allocation2 + $0x20] sm:$0xff] %vm31_vm12, %v4715_v47  ;;  %v2712_v17 = vpop.xlane.xlu2 %2711  ;;  %v2928_v34 = vld [vmem:[%s10484_s0 + $0x68] sm:$0xff] }
 0x23f   :  { %v2466_v1 = vsel %vm2463_vm2, %v2465_v45, %v2461_v29  ;;  %32 = vst.msk [vmem:[#allocation2] sm:$0xff] %vm31_vm12, %v4715_v47  ;;  %v2932_v29 = vld [vmem:[%s10484_s0 + $0x88] sm:$0xff] }
 0x240   :  { %v8399_v58 = vsel %vm347_vm8, %v475_v38, %v2466_v1  ;;  %33 = vst.msk [vmem:[#allocation2 + $0x8] sm:$0xff] %vm31_vm12, %v4715_v47 }
 0x241   :  { %v2840_v43 = vadd.f32 %v2839_v4, %v8399_v58  ;;  %34 = vst.msk [vmem:[#allocation2 + $0x10] sm:$0xff] %vm31_vm12, %v4715_v47 }
 0x242   :  { %35 = vst.msk [vmem:[#allocation2 + $0x18] sm:$0xff] %vm31_vm12, %v4715_v47  ;;  %v8509_v6 = vpop.xlane.xlu0 %2696 }
 0x243   :  { %2841 = vadd.xlane.f32.xlu0 %v2840_v43  ;;  %37 = vst.msk [vmem:[#allocation2 + $0x28] sm:$0xff] %vm31_vm12, %v4715_v47  ;;  %v2707_v21 = vpop.xlane.xlu1 %2706 }
 0x244   :  { %38 = vst.msk [vmem:[#allocation2 + $0x30] sm:$0xff] %vm31_vm12, %v4715_v47 }
 0x245   :  { %3003 = vperm.xlu2 %4283, %v2919_v55   ;;  %v2660_v40 = vld [vmem:[#allocation2 + $0x20] sm:$0xff]  ;;  %39 = vst.msk [vmem:[#allocation2 + $0x38] sm:$0xff] %vm31_vm12, %v4715_v47 }
 0x246   :  { %v2852_v22 = vadd.f32 %v2712_v17, %v2660_v40  ;;  %40 = vst.msk [vmem:[#allocation2 + $0x40] sm:$0xff] %vm31_vm12, %v4715_v47  ;;  %v2717_v25 = vpop.xlane.xlu2 %2716  ;;  %v2656_v17 = vld [vmem:[#allocation2] sm:$0xff]  ;;  %v2930_v40 = vld [vmem:[%s10484_s0 + $0x78] sm:$0xff] }
 0x247   :  { %41 = vst.msk [vmem:[#allocation2 + $0x48] sm:$0xff] %vm31_vm12, %v4715_v47 }
 0x248   :  { %2885 = vst.msk [vmem:[#allocation2 + $0x20] sm:$0xff] %vm31_vm12, %v2852_v22  ;;  %v2658_v55 = vld [vmem:[#allocation2 + $0x10] sm:$0xff] }
 0x249   :  { %42 = vst.msk [vmem:[#allocation2 + $0x50] sm:$0xff] %vm31_vm12, %v4715_v47 }
 0x24a   :  { %43 = vst.msk [vmem:[#allocation2 + $0x58] sm:$0xff] %vm31_vm12, %v4715_v47  ;;  %v2722_v38 = vpop.xlane.xlu0 %2721  ;;  %v2661_v22 = vld [vmem:[#allocation2 + $0x28] sm:$0xff] }
 0x24b   :  { %2997 = vperm.xlu1 %4285, %v2917_v14   ;;  %44 = vst.msk [vmem:[#allocation2 + $0x60] sm:$0xff] %vm31_vm12, %v4715_v47  ;;  %v2727_v37 = vpop.xlane.xlu1 %2726  ;;  %v2931_v14 = vld [vmem:[%s10484_s0 + $0x80] sm:$0xff] }
 0x24c   :  { %45 = vst.msk [vmem:[#allocation2 + $0x68] sm:$0xff] %vm31_vm12, %v4715_v47 }
 0x24d   :  { %46 = vst.msk [vmem:[#allocation2 + $0x70] sm:$0xff] %vm31_vm12, %v4715_v47  ;;  %3009 = vperm.xlu2 %4283, %v2921_v2   ;;  %v2848_v2 = vadd.f32 %v8478_v59, %v2656_v17  ;;  %v2662_v59 = vld [vmem:[#allocation2 + $0x30] sm:$0xff] }
 0x24e   :  { %47 = vst.msk [vmem:[#allocation2 + $0x78] sm:$0xff] %vm31_vm12, %v4715_v47  ;;  %v2732_v45 = vpop.xlane.xlu2 %2731 }
 0x24f   :  { %48 = vst.msk [vmem:[#allocation2 + $0x80] sm:$0xff] %vm31_vm12, %v4715_v47 }
 0x250   :  { %49 = vst.msk [vmem:[#allocation2 + $0x88] sm:$0xff] %vm31_vm12, %v4715_v47 }
 0x251   :  { %50 = vst.msk [vmem:[#allocation2 + $0x90] sm:$0xff] %vm31_vm12, %v4715_v47  ;;  %v2667_v17 = vld [vmem:[#allocation2 + $0x58] sm:$0xff] }
 0x252   :  { %51 = vst.msk [vmem:[#allocation2 + $0x98] sm:$0xff] %vm31_vm12, %v4715_v47  ;;  %v2737_v43 = vpop.xlane.xlu0 %2736 }
 0x253   :  { %3006 = vperm.xlu1 %4285, %v2920_v23   ;;  %52 = vst.msk [vmem:[#allocation2 + $0xa0] sm:$0xff] %vm31_vm12, %v4715_v47  ;;  %v2742_v1 = vpop.xlane.xlu1 %2741  ;;  %v2850_v23 = vadd.f32 %v8474_v44, %v2658_v55 }
 0x254   :  { %53 = vst.msk [vmem:[#allocation2 + $0xa8] sm:$0xff] %vm31_vm12, %v4715_v47 }
 0x255   :  { %54 = vst.msk [vmem:[#allocation2 + $0xb0] sm:$0xff] %vm31_vm12, %v4715_v47  ;;  %3018 = vperm.xlu2 %4283, %v2924_v10   ;;  %v2664_v10 = vld [vmem:[#allocation2 + $0x40] sm:$0xff] }
 0x256   :  { %55 = vst.msk [vmem:[#allocation2 + $0xb8] sm:$0xff] %vm31_vm12, %v4715_v47  ;;  %v2747_v4 = vpop.xlane.xlu2 %2746  ;;  %v2856_v55 = vadd.f32 %v2732_v45, %v2664_v10 }
 0x257   :  { %2994 = vperm.xlu0 %4284, %v2916_v50   ;;  %56 = vst.msk [vmem:[#allocation2 + $0xc0] sm:$0xff] %vm31_vm12, %v4715_v47  ;;  %v2659_v50 = vld [vmem:[#allocation2 + $0x18] sm:$0xff]  ;;  %v2859_v45 = vadd.f32 %v2747_v4, %v2667_v17  ;;  %v2673_v4 = vld [vmem:[#allocation2 + $0x88] sm:$0xff] }
 0x258   :  { %57 = vst.msk [vmem:[#allocation2 + $0xc8] sm:$0xff] %vm31_vm12, %v4715_v47  ;;  %v2851_v44 = vadd.f32 %v2707_v21, %v2659_v50  ;;  %v2854_v21 = vadd.f32 %v2722_v38, %v2662_v59  ;;  %v2669_v50 = vld [vmem:[#allocation2 + $0x68] sm:$0xff]  ;;  %v2937_v59 = vld [vmem:[%s10484_s0 + $0xb0] sm:$0xff] }
 0x259   :  { %58 = vst.msk [vmem:[#allocation2 + $0xd0] sm:$0xff] %vm31_vm12, %v4715_v47 }
 0x25a   :  { %59 = vst.msk [vmem:[#allocation2 + $0xd8] sm:$0xff] %vm31_vm12, %v4715_v47 }
 0x25b   :  { %60 = vst.msk [vmem:[#allocation2 + $0xe0] sm:$0xff] %vm31_vm12, %v4715_v47  ;;  %3012 = vperm.xlu1 %4285, %v2922_v13   ;;  %v2657_v13 = vld [vmem:[#allocation2 + $0x8] sm:$0xff] }
 0x25c   :  { %61 = vst.msk [vmem:[#allocation2 + $0xe8] sm:$0xff] %vm31_vm12, %v4715_v47 }
 0x25d   :  { %62 = vst.msk [vmem:[#allocation2 + $0xf0] sm:$0xff] %vm31_vm12, %v4715_v47  ;;  %3027 = vperm.xlu2 %4283, %v2927_v24   ;;  %v2663_v24 = vld [vmem:[#allocation2 + $0x38] sm:$0xff] }
 0x25e   :  { %63 = vst.msk [vmem:[#allocation2 + $0xf8] sm:$0xff] %vm31_vm12, %v4715_v47 }
 0x25f   :  { %3015 = vperm.xlu0 %4284, %v2923_v49   ;;  %64 = vst.msk [vmem:[#allocation3] sm:$0xff] %vm31_vm12, %v4715_v47  ;;  %v2935_v49 = vld [vmem:[%s10484_s0 + $0xa0] sm:$0xff] }
 0x260   :  { %65 = vst.msk [vmem:[#allocation3 + $0x8] sm:$0xff] %vm31_vm12, %v4715_v47 }
 0x261   :  { %66 = vst.msk [vmem:[#allocation3 + $0x10] sm:$0xff] %vm31_vm12, %v4715_v47 }
 0x262   :  { %67 = vst.msk [vmem:[#allocation3 + $0x18] sm:$0xff] %vm31_vm12, %v4715_v47 }
 0x263   :  { %68 = vst.msk [vmem:[#allocation3 + $0x20] sm:$0xff] %vm31_vm12, %v4715_v47  ;;  %3021 = vperm.xlu1 %4285, %v2925_v53   ;;  %v2762_v53 = vpop.xlane.xlu2 %2761 }
 0x264   :  { %69 = vst.msk [vmem:[#allocation3 + $0x28] sm:$0xff] %vm31_vm12, %v4715_v47 }
 0x265   :  { %70 = vst.msk [vmem:[#allocation3 + $0x30] sm:$0xff] %vm31_vm12, %v4715_v47  ;;  %3036 = vperm.xlu2 %4283, %v2930_v40   ;;  %v2666_v40 = vld [vmem:[#allocation2 + $0x50] sm:$0xff] }
 0x266   :  { %71 = vst.msk [vmem:[#allocation3 + $0x38] sm:$0xff] %vm31_vm12, %v4715_v47 }
 0x267   :  { %3024 = vperm.xlu0 %4284, %v2926_v30   ;;  %72 = vst.msk [vmem:[#allocation3 + $0x40] sm:$0xff] %vm31_vm12, %v4715_v47  ;;  %v2853_v30 = vadd.f32 %v2717_v25, %v2661_v22  ;;  %v2855_v25 = vadd.f32 %v2727_v37, %v2663_v24  ;;  %v2665_v22 = vld [vmem:[#allocation2 + $0x48] sm:$0xff]  ;;  %v2938_v37 = vld [vmem:[%s10484_s0 + $0xb8] sm:$0xff]  ;;  %v2672_v24 = vld [vmem:[#allocation2 + $0x80] sm:$0xff] }
 0x268   :  { %73 = vst.msk [vmem:[#allocation3 + $0x48] sm:$0xff] %vm31_vm12, %v4715_v47  ;;  %v2857_v38 = vadd.f32 %v2737_v43, %v2665_v22  ;;  %v2936_v43 = vld [vmem:[%s10484_s0 + $0xa8] sm:$0xff] }
 0x269   :  { %74 = vst.msk [vmem:[#allocation3 + $0x50] sm:$0xff] %vm31_vm12, %v4715_v47  ;;  %v2944_v22 = vld [vmem:[%s10484_s0 + $0xe8] sm:$0xff] }
 0x26a   :  { %75 = vst.msk [vmem:[#allocation3 + $0x58] sm:$0xff] %vm31_vm12, %v4715_v47 }
 0x26b   :  { %76 = vst.msk [vmem:[#allocation3 + $0x60] sm:$0xff] %vm31_vm12, %v4715_v47  ;;  %3030 = vperm.xlu1 %4285, %v2928_v34   ;;  %v2752_v34 = vpop.xlane.xlu0 %2751 }
 0x26c   :  { %77 = vst.msk [vmem:[#allocation3 + $0x68] sm:$0xff] %vm31_vm12, %v4715_v47 }
 0x26d   :  { %78 = vst.msk [vmem:[#allocation3 + $0x70] sm:$0xff] %vm31_vm12, %v4715_v47 }
 0x26e   :  { %79 = vst.msk [vmem:[#allocation3 + $0x78] sm:$0xff] %vm31_vm12, %v4715_v47 }
 0x26f   :  { %3033 = vperm.xlu0 %4284, %v2929_v32   ;;  %80 = vst.msk [vmem:[#allocation3 + $0x80] sm:$0xff] %vm31_vm12, %v4715_v47  ;;  %v2757_v32 = vpop.xlane.xlu1 %2756 }
 0x270   :  { %81 = vst.msk [vmem:[#allocation3 + $0x88] sm:$0xff] %vm31_vm12, %v4715_v47 }
 0x271   :  { %82 = vst.msk [vmem:[#allocation3 + $0x90] sm:$0xff] %vm31_vm12, %v4715_v47 }
 0x272   :  { %83 = vst.msk [vmem:[#allocation3 + $0x98] sm:$0xff] %vm31_vm12, %v4715_v47 }
 0x273   :  { %84 = vst.msk [vmem:[#allocation3 + $0xa0] sm:$0xff] %vm31_vm12, %v4715_v47  ;;  %3039 = vperm.xlu1 %4285, %v2931_v14   ;;  %v2670_v14 = vld [vmem:[#allocation2 + $0x70] sm:$0xff]  ;;  %v2767_v10 = vpop.xlane.xlu0 %2766 }
 0x274   :  { %85 = vst.msk [vmem:[#allocation3 + $0xa8] sm:$0xff] %vm31_vm12, %v4715_v47 }
 0x275   :  { %86 = vst.msk [vmem:[#allocation3 + $0xb0] sm:$0xff] %vm31_vm12, %v4715_v47 }
 0x276   :  { %87 = vst.msk [vmem:[#allocation3 + $0xb8] sm:$0xff] %vm31_vm12, %v4715_v47 }
 0x277   :  { %3042 = vperm.xlu0 %4284, %v2932_v29   ;;  %88 = vst.msk [vmem:[#allocation3 + $0xc0] sm:$0xff] %vm31_vm12, %v4715_v47  ;;  %v2849_v29 = vadd.f32 %v8509_v6, %v2657_v13  ;;  %v2934_v6 = vld [vmem:[%s10484_s0 + $0x98] sm:$0xff]  ;;  %v2772_v13 = vpop.xlane.xlu1 %2771 }
 0x278   :  { %89 = vst.msk [vmem:[#allocation3 + $0xc8] sm:$0xff] %vm31_vm12, %v4715_v47 }
 0x279   :  { %90 = vst.msk [vmem:[#allocation3 + $0xd0] sm:$0xff] %vm31_vm12, %v4715_v47 }
 0x27a   :  { %91 = vst.msk [vmem:[#allocation3 + $0xd8] sm:$0xff] %vm31_vm12, %v4715_v47 }
 0x27b   :  { %92 = vst.msk [vmem:[#allocation3 + $0xe0] sm:$0xff] %vm31_vm12, %v4715_v47  ;;  %3048 = vperm.xlu1 %4285, %v2934_v6  }
 0x27c   :  { %93 = vst.msk [vmem:[#allocation3 + $0xe8] sm:$0xff] %vm31_vm12, %v4715_v47 }
 0x27d   :  { %94 = vst.msk [vmem:[#allocation3 + $0xf0] sm:$0xff] %vm31_vm12, %v4715_v47 }
 0x27e   :  { %95 = vst.msk [vmem:[#allocation3 + $0xf8] sm:$0xff] %vm31_vm12, %v4715_v47  ;;  %v2933_v47 = vld [vmem:[%s10484_s0 + $0x90] sm:$0xff] }
 0x27f   :  { %3051 = vperm.xlu0 %4284, %v2935_v49   ;;  %2883 = vst.msk [vmem:[#allocation2 + $0x10] sm:$0xff] %vm31_vm12, %v2850_v23  ;;  %3045 = vperm.xlu2 %4283, %v2933_v47   ;;  %v2858_v23 = vadd.f32 %v2742_v1, %v2666_v40  ;;  %v2668_v49 = vld [vmem:[#allocation2 + $0x60] sm:$0xff]  ;;  %v2782_v40 = vpop.xlane.xlu0 %2781 }
 0x280   :  { %2881 = vst.msk [vmem:[#allocation2] sm:$0xff] %vm31_vm12, %v2848_v2  ;;  %v2777_v2 = vpop.xlane.xlu2 %2776  ;;  %v2860_v1 = vadd.f32 %v2752_v34, %v2668_v49  ;;  %v2941_v34 = vld [vmem:[%s10484_s0 + $0xd0] sm:$0xff]  ;;  %v2939_v47 = vld [vmem:[%s10484_s0 + $0xc0] sm:$0xff] }
 0x281   :  { %2886 = vst.msk [vmem:[#allocation2 + $0x28] sm:$0xff] %vm31_vm12, %v2853_v30  ;;  %v2862_v30 = vadd.f32 %v2762_v53, %v2670_v14  ;;  %v2865_v53 = vadd.f32 %v2777_v2, %v2673_v4  ;;  %v2674_v49 = vld [vmem:[#allocation2 + $0x90] sm:$0xff]  ;;  %v2679_v2 = vld [vmem:[#allocation2 + $0xb8] sm:$0xff] }
 0x282   :  { %2884 = vst.msk [vmem:[#allocation2 + $0x18] sm:$0xff] %vm31_vm12, %v2851_v44  ;;  %v2861_v44 = vadd.f32 %v2757_v32, %v2669_v50  ;;  %v2676_v50 = vld [vmem:[#allocation2 + $0xa0] sm:$0xff] }
 0x283   :  { %2882 = vst.msk [vmem:[#allocation2 + $0x8] sm:$0xff] %vm31_vm12, %v2849_v29  ;;  %v2671_v29 = vld [vmem:[#allocation2 + $0x78] sm:$0xff]  ;;  %3057 = vperm.xlu1 %4285, %v2937_v59   ;;  %v2682_v59 = vld [vmem:[#allocation2 + $0xd0] sm:$0xff] }
 0x284   :  { %2889 = vst.msk [vmem:[#allocation2 + $0x40] sm:$0xff] %vm31_vm12, %v2856_v55  ;;  %v2864_v55 = vadd.f32 %v2772_v13, %v2672_v24  ;;  %v2863_v32 = vadd.f32 %v2767_v10, %v2671_v29  ;;  %v2678_v13 = vld [vmem:[#allocation2 + $0xb0] sm:$0xff]  ;;  %v2677_v24 = vld [vmem:[#allocation2 + $0xa8] sm:$0xff]  ;;  %v2866_v29 = vadd.f32 %v2782_v40, %v2674_v49 }
 0x285   :  { %2888 = vst.msk [vmem:[#allocation2 + $0x38] sm:$0xff] %vm31_vm12, %v2855_v25  ;;  %v2787_v25 = vpop.xlane.xlu1 %2786 }
 0x286   :  { %2887 = vst.msk [vmem:[#allocation2 + $0x30] sm:$0xff] %vm31_vm12, %v2854_v21  ;;  %v2940_v21 = vld [vmem:[%s10484_s0 + $0xc8] sm:$0xff] }
 0x287   :  { %3060 = vperm.xlu0 %4284, %v2938_v37   ;;  %2892 = vst.msk [vmem:[#allocation2 + $0x58] sm:$0xff] %vm31_vm12, %v2859_v45  ;;  %3054 = vperm.xlu2 %4283, %v2936_v43   ;;  %v2797_v14 = vpop.xlane.xlu0 %2796  ;;  %v2942_v37 = vld [vmem:[%s10484_s0 + $0xd8] sm:$0xff] }
 0x288   :  { %2891 = vst.msk [vmem:[#allocation2 + $0x50] sm:$0xff] %vm31_vm12, %v2858_v23  ;;  %v2792_v17 = vpop.xlane.xlu2 %2791  ;;  %v2943_v23 = vld [vmem:[%s10484_s0 + $0xe0] sm:$0xff] }
 0x289   :  { %2890 = vst.msk [vmem:[#allocation2 + $0x48] sm:$0xff] %vm31_vm12, %v2857_v38  ;;  %v2675_v38 = vld [vmem:[#allocation2 + $0x98] sm:$0xff]  ;;  %v2868_v10 = vadd.f32 %v2792_v17, %v2676_v50  ;;  %v2869_v17 = vadd.f32 %v2797_v14, %v2677_v24 }
 0x28a   :  { %2895 = vst.msk [vmem:[#allocation2 + $0x70] sm:$0xff] %vm31_vm12, %v2862_v30 }
 0x28b   :  { %2894 = vst.msk [vmem:[#allocation2 + $0x68] sm:$0xff] %vm31_vm12, %v2861_v44  ;;  %3066 = vperm.xlu1 %4285, %v2940_v21   ;;  %v2867_v44 = vadd.f32 %v2787_v25, %v2675_v38  ;;  %v2680_v25 = vld [vmem:[#allocation2 + $0xc0] sm:$0xff]  ;;  %v2685_v21 = vld [vmem:[#allocation2 + $0xe8] sm:$0xff] }
 0x28c   :  { %2893 = vst.msk [vmem:[#allocation2 + $0x60] sm:$0xff] %vm31_vm12, %v2860_v1 }
 0x28d   :  { %2898 = vst.msk [vmem:[#allocation2 + $0x88] sm:$0xff] %vm31_vm12, %v2865_v53  ;;  %v2802_v45 = vpop.xlane.xlu1 %2801  ;;  %v2945_v53 = vld [vmem:[%s10484_s0 + $0xf0] sm:$0xff] }
 0x28e   :  { %2897 = vst.msk [vmem:[#allocation2 + $0x80] sm:$0xff] %vm31_vm12, %v2864_v55  ;;  %v2870_v55 = vadd.f32 %v2802_v45, %v2678_v13  ;;  %v2683_v45 = vld [vmem:[#allocation2 + $0xd8] sm:$0xff] }
 0x28f   :  { %3069 = vperm.xlu0 %4284, %v2941_v34   ;;  %2896 = vst.msk [vmem:[#allocation2 + $0x78] sm:$0xff] %vm31_vm12, %v2863_v32  ;;  %3063 = vperm.xlu2 %4283, %v2939_v47   ;;  %v2812_v1 = vpop.xlane.xlu0 %2811  ;;  %v2681_v32 = vld [vmem:[#allocation2 + $0xc8] sm:$0xff]  ;;  %v2946_v34 = vld [vmem:[%s10484_s0 + $0xf8] sm:$0xff] }
 0x290   :  { %v2807_v6 = vpop.xlane.xlu2 %2806  ;;  %2901 = vst.msk [vmem:[#allocation2 + $0xa0] sm:$0xff] %vm31_vm12, %v2868_v10 }
 0x291   :  { %v2871_v43 = vadd.f32 %v2807_v6, %v2679_v2  ;;  %2900 = vst.msk [vmem:[#allocation2 + $0x98] sm:$0xff] %vm31_vm12, %v2867_v44  ;;  %v2872_v6 = vadd.f32 %v2812_v1, %v2680_v25  ;;  %v8653_v2 = vld [vmem:[#allocation2 + $0x20] sm:$0xff]  ;;  %v8676_v25 = vld [vmem:[#allocation2 + $0x10] sm:$0xff] }
 0x292   :  { %2899 = vst.msk [vmem:[#allocation2 + $0x90] sm:$0xff] %vm31_vm12, %v2866_v29  ;;  %4542 = vrcp.f32 %v8653_v2  ;;  %vm3698_vm9 = vweird.f32 %v8653_v2 }
 0x293   :  { %3075 = vperm.xlu1 %4285, %v2943_v23   ;;  %2904 = vst.msk [vmem:[#allocation2 + $0xb8] sm:$0xff] %vm31_vm12, %v2871_v43  ;;  %v2687_v43 = vld [vmem:[#allocation2 + $0xf8] sm:$0xff]  ;;  %4544 = vrcp.f32 %v8676_v25 }
 0x294   :  { %2903 = vst.msk [vmem:[#allocation2 + $0xb0] sm:$0xff] %vm31_vm12, %v2870_v55 }
 0x295   :  { %v2817_v4 = vpop.xlane.xlu1 %2816  ;;  %2902 = vst.msk [vmem:[#allocation2 + $0xa8] sm:$0xff] %vm31_vm12, %v2869_v17 }
 0x296   :  { %v2873_v47 = vadd.f32 %v2817_v4, %v2681_v32  ;;  %2905 = vst.msk [vmem:[#allocation2 + $0xc0] sm:$0xff] %vm31_vm12, %v2872_v6 }
 0x297   :  { %3078 = vperm.xlu0 %4284, %v2944_v22   ;;  %3072 = vperm.xlu2 %4283, %v2942_v37   ;;  %v2684_v22 = vld [vmem:[#allocation2 + $0xe0] sm:$0xff]  ;;  %v2827_v38 = vpop.xlane.xlu0 %2826 }
 0x298   :  { %v2822_v30 = vpop.xlane.xlu2 %2821  ;;  %2906 = vst.msk [vmem:[#allocation2 + $0xc8] sm:$0xff] %vm31_vm12, %v2873_v47  ;;  %v2875_v49 = vadd.f32 %v2827_v38, %v2683_v45  ;;  %v8660_v4 = vpop.eup %4542 }
 0x299   :  { %v2874_v40 = vadd.f32 %v2822_v30, %v2682_v59  ;;  %v2948_v30 = vlaneseq  ;;  %v3694_v44 = vmul.f32 %v8660_v4, %v8653_v2  ;;  %vm3699_vm1 = vweird.f32 %v8660_v4 }
 0x29a   :  { %2908 = vst.msk [vmem:[#allocation2 + $0xd8] sm:$0xff] %vm31_vm12, %v2875_v49  ;;  %v8700_v49 = vld [vmem:[#allocation2 + $0x28] sm:$0xff] }
 0x29b   :  { %3084 = vperm.xlu1 %4285, %v2946_v34   ;;  %2907 = vst.msk [vmem:[#allocation2 + $0xd0] sm:$0xff] %vm31_vm12, %v2874_v40  ;;  %v8662_v10 = vand.u32 127, %v2948_v30  ;;  %v3695_v55 = vsub.f32 1.0, %v3694_v44  ;;  %v3704_v34 = vand.u32 2147483648, %v8653_v2 }
 0x29d   :  { %v2832_v23 = vpop.xlane.xlu1 %2831  ;;  %v8669_v29 = vadd.s32 128, %v8662_v10  ;;  %v8672_v32 = vadd.s32 256, %v8662_v10  ;;  %v8680_v47 = vadd.s32 384, %v8662_v10 }
 0x29e   :  { %v2876_v50 = vadd.f32 %v2832_v23, %v2684_v22  ;;  %v3702_v23 = vand.u32 2147483647, %v8653_v2 }
 0x29f   :  { %3081 = vperm.xlu2 %4283, %v2945_v53   ;;  %v2686_v53 = vld [vmem:[#allocation2 + $0xf0] sm:$0xff] }
 0x2a0   :  { %v2837_v37 = vpop.xlane.xlu2 %2836  ;;  %2909 = vst.msk [vmem:[#allocation2 + $0xe0] sm:$0xff] %vm31_vm12, %v2876_v50  ;;  %v8694_v50 = vld [vmem:[#allocation2] sm:$0xff] }
 0x2a1   :  { %v2877_v14 = vadd.f32 %v2837_v37, %v2685_v21  ;;  %v3696_v21 = vmul.f32 %v8660_v4, %v3695_v55  ;;  %4546 = vrcp.f32 %v8694_v50 }
 0x2a2   :  { %4548 = vrcp.f32 %v8700_v49 }
 0x2a3   :  { %2910 = vst.msk [vmem:[#allocation2 + $0xe8] sm:$0xff] %vm31_vm12, %v2877_v14  ;;  %v8692_v14 = vor.u32 1.1754944e-38, %v3704_v34  ;;  %v8723_v34 = vpop.eup %4544 }
 0x2a5   :  { %v2847_v24 = vpop.xlane.xlu1 %2846 }
 0x2a6   :  { %v2879_v17 = vadd.f32 %v2847_v24, %v2687_v43  ;;  %v3644_v43 = vand.u32 2147483648, %v8694_v50 }
 0x2a8   :  { %v2992_v13 = vpop.permute.xlu2 %2991  ;;  %2912 = vst.msk [vmem:[#allocation2 + $0xf8] sm:$0xff] %vm31_vm12, %v2879_v17  ;;  %v8726_v17 = vld [vmem:[#allocation2 + $0x8] sm:$0xff] }
 0x2a9   :  { %vm3086_vm5 = vcmp.eq.s32.totalorder %v8662_v10, %v2992_v13  ;;  %vm3087_vm0 = vcmp.eq.s32.totalorder %v8669_v29, %v2992_v13  ;;  %vm3088_vm14 = vcmp.eq.s32.totalorder %v8672_v32, %v2992_v13  ;;  %vm3089_vm10 = vcmp.eq.s32.totalorder %v8680_v47, %v2992_v13 }
 0x2aa   :  { %v3214_v22 = vsel %vm3086_vm5, %v5083_v5, 0.0  ;;  %v3215_v45 = vsel %vm3087_vm0, %v5093_v27, 0.0  ;;  %v3216_v27 = vsel %vm3088_vm14, %v5103_v12, 0.0  ;;  %v3217_v12 = vsel %vm3089_vm10, %v5114_v3, 0.0  ;;  %v9399_v5 = vld [vmem:[#allocation2 + $0xc8] sm:$0xff] }
 0x2ab   :  { %v3342_v38 = vadd.f32 %v3215_v45, %v3214_v22  ;;  %v3642_v22 = vand.u32 2147483647, %v8694_v50  ;;  %vm8765_vm14 = vcmp.eq.f32.partialorder %v3702_v23, 8.507059e+37 }
 0x2ad   :  { %v3343_v30 = vadd.f32 %v3342_v38, %v3216_v27 }
 0x2af   :  { %v3344_v55 = vadd.f32 %v3343_v30, %v3217_v12 }
 0x2b0   :  { %v8666_v1 = vpop.permute.xlu2 %3000 }
 0x2b1   :  { %vm3098_vm2 = vcmp.eq.s32.totalorder %v8662_v10, %v8666_v1  ;;  %vm3099_vm8 = vcmp.eq.s32.totalorder %v8669_v29, %v8666_v1 }
 0x2b6   :  { %v2842_v59 = vpop.xlane.xlu0 %2841 }
 0x2b7   :  { %v2878_v40 = vadd.f32 %v2842_v59, %v2686_v53  ;;  %v8712_v59 = vld [vmem:[#allocation2 + $0x18] sm:$0xff] }
 0x2b8   :  { %v3004_v37 = vpop.permute.xlu2 %3003  ;;  %4550 = vrcp.f32 %v8712_v59 }
 0x2b9   :  { %2911 = vst.msk [vmem:[#allocation2 + $0xf0] sm:$0xff] %vm31_vm12, %v2878_v40  ;;  %vm3102_vm4 = vcmp.eq.s32.totalorder %v8662_v10, %v3004_v37  ;;  %vm3103_vm6 = vcmp.eq.s32.totalorder %v8669_v29, %v3004_v37  ;;  %vm3104_vm3 = vcmp.eq.s32.totalorder %v8672_v32, %v3004_v37  ;;  %vm3105_vm13 = vcmp.eq.s32.totalorder %v8680_v47, %v3004_v37  ;;  %v8771_v37 = vld [vmem:[#allocation2 + $0x40] sm:$0xff] }
 0x2ba   :  { %v3230_v44 = vsel %vm3102_vm4, %v4865_v15, 0.0  ;;  %v3231_v24 = vsel %vm3103_vm6, %v4872_v18, 0.0  ;;  %v3232_v15 = vsel %vm3104_vm3, %v4879_v0, 0.0  ;;  %v8721_v18 = vadd.f32 %v8660_v4, %v3696_v21  ;;  %11139 = vst [vmem:[#allocation100_spill] sm:$0xff] %v8771_v37 }
 0x2bb   :  { %v3362_v53 = vadd.f32 %v3231_v24, %v3230_v44  ;;  %4552 = vrcp.f32 %v8726_v17  ;;  %v3233_v27 = vsel %vm3105_vm13, %v4890_v26, 0.0  ;;  %v8758_v44 = vpop.eup %4546  ;;  %vm8813_vm13 = vmor %vm3698_vm9, %vm3699_vm1 }
 0x2bc   :  { %4554 = vrcp.f32 %v8771_v37 }
 0x2bd   :  { %v8687_v6 = vpop.permute.xlu1 %2997  ;;  %v3363_v3 = vadd.f32 %v3362_v53, %v3232_v15  ;;  %v8769_v53 = vpop.eup %4548  ;;  %v3226_v15 = vsel %vm3098_vm2, %v5288_v39, 0.0 }
 0x2be   :  { %vm3094_vm11 = vcmp.eq.s32.totalorder %v8662_v10, %v8687_v6  ;;  %vm3095_vm15 = vcmp.eq.s32.totalorder %v8669_v29, %v8687_v6  ;;  %vm3096_vm7 = vcmp.eq.s32.totalorder %v8672_v32, %v8687_v6  ;;  %vm3097_vm0 = vcmp.eq.s32.totalorder %v8680_v47, %v8687_v6  ;;  %v8787_v23 = vpop.eup %4550 }
 0x2bf   :  { %v3222_v13 = vsel %vm3094_vm11, %v4941_v56, 0.0  ;;  %v3223_v0 = vsel %vm3095_vm15, %v4945_v57, 0.0  ;;  %v8751_v57 = vor.u32 1.1754944e-38, %v3644_v43  ;;  %v3364_v24 = vadd.f32 %v3363_v3, %v3233_v27  ;;  %v8798_v27 = vld [vmem:[#allocation2 + $0x38] sm:$0xff] }
 0x2c0   :  { %v8749_v56 = vpop.permute.xlu2 %3009  ;;  %v3352_v30 = vadd.f32 %v3223_v0, %v3222_v13  ;;  %v3224_v43 = vsel %vm3096_vm7, %v4969_v8, 0.0  ;;  %v3227_v8 = vsel %vm3099_vm8, %v5301_v52, 0.0  ;;  %v3225_v52 = vsel %vm3097_vm0, %v5009_v28, 0.0  ;;  %11140 = vst [vmem:[#allocation101_spill] sm:$0xff] %v8798_v27  ;;  %v11161_v0 = vld [vmem:[#allocation29_spill] sm:$0xff] }
 0x2c1   :  { %3345 = vadd.xlane.f32.xlu0 %v3344_v55  ;;  %vm3100_vm15 = vcmp.eq.s32.totalorder %v8672_v32, %v8666_v1  ;;  %4556 = vrcp.f32 %v8798_v27  ;;  %vm3110_vm1 = vcmp.eq.s32.totalorder %v8662_v10, %v8749_v56  ;;  %vm3111_vm2 = vcmp.eq.s32.totalorder %v8669_v29, %v8749_v56 }
 0x2c2   :  { %v3353_v55 = vadd.f32 %v3352_v30, %v3224_v43  ;;  %vm3101_vm8 = vcmp.eq.s32.totalorder %v8680_v47, %v8666_v1 }
 0x2c4   :  { %v3354_v43 = vadd.f32 %v3353_v55, %v3225_v52 }
 0x2c5   :  { %v8739_v21 = vpop.permute.xlu1 %3006 }
 0x2c6   :  { %vm3106_vm5 = vcmp.eq.s32.totalorder %v8662_v10, %v8739_v21  ;;  %vm3107_vm10 = vcmp.eq.s32.totalorder %v8669_v29, %v8739_v21  ;;  %3355 = vadd.xlane.f32.xlu1 %v3354_v43  ;;  %vm3108_vm7 = vcmp.eq.s32.totalorder %v8672_v32, %v8739_v21  ;;  %vm3109_vm9 = vcmp.eq.s32.totalorder %v8680_v47, %v8739_v21 }
 0x2c7   :  { %v3234_v28 = vsel %vm3106_vm5, %v5191_v16, 0.0  ;;  %v3235_v16 = vsel %vm3107_vm10, %v5211_v35, 0.0  ;;  %v3228_v35 = vsel %vm3100_vm15, %v5323_v62, 0.0  ;;  %v3237_v62 = vsel %vm3109_vm9, %v5241_v11, 0.0  ;;  %v11145_v11 = vld [vmem:[#allocation8_spill] sm:$0xff] }
 0x2c8   :  { %vm3112_vm10 = vcmp.eq.s32.totalorder %v8672_v32, %v8749_v56 }
 0x2c9   :  { %v2995_v26 = vpop.permute.xlu0 %2994  ;;  %3365 = vadd.xlane.f32.xlu0 %v3364_v24  ;;  %v8817_v24 = vpop.permute.xlu2 %3018 }
 0x2ca   :  { %vm3090_vm4 = vcmp.eq.s32.totalorder %v8662_v10, %v2995_v26  ;;  %vm3091_vm6 = vcmp.eq.s32.totalorder %v8669_v29, %v2995_v26  ;;  %vm3092_vm11 = vcmp.eq.s32.totalorder %v8672_v32, %v2995_v26  ;;  %vm3093_vm3 = vcmp.eq.s32.totalorder %v8680_v47, %v2995_v26  ;;  %v8800_v26 = vpop.eup %4552 }
 0x2cb   :  { %v3218_v3 = vsel %vm3090_vm4, %v5420_v61, 0.0  ;;  %v3219_v13 = vsel %vm3091_vm6, %v5435_v33, 0.0  ;;  %v3220_v39 = vsel %vm3092_vm11, %v5447_v7, 0.0  ;;  %v3221_v61 = vsel %vm3093_vm3, %v5453_v42, 0.0 }
 0x2cc   :  { %v3347_v30 = vadd.f32 %v3219_v13, %v3218_v3  ;;  %v3357_v33 = vadd.f32 %v3227_v8, %v3226_v15  ;;  %v3701_v42 = vsel %vm8813_vm13, %v8660_v4, %v8721_v18  ;;  %v3367_v4 = vadd.f32 %v3235_v16, %v3234_v28  ;;  %v8849_v3 = vpop.eup %4554 }
 0x2cd   :  { %v3236_v8 = vsel %vm3108_vm7, %v5229_v41, 0.0  ;;  %v8847_v21 = vsel %vm8765_vm14, %v8692_v14, %v3701_v42  ;;  %vm3113_vm4 = vcmp.eq.s32.totalorder %v8680_v47, %v8749_v56  ;;  %v3238_v41 = vsel %vm3110_vm1, %v5755_v48, 0.0  ;;  %v11144_v14 = vld [vmem:[#allocation16_spill] sm:$0xff]  ;;  %v3013_v16 = vpop.permute.xlu1 %3012  ;;  %v11149_v42 = vld [vmem:[#allocation17_spill] sm:$0xff] }
 0x2ce   :  { %v3348_v6 = vadd.f32 %v3347_v30, %v3220_v39  ;;  %v3358_v15 = vadd.f32 %v3357_v33, %v3228_v35  ;;  %11143 = vst [vmem:[#allocation102_spill] sm:$0xff] %v8847_v21  ;;  %v3368_v13 = vadd.f32 %v3367_v4, %v3236_v8  ;;  %v3239_v12 = vsel %vm3111_vm2, %v11144_v14, 0.0  ;;  %v11146_v30 = vld [vmem:[#allocation9_spill] sm:$0xff]  ;;  %v11148_v33 = vld [vmem:[#allocation7_spill] sm:$0xff]  ;;  %v11150_v35 = vld [vmem:[#allocation18_spill] sm:$0xff] }
 0x2cf   :  { %vm3122_vm6 = vcmp.eq.s32.totalorder %v8662_v10, %v8817_v24  ;;  %v3229_v48 = vsel %vm3101_vm8, %v11148_v33, 0.0  ;;  %vm3123_vm3 = vcmp.eq.s32.totalorder %v8669_v29, %v8817_v24  ;;  %v3241_v1 = vsel %vm3113_vm4, %v11150_v35, 0.0  ;;  %v11153_v14 = vld [vmem:[#allocation11_spill] sm:$0xff]  ;;  %v9437_v21 = vld [vmem:[#allocation2 + $0xd8] sm:$0xff] }
 0x2d0   :  { %v3349_v55 = vadd.f32 %v3348_v6, %v3221_v61  ;;  %v3369_v39 = vadd.f32 %v3368_v13, %v3237_v62  ;;  %v8869_v61 = vpop.eup %4556  ;;  %v3359_v7 = vadd.f32 %v3358_v15, %v3229_v48  ;;  %vm3114_vm15 = vcmp.eq.s32.totalorder %v8662_v10, %v3013_v16  ;;  %v11151_v15 = vld [vmem:[#allocation10_spill] sm:$0xff]  ;;  %v11152_v62 = vld [vmem:[#allocation12_spill] sm:$0xff] }
 0x2d1   :  { %v3016_v18 = vpop.permute.xlu0 %3015  ;;  %11147 = vst [vmem:[#allocation16_spill] sm:$0xff] %v8869_v61  ;;  %v8880_v6 = vpop.permute.xlu2 %3027  ;;  %vm3115_vm13 = vcmp.eq.s32.totalorder %v8669_v29, %v3013_v16  ;;  %v3372_v4 = vadd.f32 %v3239_v12, %v3238_v41  ;;  %vm3116_vm7 = vcmp.eq.s32.totalorder %v8672_v32, %v3013_v16  ;;  %v3242_v13 = vsel %vm3114_vm15, %v11152_v62, 0.0  ;;  %v11158_v62 = vld [vmem:[#allocation19_spill] sm:$0xff] }
 0x2d2   :  { %vm3118_vm5 = vcmp.eq.s32.totalorder %v8662_v10, %v3016_v18  ;;  %vm3119_vm0 = vcmp.eq.s32.totalorder %v8669_v29, %v3016_v18  ;;  %3350 = vadd.xlane.f32.xlu2 %v3349_v55  ;;  %vm3120_vm14 = vcmp.eq.s32.totalorder %v8672_v32, %v3016_v18  ;;  %vm3121_vm11 = vcmp.eq.s32.totalorder %v8680_v47, %v3016_v18  ;;  %v11156_v18 = vld [vmem:[#allocation28_spill] sm:$0xff] }
 0x2d3   :  { %v3246_v52 = vsel %vm3118_vm5, %v11145_v11, 0.0  ;;  %v3247_v43 = vsel %vm3119_vm0, %v11146_v30, 0.0  ;;  %3370 = vadd.xlane.f32.xlu1 %v3369_v39  ;;  %v3240_v55 = vsel %vm3112_vm10, %v11149_v42, 0.0  ;;  %v3248_v8 = vsel %vm3120_vm14, %v11151_v15, 0.0  ;;  %v11154_v11 = vld [vmem:[#allocation13_spill] sm:$0xff] }
 0x2d4   :  { %v3382_v28 = vadd.f32 %v3247_v43, %v3246_v52  ;;  %v3249_v39 = vsel %vm3121_vm11, %v11153_v14, 0.0  ;;  %vm3124_vm1 = vcmp.eq.s32.totalorder %v8672_v32, %v8817_v24  ;;  %v3243_v52 = vsel %vm3115_vm13, %v11154_v11, 0.0  ;;  %v11155_v43 = vld [vmem:[#allocation27_spill] sm:$0xff]  ;;  %v11159_v11 = vld [vmem:[#allocation20_spill] sm:$0xff] }
 0x2d5   :  { %v3250_v41 = vsel %vm3122_vm6, %v11155_v43, 0.0  ;;  %v3251_v12 = vsel %vm3123_vm3, %v11156_v18, 0.0  ;;  %vm3117_vm8 = vcmp.eq.s32.totalorder %v8680_v47, %v3013_v16  ;;  %v3377_v33 = vadd.f32 %v3243_v52, %v3242_v13  ;;  %v11160_v18 = vld [vmem:[#allocation15_spill] sm:$0xff] }
 0x2d6   :  { %v3383_v30 = vadd.f32 %v3382_v28, %v3248_v8  ;;  %v3373_v48 = vadd.f32 %v3372_v4, %v3240_v55  ;;  %v11157_v28 = vld [vmem:[#allocation14_spill] sm:$0xff]  ;;  %vm3125_vm5 = vcmp.eq.s32.totalorder %v8680_v47, %v8817_v24  ;;  %v3387_v8 = vadd.f32 %v3251_v12, %v3250_v41  ;;  %v3022_v4 = vpop.permute.xlu1 %3021  ;;  %v11163_v41 = vld [vmem:[#allocation23_spill] sm:$0xff] }
 0x2d7   :  { %v3244_v42 = vsel %vm3116_vm7, %v11157_v28, 0.0  ;;  %v3245_v2 = vsel %vm3117_vm8, %v11160_v18, 0.0  ;;  %vm3134_vm10 = vcmp.eq.s32.totalorder %v8662_v10, %v8880_v6  ;;  %vm3135_vm4 = vcmp.eq.s32.totalorder %v8669_v29, %v8880_v6 }
 0x2d8   :  { %v3384_v35 = vadd.f32 %v3383_v30, %v3249_v39  ;;  %v3378_v15 = vadd.f32 %v3377_v33, %v3244_v42  ;;  %v3374_v39 = vadd.f32 %v3373_v48, %v3241_v1  ;;  %vm3126_vm6 = vcmp.eq.s32.totalorder %v8662_v10, %v3022_v4  ;;  %v11165_v48 = vld [vmem:[#allocation24_spill] sm:$0xff]  ;;  %v11166_v42 = vld [vmem:[#allocation22_spill] sm:$0xff] }
 0x2d9   :  { %v3025_v56 = vpop.permute.xlu0 %3024  ;;  %v8927_v55 = vpop.permute.xlu2 %3036  ;;  %vm3127_vm11 = vcmp.eq.s32.totalorder %v8669_v29, %v3022_v4  ;;  %vm3128_vm3 = vcmp.eq.s32.totalorder %v8672_v32, %v3022_v4  ;;  %v3254_v12 = vsel %vm3126_vm6, %v11163_v41, 0.0  ;;  %vm3136_vm15 = vcmp.eq.s32.totalorder %v8672_v32, %v8880_v6 }
 0x2da   :  { %vm3130_vm9 = vcmp.eq.s32.totalorder %v8662_v10, %v3025_v56  ;;  %vm3131_vm2 = vcmp.eq.s32.totalorder %v8669_v29, %v3025_v56  ;;  %3360 = vadd.xlane.f32.xlu2 %v3359_v7  ;;  %v3252_v7 = vsel %vm3124_vm1, %v11161_v0, 0.0  ;;  %vm3132_vm0 = vcmp.eq.s32.totalorder %v8672_v32, %v3025_v56  ;;  %v11162_v0 = vld [vmem:[#allocation30_spill] sm:$0xff] }
 0x2db   :  { %v3258_v14 = vsel %vm3130_vm9, %v11158_v62, 0.0  ;;  %v3259_v43 = vsel %vm3131_vm2, %v11159_v11, 0.0  ;;  %v3379_v13 = vadd.f32 %v3378_v15, %v3245_v2  ;;  %3385 = vadd.xlane.f32.xlu1 %v3384_v35  ;;  %vm3133_vm14 = vcmp.eq.s32.totalorder %v8680_v47, %v3025_v56  ;;  %v11164_v2 = vld [vmem:[#allocation21_spill] sm:$0xff]  ;;  %v11168_v62 = vld [vmem:[#allocation39_spill] sm:$0xff]  ;;  %v11169_v11 = vld [vmem:[#allocation40_spill] sm:$0xff] }
 0x2dc   :  { %v3397_v16 = vadd.f32 %v3259_v43, %v3258_v14  ;;  %v3253_v52 = vsel %vm3125_vm5, %v11162_v0, 0.0  ;;  %v3388_v30 = vadd.f32 %v3387_v8, %v3252_v7  ;;  %v3260_v33 = vsel %vm3132_vm0, %v11164_v2, 0.0  ;;  %v11167_v8 = vld [vmem:[#allocation25_spill] sm:$0xff]  ;;  %v11172_v0 = vld [vmem:[#allocation26_spill] sm:$0xff] }
 0x2dd   :  { %3380 = vadd.xlane.f32.xlu0 %v3379_v13  ;;  %v3255_v28 = vsel %vm3127_vm11, %v11165_v48, 0.0  ;;  %v3261_v35 = vsel %vm3133_vm14, %v11166_v42, 0.0  ;;  %vm3129_vm1 = vcmp.eq.s32.totalorder %v8680_v47, %v3022_v4  ;;  %v3256_v56 = vsel %vm3128_vm3, %v11167_v8, 0.0  ;;  %v11171_v13 = vld [vmem:[#allocation32_spill] sm:$0xff]  ;;  %v11173_v42 = vld [vmem:[#allocation41_spill] sm:$0xff] }
 0x2de   :  { %v3398_v15 = vadd.f32 %v3397_v16, %v3260_v33  ;;  %v3392_v24 = vadd.f32 %v3255_v28, %v3254_v12  ;;  %vm3137_vm9 = vcmp.eq.s32.totalorder %v8680_v47, %v8880_v6  ;;  %v3262_v14 = vsel %vm3134_vm10, %v11168_v62, 0.0  ;;  %v11170_v16 = vld [vmem:[#allocation31_spill] sm:$0xff]  ;;  %v3031_v48 = vpop.permute.xlu1 %3030 }
 0x2df   :  { %v3263_v43 = vsel %vm3135_vm4, %v11169_v11, 0.0  ;;  %vm3146_vm2 = vcmp.eq.s32.totalorder %v8662_v10, %v8927_v55  ;;  %v3257_v41 = vsel %vm3129_vm1, %v11172_v0, 0.0  ;;  %vm3147_vm5 = vcmp.eq.s32.totalorder %v8669_v29, %v8927_v55  ;;  %v11178_v6 = vld [vmem:[#allocation51_spill] sm:$0xff]  ;;  %11264 = vst [vmem:[#allocation31_spill] sm:$0xff] %v9399_v5 }
 0x2e0   :  { %v3393_v18 = vadd.f32 %v3392_v24, %v3256_v56  ;;  %v3399_v7 = vadd.f32 %v3398_v15, %v3261_v35  ;;  %v3389_v2 = vadd.f32 %v3388_v30, %v3253_v52  ;;  %v3264_v35 = vsel %vm3136_vm15, %v11173_v42, 0.0  ;;  %v11174_v15 = vld [vmem:[#allocation42_spill] sm:$0xff]  ;;  %v11175_v30 = vld [vmem:[#allocation35_spill] sm:$0xff]  ;;  %v11176_v56 = vld [vmem:[#allocation33_spill] sm:$0xff] }
 0x2e1   :  { %v3034_v1 = vpop.permute.xlu0 %3033  ;;  %v8967_v33 = vpop.permute.xlu2 %3045  ;;  %vm3138_vm0 = vcmp.eq.s32.totalorder %v8662_v10, %v3031_v48  ;;  %vm3139_vm10 = vcmp.eq.s32.totalorder %v8669_v29, %v3031_v48  ;;  %v3265_v24 = vsel %vm3137_vm9, %v11174_v15, 0.0  ;;  %v3402_v52 = vadd.f32 %v3263_v43, %v3262_v14  ;;  %11271 = vst [vmem:[#allocation35_spill] sm:$0xff] %v9437_v21 }
 0x2e2   :  { %vm3142_vm13 = vcmp.eq.s32.totalorder %v8662_v10, %v3034_v1  ;;  %vm3143_vm7 = vcmp.eq.s32.totalorder %v8669_v29, %v3034_v1  ;;  %3375 = vadd.xlane.f32.xlu2 %v3374_v39  ;;  %vm3144_vm8 = vcmp.eq.s32.totalorder %v8672_v32, %v3034_v1  ;;  %v3394_v28 = vadd.f32 %v3393_v18, %v3257_v41  ;;  %v11177_v18 = vld [vmem:[#allocation36_spill] sm:$0xff]  ;;  %v11181_v41 = vld [vmem:[#allocation34_spill] sm:$0xff] }
 0x2e3   :  { %v3270_v4 = vsel %vm3142_vm13, %v11170_v16, 0.0  ;;  %v3271_v39 = vsel %vm3143_vm7, %v11171_v13, 0.0  ;;  %3400 = vadd.xlane.f32.xlu1 %v3399_v7  ;;  %vm3140_vm4 = vcmp.eq.s32.totalorder %v8672_v32, %v3031_v48  ;;  %v3266_v8 = vsel %vm3138_vm0, %v11175_v30, 0.0  ;;  %v11183_v30 = vld [vmem:[#allocation38_spill] sm:$0xff] }
 0x2e4   :  { %v3412_v12 = vadd.f32 %v3271_v39, %v3270_v4  ;;  %vm3145_vm14 = vcmp.eq.s32.totalorder %v8680_v47, %v3034_v1  ;;  %v3272_v62 = vsel %vm3144_vm8, %v11176_v56, 0.0  ;;  %vm3141_vm6 = vcmp.eq.s32.totalorder %v8680_v47, %v3031_v48  ;;  %v11179_v4 = vld [vmem:[#allocation52_spill] sm:$0xff]  ;;  %v11180_v39 = vld [vmem:[#allocation37_spill] sm:$0xff] }
 0x2e5   :  { %3395 = vadd.xlane.f32.xlu0 %v3394_v28  ;;  %v3267_v7 = vsel %vm3139_vm10, %v11177_v18, 0.0  ;;  %v3274_v14 = vsel %vm3146_vm2, %v11178_v6, 0.0  ;;  %v3275_v1 = vsel %vm3147_vm5, %v11179_v4, 0.0  ;;  %v3403_v13 = vadd.f32 %v3402_v52, %v3264_v35  ;;  %v11184_v35 = vld [vmem:[#allocation44_spill] sm:$0xff]  ;;  %v11185_v48 = vld [vmem:[#allocation53_spill] sm:$0xff] }
 0x2e6   :  { %v3413_v16 = vadd.f32 %v3412_v12, %v3272_v62  ;;  %v3407_v43 = vadd.f32 %v3267_v7, %v3266_v8  ;;  %v3268_v0 = vsel %vm3140_vm4, %v11180_v39, 0.0  ;;  %v3273_v12 = vsel %vm3145_vm14, %v11181_v41, 0.0  ;;  %v3040_v18 = vpop.permute.xlu1 %3039  ;;  %v11188_v39 = vld [vmem:[#allocation54_spill] sm:$0xff] }
 0x2e7   :  { %vm3148_vm15 = vcmp.eq.s32.totalorder %v8672_v32, %v8927_v55  ;;  %vm3149_vm13 = vcmp.eq.s32.totalorder %v8680_v47, %v8927_v55  ;;  %v3269_v8 = vsel %vm3141_vm6, %v11183_v30, 0.0  ;;  %v3417_v56 = vadd.f32 %v3275_v1, %v3274_v14  ;;  %v11187_v1 = vld [vmem:[#allocation45_spill] sm:$0xff]  ;;  %v11191_v30 = vld [vmem:[#allocation46_spill] sm:$0xff] }
 0x2e8   :  { %v3408_v28 = vadd.f32 %v3407_v43, %v3268_v0  ;;  %v3414_v42 = vadd.f32 %v3413_v16, %v3273_v12  ;;  %vm3158_vm1 = vcmp.eq.s32.totalorder %v8662_v10, %v8967_v33  ;;  %vm3159_vm9 = vcmp.eq.s32.totalorder %v8669_v29, %v8967_v33  ;;  %v11186_v43 = vld [vmem:[#allocation47_spill] sm:$0xff]  ;;  %v11189_v12 = vld [vmem:[#allocation48_spill] sm:$0xff] }
 0x2e9   :  { %v3043_v11 = vpop.permute.xlu0 %3042  ;;  %v9013_v62 = vpop.permute.xlu2 %3054  ;;  %v3404_v6 = vadd.f32 %v3403_v13, %v3265_v24  ;;  %vm3150_vm2 = vcmp.eq.s32.totalorder %v8662_v10, %v3040_v18  ;;  %vm3151_vm8 = vcmp.eq.s32.totalorder %v8669_v29, %v3040_v18  ;;  %v3276_v14 = vsel %vm3148_vm15, %v11185_v48, 0.0  ;;  %v11195_v48 = vld [vmem:[#allocation55_spill] sm:$0xff] }
 0x2ea   :  { %vm3154_vm11 = vcmp.eq.s32.totalorder %v8662_v10, %v3043_v11  ;;  %vm3155_vm3 = vcmp.eq.s32.totalorder %v8669_v29, %v3043_v11  ;;  %3390 = vadd.xlane.f32.xlu2 %v3389_v2  ;;  %v11182_v2 = vld [vmem:[#allocation43_spill] sm:$0xff]  ;;  %vm3156_vm7 = vcmp.eq.s32.totalorder %v8672_v32, %v3043_v11  ;;  %v3409_v7 = vadd.f32 %v3408_v28, %v3269_v8 }
 0x2eb   :  { %v3282_v15 = vsel %vm3154_vm11, %v11182_v2, 0.0  ;;  %v3283_v52 = vsel %vm3155_vm3, %v11184_v35, 0.0  ;;  %3415 = vadd.xlane.f32.xlu1 %v3414_v42  ;;  %vm3152_vm5 = vcmp.eq.s32.totalorder %v8672_v32, %v3040_v18  ;;  %v3278_v4 = vsel %vm3150_vm2, %v11186_v43, 0.0  ;;  %v11192_v35 = vld [vmem:[#allocation63_spill] sm:$0xff]  ;;  %v11196_v43 = vld [vmem:[#allocation56_spill] sm:$0xff] }
 0x2ec   :  { %v3427_v16 = vadd.f32 %v3283_v52, %v3282_v15  ;;  %vm3157_vm0 = vcmp.eq.s32.totalorder %v8680_v47, %v3043_v11  ;;  %v3284_v24 = vsel %vm3156_vm7, %v11187_v1, 0.0  ;;  %v3277_v0 = vsel %vm3149_vm13, %v11188_v39, 0.0  ;;  %v11190_v11 = vld [vmem:[#allocation49_spill] sm:$0xff] }
 0x2ed   :  { %3410 = vadd.xlane.f32.xlu0 %v3409_v7  ;;  %v3418_v41 = vadd.f32 %v3417_v56, %v3276_v14  ;;  %v3279_v28 = vsel %vm3151_vm8, %v11189_v12, 0.0  ;;  %vm3153_vm14 = vcmp.eq.s32.totalorder %v8680_v47, %v3040_v18  ;;  %v3280_v15 = vsel %vm3152_vm5, %v11190_v11, 0.0  ;;  %v11193_v7 = vld [vmem:[#allocation64_spill] sm:$0xff] }
 0x2ee   :  { %v3428_v42 = vadd.f32 %v3427_v16, %v3284_v24  ;;  %v3422_v2 = vadd.f32 %v3279_v28, %v3278_v4  ;;  %v3285_v8 = vsel %vm3157_vm0, %v11191_v30, 0.0  ;;  %vm3160_vm6 = vcmp.eq.s32.totalorder %v8672_v32, %v8967_v33  ;;  %v11194_v16 = vld [vmem:[#allocation50_spill] sm:$0xff]  ;;  %v3049_v1 = vpop.permute.xlu1 %3048 }
 0x2ef   :  { %vm3161_vm11 = vcmp.eq.s32.totalorder %v8680_v47, %v8967_v33  ;;  %v3286_v52 = vsel %vm3158_vm1, %v11192_v35, 0.0  ;;  %v3287_v18 = vsel %vm3159_vm9, %v11193_v7, 0.0  ;;  %vm3170_vm15 = vcmp.eq.s32.totalorder %v8662_v10, %v9013_v62  ;;  %v11200_v35 = vld [vmem:[#allocation60_spill] sm:$0xff] }
 0x2f0   :  { %v3423_v55 = vadd.f32 %v3422_v2, %v3280_v15  ;;  %v3429_v56 = vadd.f32 %v3428_v42, %v3285_v8  ;;  %vm3171_vm7 = vcmp.eq.s32.totalorder %v8669_v29, %v9013_v62  ;;  %vm3162_vm1 = vcmp.eq.s32.totalorder %v8662_v10, %v3049_v1  ;;  %v11197_v2 = vld [vmem:[#allocation59_spill] sm:$0xff]  ;;  %v11198_v15 = vld [vmem:[#allocation57_spill] sm:$0xff] }
 0x2f1   :  { %v3052_v13 = vpop.permute.xlu0 %3051  ;;  %v9058_v12 = vpop.permute.xlu2 %3063  ;;  %vm3163_vm9 = vcmp.eq.s32.totalorder %v8669_v29, %v3049_v1  ;;  %v3432_v28 = vadd.f32 %v3287_v18, %v3286_v52  ;;  %v3419_v42 = vadd.f32 %v3418_v41, %v3277_v0  ;;  %vm3164_vm2 = vcmp.eq.s32.totalorder %v8672_v32, %v3049_v1  ;;  %v11202_v18 = vld [vmem:[#allocation61_spill] sm:$0xff] }
 0x2f2   :  { %vm3166_vm10 = vcmp.eq.s32.totalorder %v8662_v10, %v3052_v13  ;;  %vm3167_vm4 = vcmp.eq.s32.totalorder %v8669_v29, %v3052_v13  ;;  %3405 = vadd.xlane.f32.xlu2 %v3404_v6  ;;  %v3281_v6 = vsel %vm3153_vm14, %v11194_v16, 0.0  ;;  %vm3168_vm3 = vcmp.eq.s32.totalorder %v8672_v32, %v3052_v13  ;;  %v11201_v16 = vld [vmem:[#allocation58_spill] sm:$0xff] }
 0x2f3   :  { %v3294_v14 = vsel %vm3166_vm10, %v11195_v48, 0.0  ;;  %v3295_v4 = vsel %vm3167_vm4, %v11196_v43, 0.0  ;;  %v3424_v24 = vadd.f32 %v3423_v55, %v3281_v6  ;;  %3430 = vadd.xlane.f32.xlu1 %v3429_v56  ;;  %vm3169_vm13 = vcmp.eq.s32.totalorder %v8680_v47, %v3052_v13  ;;  %v11199_v55 = vld [vmem:[#allocation65_spill] sm:$0xff]  ;;  %v11203_v48 = vld [vmem:[#allocation75_spill] sm:$0xff]  ;;  %v11204_v43 = vld [vmem:[#allocation76_spill] sm:$0xff] }
 0x2f4   :  { %v3442_v39 = vadd.f32 %v3295_v4, %v3294_v14  ;;  %v3290_v11 = vsel %vm3162_vm1, %v11197_v2, 0.0  ;;  %v3296_v30 = vsel %vm3168_vm3, %v11198_v15, 0.0  ;;  %v3288_v56 = vsel %vm3160_vm6, %v11199_v55, 0.0 }
 0x2f5   :  { %3425 = vadd.xlane.f32.xlu0 %v3424_v24  ;;  %v3291_v7 = vsel %vm3163_vm9, %v11200_v35, 0.0  ;;  %v3297_v52 = vsel %vm3169_vm13, %v11201_v16, 0.0  ;;  %vm3165_vm0 = vcmp.eq.s32.totalorder %v8680_v47, %v3049_v1  ;;  %v3433_v41 = vadd.f32 %v3432_v28, %v3288_v56  ;;  %v11205_v24 = vld [vmem:[#allocation66_spill] sm:$0xff] }
 0x2f6   :  { %v3443_v0 = vadd.f32 %v3442_v39, %v3296_v30  ;;  %v3437_v13 = vadd.f32 %v3291_v7, %v3290_v11  ;;  %v3292_v6 = vsel %vm3164_vm2, %v11202_v18, 0.0  ;;  %v3298_v14 = vsel %vm3170_vm15, %v11203_v48, 0.0  ;;  %v11206_v28 = vld [vmem:[#allocation62_spill] sm:$0xff]  ;;  %v11207_v11 = vld [vmem:[#allocation67_spill] sm:$0xff]  ;;  %v11208_v30 = vld [vmem:[#allocation68_spill] sm:$0xff]  ;;  %v3058_v56 = vpop.permute.xlu1 %3057 }
 0x2f7   :  { %v3299_v4 = vsel %vm3171_vm7, %v11204_v43, 0.0  ;;  %v3289_v39 = vsel %vm3161_vm11, %v11205_v24, 0.0  ;;  %vm3172_vm10 = vcmp.eq.s32.totalorder %v8672_v32, %v9013_v62  ;;  %v3293_v2 = vsel %vm3165_vm0, %v11206_v28, 0.0  ;;  %v11211_v48 = vld [vmem:[#allocation77_spill] sm:$0xff]  ;;  %v11212_v43 = vld [vmem:[#allocation72_spill] sm:$0xff] }
 0x2f8   :  { %v3438_v1 = vadd.f32 %v3437_v13, %v3292_v6  ;;  %vm3182_vm14 = vcmp.eq.s32.totalorder %v8662_v10, %v9058_v12  ;;  %v3447_v33 = vadd.f32 %v3299_v4, %v3298_v14  ;;  %v3434_v16 = vadd.f32 %v3433_v41, %v3289_v39  ;;  %v11210_v13 = vld [vmem:[#allocation69_spill] sm:$0xff]  ;;  %v11213_v39 = vld [vmem:[#allocation78_spill] sm:$0xff] }
 0x2f9   :  { %v3061_v8 = vpop.permute.xlu0 %3060  ;;  %vm3174_vm6 = vcmp.eq.s32.totalorder %v8662_v10, %v3058_v56  ;;  %vm3175_vm11 = vcmp.eq.s32.totalorder %v8669_v29, %v3058_v56  ;;  %vm3173_vm3 = vcmp.eq.s32.totalorder %v8680_v47, %v9013_v62  ;;  %vm3176_vm15 = vcmp.eq.s32.totalorder %v8672_v32, %v3058_v56  ;;  %v9109_v6 = vpop.permute.xlu2 %3072  ;;  %v11215_v62 = vld [vmem:[#allocation70_spill] sm:$0xff] }
 0x2fa   :  { %vm3178_vm8 = vcmp.eq.s32.totalorder %v8662_v10, %v3061_v8  ;;  %vm3179_vm5 = vcmp.eq.s32.totalorder %v8669_v29, %v3061_v8  ;;  %3420 = vadd.xlane.f32.xlu2 %v3419_v42  ;;  %v3444_v42 = vadd.f32 %v3443_v0, %v3297_v52  ;;  %vm3180_vm4 = vcmp.eq.s32.totalorder %v8672_v32, %v3061_v8  ;;  %v11209_v52 = vld [vmem:[#allocation71_spill] sm:$0xff] }
 0x2fb   :  { %v3306_v15 = vsel %vm3178_vm8, %v11207_v11, 0.0  ;;  %v3307_v55 = vsel %vm3179_vm5, %v11208_v30, 0.0  ;;  %v3439_v35 = vadd.f32 %v3438_v1, %v3293_v2  ;;  %v3302_v0 = vsel %vm3174_vm6, %v11209_v52, 0.0  ;;  %v11214_v2 = vld [vmem:[#allocation73_spill] sm:$0xff] }
 0x2fc   :  { %3445 = vadd.xlane.f32.xlu1 %v3444_v42  ;;  %v3457_v7 = vadd.f32 %v3307_v55, %v3306_v15  ;;  %vm3181_vm13 = vcmp.eq.s32.totalorder %v8680_v47, %v3061_v8  ;;  %v3308_v18 = vsel %vm3180_vm4, %v11210_v13, 0.0  ;;  %vm3183_vm7 = vcmp.eq.s32.totalorder %v8669_v29, %v9058_v12  ;;  %v11217_v8 = vld [vmem:[#allocation87_spill] sm:$0xff] }
 0x2fd   :  { %3440 = vadd.xlane.f32.xlu0 %v3439_v35  ;;  %v3300_v14 = vsel %vm3172_vm10, %v11211_v48, 0.0  ;;  %v3303_v4 = vsel %vm3175_vm11, %v11212_v43, 0.0  ;;  %v3301_v1 = vsel %vm3173_vm3, %v11213_v39, 0.0  ;;  %vm3177_vm1 = vcmp.eq.s32.totalorder %v8680_v47, %v3058_v56  ;;  %v11216_v35 = vld [vmem:[#allocation74_spill] sm:$0xff] }
 0x2fe   :  { %v3458_v24 = vadd.f32 %v3457_v7, %v3308_v18  ;;  %v3448_v42 = vadd.f32 %v3447_v33, %v3300_v14  ;;  %v3452_v28 = vadd.f32 %v3303_v4, %v3302_v0  ;;  %v3304_v11 = vsel %vm3176_vm15, %v11214_v2, 0.0  ;;  %v11218_v0 = vld [vmem:[#allocation79_spill] sm:$0xff]  ;;  %v11219_v18 = vld [vmem:[#allocation80_spill] sm:$0xff] }
 0x2ff   :  { %v3309_v15 = vsel %vm3181_vm13, %v11215_v62, 0.0  ;;  %vm3194_vm8 = vcmp.eq.s32.totalorder %v8662_v10, %v9109_v6  ;;  %vm3195_vm5 = vcmp.eq.s32.totalorder %v8669_v29, %v9109_v6  ;;  %v3305_v33 = vsel %vm3177_vm1, %v11216_v35, 0.0 }
 0x300   :  { %v3453_v30 = vadd.f32 %v3452_v28, %v3304_v11  ;;  %v3459_v55 = vadd.f32 %v3458_v24, %v3309_v15  ;;  %vm3184_vm0 = vcmp.eq.s32.totalorder %v8672_v32, %v9058_v12  ;;  %v3310_v56 = vsel %vm3182_vm14, %v7810_v20, 0.0  ;;  %v11220_v20 = vld [vmem:[#allocation88_spill] sm:$0xff]  ;;  %v11221_v24 = vld [vmem:[#allocation83_spill] sm:$0xff]  ;;  %v9155_v28 = vld [vmem:[#allocation2 + $0x30] sm:$0xff] }
 0x301   :  { %v3070_v41 = vpop.permute.xlu0 %3069  ;;  %v3311_v7 = vsel %vm3183_vm7, %v11217_v8, 0.0  ;;  %v3449_v14 = vadd.f32 %v3448_v42, %v3301_v1  ;;  %vm3185_vm6 = vcmp.eq.s32.totalorder %v8680_v47, %v9058_v12  ;;  %v3312_v43 = vsel %vm3184_vm0, %v11220_v20, 0.0  ;;  %v11222_v11 = vld [vmem:[#allocation84_spill] sm:$0xff]  ;;  %v11223_v42 = vld [vmem:[#allocation81_spill] sm:$0xff] }
 0x302   :  { %3435 = vadd.xlane.f32.xlu2 %v3434_v16  ;;  %vm3190_vm9 = vcmp.eq.s32.totalorder %v8662_v10, %v3070_v41  ;;  %vm3191_vm2 = vcmp.eq.s32.totalorder %v8669_v29, %v3070_v41  ;;  %v3067_v16 = vpop.permute.xlu1 %3066  ;;  %v3454_v52 = vadd.f32 %v3453_v30, %v3305_v33  ;;  %vm3192_vm10 = vcmp.eq.s32.totalorder %v8672_v32, %v3070_v41  ;;  %v11224_v30 = vld [vmem:[#allocation85_spill] sm:$0xff] }
 0x303   :  { %v3318_v13 = vsel %vm3190_vm9, %v11218_v0, 0.0  ;;  %v3319_v48 = vsel %vm3191_vm2, %v11219_v18, 0.0  ;;  %vm3186_vm4 = vcmp.eq.s32.totalorder %v8662_v10, %v3067_v16  ;;  %vm3187_vm14 = vcmp.eq.s32.totalorder %v8669_v29, %v3067_v16  ;;  %v9176_v0 = vpop.permute.xlu2 %3081 }
 0x304   :  { %3460 = vadd.xlane.f32.xlu1 %v3459_v55  ;;  %v3462_v4 = vadd.f32 %v3311_v7, %v3310_v56  ;;  %vm3188_vm11 = vcmp.eq.s32.totalorder %v8672_v32, %v3067_v16  ;;  %v3314_v39 = vsel %vm3186_vm4, %v11221_v24, 0.0  ;;  %v3315_v1 = vsel %vm3187_vm14, %v11222_v11, 0.0 }
 0x305   :  { %3455 = vadd.xlane.f32.xlu0 %v3454_v52  ;;  %vm3193_vm3 = vcmp.eq.s32.totalorder %v8680_v47, %v3070_v41  ;;  %v3320_v62 = vsel %vm3192_vm10, %v11223_v42, 0.0  ;;  %v3472_v15 = vadd.f32 %v3319_v48, %v3318_v13  ;;  %vm3189_vm13 = vcmp.eq.s32.totalorder %v8680_v47, %v3067_v16  ;;  %v11225_v16 = vld [vmem:[#allocation82_spill] sm:$0xff]  ;;  %v11226_v13 = vld [vmem:[#allocation89_spill] sm:$0xff] }
 0x306   :  { %v3316_v55 = vsel %vm3188_vm11, %v11224_v30, 0.0  ;;  %v3467_v35 = vadd.f32 %v3315_v1, %v3314_v39  ;;  %v3322_v56 = vsel %vm3194_vm8, %v8172_v54, 0.0  ;;  %v3323_v41 = vsel %vm3195_vm5, %v8181_v19, 0.0  ;;  %v11227_v48 = vld [vmem:[#allocation86_spill] sm:$0xff]  ;;  %v11229_v39 = vld [vmem:[#allocation91_spill] sm:$0xff] }
 0x307   :  { %v3473_v33 = vadd.f32 %v3472_v15, %v3320_v62  ;;  %4558 = vrcp.f32 %v9155_v28  ;;  %v3463_v8 = vadd.f32 %v3462_v4, %v3312_v43  ;;  %v3321_v52 = vsel %vm3193_vm3, %v11225_v16, 0.0  ;;  %v11228_v43 = vld [vmem:[#allocation90_spill] sm:$0xff]  ;;  %v11231_v62 = vld [vmem:[#allocation95_spill] sm:$0xff]  ;;  %v11234_v16 = vld [vmem:[#allocation92_spill] sm:$0xff] }
 0x308   :  { %v3468_v7 = vadd.f32 %v3467_v35, %v3316_v55  ;;  %v3313_v18 = vsel %vm3185_vm6, %v11226_v13, 0.0  ;;  %v3317_v54 = vsel %vm3189_vm13, %v11227_v48, 0.0  ;;  %vm3196_vm1 = vcmp.eq.s32.totalorder %v8672_v32, %v9109_v6  ;;  %v11230_v1 = vld [vmem:[#allocation94_spill] sm:$0xff]  ;;  %v9217_v13 = vld [vmem:[#allocation2 + $0x50] sm:$0xff] }
 0x309   :  { %v3079_v2 = vpop.permute.xlu0 %3078  ;;  %v3477_v24 = vadd.f32 %v3323_v41, %v3322_v56  ;;  %vm3206_vm0 = vcmp.eq.s32.totalorder %v8662_v10, %v9176_v0  ;;  %v3464_v12 = vadd.f32 %v3463_v8, %v3313_v18  ;;  %v9199_v30 = vld [vmem:[#allocation2 + $0x58] sm:$0xff]  ;;  %vm3207_vm14 = vcmp.eq.s32.totalorder %v8669_v29, %v9176_v0  ;;  %v11233_v8 = vld [vmem:[#allocation96_spill] sm:$0xff]  ;;  %11235 = vst [vmem:[#allocation8_spill] sm:$0xff] %v9217_v13 }
 0x30a   :  { %vm3202_vm15 = vcmp.eq.s32.totalorder %v8662_v10, %v3079_v2  ;;  %3450 = vadd.xlane.f32.xlu2 %v3449_v14  ;;  %vm3203_vm7 = vcmp.eq.s32.totalorder %v8669_v29, %v3079_v2  ;;  %v3474_v14 = vadd.f32 %v3473_v33, %v3321_v52  ;;  %v3076_v19 = vpop.permute.xlu1 %3075  ;;  %v3469_v20 = vadd.f32 %v3468_v7, %v3317_v54  ;;  %v11232_v56 = vld [vmem:[#allocation98_spill] sm:$0xff] }
 0x30b   :  { %v3330_v4 = vsel %vm3202_vm15, %v11228_v43, 0.0  ;;  %v3331_v11 = vsel %vm3203_vm7, %v11229_v39, 0.0  ;;  %vm3198_vm9 = vcmp.eq.s32.totalorder %v8662_v10, %v3076_v19  ;;  %vm3199_vm2 = vcmp.eq.s32.totalorder %v8669_v29, %v3076_v19 }
 0x30c   :  { %3475 = vadd.xlane.f32.xlu1 %v3474_v14  ;;  %vm3200_vm8 = vcmp.eq.s32.totalorder %v8672_v32, %v3076_v19  ;;  %vm3204_vm5 = vcmp.eq.s32.totalorder %v8672_v32, %v3079_v2  ;;  %v3326_v42 = vsel %vm3198_vm9, %v11230_v1, 0.0  ;;  %v3327_v15 = vsel %vm3199_vm2, %v11231_v62, 0.0  ;;  %v11238_v62 = vld [vmem:[#allocation99_spill] sm:$0xff] }
 0x30d   :  { %3470 = vadd.xlane.f32.xlu0 %v3469_v20  ;;  %vm3201_vm10 = vcmp.eq.s32.totalorder %v8680_v47, %v3076_v19  ;;  %v3482_v55 = vadd.f32 %v3327_v15, %v3326_v42  ;;  %vm3205_vm4 = vcmp.eq.s32.totalorder %v8680_v47, %v3079_v2  ;;  %v3487_v35 = vadd.f32 %v3331_v11, %v3330_v4  ;;  %v9203_v33 = vpop.eup %4558  ;;  %v11236_v20 = vld [vmem:[#allocation97_spill] sm:$0xff]  ;;  %v9246_v2 = vld [vmem:[#allocation2 + $0x48] sm:$0xff] }
 0x30e   :  { %v3324_v41 = vsel %vm3196_vm1, %v11232_v56, 0.0  ;;  %v3328_v7 = vsel %vm3200_vm8, %v11233_v8, 0.0  ;;  %v3332_v52 = vsel %vm3204_vm5, %v11234_v16, 0.0  ;;  %vm3197_vm6 = vcmp.eq.s32.totalorder %v8680_v47, %v9109_v6  ;;  %v11237_v4 = vld [vmem:[#allocation93_spill] sm:$0xff]  ;;  %v9275_v16 = vld [vmem:[#allocation2 + $0x60] sm:$0xff] }
 0x30f   :  { %v3478_v18 = vadd.f32 %v3477_v24, %v3324_v41  ;;  %v3483_v48 = vadd.f32 %v3482_v55, %v3328_v7  ;;  %v3488_v54 = vadd.f32 %v3487_v35, %v3332_v52  ;;  %v9223_v14 = vmul.f32 %v8723_v34, %v8676_v25  ;;  %11242 = vst [vmem:[#allocation18_spill] sm:$0xff] %v9275_v16  ;;  %v9391_v42 = vld [vmem:[#allocation2 + $0xd0] sm:$0xff] }
 0x310   :  { %4560 = vrcp.f32 %v9199_v30  ;;  %v3329_v43 = vsel %vm3201_vm10, %v11236_v20, 0.0  ;;  %v3333_v39 = vsel %vm3205_vm4, %v11237_v4, 0.0  ;;  %v3334_v24 = vsel %vm3206_vm0, %v8373_v63, 0.0  ;;  %v9292_v4 = vld [vmem:[#allocation2 + $0x80] sm:$0xff]  ;;  %11263 = vst [vmem:[#allocation40_spill] sm:$0xff] %v9391_v42 }
 0x311   :  { %v3484_v11 = vadd.f32 %v3483_v48, %v3329_v43  ;;  %v3335_v1 = vsel %vm3207_vm14, %v8384_v60, 0.0  ;;  %v9242_v19 = vmul.f32 %v8758_v44, %v8694_v50  ;;  %4562 = vrcp.f32 %v9217_v13  ;;  %v9255_v60 = vld [vmem:[#allocation2 + $0x70] sm:$0xff]  ;;  %v9283_v48 = vld [vmem:[#allocation2 + $0x88] sm:$0xff]  ;;  %11245 = vst [vmem:[#allocation11_spill] sm:$0xff] %v9292_v4 }
 0x312   :  { %3465 = vadd.xlane.f32.xlu2 %v3464_v12  ;;  %v3489_v12 = vadd.f32 %v3488_v54, %v3333_v39  ;;  %v3325_v63 = vsel %vm3197_vm6, %v11238_v62, 0.0  ;;  %v3085_v15 = vpop.permute.xlu1 %3084  ;;  %11239 = vst [vmem:[#allocation9_spill] sm:$0xff] %v9255_v60  ;;  %vm3208_vm13 = vcmp.eq.s32.totalorder %v8672_v32, %v9176_v0  ;;  %v3492_v35 = vadd.f32 %v3335_v1, %v3334_v24 }
 0x313   :  { %v3479_v55 = vadd.f32 %v3478_v18, %v3325_v63  ;;  %vm3210_vm11 = vcmp.eq.s32.totalorder %v8662_v10, %v3085_v15  ;;  %vm3211_vm3 = vcmp.eq.s32.totalorder %v8669_v29, %v3085_v15  ;;  %vm3212_vm15 = vcmp.eq.s32.totalorder %v8672_v32, %v3085_v15  ;;  %v9264_v10 = vld [vmem:[#allocation2 + $0x68] sm:$0xff]  ;;  %11243 = vst [vmem:[#allocation10_spill] sm:$0xff] %v9283_v48  ;;  %v9303_v32 = vld [vmem:[#allocation2 + $0x78] sm:$0xff] }
 0x314   :  { %3490 = vadd.xlane.f32.xlu1 %v3489_v12  ;;  %v3338_v56 = vsel %vm3210_vm11, %v8273_v36, 0.0  ;;  %v3339_v6 = vsel %vm3211_vm3, %v8286_v46, 0.0  ;;  %v3709_v41 = vmul.f32 %v8769_v53, %v8700_v49  ;;  %4564 = vrcp.f32 %v9246_v2  ;;  %11240 = vst [vmem:[#allocation7_spill] sm:$0xff] %v9264_v10 }
 0x315   :  { %3485 = vadd.xlane.f32.xlu0 %v3484_v11  ;;  %vm3213_vm7 = vcmp.eq.s32.totalorder %v8680_v47, %v3085_v15  ;;  %v3497_v29 = vadd.f32 %v3339_v6, %v3338_v56  ;;  %v3679_v7 = vmul.f32 %v8787_v23, %v8712_v59  ;;  %v3649_v36 = vmul.f32 %v8800_v26, %v8726_v17 }
 0x316   :  { %v9267_v8 = vpop.eup %4560  ;;  %v3754_v46 = vmul.f32 %v8849_v3, %v8771_v37  ;;  %v3340_v52 = vsel %vm3212_vm15, %v8305_v9, 0.0  ;;  %v3739_v18 = vmul.f32 %v8869_v61, %v8798_v27  ;;  %4566 = vrcp.f32 %v9255_v60  ;;  %11246 = vst [vmem:[#allocation13_spill] sm:$0xff] %v9303_v32 }
 0x317   :  { %11241 = vst [vmem:[#allocation17_spill] sm:$0xff] %v9267_v8  ;;  %v3336_v54 = vsel %vm3208_vm13, %v8394_v31, 0.0  ;;  %v3498_v20 = vadd.f32 %v3497_v29, %v3340_v52  ;;  %v9289_v43 = vpop.eup %4562  ;;  %4568 = vrcp.f32 %v9264_v10  ;;  %vm3209_vm1 = vcmp.eq.s32.totalorder %v8680_v47, %v9176_v0 }
 0x318   :  { %11244 = vst [vmem:[#allocation12_spill] sm:$0xff] %v9289_v43  ;;  %v3493_v9 = vadd.f32 %v3492_v35, %v3336_v54  ;;  %v3341_v39 = vsel %vm3213_vm7, %v8316_v51, 0.0  ;;  %v3665_v11 = vsub.f32 1.0, %v9223_v14  ;;  %v3724_v31 = vmul.f32 %v9203_v33, %v9155_v28 }
 0x319   :  { %4570 = vrcp.f32 %v9275_v16  ;;  %v3499_v12 = vadd.f32 %v3498_v20, %v3341_v39  ;;  %v3635_v24 = vsub.f32 1.0, %v9242_v19  ;;  %v3710_v1 = vsub.f32 1.0, %v3709_v41 }
 0x31a   :  { %3480 = vadd.xlane.f32.xlu2 %v3479_v55  ;;  %v3680_v62 = vsub.f32 1.0, %v3679_v7  ;;  %4572 = vrcp.f32 %v9283_v48  ;;  %v9307_v63 = vpop.eup %4564  ;;  %v3650_v15 = vsub.f32 1.0, %v3649_v36  ;;  %v3799_v51 = vmul.f32 %v9267_v8, %v9199_v30  ;;  %v9323_v36 = vld [vmem:[#allocation2 + $0xa0] sm:$0xff] }
 0x31b   :  { %11247 = vst [vmem:[#allocation27_spill] sm:$0xff] %v9307_v63  ;;  %4574 = vrcp.f32 %v9292_v4  ;;  %v3337_v14 = vsel %vm3209_vm1, %v8399_v58, 0.0  ;;  %v3755_v55 = vsub.f32 1.0, %v3754_v46  ;;  %v3740_v35 = vsub.f32 1.0, %v3739_v18  ;;  %v9335_v18 = vld [vmem:[#allocation2 + $0x98] sm:$0xff] }
 0x31c   :  { %4576 = vrcp.f32 %v9303_v32  ;;  %v3494_v19 = vadd.f32 %v3493_v9, %v3337_v14  ;;  %v9317_v56 = vpop.eup %4566  ;;  %v3725_v6 = vsub.f32 1.0, %v3724_v31  ;;  %v3784_v29 = vmul.f32 %v9289_v43, %v9217_v13  ;;  %11249 = vst [vmem:[#allocation14_spill] sm:$0xff] %v9323_v36  ;;  %v9346_v31 = vld [vmem:[#allocation2 + $0x90] sm:$0xff] }
 0x31d   :  { %3500 = vadd.xlane.f32.xlu0 %v3499_v12  ;;  %11248 = vst [vmem:[#allocation28_spill] sm:$0xff] %v9317_v56  ;;  %v9325_v47 = vpop.eup %4568  ;;  %v9328_v58 = vmul.f32 %v8723_v34, %v3665_v11  ;;  %v3636_v0 = vmul.f32 %v8758_v44, %v3635_v24  ;;  %vm3638_vm9 = vweird.f32 %v8694_v50  ;;  %v3769_v46 = vmul.f32 %v9307_v63, %v9246_v2 }
 0x31e   :  { %11250 = vst [vmem:[#allocation19_spill] sm:$0xff] %v9325_v47  ;;  %v9340_v20 = vmul.f32 %v8769_v53, %v3710_v1  ;;  %v9343_v9 = vmul.f32 %v8787_v23, %v3680_v62  ;;  %v3651_v39 = vmul.f32 %v8800_v26, %v3650_v15  ;;  %v3800_v11 = vsub.f32 1.0, %v3799_v51  ;;  %v9358_v1 = vld [vmem:[#allocation2 + $0xb8] sm:$0xff] }
 0x31f   :  { %11251 = vst [vmem:[#allocation20_spill] sm:$0xff] %v9335_v18  ;;  %v9337_v54 = vpop.eup %4570  ;;  %v9351_v24 = vmul.f32 %v8849_v3, %v3755_v55  ;;  %v9354_v14 = vmul.f32 %v8869_v61, %v3740_v35  ;;  %4578 = vrcp.f32 %v9323_v36  ;;  %v9363_v15 = vmul.f32 %v9203_v33, %v3725_v6  ;;  %v9367_v55 = vld [vmem:[#allocation2 + $0xb0] sm:$0xff]  ;;  %v9377_v6 = vld [vmem:[#allocation2 + $0xa8] sm:$0xff] }
 0x320   :  { %11252 = vst [vmem:[#allocation15_spill] sm:$0xff] %v9337_v54  ;;  %v9348_v12 = vpop.eup %4572  ;;  %v3785_v51 = vsub.f32 1.0, %v3784_v29  ;;  %4580 = vrcp.f32 %v9335_v18  ;;  %vm3653_vm2 = vweird.f32 %v8726_v17  ;;  %v3844_v41 = vmul.f32 %v9317_v56, %v9255_v60 }
 0x321   :  { %11253 = vst [vmem:[#allocation29_spill] sm:$0xff] %v9346_v31  ;;  %v9360_v62 = vpop.eup %4574  ;;  %v3829_v52 = vmul.f32 %v9325_v47, %v9264_v10  ;;  %4582 = vrcp.f32 %v9346_v31  ;;  %vm9381_vm8 = vcmp.eq.f32.partialorder %v3642_v22, 8.507059e+37  ;;  %v9386_v7 = vmul.f32 %v9267_v8, %v3800_v11  ;;  %v9409_v10 = vld [vmem:[#allocation2 + $0xc0] sm:$0xff] }
 0x322   :  { %3495 = vadd.xlane.f32.xlu2 %v3494_v19  ;;  %11254 = vst [vmem:[#allocation30_spill] sm:$0xff] %v9348_v12  ;;  %v9369_v35 = vpop.eup %4576  ;;  %v3770_v19 = vsub.f32 1.0, %v3769_v46  ;;  %v3814_v46 = vmul.f32 %v9337_v54, %v9275_v16  ;;  %4584 = vrcp.f32 %v9358_v1  ;;  %v3637_v40 = vadd.f32 %v8758_v44, %v3636_v0 }
 0x323   :  { %11255 = vst [vmem:[#allocation23_spill] sm:$0xff] %v9358_v1  ;;  %v3889_v45 = vmul.f32 %v9348_v12, %v9283_v48  ;;  %v3874_v22 = vmul.f32 %v9360_v62, %v9292_v4  ;;  %4586 = vrcp.f32 %v9367_v55  ;;  %vm3639_vm5 = vweird.f32 %v8758_v44  ;;  %v9486_v4 = vld [vmem:[#allocation2 + $0xf0] sm:$0xff] }
 0x324   :  { %11256 = vst [vmem:[#allocation21_spill] sm:$0xff] %v9360_v62  ;;  %v9403_v11 = vmul.f32 %v9289_v43, %v3785_v51  ;;  %v3859_v0 = vmul.f32 %v9369_v35, %v9303_v32  ;;  %4588 = vrcp.f32 %v9377_v6  ;;  %v9414_v8 = vmul.f32 %v9307_v63, %v3770_v19  ;;  %v9417_v51 = vld [vmem:[#allocation2 + $0xe8] sm:$0xff]  ;;  %vm9428_vm0 = vmor %vm3638_vm9, %vm3639_vm5 }
 0x325   :  { %11257 = vst [vmem:[#allocation24_spill] sm:$0xff] %v9367_v55  ;;  %v9411_v60 = vpop.eup %4578  ;;  %v3830_v27 = vsub.f32 1.0, %v3829_v52  ;;  %4590 = vrcp.f32 %v9391_v42  ;;  %v3815_v38 = vsub.f32 1.0, %v3814_v46  ;;  %vm3654_vm10 = vweird.f32 %v8800_v26  ;;  %v4670_v19 = vld [vmem:[#allocation2 + $0x8] sm:$0xff] }
 0x326   :  { %11258 = vst [vmem:[#allocation22_spill] sm:$0xff] %v9369_v35  ;;  %v9419_v43 = vpop.eup %4580  ;;  %4592 = vrcp.f32 %v9399_v5  ;;  %v3890_v16 = vsub.f32 1.0, %v3889_v45  ;;  %v3875_v46 = vsub.f32 1.0, %v3874_v22  ;;  %v3641_v50 = vsel %vm9428_vm0, %v8758_v44, %v3637_v40  ;;  %vm9474_vm4 = vmor %vm3653_vm2, %vm3654_vm10 }
 0x327   :  { %11259 = vst [vmem:[#allocation25_spill] sm:$0xff] %v9377_v6  ;;  %v9434_v52 = vpop.eup %4582  ;;  %4594 = vrcp.f32 %v9409_v10  ;;  %v3657_v40 = vand.u32 2147483647, %v4670_v19  ;;  %v9457_v63 = vmul.f32 %v9325_v47, %v3830_v27  ;;  %v11279_v29 = vand.u32 2147483648, %v8726_v17 }
 0x328   :  { %11262 = vst [vmem:[#allocation39_spill] sm:$0xff] %v9386_v7  ;;  %v3845_v7 = vsub.f32 1.0, %v3844_v41  ;;  %v3652_v41 = vadd.f32 %v8800_v26, %v3651_v39  ;;  %v9442_v13 = vpop.eup %4584  ;;  %4596 = vrcp.f32 %v9417_v51  ;;  %v9463_v39 = vld [vmem:[#allocation2 + $0xf8] sm:$0xff]  ;;  %v9484_v22 = vmul.f32 %v9360_v62, %v3875_v46 }
 0x329   :  { %11265 = vst [vmem:[#allocation32_spill] sm:$0xff] %v9403_v11  ;;  %v9422_v11 = vld [vmem:[#allocation2 + $0xe0] sm:$0xff]  ;;  %v9447_v37 = vpop.eup %4586  ;;  %v3919_v62 = vmul.f32 %v9419_v43, %v9335_v18  ;;  %v3904_v17 = vmul.f32 %v9434_v52, %v9346_v31  ;;  %vm3658_vm14 = vcmp.eq.f32.partialorder %v3657_v40, 8.507059e+37  ;;  %v9524_v40 = vadd.f32 %v8723_v34, %v9328_v58 }
 0x32a   :  { %11266 = vst [vmem:[#allocation26_spill] sm:$0xff] %v9409_v10  ;;  %v9450_v45 = vmul.f32 %v9317_v56, %v3845_v7  ;;  %4598 = vrcp.f32 %v9422_v11  ;;  %v9454_v44 = vpop.eup %4588  ;;  %v9468_v7 = vsel %vm9381_vm8, %v8751_v57, %v3641_v50  ;;  %v3656_v57 = vsel %vm9474_vm4, %v8800_v26, %v3652_v41  ;;  %v2958_v58 = vld [vmem:[#allocation3] sm:$0xff] }
 0x32b   :  { %11267 = vst [vmem:[#allocation41_spill] sm:$0xff] %v9414_v8  ;;  %v3860_v8 = vsub.f32 1.0, %v3859_v0  ;;  %v9460_v0 = vmul.f32 %v9337_v54, %v3815_v38  ;;  %4600 = vrcp.f32 %v9437_v21  ;;  %v9478_v27 = vpop.eup %4590  ;;  %v9481_v38 = vmul.f32 %v9348_v12, %v3890_v16 }
 0x32c   :  { %11268 = vst [vmem:[#allocation42_spill] sm:$0xff] %v9417_v51  ;;  %v3660_v50 = vor.u32 1.1754944e-38, %v11279_v29  ;;  %v9493_v48 = vpop.eup %4592  ;;  %v3934_v16 = vmul.f32 %v9411_v60, %v9323_v36  ;;  %4602 = vrcp.f32 %v9463_v39  ;;  %v3979_v26 = vmul.f32 %v9442_v13, %v9358_v1 }
 0x32d   :  { %11272 = vst [vmem:[#allocation33_spill] sm:$0xff] %v9450_v45  ;;  %v9496_v47 = vmul.f32 %v9369_v35, %v3860_v8  ;;  %4604 = vrcp.f32 %v9486_v4  ;;  %v3920_v31 = vsub.f32 1.0, %v3919_v62  ;;  %v3905_v12 = vsub.f32 1.0, %v3904_v17 }
 0x32e   :  { %11273 = vst [vmem:[#allocation36_spill] sm:$0xff] %v9457_v63  ;;  %v9514_v29 = vsel %vm3658_vm14, %v3660_v50, %v3656_v57  ;;  %v3935_v19 = vsub.f32 1.0, %v3934_v16  ;;  %v3964_v57 = vmul.f32 %v9447_v37, %v9367_v55  ;;  %v3949_v1 = vmul.f32 %v9454_v44, %v9377_v6 }
 0x32f   :  { %11274 = vst [vmem:[#allocation51_spill] sm:$0xff] %v9460_v0  ;;  %v4024_v18 = vmul.f32 %v9478_v27, %v9391_v42  ;;  %v4009_v62 = vmul.f32 %v9493_v48, %v9399_v5  ;;  %v9546_v42 = vld [vmem:[#allocation2 + $0x18] sm:$0xff]  ;;  %v3980_v36 = vsub.f32 1.0, %v3979_v26  ;;  %v9559_v45 = vmul.f32 %v9419_v43, %v3920_v31 }
 0x330   :  { %11277 = vst [vmem:[#allocation52_spill] sm:$0xff] %v9481_v38  ;;  %v4671_v38 = vld [vmem:[#allocation2 + $0x10] sm:$0xff]  ;;  %vm3683_vm11 = vweird.f32 %v9546_v42  ;;  %v9556_v56 = vmul.f32 %v9411_v60, %v3935_v19  ;;  %v3965_v32 = vsub.f32 1.0, %v3964_v57  ;;  %v9562_v26 = vmul.f32 %v9434_v52, %v3905_v12  ;;  %v9566_v19 = vld [vmem:[#allocation2 + $0x28] sm:$0xff]  ;;  %v9586_v57 = vld [vmem:[#allocation2 + $0x40] sm:$0xff] }
 0x331   :  { %11278 = vst [vmem:[#allocation37_spill] sm:$0xff] %v9484_v22  ;;  %v9503_v22 = vpop.eup %4594  ;;  %vm3668_vm6 = vweird.f32 %v4671_v38  ;;  %v3950_v55 = vsub.f32 1.0, %v3949_v1  ;;  %vm3713_vm3 = vweird.f32 %v9566_v19  ;;  %v9570_v31 = vmul.f32 %v9442_v13, %v3980_v36 }
 0x332   :  { %11280 = vst [vmem:[#allocation34_spill] sm:$0xff] %v9496_v47  ;;  %v9509_v8 = vpop.eup %4596  ;;  %v3994_v16 = vmul.f32 %v9503_v22, %v9409_v10  ;;  %v4025_v10 = vsub.f32 1.0, %v4024_v18  ;;  %vm3728_vm15 = vweird.f32 %v9155_v28  ;;  %vm3669_vm13 = vweird.f32 %v8723_v34 }
 0x333   :  { %11281 = vst [vmem:[#allocation43_spill] sm:$0xff] %v9514_v29  ;;  %v9516_v46 = vpop.eup %4598  ;;  %v4069_v17 = vmul.f32 %v9509_v8, %v9417_v51  ;;  %v4010_v51 = vsub.f32 1.0, %v4009_v62  ;;  %v3672_v36 = vand.u32 2147483647, %v4671_v38  ;;  %vm3758_vm7 = vweird.f32 %v9586_v57  ;;  %vm9618_vm9 = vmor %vm3668_vm6, %vm3669_vm13 }
 0x334   :  { %v9526_v41 = vpop.eup %4600  ;;  %v4054_v50 = vmul.f32 %v9516_v46, %v9422_v11  ;;  %v3346_v47 = vpop.xlane.xlu0 %3345  ;;  %v3995_v0 = vsub.f32 1.0, %v3994_v16  ;;  %vm3684_vm1 = vweird.f32 %v8787_v23  ;;  %vm3714_vm0 = vweird.f32 %v8769_v53 }
 0x335   :  { %v9544_v6 = vpop.eup %4602  ;;  %v4039_v35 = vmul.f32 %v9526_v41, %v9437_v21  ;;  %v3502_v54 = vadd.f32 %v3346_v47, %v2958_v58  ;;  %v4070_v29 = vsub.f32 1.0, %v4069_v17  ;;  %vm9628_vm2 = vcmp.eq.f32.partialorder %v3672_v36, 8.507059e+37  ;;  %vm9636_vm8 = vmor %vm3683_vm11, %vm3684_vm1  ;;  %v11368_v21 = vld [vmem:[#allocation29_spill] sm:$0xff] }
 0x336   :  { %v9553_v63 = vpop.eup %4604  ;;  %v4055_v61 = vsub.f32 1.0, %v4054_v50  ;;  %v9574_v12 = vmul.f32 %v9544_v6, %v9463_v39  ;;  %v2962_v39 = vld [vmem:[#allocation3 + $0x20] sm:$0xff]  ;;  %v9599_v50 = vmul.f32 %v9493_v48, %v4010_v51  ;;  %v9602_v58 = vmul.f32 %v9503_v22, %v3995_v0  ;;  %vm9670_vm11 = vmor %vm3713_vm3, %vm3714_vm0 }
 0x337   :  { %11282 = vst [vmem:[#allocation38_spill] sm:$0xff] %v9553_v63  ;;  %v4040_v47 = vsub.f32 1.0, %v4039_v35  ;;  %v9578_v18 = vmul.f32 %v9553_v63, %v9486_v4  ;;  %v9590_v35 = vmul.f32 %v9454_v44, %v3950_v55  ;;  %v9593_v4 = vmul.f32 %v9478_v27, %v4025_v10  ;;  %v2960_v10 = vld [vmem:[#allocation3 + $0x10] sm:$0xff] }
 0x338   :  { %3534 = vst.msk [vmem:[#allocation3] sm:$0xff] %vm31_vm12, %v3502_v54  ;;  %v9582_v54 = vmul.f32 %v9447_v37, %v3965_v32  ;;  %v3682_v32 = vadd.f32 %v8787_v23, %v9343_v9  ;;  %v9605_v62 = vmul.f32 %v9509_v8, %v4070_v29  ;;  %v9608_v55 = vmul.f32 %v9516_v46, %v4055_v61 }
 0x339   :  { %11283 = vst [vmem:[#allocation44_spill] sm:$0xff] %v9578_v18  ;;  %v9611_v16 = vmul.f32 %v9526_v41, %v4040_v47  ;;  %v11286_v0 = vand.u32 2147483648, %v8676_v25  ;;  %v3356_v5 = vpop.xlane.xlu1 %3355  ;;  %v3671_v47 = vsel %vm9618_vm9, %v8723_v34, %v9524_v40  ;;  %v3687_v25 = vand.u32 2147483647, %v9546_v42  ;;  %v2959_v42 = vld [vmem:[#allocation3 + $0x8] sm:$0xff] }
 0x33a   :  { %v3504_v34 = vadd.f32 %v3356_v5, %v2960_v10  ;;  %v3686_v40 = vsel %vm9636_vm8, %v8787_v23, %v3682_v32  ;;  %v3712_v36 = vadd.f32 %v8769_v53, %v9340_v20  ;;  %vm3773_vm10 = vweird.f32 %v9246_v2 }
 0x33b   :  { %v3675_v61 = vor.u32 1.1754944e-38, %v11286_v0  ;;  %v3717_v0 = vand.u32 2147483647, %v9566_v19  ;;  %v3727_v5 = vadd.f32 %v9203_v33, %v9363_v15  ;;  %vm3729_vm4 = vweird.f32 %v9203_v33 }
 0x33c   :  { %v3366_v1 = vpop.xlane.xlu0 %3365  ;;  %3536 = vst.msk [vmem:[#allocation3 + $0x10] sm:$0xff] %vm31_vm12, %v3504_v34  ;;  %v11291_v23 = vand.u32 2147483648, %v8712_v59  ;;  %v3732_v32 = vand.u32 2147483647, %v9155_v28  ;;  %vm3759_vm14 = vweird.f32 %v8849_v3  ;;  %vm3688_vm6 = vcmp.eq.f32.partialorder %v3687_v25, 8.507059e+37  ;;  %vm9686_vm3 = vmor %vm3728_vm15, %vm3729_vm4 }
 0x33d   :  { %v3506_v29 = vadd.f32 %v3366_v1, %v2962_v39  ;;  %v9641_v1 = vld [vmem:[#allocation2 + $0x38] sm:$0xff]  ;;  %v3676_v38 = vsel %vm9628_vm2, %v3675_v61, %v3671_v47  ;;  %v11294_v15 = vand.u32 2147483648, %v8700_v49  ;;  %vm3803_vm13 = vweird.f32 %v9199_v30  ;;  %v2963_v61 = vld [vmem:[#allocation3 + $0x28] sm:$0xff]  ;;  %vm9704_vm15 = vmor %vm3758_vm7, %vm3759_vm14 }
 0x33e   :  { %vm3743_vm5 = vweird.f32 %v9641_v1  ;;  %v3690_v20 = vor.u32 1.1754944e-38, %v11291_v23  ;;  %v3716_v17 = vsel %vm9670_vm11, %v8769_v53, %v3712_v36  ;;  %v3762_v49 = vand.u32 2147483647, %v9586_v57 }
 0x33f   :  { %v3569_v39 = vld [vmem:[#allocation3] sm:$0xff]  ;;  %3538 = vst.msk [vmem:[#allocation3 + $0x20] sm:$0xff] %vm31_vm12, %v3506_v29  ;;  %vm9691_vm1 = vcmp.eq.f32.partialorder %v3717_v0, 8.507059e+37  ;;  %v3731_v53 = vsel %vm9686_vm3, %v9203_v33, %v3727_v5  ;;  %v11299_v25 = vand.u32 2147483648, %v9155_v28  ;;  %vm3733_vm9 = vcmp.eq.f32.partialorder %v3732_v32, 8.507059e+37  ;;  %v11302_v33 = vld [vmem:[#allocation16_spill] sm:$0xff] }
 0x340   :  { %v3647_v51 = vmul.f32 %v9468_v7, %v3569_v39  ;;  %v3757_v7 = vadd.f32 %v8849_v3, %v9351_v24  ;;  %v3720_v39 = vor.u32 1.1754944e-38, %v11294_v15  ;;  %v9677_v34 = vsel %vm3688_vm6, %v3690_v20, %v3686_v40  ;;  %v11303_v0 = vld [vmem:[#allocation100_spill] sm:$0xff]  ;;  %v11305_v20 = vld [vmem:[#allocation41_spill] sm:$0xff]  ;;  %v11308_v15 = vld [vmem:[#allocation102_spill] sm:$0xff] }
 0x341   :  { %v3735_v40 = vor.u32 1.1754944e-38, %v11299_v25  ;;  %vm3744_vm2 = vweird.f32 %v11302_v33  ;;  %v11304_v5 = vand.u32 2147483648, %v11303_v0  ;;  %v3747_v23 = vand.u32 2147483647, %v9641_v1  ;;  %v11307_v32 = vld [vmem:[#allocation8_spill] sm:$0xff]  ;;  %v2961_v25 = vld [vmem:[#allocation3 + $0x18] sm:$0xff] }
 0x342   :  { %v4113_v10 = vadd.f32 1e-10, %v3647_v51  ;;  %v3761_v51 = vsel %vm9704_vm15, %v8849_v3, %v3757_v7  ;;  %vm3788_vm8 = vweird.f32 %v11307_v32  ;;  %vm3763_vm0 = vcmp.eq.f32.partialorder %v3762_v49, 8.507059e+37  ;;  %vm9733_vm4 = vmor %vm3743_vm5, %vm3744_vm2 }
 0x343   :  { %v3765_v57 = vor.u32 1.1754944e-38, %v11304_v5  ;;  %v9724_v7 = vsel %vm3733_vm9, %v3735_v40, %v3731_v53  ;;  %v3571_v19 = vld [vmem:[#allocation3 + $0x10] sm:$0xff]  ;;  %v11315_v40 = vld [vmem:[#allocation39_spill] sm:$0xff]  ;;  %v11317_v5 = vld [vmem:[#allocation18_spill] sm:$0xff]  ;;  %vm9756_vm11 = vcmp.eq.f32.partialorder %v3747_v23, 8.507059e+37 }
 0x344   :  { %4606 = vlog2.f32 %v4113_v10  ;;  %v11306_v10 = vld [vmem:[#allocation27_spill] sm:$0xff]  ;;  %v3677_v49 = vmul.f32 %v3676_v38, %v3571_v19  ;;  %vm3818_vm6 = vweird.f32 %v11317_v5 }
 0x345   :  { %v3351_v29 = vpop.xlane.xlu2 %3350  ;;  %vm3774_vm7 = vweird.f32 %v11306_v10  ;;  %v9727_v36 = vsel %vm3763_vm0, %v3765_v57, %v3761_v51  ;;  %v11316_v51 = vld [vmem:[#allocation17_spill] sm:$0xff] }
 0x346   :  { %v3503_v24 = vadd.f32 %v3351_v29, %v2959_v42  ;;  %v3742_v42 = vadd.f32 %v11302_v33, %v9354_v14  ;;  %v3371_v28 = vpop.xlane.xlu1 %3370  ;;  %v3772_v29 = vadd.f32 %v11306_v10, %v11305_v20  ;;  %v3573_v59 = vld [vmem:[#allocation3 + $0x20] sm:$0xff]  ;;  %v3721_v14 = vsel %vm9691_vm1, %v3720_v39, %v3716_v17  ;;  %vm9748_vm5 = vmor %vm3773_vm10, %vm3774_vm7 }
 0x347   :  { %v3507_v3 = vadd.f32 %v3371_v28, %v2963_v61  ;;  %v11311_v61 = vld [vmem:[#allocation101_spill] sm:$0xff]  ;;  %v3777_v17 = vand.u32 2147483647, %v9246_v2  ;;  %v3802_v28 = vadd.f32 %v11316_v51, %v11315_v40  ;;  %vm3804_vm14 = vweird.f32 %v11316_v51 }
 0x348   :  { %3535 = vst.msk [vmem:[#allocation3 + $0x8] sm:$0xff] %vm31_vm12, %v3503_v24  ;;  %v3707_v24 = vmul.f32 %v11308_v15, %v3573_v59  ;;  %v11312_v47 = vand.u32 2147483648, %v11311_v61  ;;  %v3746_v53 = vsel %vm9733_vm4, %v11302_v33, %v3742_v42  ;;  %v3776_v42 = vsel %vm9748_vm5, %v11306_v10, %v3772_v29  ;;  %vm9774_vm3 = vmor %vm3803_vm13, %vm3804_vm14  ;;  %v11326_v29 = vld [vmem:[#allocation12_spill] sm:$0xff] }
 0x349   :  { %3539 = vst.msk [vmem:[#allocation3 + $0x28] sm:$0xff] %vm31_vm12, %v3507_v3  ;;  %v11320_v59 = vand.u32 2147483648, %v9246_v2  ;;  %v4115_v19 = vadd.f32 1e-10, %v3677_v49  ;;  %v3807_v61 = vand.u32 2147483647, %v9199_v30  ;;  %vm3789_vm1 = vweird.f32 %v11326_v29 }
 0x34a   :  { %v3750_v39 = vor.u32 1.1754944e-38, %v11312_v47  ;;  %v4607_v38 = vpop.eup %4606  ;;  %v4117_v57 = vadd.f32 1e-10, %v3707_v24  ;;  %v2966_v24 = vld [vmem:[#allocation3 + $0x40] sm:$0xff]  ;;  %vm9766_vm10 = vcmp.eq.f32.partialorder %v3777_v17, 8.507059e+37  ;;  %v11325_v2 = vld [vmem:[#allocation32_spill] sm:$0xff]  ;;  %vm9810_vm2 = vmor %vm3788_vm8, %vm3789_vm1 }
 0x34b   :  { %v3780_v3 = vor.u32 1.1754944e-38, %v11320_v59  ;;  %v4146_v15 = vmul.f32 0.6931472, %v4607_v38  ;;  %v11327_v49 = vld [vmem:[#allocation9_spill] sm:$0xff]  ;;  %v11328_v17 = vld [vmem:[#allocation43_spill] sm:$0xff]  ;;  %v3806_v38 = vsel %vm9774_vm3, %v11316_v51, %v3802_v28  ;;  %vm3808_vm13 = vcmp.eq.f32.partialorder %v3807_v61, 8.507059e+37 }
 0x34c   :  { %4608 = vlog2.f32 %v4117_v57  ;;  %vm3848_vm15 = vweird.f32 %v11327_v49  ;;  %v9789_v59 = vsel %vm9756_vm11, %v3750_v39, %v3746_v53  ;;  %v11330_v39 = vld [vmem:[#allocation7_spill] sm:$0xff]  ;;  %v2964_v53 = vld [vmem:[#allocation3 + $0x30] sm:$0xff] }
 0x34d   :  { %v3361_v20 = vpop.xlane.xlu2 %3360  ;;  %v4209_v1 = vsub.f32 0.0, %v4146_v15  ;;  %4610 = vlog2.f32 %v4115_v19  ;;  %v3792_v15 = vand.u32 2147483647, %v11307_v32  ;;  %v9801_v28 = vsel %vm9766_vm10, %v3780_v3, %v3776_v42  ;;  %v11334_v3 = vld [vmem:[#allocation51_spill] sm:$0xff] }
 0x34e   :  { %v3505_v0 = vadd.f32 %v3361_v20, %v2961_v25  ;;  %v3787_v25 = vadd.f32 %v11326_v29, %v11325_v2  ;;  %v3386_v57 = vpop.xlane.xlu1 %3385  ;;  %v2965_v20 = vld [vmem:[#allocation3 + $0x38] sm:$0xff]  ;;  %v11329_v2 = vand.u32 2147483648, %v9199_v30  ;;  %vm3833_vm9 = vweird.f32 %v11330_v39  ;;  %v11335_v61 = vld [vmem:[#allocation15_spill] sm:$0xff] }
 0x34f   :  { %v3570_v47 = vld [vmem:[#allocation3 + $0x8] sm:$0xff]  ;;  %4241 = vst.msk [vmem:[%s10486_s2] sm:$0xff] %vm31_vm12, %v4209_v1  ;;  %v3510_v51 = vadd.f32 %v3386_v57, %v2966_v24  ;;  %v11333_v24 = vand.u32 2147483648, %v11307_v32  ;;  %v3817_v23 = vadd.f32 %v11335_v61, %v11334_v3  ;;  %vm3819_vm7 = vweird.f32 %v11335_v61  ;;  %v11352_v32 = vld [vmem:[#allocation34_spill] sm:$0xff] }
 0x350   :  { %v3662_v40 = vmul.f32 %v11328_v17, %v3570_v47  ;;  %3537 = vst.msk [vmem:[#allocation3 + $0x18] sm:$0xff] %vm31_vm12, %v3505_v0  ;;  %v3810_v9 = vor.u32 1.1754944e-38, %v11329_v2  ;;  %v3822_v47 = vand.u32 2147483647, %v11317_v5  ;;  %v3574_v30 = vld [vmem:[#allocation3 + $0x28] sm:$0xff]  ;;  %v3381_v33 = vpop.xlane.xlu0 %3380  ;;  %v3791_v17 = vsel %vm9810_vm2, %v11326_v29, %v3787_v25  ;;  %vm9839_vm5 = vmor %vm3818_vm6, %vm3819_vm7 }
 0x351   :  { %v3795_v42 = vor.u32 1.1754944e-38, %v11333_v24  ;;  %v3722_v1 = vmul.f32 %v3721_v14, %v3574_v30  ;;  %3542 = vst.msk [vmem:[#allocation3 + $0x40] sm:$0xff] %vm31_vm12, %v3510_v51  ;;  %vm3793_vm0 = vcmp.eq.f32.partialorder %v3792_v15, 8.507059e+37  ;;  %v11339_v2 = vand.u32 2147483648, %v11317_v5  ;;  %v11340_v14 = vld [vmem:[#allocation33_spill] sm:$0xff]  ;;  %v11341_v30 = vld [vmem:[#allocation28_spill] sm:$0xff] }
 0x352   :  { %v4114_v19 = vadd.f32 1e-10, %v3662_v40  ;;  %v9804_v0 = vsel %vm3808_vm13, %v3810_v9, %v3806_v38  ;;  %v3509_v9 = vadd.f32 %v3381_v33, %v2965_v20  ;;  %v4609_v40 = vpop.eup %4608  ;;  %v11336_v38 = vld [vmem:[#allocation13_spill] sm:$0xff]  ;;  %vm9824_vm4 = vcmp.eq.f32.partialorder %v3822_v47, 8.507059e+37  ;;  %v2969_v24 = vld [vmem:[#allocation3 + $0x58] sm:$0xff] }
 0x353   :  { %vm3863_vm8 = vweird.f32 %v11336_v38  ;;  %v9832_v51 = vadd.f32 %v11341_v30, %v11340_v14  ;;  %v4611_v20 = vpop.eup %4610  ;;  %v4154_v33 = vmul.f32 0.6931472, %v4609_v40  ;;  %v4118_v10 = vadd.f32 1e-10, %v3722_v1 }
 0x354   :  { %4612 = vlog2.f32 %v4114_v19  ;;  %v3825_v19 = vor.u32 1.1754944e-38, %v11339_v2  ;;  %3541 = vst.msk [vmem:[#allocation3 + $0x38] sm:$0xff] %vm31_vm12, %v3509_v9  ;;  %vm3849_vm14 = vweird.f32 %v11341_v30  ;;  %v4150_v15 = vmul.f32 0.6931472, %v4611_v20 }
 0x355   :  { %v3376_v57 = vpop.xlane.xlu2 %3375  ;;  %v9844_v3 = vsel %vm3793_vm0, %v3795_v42, %v3791_v17  ;;  %v3852_v1 = vand.u32 2147483647, %v11327_v49  ;;  %v4213_v9 = vsub.f32 0.0, %v4154_v33  ;;  %4614 = vlog2.f32 %v4118_v10  ;;  %v2968_v42 = vld [vmem:[#allocation3 + $0x50] sm:$0xff]  ;;  %vm9860_vm6 = vmor %vm3848_vm15, %vm3849_vm14  ;;  %v11349_v10 = vld [vmem:[#allocation10_spill] sm:$0xff] }
 0x356   :  { %v3508_v29 = vadd.f32 %v3376_v57, %v2964_v53  ;;  %v3821_v53 = vsel %vm9839_vm5, %v11335_v61, %v3817_v23  ;;  %v11344_v40 = vand.u32 2147483648, %v11327_v49  ;;  %v4211_v2 = vsub.f32 0.0, %v4150_v15  ;;  %v3401_v14 = vpop.xlane.xlu1 %3400  ;;  %v11347_v23 = vld [vmem:[#allocation36_spill] sm:$0xff] }
 0x357   :  { %v3572_v47 = vld [vmem:[#allocation3 + $0x18] sm:$0xff]  ;;  %v3837_v20 = vand.u32 2147483647, %v11330_v39  ;;  %vm3893_vm10 = vweird.f32 %v11349_v10  ;;  %4245 = vst.msk [vmem:[%s10486_s2 + $0x20] sm:$0xff] %vm31_vm12, %v4213_v9  ;;  %v9877_v25 = vsel %vm9824_vm4, %v3825_v19, %v3821_v53  ;;  %v3851_v15 = vsel %vm9860_vm6, %v11341_v30, %v9832_v51  ;;  %v11354_v30 = vld [vmem:[#allocation11_spill] sm:$0xff] }
 0x358   :  { %v3692_v5 = vmul.f32 %v9677_v34, %v3572_v47  ;;  %3540 = vst.msk [vmem:[#allocation3 + $0x30] sm:$0xff] %vm31_vm12, %v3508_v29  ;;  %v9854_v57 = vor.u32 1.1754944e-38, %v11344_v40  ;;  %v11348_v34 = vld [vmem:[#allocation19_spill] sm:$0xff]  ;;  %v3513_v29 = vadd.f32 %v3401_v14, %v2969_v24  ;;  %v3396_v9 = vpop.xlane.xlu0 %3395  ;;  %vm9887_vm3 = vcmp.eq.f32.partialorder %v3852_v1, 8.507059e+37  ;;  %v11353_v19 = vld [vmem:[#allocation22_spill] sm:$0xff] }
 0x359   :  { %v9866_v17 = vadd.f32 %v11348_v34, %v11347_v23  ;;  %vm3834_vm11 = vweird.f32 %v11348_v34  ;;  %4243 = vst.msk [vmem:[%s10486_s2 + $0x10] sm:$0xff] %vm31_vm12, %v4211_v2  ;;  %v3577_v40 = vld [vmem:[#allocation3 + $0x40] sm:$0xff]  ;;  %v2967_v23 = vld [vmem:[#allocation3 + $0x48] sm:$0xff]  ;;  %v9893_v53 = vadd.f32 %v11353_v19, %v11352_v32  ;;  %vm3864_vm1 = vweird.f32 %v11353_v19  ;;  %v11364_v1 = vld [vmem:[#allocation30_spill] sm:$0xff] }
 0x35a   :  { %v4613_v33 = vpop.eup %4612  ;;  %v4116_v49 = vadd.f32 1e-10, %v3692_v5  ;;  %vm3878_vm15 = vweird.f32 %v11354_v30  ;;  %v3767_v51 = vmul.f32 %v9727_v36, %v3577_v40  ;;  %3545 = vst.msk [vmem:[#allocation3 + $0x58] sm:$0xff] %vm31_vm12, %v3513_v29  ;;  %v3512_v5 = vadd.f32 %v3396_v9, %v2968_v42  ;;  %vm9903_vm13 = vmor %vm3833_vm9, %vm3834_vm11 }
 0x35b   :  { %v4148_v47 = vmul.f32 0.6931472, %v4613_v33  ;;  %v11357_v2 = vand.u32 2147483648, %v11330_v39  ;;  %v3576_v33 = vld [vmem:[#allocation3 + $0x38] sm:$0xff]  ;;  %v3836_v36 = vsel %vm9903_vm13, %v11348_v34, %v9866_v17  ;;  %vm9913_vm2 = vcmp.eq.f32.partialorder %v3837_v20, 8.507059e+37  ;;  %v4615_v29 = vpop.eup %4614  ;;  %vm9924_vm9 = vmor %vm3863_vm8, %vm3864_vm1 }
 0x35c   :  { %4616 = vlog2.f32 %v4116_v49  ;;  %v3867_v49 = vand.u32 2147483647, %v11336_v38  ;;  %v4121_v40 = vadd.f32 1e-10, %v3767_v51  ;;  %v3752_v9 = vmul.f32 %v9789_v59, %v3576_v33  ;;  %3544 = vst.msk [vmem:[#allocation3 + $0x50] sm:$0xff] %vm31_vm12, %v3512_v5  ;;  %v11363_v5 = vld [vmem:[#allocation52_spill] sm:$0xff] }
 0x35d   :  { %v3840_v14 = vor.u32 1.1754944e-38, %v11357_v2  ;;  %v4210_v61 = vsub.f32 0.0, %v4148_v47  ;;  %v3391_v32 = vpop.xlane.xlu2 %3390  ;;  %v11362_v34 = vand.u32 2147483648, %v11336_v38  ;;  %v4156_v59 = vmul.f32 0.6931472, %v4615_v29 }
 0x35e   :  { %v3511_v39 = vadd.f32 %v3391_v32, %v2967_v23  ;;  %v2972_v23 = vld [vmem:[#allocation3 + $0x70] sm:$0xff]  ;;  %v3866_v51 = vsel %vm9924_vm9, %v11353_v19, %v9893_v53  ;;  %v3892_v2 = vadd.f32 %v11364_v1, %v11363_v5  ;;  %vm3894_vm7 = vweird.f32 %v11364_v1  ;;  %v3416_v29 = vpop.xlane.xlu1 %3415 }
 0x35f   :  { %v3870_v17 = vor.u32 1.1754944e-38, %v11362_v34  ;;  %4242 = vst.msk [vmem:[%s10486_s2 + $0x8] sm:$0xff] %vm31_vm12, %v4210_v61  ;;  %v3575_v20 = vld [vmem:[#allocation3 + $0x30] sm:$0xff]  ;;  %4618 = vlog2.f32 %v4121_v40  ;;  %v4120_v33 = vadd.f32 1e-10, %v3752_v9  ;;  %v4214_v32 = vsub.f32 0.0, %v4156_v59  ;;  %vm9966_vm5 = vmor %vm3893_vm10, %vm3894_vm7 }
 0x360   :  { %v3737_v38 = vmul.f32 %v9724_v7, %v3575_v20  ;;  %3543 = vst.msk [vmem:[#allocation3 + $0x48] sm:$0xff] %vm31_vm12, %v3511_v39  ;;  %v3897_v61 = vand.u32 2147483647, %v11349_v10  ;;  %v2971_v34 = vld [vmem:[#allocation3 + $0x68] sm:$0xff]  ;;  %v11365_v63 = vand.u32 2147483648, %v11349_v10  ;;  %v11366_v19 = vld [vmem:[#allocation37_spill] sm:$0xff]  ;;  %vm3908_vm0 = vweird.f32 %v11368_v21 }
 0x361   :  { %v11367_v53 = vld [vmem:[#allocation21_spill] sm:$0xff]  ;;  %4620 = vlog2.f32 %v4120_v33  ;;  %v3516_v40 = vadd.f32 %v3416_v29, %v2972_v23  ;;  %v3882_v9 = vand.u32 2147483647, %v11354_v30  ;;  %4246 = vst.msk [vmem:[%s10486_s2 + $0x28] sm:$0xff] %vm31_vm12, %v4214_v32  ;;  %v2970_v59 = vld [vmem:[#allocation3 + $0x60] sm:$0xff]  ;;  %v3856_v20 = vsel %vm9887_vm3, %v9854_v57, %v3851_v15  ;;  %v11374_v29 = vld [vmem:[#allocation14_spill] sm:$0xff] }
 0x362   :  { %v3900_v47 = vor.u32 1.1754944e-38, %v11365_v63  ;;  %v3877_v18 = vadd.f32 %v11367_v53, %v11366_v19  ;;  %vm3879_vm8 = vweird.f32 %v11367_v53  ;;  %v4617_v5 = vpop.eup %4616  ;;  %v4119_v7 = vadd.f32 1e-10, %v3737_v38  ;;  %v3580_v63 = vld [vmem:[#allocation3 + $0x58] sm:$0xff]  ;;  %v3411_v19 = vpop.xlane.xlu0 %3410  ;;  %v11386_v10 = vld [vmem:[#allocation24_spill] sm:$0xff] }
 0x363   :  { %v4152_v39 = vmul.f32 0.6931472, %v4617_v5  ;;  %v9960_v38 = vsel %vm9913_vm2, %v3840_v14, %v3836_v36  ;;  %vm3868_vm4 = vcmp.eq.f32.partialorder %v3867_v49, 8.507059e+37  ;;  %v3812_v33 = vmul.f32 %v9804_v0, %v3580_v63  ;;  %3548 = vst.msk [vmem:[#allocation3 + $0x70] sm:$0xff] %vm31_vm12, %v3516_v40  ;;  %v3579_v14 = vld [vmem:[#allocation3 + $0x50] sm:$0xff]  ;;  %vm9981_vm6 = vmor %vm3878_vm15, %vm3879_vm8 }
 0x364   :  { %4622 = vlog2.f32 %v4119_v7  ;;  %v3515_v57 = vadd.f32 %v3411_v19, %v2971_v34  ;;  %v3896_v15 = vsel %vm9966_vm5, %v11364_v1, %v3892_v2  ;;  %v9975_v42 = vsel %vm3868_vm4, %v3870_v17, %v3866_v51  ;;  %v2975_v34 = vld [vmem:[#allocation3 + $0x88] sm:$0xff] }
 0x365   :  { %v4212_v24 = vsub.f32 0.0, %v4152_v39  ;;  %v3406_v36 = vpop.xlane.xlu2 %3405  ;;  %vm3898_vm14 = vcmp.eq.f32.partialorder %v3897_v61, 8.507059e+37  ;;  %v11373_v0 = vand.u32 2147483648, %v11354_v30  ;;  %v4619_v32 = vpop.eup %4618  ;;  %vm3938_vm11 = vweird.f32 %v11374_v29 }
 0x366   :  { %v4124_v1 = vadd.f32 1e-10, %v3812_v33  ;;  %v3797_v2 = vmul.f32 %v9844_v3, %v3579_v14  ;;  %v3514_v17 = vadd.f32 %v3406_v36, %v2970_v59  ;;  %3547 = vst.msk [vmem:[#allocation3 + $0x68] sm:$0xff] %vm31_vm12, %v3515_v57  ;;  %v3881_v51 = vsel %vm9981_vm6, %v11367_v53, %v3877_v18  ;;  %v11375_v18 = vld [vmem:[#allocation20_spill] sm:$0xff]  ;;  %v3431_v59 = vpop.xlane.xlu1 %3430  ;;  %v2973_v14 = vld [vmem:[#allocation3 + $0x78] sm:$0xff] }
 0x367   :  { %v3885_v49 = vor.u32 1.1754944e-38, %v11373_v0  ;;  %4244 = vst.msk [vmem:[%s10486_s2 + $0x18] sm:$0xff] %vm31_vm12, %v4212_v24  ;;  %v4162_v30 = vmul.f32 0.6931472, %v4619_v32  ;;  %v3578_v61 = vld [vmem:[#allocation3 + $0x48] sm:$0xff]  ;;  %v9997_v5 = vsel %vm3898_vm14, %v3900_v47, %v3896_v15  ;;  %vm3883_vm10 = vcmp.eq.f32.partialorder %v3882_v9, 8.507059e+37  ;;  %v4621_v7 = vpop.eup %4620 }
 0x368   :  { %v3907_v3 = vadd.f32 %v9434_v52, %v9562_v26  ;;  %v3782_v40 = vmul.f32 %v9801_v28, %v3578_v61  ;;  %4624 = vlog2.f32 %v4124_v1  ;;  %v4123_v39 = vadd.f32 1e-10, %v3797_v2  ;;  %3546 = vst.msk [vmem:[#allocation3 + $0x60] sm:$0xff] %vm31_vm12, %v3514_v17  ;;  %v2974_v47 = vld [vmem:[#allocation3 + $0x80] sm:$0xff] }
 0x369   :  { %vm3909_vm3 = vweird.f32 %v9434_v52  ;;  %vm3923_vm1 = vweird.f32 %v11375_v18  ;;  %v4217_v53 = vsub.f32 0.0, %v4162_v30  ;;  %v4160_v63 = vmul.f32 0.6931472, %v4621_v7 }
 0x36a   :  { %v10005_v19 = vsel %vm3883_vm10, %v3885_v49, %v3881_v51  ;;  %v3912_v9 = vand.u32 2147483647, %v11368_v21  ;;  %v4623_v26 = vpop.eup %4622  ;;  %v4122_v23 = vadd.f32 1e-10, %v3782_v40  ;;  %4626 = vlog2.f32 %v4123_v39  ;;  %v3583_v24 = vld [vmem:[#allocation3 + $0x70] sm:$0xff]  ;;  %v3426_v36 = vpop.xlane.xlu0 %3425  ;;  %vm10017_vm15 = vmor %vm3908_vm0, %vm3909_vm3 }
 0x36b   :  { %v3519_v28 = vadd.f32 %v3431_v59, %v2975_v34  ;;  %v3942_v33 = vand.u32 2147483647, %v11374_v29  ;;  %v4158_v57 = vmul.f32 0.6931472, %v4623_v26  ;;  %4249 = vst.msk [vmem:[%s10486_s2 + $0x40] sm:$0xff] %vm31_vm12, %v4217_v53  ;;  %v4216_v15 = vsub.f32 0.0, %v4160_v63 }
 0x36c   :  { %v3937_v0 = vadd.f32 %v9411_v60, %v9556_v56  ;;  %vm3939_vm13 = vweird.f32 %v9411_v60  ;;  %4628 = vlog2.f32 %v4122_v23  ;;  %v3857_v49 = vmul.f32 %v3856_v20, %v3583_v24  ;;  %v2978_v63 = vld [vmem:[#allocation3 + $0xa0] sm:$0xff]  ;;  %v2977_v24 = vld [vmem:[#allocation3 + $0x98] sm:$0xff] }
 0x36d   :  { %3551 = vst.msk [vmem:[#allocation3 + $0x88] sm:$0xff] %vm31_vm12, %v3519_v28  ;;  %v3518_v32 = vadd.f32 %v3426_v36, %v2974_v47  ;;  %v3911_v1 = vsel %vm10017_vm15, %v9434_v52, %v3907_v3  ;;  %v4215_v2 = vsub.f32 0.0, %v4158_v57  ;;  %v3582_v17 = vld [vmem:[#allocation3 + $0x68] sm:$0xff]  ;;  %v3421_v51 = vpop.xlane.xlu2 %3420  ;;  %vm3913_vm2 = vcmp.eq.f32.partialorder %v3912_v9, 8.507059e+37  ;;  %vm10049_vm9 = vmor %vm3938_vm11, %vm3939_vm13  ;;  %v11382_v23 = vld [vmem:[#allocation23_spill] sm:$0xff] }
 0x36e   :  { %4248 = vst.msk [vmem:[%s10486_s2 + $0x38] sm:$0xff] %vm31_vm12, %v4216_v15  ;;  %v11378_v56 = vand.u32 2147483648, %v11368_v21  ;;  %v11379_v20 = vand.u32 2147483648, %v11374_v29  ;;  %v4625_v34 = vpop.eup %4624  ;;  %v4127_v7 = vadd.f32 1e-10, %v3857_v49  ;;  %v3842_v40 = vmul.f32 %v9960_v38, %v3582_v17 }
 0x36f   :  { %v3517_v52 = vadd.f32 %v3421_v51, %v2973_v14  ;;  %3550 = vst.msk [vmem:[#allocation3 + $0x80] sm:$0xff] %vm31_vm12, %v3518_v32  ;;  %v3927_v3 = vand.u32 2147483647, %v11375_v18  ;;  %v4168_v39 = vmul.f32 0.6931472, %v4625_v34  ;;  %v3581_v21 = vld [vmem:[#allocation3 + $0x60] sm:$0xff]  ;;  %v10055_v59 = vadd.f32 %v9419_v43, %v9559_v45  ;;  %v3446_v15 = vpop.xlane.xlu1 %3445 }
 0x370   :  { %v3915_v30 = vor.u32 1.1754944e-38, %v11378_v56  ;;  %v3945_v61 = vor.u32 1.1754944e-38, %v11379_v20  ;;  %4247 = vst.msk [vmem:[%s10486_s2 + $0x30] sm:$0xff] %vm31_vm12, %v4215_v2  ;;  %vm3924_vm7 = vweird.f32 %v9419_v43  ;;  %v4627_v47 = vpop.eup %4626  ;;  %v3827_v9 = vmul.f32 %v9877_v25, %v3581_v21  ;;  %v11391_v32 = vld [vmem:[#allocation25_spill] sm:$0xff] }
 0x371   :  { %4630 = vlog2.f32 %v4127_v7  ;;  %v4126_v26 = vadd.f32 1e-10, %v3842_v40  ;;  %3549 = vst.msk [vmem:[#allocation3 + $0x78] sm:$0xff] %vm31_vm12, %v3517_v52  ;;  %v3941_v29 = vsel %vm10049_vm9, %v9411_v60, %v3937_v0  ;;  %vm3983_vm8 = vweird.f32 %v11382_v23  ;;  %vm10077_vm5 = vmor %vm3923_vm1, %vm3924_vm7  ;;  %v2976_v51 = vld [vmem:[#allocation3 + $0x90] sm:$0xff] }
 0x372   :  { %v10043_v53 = vsel %vm3913_vm2, %v3915_v30, %v3911_v1  ;;  %v4220_v28 = vsub.f32 0.0, %v4168_v39  ;;  %v4166_v57 = vmul.f32 0.6931472, %v4627_v47  ;;  %vm10064_vm0 = vcmp.eq.f32.partialorder %v3942_v33, 8.507059e+37  ;;  %v4629_v36 = vpop.eup %4628  ;;  %v3441_v56 = vpop.xlane.xlu0 %3440 }
 0x373   :  { %v11385_v25 = vand.u32 2147483648, %v11375_v18  ;;  %vm3968_vm4 = vweird.f32 %v11386_v10  ;;  %v4125_v49 = vadd.f32 1e-10, %v3827_v9  ;;  %4632 = vlog2.f32 %v4126_v26  ;;  %v2981_v9 = vld [vmem:[#allocation3 + $0xb8] sm:$0xff] }
 0x374   :  { %v3522_v60 = vadd.f32 %v3446_v15, %v2978_v63  ;;  %vm10081_vm14 = vcmp.eq.f32.partialorder %v3927_v3, 8.507059e+37  ;;  %vm3953_vm6 = vweird.f32 %v11391_v32  ;;  %v4164_v1 = vmul.f32 0.6931472, %v4629_v36  ;;  %4252 = vst.msk [vmem:[%s10486_s2 + $0x58] sm:$0xff] %vm31_vm12, %v4220_v28  ;;  %v3586_v17 = vld [vmem:[#allocation3 + $0x88] sm:$0xff] }
 0x375   :  { %v10070_v14 = vor.u32 1.1754944e-38, %v11385_v25  ;;  %v4219_v2 = vsub.f32 0.0, %v4166_v57  ;;  %v3946_v18 = vsel %vm10064_vm0, %v3945_v61, %v3941_v29  ;;  %v3926_v30 = vsel %vm10077_vm5, %v9419_v43, %v10055_v59  ;;  %v3436_v52 = vpop.xlane.xlu2 %3435 }
 0x376   :  { %4634 = vlog2.f32 %v4125_v49  ;;  %v3902_v20 = vmul.f32 %v9997_v5, %v3586_v17  ;;  %3554 = vst.msk [vmem:[#allocation3 + $0xa0] sm:$0xff] %vm31_vm12, %v3522_v60  ;;  %v3521_v34 = vadd.f32 %v3441_v56, %v2977_v24  ;;  %v3957_v7 = vand.u32 2147483647, %v11391_v32  ;;  %v3585_v61 = vld [vmem:[#allocation3 + $0x80] sm:$0xff]  ;;  %v2980_v60 = vld [vmem:[#allocation3 + $0xb0] sm:$0xff] }
 0x377   :  { %v4218_v40 = vsub.f32 0.0, %v4164_v1  ;;  %4251 = vst.msk [vmem:[%s10486_s2 + $0x50] sm:$0xff] %vm31_vm12, %v4219_v2  ;;  %vm3954_vm11 = vweird.f32 %v9454_v44  ;;  %v11392_v43 = vand.u32 2147483648, %v11391_v32  ;;  %v3987_v5 = vand.u32 2147483647, %v11382_v23  ;;  %v4631_v39 = vpop.eup %4630  ;;  %v3461_v36 = vpop.xlane.xlu1 %3460  ;;  %v2984_v49 = vld [vmem:[#allocation3 + $0xd0] sm:$0xff] }
 0x378   :  { %v4130_v21 = vadd.f32 1e-10, %v3902_v20  ;;  %v3887_v63 = vmul.f32 %v10005_v19, %v3585_v61  ;;  %v3520_v38 = vadd.f32 %v3436_v52, %v2976_v51  ;;  %3553 = vst.msk [vmem:[#allocation3 + $0x98] sm:$0xff] %vm31_vm12, %v3521_v34  ;;  %vm3984_vm10 = vweird.f32 %v9442_v13  ;;  %v3584_v47 = vld [vmem:[#allocation3 + $0x78] sm:$0xff]  ;;  %v2979_v34 = vld [vmem:[#allocation3 + $0xa8] sm:$0xff]  ;;  %vm10163_vm2 = vmor %vm3953_vm6, %vm3954_vm11 }
 0x379   :  { %v10106_v3 = vor.u32 1.1754944e-38, %v11392_v43  ;;  %4250 = vst.msk [vmem:[%s10486_s2 + $0x48] sm:$0xff] %vm31_vm12, %v4218_v40  ;;  %v4174_v59 = vmul.f32 0.6931472, %v4631_v39  ;;  %v3982_v26 = vadd.f32 %v9442_v13, %v9570_v31  ;;  %v11393_v29 = vand.u32 2147483648, %v11382_v23  ;;  %v4633_v19 = vpop.eup %4632  ;;  %vm10137_vm15 = vmor %vm3983_vm8, %vm3984_vm10 }
 0x37a   :  { %vm3969_vm3 = vweird.f32 %v9447_v37  ;;  %v3872_v57 = vmul.f32 %v9975_v42, %v3584_v47  ;;  %4636 = vlog2.f32 %v4130_v21  ;;  %v4129_v15 = vadd.f32 1e-10, %v3887_v63  ;;  %3552 = vst.msk [vmem:[#allocation3 + $0x90] sm:$0xff] %vm31_vm12, %v3520_v38  ;;  %v3456_v40 = vpop.xlane.xlu0 %3455 }
 0x37b   :  { %v3990_v28 = vor.u32 1.1754944e-38, %v11393_v29  ;;  %v3967_v45 = vadd.f32 %v9447_v37, %v9582_v54  ;;  %v4223_v24 = vsub.f32 0.0, %v4174_v59  ;;  %v4172_v25 = vmul.f32 0.6931472, %v4633_v19  ;;  %vm10155_vm13 = vmor %vm3968_vm4, %vm3969_vm3 }
 0x37c   :  { %v10127_v31 = vadd.f32 %v9454_v44, %v9590_v35  ;;  %vm10129_vm1 = vcmp.eq.f32.partialorder %v3987_v5, 8.507059e+37  ;;  %v4635_v42 = vpop.eup %4634  ;;  %v4128_v33 = vadd.f32 1e-10, %v3872_v57  ;;  %4638 = vlog2.f32 %v4129_v15  ;;  %v4676_v35 = vld [vmem:[#allocation2 + $0xb0] sm:$0xff] }
 0x37d   :  { %v3525_v1 = vadd.f32 %v3461_v36, %v2981_v9  ;;  %v3972_v2 = vand.u32 2147483647, %v4676_v35  ;;  %v4170_v17 = vmul.f32 0.6931472, %v4635_v42  ;;  %4255 = vst.msk [vmem:[%s10486_s2 + $0x70] sm:$0xff] %vm31_vm12, %v4223_v24  ;;  %v4222_v51 = vsub.f32 0.0, %v4172_v25  ;;  %v3451_v43 = vpop.xlane.xlu2 %3450 }
 0x37e   :  { %v3589_v56 = vld [vmem:[#allocation3 + $0xa0] sm:$0xff]  ;;  %v3931_v20 = vsel %vm10081_vm14, %v10070_v14, %v3926_v30  ;;  %v3986_v23 = vsel %vm10137_vm15, %v9442_v13, %v3982_v26  ;;  %4640 = vlog2.f32 %v4128_v33  ;;  %v3524_v13 = vadd.f32 %v3456_v40, %v2980_v60  ;;  %v10199_v57 = vld [vmem:[#allocation2 + $0xd0] sm:$0xff]  ;;  %v11405_v24 = vld [vmem:[#allocation26_spill] sm:$0xff] }
 0x37f   :  { %v3947_v52 = vmul.f32 %v3946_v18, %v3589_v56  ;;  %3557 = vst.msk [vmem:[#allocation3 + $0xb8] sm:$0xff] %vm31_vm12, %v3525_v1  ;;  %v3971_v0 = vsel %vm10155_vm13, %v9447_v37, %v3967_v45  ;;  %v4221_v30 = vsub.f32 0.0, %v4170_v17  ;;  %v3588_v18 = vld [vmem:[#allocation3 + $0x98] sm:$0xff]  ;;  %v3956_v5 = vsel %vm10163_vm2, %v9454_v44, %v10127_v31  ;;  %v10189_v9 = vld [vmem:[#allocation2 + $0xc0] sm:$0xff]  ;;  %v11407_v33 = vld [vmem:[#allocation40_spill] sm:$0xff]  ;;  %v3476_v17 = vpop.xlane.xlu1 %3475 }
 0x380   :  { %4254 = vst.msk [vmem:[%s10486_s2 + $0x68] sm:$0xff] %vm31_vm12, %v4222_v51  ;;  %v11402_v39 = vand.u32 2147483648, %v11386_v10  ;;  %vm3999_vm9 = vweird.f32 %v9503_v22  ;;  %v4637_v63 = vpop.eup %4636  ;;  %v3932_v38 = vmul.f32 %v3931_v20, %v3588_v18  ;;  %v3523_v59 = vadd.f32 %v3451_v43, %v2979_v34  ;;  %v2983_v51 = vld [vmem:[#allocation3 + $0xc8] sm:$0xff]  ;;  %v11409_v20 = vld [vmem:[#allocation31_spill] sm:$0xff]  ;;  %v10278_v14 = vld [vmem:[#allocation2 + $0xd8] sm:$0xff] }
 0x381   :  { %v4133_v37 = vadd.f32 1e-10, %v3947_v52  ;;  %vm10184_vm7 = vcmp.eq.f32.partialorder %v3957_v7, 8.507059e+37  ;;  %3556 = vst.msk [vmem:[#allocation3 + $0xb0] sm:$0xff] %vm31_vm12, %v3524_v13  ;;  %vm3973_vm8 = vcmp.eq.f32.partialorder %v3972_v2, 8.507059e+37  ;;  %vm3998_vm0 = vweird.f32 %v10189_v9  ;;  %v3587_v26 = vld [vmem:[#allocation3 + $0x90] sm:$0xff] }
 0x382   :  { %v3975_v21 = vor.u32 1.1754944e-38, %v11402_v39  ;;  %4253 = vst.msk [vmem:[%s10486_s2 + $0x60] sm:$0xff] %vm31_vm12, %v4221_v30  ;;  %v4180_v10 = vmul.f32 0.6931472, %v4637_v63  ;;  %v3991_v32 = vsel %vm10129_vm1, %v3990_v28, %v3986_v23  ;;  %v4002_v29 = vand.u32 2147483647, %v10189_v9  ;;  %v4639_v19 = vpop.eup %4638  ;;  %v3471_v30 = vpop.xlane.xlu0 %3470  ;;  %vm10272_vm1 = vmor %vm3998_vm0, %vm3999_vm9 }
 0x383   :  { %vm4028_vm4 = vweird.f32 %v10199_v57  ;;  %v3917_v15 = vmul.f32 %v10043_v53, %v3587_v26  ;;  %4642 = vlog2.f32 %v4133_v37  ;;  %v4132_v45 = vadd.f32 1e-10, %v3932_v38  ;;  %3555 = vst.msk [vmem:[#allocation3 + $0xa8] sm:$0xff] %vm31_vm12, %v3523_v59  ;;  %v10213_v2 = vld [vmem:[#allocation2 + $0xc8] sm:$0xff]  ;;  %v2982_v13 = vld [vmem:[#allocation3 + $0xc0] sm:$0xff] }
 0x384   :  { %v3976_v7 = vsel %vm3973_vm8, %v3975_v21, %v3971_v0  ;;  %v11406_v25 = vand.u32 2147483648, %v11405_v24  ;;  %v4226_v28 = vsub.f32 0.0, %v4180_v10  ;;  %v4178_v60 = vmul.f32 0.6931472, %v4639_v19  ;;  %v4641_v35 = vpop.eup %4640  ;;  %v10230_v39 = vld [vmem:[#allocation2 + $0xe8] sm:$0xff] }
 0x385   :  { %v4032_v42 = vand.u32 2147483647, %v10199_v57  ;;  %v11408_v1 = vand.u32 2147483648, %v11407_v33  ;;  %vm4013_vm5 = vweird.f32 %v10213_v2  ;;  %v4131_v53 = vadd.f32 1e-10, %v3917_v15  ;;  %v3466_v10 = vpop.xlane.xlu2 %3465  ;;  %v2987_v31 = vld [vmem:[#allocation3 + $0xe8] sm:$0xff] }
 0x386   :  { %v10206_v36 = vor.u32 1.1754944e-38, %v11406_v25  ;;  %4644 = vlog2.f32 %v4132_v45  ;;  %v4017_v56 = vand.u32 2147483647, %v10213_v2  ;;  %v11410_v34 = vand.u32 2147483648, %v11409_v20  ;;  %4258 = vst.msk [vmem:[%s10486_s2 + $0x88] sm:$0xff] %vm31_vm12, %v4226_v28  ;;  %v3592_v52 = vld [vmem:[#allocation3 + $0xb8] sm:$0xff] }
 0x387   :  { %v10211_v54 = vor.u32 1.1754944e-38, %v11408_v1  ;;  %v4176_v40 = vmul.f32 0.6931472, %v4641_v35  ;;  %v4225_v61 = vsub.f32 0.0, %v4178_v60  ;;  %v3528_v0 = vadd.f32 %v3476_v17, %v2984_v49  ;;  %v10263_v49 = vld [vmem:[#allocation2 + $0xe0] sm:$0xff]  ;;  %v3491_v17 = vpop.xlane.xlu1 %3490 }
 0x388   :  { %v10219_v23 = vor.u32 1.1754944e-38, %v11410_v34  ;;  %vm4029_vm14 = vweird.f32 %v9478_v27  ;;  %4646 = vlog2.f32 %v4131_v53  ;;  %v3992_v18 = vmul.f32 %v3991_v32, %v3592_v52  ;;  %v3591_v59 = vld [vmem:[#allocation3 + $0xb0] sm:$0xff] }
 0x389   :  { %vm10226_vm6 = vcmp.eq.f32.partialorder %v4002_v29, 8.507059e+37  ;;  %v4077_v21 = vand.u32 2147483647, %v10230_v39  ;;  %v11413_v63 = vand.u32 2147483648, %v9422_v11  ;;  %v4224_v38 = vsub.f32 0.0, %v4176_v40  ;;  %4257 = vst.msk [vmem:[%s10486_s2 + $0x80] sm:$0xff] %vm31_vm12, %v4225_v61  ;;  %v4643_v19 = vpop.eup %4642  ;;  %vm10290_vm13 = vmor %vm4028_vm4, %vm4029_vm14 }
 0x38a   :  { %v3997_v26 = vadd.f32 %v9503_v22, %v9602_v58  ;;  %vm10243_vm11 = vcmp.eq.f32.partialorder %v4032_v42, 8.507059e+37  ;;  %v3527_v29 = vadd.f32 %v3471_v30, %v2983_v51  ;;  %v4136_v11 = vadd.f32 1e-10, %v3992_v18  ;;  %3560 = vst.msk [vmem:[#allocation3 + $0xd0] sm:$0xff] %vm31_vm12, %v3528_v0  ;;  %v3590_v25 = vld [vmem:[#allocation3 + $0xa8] sm:$0xff]  ;;  %v2986_v51 = vld [vmem:[#allocation3 + $0xe0] sm:$0xff]  ;;  %v3486_v52 = vpop.xlane.xlu0 %3485 }
 0x38b   :  { %v10235_v37 = vor.u32 1.1754944e-38, %v11413_v63  ;;  %v3977_v15 = vmul.f32 %v3976_v7, %v3591_v59  ;;  %v3526_v45 = vadd.f32 %v3466_v10, %v2982_v13  ;;  %v4027_v24 = vadd.f32 %v9478_v27, %v9593_v4  ;;  %4256 = vst.msk [vmem:[%s10486_s2 + $0x78] sm:$0xff] %vm31_vm12, %v4224_v38  ;;  %v11427_v30 = vld [vmem:[#allocation42_spill] sm:$0xff] }
 0x38c   :  { %v4186_v58 = vmul.f32 0.6931472, %v4643_v19  ;;  %v3961_v7 = vsel %vm10184_vm7, %v10106_v3, %v3956_v5  ;;  %vm4014_vm10 = vweird.f32 %v9493_v48  ;;  %v4062_v4 = vand.u32 2147483647, %v10263_v49  ;;  %v4645_v28 = vpop.eup %4644  ;;  %3559 = vst.msk [vmem:[#allocation3 + $0xc8] sm:$0xff] %vm31_vm12, %v3527_v29 }
 0x38d   :  { %vm4073_vm3 = vweird.f32 %v10230_v39  ;;  %v3962_v60 = vmul.f32 %v3961_v7, %v3590_v25  ;;  %4648 = vlog2.f32 %v4136_v11  ;;  %v4135_v42 = vadd.f32 1e-10, %v3977_v15  ;;  %3558 = vst.msk [vmem:[#allocation3 + $0xc0] sm:$0xff] %vm31_vm12, %v3526_v45  ;;  %vm10311_vm9 = vmor %vm4013_vm5, %vm4014_vm10  ;;  %v10353_v11 = vld [vmem:[#allocation2 + $0xf8] sm:$0xff] }
 0x38e   :  { %v4012_v3 = vadd.f32 %v9493_v48, %v9599_v50  ;;  %vm4043_vm15 = vweird.f32 %v10278_v14  ;;  %v11418_v5 = vsub.f32 1.0, %v9574_v12  ;;  %v4229_v33 = vsub.f32 0.0, %v4186_v58  ;;  %v4647_v35 = vpop.eup %4646 }
 0x38f   :  { %v4184_v1 = vmul.f32 0.6931472, %v4645_v28  ;;  %v4047_v50 = vand.u32 2147483647, %v10278_v14  ;;  %vm4058_vm2 = vweird.f32 %v10263_v49  ;;  %v4134_v12 = vadd.f32 1e-10, %v3962_v60 }
 0x390   :  { %v10284_v47 = vmul.f32 %v9544_v6, %v11418_v5  ;;  %4650 = vlog2.f32 %v4135_v42  ;;  %v4001_v53 = vsel %vm10272_vm1, %v9503_v22, %v3997_v26  ;;  %v4031_v57 = vsel %vm10290_vm13, %v9478_v27, %v4027_v24  ;;  %4261 = vst.msk [vmem:[%s10486_s2 + $0xa0] sm:$0xff] %vm31_vm12, %v4229_v33  ;;  %v2985_v27 = vld [vmem:[#allocation3 + $0xd8] sm:$0xff]  ;;  %v2988_v33 = vld [vmem:[#allocation3 + $0xf0] sm:$0xff] }
 0x391   :  { %v4182_v20 = vmul.f32 0.6931472, %v4647_v35  ;;  %v4228_v34 = vsub.f32 0.0, %v4184_v1  ;;  %vm10317_vm7 = vcmp.eq.f32.partialorder %v4017_v56, 8.507059e+37  ;;  %v3531_v61 = vadd.f32 %v3491_v17, %v2987_v31  ;;  %v3595_v38 = vld [vmem:[#allocation3 + $0xd0] sm:$0xff]  ;;  %v11437_v1 = vld [vmem:[#allocation44_spill] sm:$0xff] }
 0x392   :  { %4652 = vlog2.f32 %v4134_v12  ;;  %v4016_v13 = vsel %vm10311_vm9, %v9493_v48, %v4012_v3  ;;  %vm10324_vm8 = vcmp.eq.f32.partialorder %v4077_v21, 8.507059e+37  ;;  %v11428_v18 = vand.u32 2147483648, %v11427_v30  ;;  %v3481_v21 = vpop.xlane.xlu2 %3480  ;;  %v11435_v3 = vld [vmem:[#allocation35_spill] sm:$0xff] }
 0x393   :  { %v4227_v2 = vsub.f32 0.0, %v4182_v20  ;;  %4260 = vst.msk [vmem:[%s10486_s2 + $0x98] sm:$0xff] %vm31_vm12, %v4228_v34  ;;  %v4006_v56 = vsel %vm10226_vm6, %v10206_v36, %v4001_v53  ;;  %v4036_v48 = vsel %vm10243_vm11, %v10211_v54, %v4031_v57  ;;  %v3530_v59 = vadd.f32 %v3486_v52, %v2986_v51  ;;  %v4649_v10 = vpop.eup %4648  ;;  %v3594_v45 = vld [vmem:[#allocation3 + $0xc8] sm:$0xff] }
 0x394   :  { %v4080_v63 = vor.u32 1.1754944e-38, %v11428_v18  ;;  %v4037_v26 = vmul.f32 %v4036_v48, %v3595_v38  ;;  %v3529_v29 = vadd.f32 %v3481_v21, %v2985_v27  ;;  %3563 = vst.msk [vmem:[#allocation3 + $0xe8] sm:$0xff] %vm31_vm12, %v3531_v61  ;;  %v4072_v19 = vadd.f32 %v9509_v8, %v9605_v62  ;;  %v3593_v43 = vld [vmem:[#allocation3 + $0xc0] sm:$0xff] }
 0x395   :  { %vm4074_vm0 = vweird.f32 %v9509_v8  ;;  %4259 = vst.msk [vmem:[%s10486_s2 + $0x90] sm:$0xff] %vm31_vm12, %v4227_v2  ;;  %v4192_v36 = vmul.f32 0.6931472, %v4649_v10  ;;  %v4021_v54 = vsel %vm10317_vm7, %v10219_v23, %v4016_v13  ;;  %vm4044_vm4 = vweird.f32 %v9526_v41 }
 0x396   :  { %vm4059_vm5 = vweird.f32 %v9516_v46  ;;  %v4651_v32 = vpop.eup %4650  ;;  %vm4103_vm14 = vweird.f32 %v10353_v11  ;;  %v4007_v62 = vmul.f32 %v4006_v56, %v3593_v43  ;;  %v4139_v15 = vadd.f32 1e-10, %v4037_v26  ;;  %3561 = vst.msk [vmem:[#allocation3 + $0xd8] sm:$0xff] %vm31_vm12, %v3529_v29  ;;  %vm10369_vm11 = vmor %vm4073_vm3, %vm4074_vm0  ;;  %v4684_v56 = vld [vmem:[#allocation2 + $0xf0] sm:$0xff] }
 0x397   :  { %v4042_v24 = vadd.f32 %v9526_v41, %v9611_v16  ;;  %v4057_v23 = vadd.f32 %v9516_v46, %v9608_v55  ;;  %v4232_v58 = vsub.f32 0.0, %v4192_v36  ;;  %v4190_v25 = vmul.f32 0.6931472, %v4651_v32  ;;  %3562 = vst.msk [vmem:[#allocation3 + $0xe0] sm:$0xff] %vm31_vm12, %v3530_v59  ;;  %v2989_v16 = vld [vmem:[#allocation3 + $0xf8] sm:$0xff]  ;;  %vm10378_vm10 = vmor %vm4043_vm15, %vm4044_vm4 }
 0x398   :  { %v4022_v7 = vmul.f32 %v4021_v54, %v3594_v45  ;;  %vm10361_vm6 = vcmp.eq.f32.partialorder %v4047_v50, 8.507059e+37  ;;  %v4653_v42 = vpop.eup %4652  ;;  %v4137_v55 = vadd.f32 1e-10, %v4007_v62  ;;  %4654 = vlog2.f32 %v4139_v15  ;;  %v11439_v50 = vld [vmem:[#allocation38_spill] sm:$0xff]  ;;  %vm10398_vm3 = vmor %vm4058_vm2, %vm4059_vm5 }
 0x399   :  { %v11436_v39 = vand.u32 2147483648, %v11435_v3  ;;  %v4076_v5 = vsel %vm10369_vm11, %v9509_v8, %v4072_v19  ;;  %v11438_v9 = vsub.f32 1.0, %v11437_v1  ;;  %v4188_v12 = vmul.f32 0.6931472, %v4653_v42  ;;  %4264 = vst.msk [vmem:[%s10486_s2 + $0xb8] sm:$0xff] %vm31_vm12, %v4232_v58  ;;  %v3501_v8 = vpop.xlane.xlu0 %3500 }
 0x39a   :  { %v4231_v14 = vsub.f32 0.0, %v4190_v25  ;;  %v4138_v53 = vadd.f32 1e-10, %v4022_v7  ;;  %4656 = vlog2.f32 %v4137_v55  ;;  %v4046_v17 = vsel %vm10378_vm10, %v9526_v41, %v4042_v24  ;;  %v3496_v41 = vpop.xlane.xlu2 %3495 }
 0x39b   :  { %v4050_v31 = vor.u32 1.1754944e-38, %v11436_v39  ;;  %v4086_v35 = vmul.f32 %v11439_v50, %v11438_v9  ;;  %v4061_v51 = vsel %vm10398_vm3, %v9516_v46, %v4057_v23  ;;  %v3533_v20 = vadd.f32 %v3501_v8, %v2989_v16  ;;  %v3598_v40 = vld [vmem:[#allocation3 + $0xe8] sm:$0xff] }
 0x39c   :  { %v4230_v34 = vsub.f32 0.0, %v4188_v12  ;;  %4263 = vst.msk [vmem:[%s10486_s2 + $0xb0] sm:$0xff] %vm31_vm12, %v4231_v14  ;;  %4658 = vlog2.f32 %v4138_v53  ;;  %v4081_v22 = vsel %vm10324_vm8, %v4080_v63, %v4076_v5  ;;  %vm4063_vm1 = vcmp.eq.f32.partialorder %v4062_v4, 8.507059e+37 }
 0x39d   :  { %v4082_v27 = vmul.f32 %v4081_v22, %v3598_v40  ;;  %v3532_v61 = vadd.f32 %v3496_v41, %v2988_v33  ;;  %3565 = vst.msk [vmem:[#allocation3 + $0xf8] sm:$0xff] %vm31_vm12, %v3533_v20  ;;  %v4102_v46 = vadd.f32 %v9544_v6, %v10284_v47  ;;  %vm4104_vm15 = vweird.f32 %v9544_v6  ;;  %v3596_v13 = vld [vmem:[#allocation3 + $0xd8] sm:$0xff] }
 0x39e   :  { %v4109_v52 = vand.u32 2147483648, %v10353_v11  ;;  %4262 = vst.msk [vmem:[%s10486_s2 + $0xa8] sm:$0xff] %vm31_vm12, %v4230_v34  ;;  %v4051_v49 = vsel %vm10361_vm6, %v4050_v31, %v4046_v17  ;;  %v4066_v4 = vsel %vm4063_vm1, %v10235_v37, %v4061_v51  ;;  %v4107_v0 = vand.u32 2147483647, %v10353_v11  ;;  %v4655_v30 = vpop.eup %4654  ;;  %v3597_v63 = vld [vmem:[#allocation3 + $0xe0] sm:$0xff]  ;;  %vm10436_vm9 = vmor %vm4103_vm14, %vm4104_vm15 }
 0x39f   :  { %v4052_v18 = vmul.f32 %v4051_v49, %v3596_v13  ;;  %v4142_v47 = vadd.f32 1e-10, %v4082_v27  ;;  %3564 = vst.msk [vmem:[#allocation3 + $0xf0] sm:$0xff] %vm31_vm12, %v3532_v61  ;;  %v4087_v2 = vadd.f32 %v11439_v50, %v4086_v35  ;;  %vm4089_vm13 = vweird.f32 %v11439_v50 }
 0x3a0   :  { %vm4088_vm2 = vweird.f32 %v4684_v56  ;;  %v4094_v38 = vand.u32 2147483648, %v4684_v56  ;;  %v4198_v48 = vmul.f32 0.6931472, %v4655_v30  ;;  %v4067_v21 = vmul.f32 %v4066_v4, %v3597_v63  ;;  %v4657_v59 = vpop.eup %4656 }
 0x3a1   :  { %v4140_v10 = vadd.f32 1e-10, %v4052_v18  ;;  %4660 = vlog2.f32 %v4142_v47  ;;  %v4092_v26 = vand.u32 2147483647, %v4684_v56  ;;  %v4106_v29 = vsel %vm10436_vm9, %v9544_v6, %v4102_v46  ;;  %vm10445_vm7 = vmor %vm4088_vm2, %vm4089_vm13 }
 0x3a2   :  { %v4659_v19 = vpop.eup %4658  ;;  %v4194_v36 = vmul.f32 0.6931472, %v4657_v59  ;;  %v4235_v43 = vsub.f32 0.0, %v4198_v48  ;;  %v4141_v54 = vadd.f32 1e-10, %v4067_v21  ;;  %v4110_v11 = vor.u32 1.1754944e-38, %v4109_v52 }
 0x3a3   :  { %v4196_v62 = vmul.f32 0.6931472, %v4659_v19  ;;  %4662 = vlog2.f32 %v4140_v10  ;;  %v4091_v15 = vsel %vm10445_vm7, %v11439_v50, %v4087_v2  ;;  %vm4108_vm8 = vcmp.eq.f32.partialorder %v4107_v0, 8.507059e+37 }
 0x3a4   :  { %v4233_v45 = vsub.f32 0.0, %v4194_v36  ;;  %4267 = vst.msk [vmem:[%s10486_s2 + $0xd0] sm:$0xff] %vm31_vm12, %v4235_v43  ;;  %4664 = vlog2.f32 %v4141_v54  ;;  %v4095_v6 = vor.u32 1.1754944e-38, %v4094_v38  ;;  %v3600_v24 = vld [vmem:[#allocation3 + $0xf8] sm:$0xff]  ;;  %v4111_v23 = vsel %vm4108_vm8, %v4110_v11, %v4106_v29 }
 0x3a5   :  { %v4234_v58 = vsub.f32 0.0, %v4196_v62  ;;  %vm4093_vm0 = vcmp.eq.f32.partialorder %v4092_v26, 8.507059e+37  ;;  %v4112_v25 = vmul.f32 %v4111_v23, %v3600_v24 }
 0x3a6   :  { %4265 = vst.msk [vmem:[%s10486_s2 + $0xc0] sm:$0xff] %vm31_vm12, %v4233_v45  ;;  %v3599_v7 = vld [vmem:[#allocation3 + $0xf0] sm:$0xff]  ;;  %v4096_v28 = vsel %vm4093_vm0, %v4095_v6, %v4091_v15 }
 0x3a7   :  { %v4661_v60 = vpop.eup %4660  ;;  %4266 = vst.msk [vmem:[%s10486_s2 + $0xc8] sm:$0xff] %vm31_vm12, %v4234_v58  ;;  %v4097_v16 = vmul.f32 %v4096_v28, %v3599_v7  ;;  %v4144_v42 = vadd.f32 1e-10, %v4112_v25 }
 0x3a8   :  { %v4204_v55 = vmul.f32 0.6931472, %v4661_v60 }
 0x3a9   :  { %v4663_v44 = vpop.eup %4662  ;;  %v4143_v3 = vadd.f32 1e-10, %v4097_v16  ;;  %4666 = vlog2.f32 %v4144_v42 }
 0x3aa   :  { %v4665_v39 = vpop.eup %4664  ;;  %v4200_v31 = vmul.f32 0.6931472, %v4663_v44  ;;  %v4238_v5 = vsub.f32 0.0, %v4204_v55 }
 0x3ab   :  { %v4202_v33 = vmul.f32 0.6931472, %v4665_v39  ;;  %4668 = vlog2.f32 %v4143_v3 }
 0x3ac   :  { %v4236_v1 = vsub.f32 0.0, %v4200_v31  ;;  %4270 = vst.msk [vmem:[%s10486_s2 + $0xe8] sm:$0xff] %vm31_vm12, %v4238_v5 }
 0x3ad   :  { %v4237_v9 = vsub.f32 0.0, %v4202_v33 }
 0x3ae   :  { %4268 = vst.msk [vmem:[%s10486_s2 + $0xd8] sm:$0xff] %vm31_vm12, %v4236_v1 }
 0x3af   :  { %v4667_v50 = vpop.eup %4666  ;;  %4269 = vst.msk [vmem:[%s10486_s2 + $0xe0] sm:$0xff] %vm31_vm12, %v4237_v9 }
 0x3b0   :  { %v4208_v35 = vmul.f32 0.6931472, %v4667_v50 }
 0x3b1   :  { %v4669_v12 = vpop.eup %4668 }
 0x3b2   :  { %v4206_v14 = vmul.f32 0.6931472, %v4669_v12  ;;  %v4240_v53 = vsub.f32 0.0, %v4208_v35 }
 0x3b4   :  { %v4239_v57 = vsub.f32 0.0, %v4206_v14  ;;  %4272 = vst.msk [vmem:[%s10486_s2 + $0xf8] sm:$0xff] %vm31_vm12, %v4240_v53 }
 0x3b6   :  { %4271 = vst.msk [vmem:[%s10486_s2 + $0xf0] sm:$0xff] %vm31_vm12, %v4239_v57 }
 0x3b7   :  { %4277 = vsyncpa [#allocation5], 1 }

</bundles_post_ra>
